<compile_context>
chip_gen: v7x
topology: tpu7x:2x2x1
jax: 0.10.0
libtpu: 0.0.40
codegen_flags: <defaults>
</compile_context>

<pallas_src>
import math

import jax
import jax.numpy as jnp
from jax.experimental import pallas as pl
from jax.experimental.pallas import tpu as pltpu


def _round_up(x, m):
    return ((x + m - 1) // m) * m


# ----------------------------------------------------------------------------
# In-kernel building block: conv3x3(pad1) + folded BN + ReLU + 2x2 maxpool
# ----------------------------------------------------------------------------
def _conv_bn_relu_pool(a_ref, p_ref, w_ref, s_ref, b_ref, H, W, Cin):
    """a_ref : (H*W + 2*(W+1), Cin) f32 scratch; rows [W+1, W+1+H*W) hold the
               activation in (h, w) raster order, the rest is zero padding.
       p_ref : (H*W, Kpad) f32 scratch for im2col patches (Kpad >= 9*Cin).
       w_ref : (Kpad, Cout) bf16 conv weight, rows ordered (ky, kx, cin).
       s_ref, b_ref : (1, Cout) f32 folded BN scale / bias (incl. conv bias).
       Returns pooled activation (H//2 * W//2, Cout) f32, rows in raster order.
    """
    HW = H * W
    PAD = W + 1
    Ho, Wo = H // 2, W // 2
    Po = Ho * Wo
    lw = int(math.log2(W))
    lwo = int(math.log2(Wo))

    used = 9 * Cin
    Kpad = p_ref.shape[1]
    if Kpad > used:  # zero the padded K tail once (layer 1: 27 -> 32)
        p_ref[:, used:] = jnp.zeros((HW, Kpad - used), jnp.float32)

    # ---- in-kernel im2col: 9 shifted static slices + iota edge masks ----
    ridx = jax.lax.broadcasted_iota(jnp.int32, (HW, Cin), 0)
    hh = ridx >> lw
    ww = ridx & (W - 1)
    for ky in range(3):
        for kx in range(3):
            dy, dx = ky - 1, kx - 1
            start = PAD + dy * W + dx
            slab = a_ref[start:start + HW, :]
            valid = ((hh + dy >= 0) & (hh + dy < H) &
                     (ww + dx >= 0) & (ww + dx < W))
            t = ky * 3 + kx
            p_ref[:, t * Cin:(t + 1) * Cin] = jnp.where(valid, slab, 0.0)

    # ---- single MXU matmul over all H*W output pixels (bf16 in, f32 acc) ----
    patches = p_ref[...]
    conv = jnp.dot(patches.astype(jnp.bfloat16), w_ref[...],
                   preferred_element_type=jnp.float32)
    y = jnp.maximum(conv * s_ref[...] + b_ref[...], 0.0)        # (HW, Cout) f32

    # ---- 2x2 maxpool: four one-hot selection matmuls (compaction on MXU) ----
    oi = jax.lax.broadcasted_iota(jnp.int32, (Po, HW), 0)
    oj = jax.lax.broadcasted_iota(jnp.int32, (Po, HW), 1)
    oh = oi >> lwo
    ow = oi & (Wo - 1)
    pooled = None
    for ph in range(2):
        for pw in range(2):
            tgt = (2 * oh + ph) * W + (2 * ow + pw)
            sel = jnp.where(oj == tgt, 1.0, 0.0).astype(jnp.float32)
            cand = jnp.dot(sel, y, preferred_element_type=jnp.float32)
            pooled = cand if pooled is None else jnp.maximum(pooled, cand)
    return pooled


# ----------------------------------------------------------------------------
# Fused whole-network kernel (one grid step == one sample)
# ----------------------------------------------------------------------------
def _build_kernel(layer_cfgs):
    n_layers = len(layer_cfgs)

    def kernel(*refs):
        i = 0
        x_ref = refs[i]; i += 1
        conv_refs = []
        for _ in range(n_layers):
            conv_refs.append(refs[i:i + 3]); i += 3
        fw1, fb1, fw2, fb2, fw3, fb3 = refs[i:i + 6]; i += 6
        out_ref = refs[i]; i += 1
        a_refs = refs[i:i + n_layers]; i += n_layers
        p_refs = refs[i:i + n_layers]; i += n_layers
        flat_ref = refs[i]

        act = x_ref[0]                                  # (H0*W0, Cin0) f32
        for li, (H, W, Cin, _Cout) in enumerate(layer_cfgs):
            a_ref, p_ref = a_refs[li], p_refs[li]
            w_ref, s_ref, b_ref = conv_refs[li]
            PAD = W + 1
            a_ref[...] = jnp.zeros_like(a_ref)          # zero spatial padding
            a_ref[PAD:PAD + H * W, :] = act
            act = _conv_bn_relu_pool(a_ref, p_ref, w_ref, s_ref, b_ref, H, W, Cin)

        # ---- flatten in NHWC (h, w, c) order; FC1 rows use the same order ----
        rows, c_last = act.shape
        for r in range(rows):
            flat_ref[:, r * c_last:(r + 1) * c_last] = act[r:r + 1, :]
        fv = flat_ref[...]                              # (1, fc_in) f32

        # ---- classifier: Linear -> ReLU -> (Dropout=id, eval) -> Linear -> ReLU -> Linear
        h1 = jnp.maximum(
            jnp.dot(fv.astype(jnp.bfloat16), fw1[...],
                    preferred_element_type=jnp.float32) + fb1[...], 0.0)
        h2 = jnp.maximum(
            jnp.dot(h1.astype(jnp.bfloat16), fw2[...],
                    preferred_element_type=jnp.float32) + fb2[...], 0.0)
        logits = jnp.dot(h2.astype(jnp.bfloat16), fw3[...],
                         preferred_element_type=jnp.float32) + fb3[...]
        out_ref[0] = logits

    return kernel


# ----------------------------------------------------------------------------
# Wrapper: single pallas_call for the whole forward pass
# ----------------------------------------------------------------------------
def cnn_forward(x_nchw, convs, fcs, layer_cfgs, n_cls):
    N, Cin, H, W = x_nchw.shape
    # one-time input layout prep: NCHW -> NHWC -> (N, H*W, C)
    x_seq = jnp.transpose(x_nchw, (0, 2, 3, 1)).reshape(N, H * W, Cin)
    fc_in = fcs[0][0].shape[0]

    kernel = _build_kernel(layer_cfgs)

    inputs = [x_seq]
    in_specs = [pl.BlockSpec((1, H * W, Cin), lambda n: (n, 0, 0))]
    for (w2d, scale, bias) in convs:
        for arr in (w2d, scale, bias):
            inputs.append(arr)
            in_specs.append(pl.BlockSpec(arr.shape, lambda n: (0, 0)))
    for (w, b) in fcs:
        for arr in (w, b):
            inputs.append(arr)
            in_specs.append(pl.BlockSpec(arr.shape, lambda n: (0, 0)))

    scratch_shapes = []
    for (Hl, Wl, Cil, _Col) in layer_cfgs:               # padded activation stage
        scratch_shapes.append(
            pltpu.VMEM((Hl * Wl + 2 * (Wl + 1), Cil), jnp.float32))
    for (Hl, Wl, Cil, _Col) in layer_cfgs:               # im2col patches
        scratch_shapes.append(
            pltpu.VMEM((Hl * Wl, _round_up(9 * Cil, 8)), jnp.float32))
    scratch_shapes.append(pltpu.VMEM((1, fc_in), jnp.float32))   # flatten buffer

    out = pl.pallas_call(
        kernel,
        out_shape=jax.ShapeDtypeStruct((N, 1, n_cls), jnp.float32),
        grid=(N,),
        in_specs=in_specs,
        out_specs=pl.BlockSpec((1, 1, n_cls), lambda n: (n, 0, 0)),
        scratch_shapes=scratch_shapes,
        compiler_params=pltpu.CompilerParams(
            dimension_semantics=("parallel",)),          # v7x: 2 TCs over batch
    )(*inputs)
    return out[:, 0, :]


# ----------------------------------------------------------------------------
# Parameter setup (deterministic, in-script).  FC1 rows are in (h, w, c) order;
# porting real PyTorch weights would require permuting them from (c, h, w).
# ----------------------------------------------------------------------------
def init_params(key, in_ch=3, n_cls=10, img_size=16):
    n_convs = int(math.log2(img_size)) - 1
    eps = 1e-5
    convs, layer_cfgs = [], []
    ch, out_ch, side = in_ch, 16, img_size
    for _ in range(n_convs):
        key, kw, kb = jax.random.split(key, 3)
        w = jax.random.normal(kw, (out_ch, ch, 3, 3), jnp.float32) / math.sqrt(9 * ch)
        b = jax.random.normal(kb, (out_ch,), jnp.float32) * 0.01
        gamma = jnp.ones((out_ch,), jnp.float32)
        beta = jnp.zeros((out_ch,), jnp.float32)
        running_mean = jnp.zeros((out_ch,), jnp.float32)
        running_var = jnp.ones((out_ch,), jnp.float32)
        scale = gamma / jnp.sqrt(running_var + eps)           # fold BN (eval)
        bias = beta + (b - running_mean) * scale              # fold conv bias too
        w2d = jnp.transpose(w, (2, 3, 1, 0)).reshape(9 * ch, out_ch)  # (ky,kx,cin) x Cout
        kpad = _round_up(9 * ch, 8)
        if kpad > 9 * ch:                                     # pad K (27 -> 32)
            w2d = jnp.concatenate(
                [w2d, jnp.zeros((kpad - 9 * ch, out_ch), jnp.float32)], axis=0)
        convs.append((w2d.astype(jnp.bfloat16),
                      scale.reshape(1, -1), bias.reshape(1, -1)))
        layer_cfgs.append((side, side, ch, out_ch))
        side //= 2
        ch, out_ch = out_ch, out_ch * 2
    fc_in = 2 * 2 * ch
    fcs = []
    for din, dout in [(fc_in, 512), (512, 128), (128, n_cls)]:
        key, kw, kb = jax.random.split(key, 3)
        w = jax.random.normal(kw, (din, dout), jnp.float32) / math.sqrt(din)
        b = jax.random.normal(kb, (1, dout), jnp.float32) * 0.01
        fcs.append((w.astype(jnp.bfloat16), b))
    return convs, fcs, layer_cfgs


# ----------------------------------------------------------------------------
# Pure-JAX reference (same bf16-rounded weights, f32 activations)
# ----------------------------------------------------------------------------
def reference_forward(x_nchw, convs, fcs, layer_cfgs):
    x = jnp.transpose(x_nchw, (0, 2, 3, 1)).astype(jnp.float32)
    for (w2d, scale, bias), (H, W, Cin, Cout) in zip(convs, layer_cfgs):
        wf = w2d.astype(jnp.float32)[: 9 * Cin].reshape(3, 3, Cin, Cout)
        xp = jnp.pad(x, ((0, 0), (1, 1), (1, 1), (0, 0)))
        y = jnp.zeros((x.shape[0], H, W, Cout), jnp.float32)
        for ky in range(3):
            for kx in range(3):
                y = y + jnp.einsum("nhwc,cd->nhwd",
                                   xp[:, ky:ky + H, kx:kx + W, :], wf[ky, kx])
        y = jnp.maximum(y * scale.reshape(1, 1, 1, -1)
                        + bias.reshape(1, 1, 1, -1), 0.0)
        x = y.reshape(x.shape[0], H // 2, 2, W // 2, 2, Cout).max(axis=(2, 4))
    flat = x.reshape(x.shape[0], -1)                     # (h, w, c) order
    (w1, b1), (w2, b2), (w3, b3) = fcs
    h = jnp.maximum(flat @ w1.astype(jnp.float32) + b1, 0.0)
    h = jnp.maximum(h @ w2.astype(jnp.float32) + b2, 0.0)
    return h @ w3.astype(jnp.float32) + b3


if __name__ == "__main__":
    IN_CH, N_CLS, IMG, BATCH = 3, 10, 16, 2

    key = jax.random.PRNGKey(0)
    key, kx, kp = jax.random.split(key, 3)
    x = jax.random.normal(kx, (BATCH, IN_CH, IMG, IMG), jnp.float32)

    convs, fcs, layer_cfgs = init_params(kp, in_ch=IN_CH, n_cls=N_CLS, img_size=IMG)

    fwd = jax.jit(lambda xx, cc, ff: cnn_forward(xx, cc, ff, layer_cfgs, N_CLS))
    out = jax.block_until_ready(fwd(x, convs, fcs))

    assert out.shape == (BATCH, N_CLS), out.shape
    assert bool(jnp.all(jnp.isfinite(out)))

    ref = reference_forward(x, convs, fcs, layer_cfgs)
    max_err = float(jnp.max(jnp.abs(out - ref)))
    assert max_err < 0.25, f"kernel vs reference mismatch: {max_err}"
    print("KERNEL_OK")
</pallas_src>

<mosaic_0001>
module attributes {stable_mosaic.version = 11 : i64} {
  func.func @kernel(%arg0: i32, %arg1: memref<1x256x3xf32, #tpu.memory_space<vmem>>, %arg2: memref<32x16xbf16, #tpu.memory_space<vmem>>, %arg3: memref<1x16xf32, #tpu.memory_space<vmem>>, %arg4: memref<1x16xf32, #tpu.memory_space<vmem>>, %arg5: memref<144x32xbf16, #tpu.memory_space<vmem>>, %arg6: memref<1x32xf32, #tpu.memory_space<vmem>>, %arg7: memref<1x32xf32, #tpu.memory_space<vmem>>, %arg8: memref<288x64xbf16, #tpu.memory_space<vmem>>, %arg9: memref<1x64xf32, #tpu.memory_space<vmem>>, %arg10: memref<1x64xf32, #tpu.memory_space<vmem>>, %arg11: memref<256x512xbf16, #tpu.memory_space<vmem>>, %arg12: memref<1x512xf32, #tpu.memory_space<vmem>>, %arg13: memref<512x128xbf16, #tpu.memory_space<vmem>>, %arg14: memref<1x128xf32, #tpu.memory_space<vmem>>, %arg15: memref<128x10xbf16, #tpu.memory_space<vmem>>, %arg16: memref<1x10xf32, #tpu.memory_space<vmem>>, %arg17: memref<1x1x10xf32, #tpu.memory_space<vmem>>, %arg18: memref<290x3xf32, #tpu.memory_space<vmem>>, %arg19: memref<82x16xf32, #tpu.memory_space<vmem>>, %arg20: memref<26x32xf32, #tpu.memory_space<vmem>>, %arg21: memref<256x32xf32, #tpu.memory_space<vmem>>, %arg22: memref<64x144xf32, #tpu.memory_space<vmem>>, %arg23: memref<16x288xf32, #tpu.memory_space<vmem>>, %arg24: memref<1x256xf32, #tpu.memory_space<vmem>>) attributes {dimension_semantics = [#tpu.dimension_semantics<parallel>], iteration_bounds = array<i64: 2>, scalar_prefetch = 0 : i64, scratch_operands = 7 : i64, tpu.core_type = #tpu.core_type<tc>, window_params = [{transform_indices = @transform_0, window_bounds = array<i64: 1, 256, 3>}, {pipeline_mode = #tpu.pipeline_mode<synchronous>, transform_indices = @transform_1, window_bounds = array<i64: 32, 16>}, {pipeline_mode = #tpu.pipeline_mode<synchronous>, transform_indices = @transform_2, window_bounds = array<i64: 1, 16>}, {pipeline_mode = #tpu.pipeline_mode<synchronous>, transform_indices = @transform_3, window_bounds = array<i64: 1, 16>}, {pipeline_mode = #tpu.pipeline_mode<synchronous>, transform_indices = @transform_4, window_bounds = array<i64: 144, 32>}, {pipeline_mode = #tpu.pipeline_mode<synchronous>, transform_indices = @transform_5, window_bounds = array<i64: 1, 32>}, {pipeline_mode = #tpu.pipeline_mode<synchronous>, transform_indices = @transform_6, window_bounds = array<i64: 1, 32>}, {pipeline_mode = #tpu.pipeline_mode<synchronous>, transform_indices = @transform_7, window_bounds = array<i64: 288, 64>}, {pipeline_mode = #tpu.pipeline_mode<synchronous>, transform_indices = @transform_8, window_bounds = array<i64: 1, 64>}, {pipeline_mode = #tpu.pipeline_mode<synchronous>, transform_indices = @transform_9, window_bounds = array<i64: 1, 64>}, {pipeline_mode = #tpu.pipeline_mode<synchronous>, transform_indices = @transform_10, window_bounds = array<i64: 256, 512>}, {pipeline_mode = #tpu.pipeline_mode<synchronous>, transform_indices = @transform_11, window_bounds = array<i64: 1, 512>}, {pipeline_mode = #tpu.pipeline_mode<synchronous>, transform_indices = @transform_12, window_bounds = array<i64: 512, 128>}, {pipeline_mode = #tpu.pipeline_mode<synchronous>, transform_indices = @transform_13, window_bounds = array<i64: 1, 128>}, {pipeline_mode = #tpu.pipeline_mode<synchronous>, transform_indices = @transform_14, window_bounds = array<i64: 128, 10>}, {pipeline_mode = #tpu.pipeline_mode<synchronous>, transform_indices = @transform_15, window_bounds = array<i64: 1, 10>}, {transform_indices = @transform_16, window_bounds = array<i64: 1, 1, 10>}]} {
    %c0 = arith.constant 0 : index
    %c0_0 = arith.constant 0 : index
    %c0_1 = arith.constant 0 : index
    %0 = vector.load %arg1[%c0, %c0_0, %c0_1] : memref<1x256x3xf32, #tpu.memory_space<vmem>>, vector<1x256x3xf32>
    %1 = vector.shape_cast %0 : vector<1x256x3xf32> to vector<256x3xf32>
    %cst = arith.constant 0.000000e+00 : f32
    %2 = vector.broadcast %cst : f32 to vector<290x3xf32>
    %c0_2 = arith.constant 0 : index
    %c0_3 = arith.constant 0 : index
    %3 = vector.load %arg18[%c0_2, %c0_3] : memref<290x3xf32, #tpu.memory_space<vmem>>, vector<290x3xf32>
    tpu.vector_store %arg18[%c0_2, %c0_3], %2 {strides = array<i32>} : memref<290x3xf32, #tpu.memory_space<vmem>>, vector<290x3xf32>,
    %c17 = arith.constant 17 : index
    %c0_4 = arith.constant 0 : index
    %4 = vector.load %arg18[%c17, %c0_4] : memref<290x3xf32, #tpu.memory_space<vmem>>, vector<256x3xf32>
    tpu.vector_store %arg18[%c17, %c0_4], %1 {strides = array<i32>} : memref<290x3xf32, #tpu.memory_space<vmem>>, vector<256x3xf32>,
    %cst_5 = arith.constant 0.000000e+00 : f32
    %5 = vector.broadcast %cst_5 : f32 to vector<256x5xf32>
    %c0_6 = arith.constant 0 : index
    %c27 = arith.constant 27 : index
    %6 = vector.load %arg21[%c0_6, %c27] : memref<256x32xf32, #tpu.memory_space<vmem>>, vector<256x5xf32>
    tpu.vector_store %arg21[%c0_6, %c27], %5 {strides = array<i32>} : memref<256x32xf32, #tpu.memory_space<vmem>>, vector<256x5xf32>,
    %7 = tpu.iota {dimensions = array<i32: 0>} : vector<256x3xi32>
    %c4_i32 = arith.constant 4 : i32
    %8 = vector.broadcast %c4_i32 : i32 to vector<256x3xi32>
    %9 = arith.shrsi %7, %8 : vector<256x3xi32>
    %c15_i32 = arith.constant 15 : i32
    %10 = vector.broadcast %c15_i32 : i32 to vector<256x3xi32>
    %11 = arith.andi %7, %10 : vector<256x3xi32>
    %c0_7 = arith.constant 0 : index
    %c0_8 = arith.constant 0 : index
    %12 = vector.load %arg18[%c0_7, %c0_8] : memref<290x3xf32, #tpu.memory_space<vmem>>, vector<256x3xf32>
    %c-1_i32 = arith.constant -1 : i32
    %13 = vector.broadcast %c-1_i32 : i32 to vector<256x3xi32>
    %14 = arith.addi %9, %13 : vector<256x3xi32>
    %c0_i32 = arith.constant 0 : i32
    %15 = vector.broadcast %c0_i32 : i32 to vector<256x3xi32>
    %16 = arith.cmpi sge, %14, %15 : vector<256x3xi32>
    %c-1_i32_9 = arith.constant -1 : i32
    %17 = vector.broadcast %c-1_i32_9 : i32 to vector<256x3xi32>
    %18 = arith.addi %9, %17 : vector<256x3xi32>
    %c16_i32 = arith.constant 16 : i32
    %19 = vector.broadcast %c16_i32 : i32 to vector<256x3xi32>
    %20 = arith.cmpi slt, %18, %19 : vector<256x3xi32>
    %21 = arith.andi %16, %20 : vector<256x3xi1>
    %c-1_i32_10 = arith.constant -1 : i32
    %22 = vector.broadcast %c-1_i32_10 : i32 to vector<256x3xi32>
    %23 = arith.addi %11, %22 : vector<256x3xi32>
    %c0_i32_11 = arith.constant 0 : i32
    %24 = vector.broadcast %c0_i32_11 : i32 to vector<256x3xi32>
    %25 = arith.cmpi sge, %23, %24 : vector<256x3xi32>
    %26 = arith.andi %21, %25 : vector<256x3xi1>
    %c-1_i32_12 = arith.constant -1 : i32
    %27 = vector.broadcast %c-1_i32_12 : i32 to vector<256x3xi32>
    %28 = arith.addi %11, %27 : vector<256x3xi32>
    %c16_i32_13 = arith.constant 16 : i32
    %29 = vector.broadcast %c16_i32_13 : i32 to vector<256x3xi32>
    %30 = arith.cmpi slt, %28, %29 : vector<256x3xi32>
    %31 = arith.andi %26, %30 : vector<256x3xi1>
    %cst_14 = arith.constant 0.000000e+00 : f32
    %32 = vector.broadcast %cst_14 : f32 to vector<256x3xf32>
    %33 = arith.select %31, %12, %32 : vector<256x3xi1>, vector<256x3xf32>
    %c0_15 = arith.constant 0 : index
    %c0_16 = arith.constant 0 : index
    %34 = vector.load %arg21[%c0_15, %c0_16] : memref<256x32xf32, #tpu.memory_space<vmem>>, vector<256x3xf32>
    tpu.vector_store %arg21[%c0_15, %c0_16], %33 {strides = array<i32>} : memref<256x32xf32, #tpu.memory_space<vmem>>, vector<256x3xf32>,
    %c1 = arith.constant 1 : index
    %c0_17 = arith.constant 0 : index
    %35 = vector.load %arg18[%c1, %c0_17] : memref<290x3xf32, #tpu.memory_space<vmem>>, vector<256x3xf32>
    %c-1_i32_18 = arith.constant -1 : i32
    %36 = vector.broadcast %c-1_i32_18 : i32 to vector<256x3xi32>
    %37 = arith.addi %9, %36 : vector<256x3xi32>
    %c0_i32_19 = arith.constant 0 : i32
    %38 = vector.broadcast %c0_i32_19 : i32 to vector<256x3xi32>
    %39 = arith.cmpi sge, %37, %38 : vector<256x3xi32>
    %c-1_i32_20 = arith.constant -1 : i32
    %40 = vector.broadcast %c-1_i32_20 : i32 to vector<256x3xi32>
    %41 = arith.addi %9, %40 : vector<256x3xi32>
    %c16_i32_21 = arith.constant 16 : i32
    %42 = vector.broadcast %c16_i32_21 : i32 to vector<256x3xi32>
    %43 = arith.cmpi slt, %41, %42 : vector<256x3xi32>
    %44 = arith.andi %39, %43 : vector<256x3xi1>
    %c0_i32_22 = arith.constant 0 : i32
    %45 = vector.broadcast %c0_i32_22 : i32 to vector<256x3xi32>
    %46 = arith.addi %11, %45 : vector<256x3xi32>
    %c0_i32_23 = arith.constant 0 : i32
    %47 = vector.broadcast %c0_i32_23 : i32 to vector<256x3xi32>
    %48 = arith.cmpi sge, %46, %47 : vector<256x3xi32>
    %49 = arith.andi %44, %48 : vector<256x3xi1>
    %c0_i32_24 = arith.constant 0 : i32
    %50 = vector.broadcast %c0_i32_24 : i32 to vector<256x3xi32>
    %51 = arith.addi %11, %50 : vector<256x3xi32>
    %c16_i32_25 = arith.constant 16 : i32
    %52 = vector.broadcast %c16_i32_25 : i32 to vector<256x3xi32>
    %53 = arith.cmpi slt, %51, %52 : vector<256x3xi32>
    %54 = arith.andi %49, %53 : vector<256x3xi1>
    %cst_26 = arith.constant 0.000000e+00 : f32
    %55 = vector.broadcast %cst_26 : f32 to vector<256x3xf32>
    %56 = arith.select %54, %35, %55 : vector<256x3xi1>, vector<256x3xf32>
    %c0_27 = arith.constant 0 : index
    %c3 = arith.constant 3 : index
    %57 = vector.load %arg21[%c0_27, %c3] : memref<256x32xf32, #tpu.memory_space<vmem>>, vector<256x3xf32>
    tpu.vector_store %arg21[%c0_27, %c3], %56 {strides = array<i32>} : memref<256x32xf32, #tpu.memory_space<vmem>>, vector<256x3xf32>,
    %c2 = arith.constant 2 : index
    %c0_28 = arith.constant 0 : index
    %58 = vector.load %arg18[%c2, %c0_28] : memref<290x3xf32, #tpu.memory_space<vmem>>, vector<256x3xf32>
    %c-1_i32_29 = arith.constant -1 : i32
    %59 = vector.broadcast %c-1_i32_29 : i32 to vector<256x3xi32>
    %60 = arith.addi %9, %59 : vector<256x3xi32>
    %c0_i32_30 = arith.constant 0 : i32
    %61 = vector.broadcast %c0_i32_30 : i32 to vector<256x3xi32>
    %62 = arith.cmpi sge, %60, %61 : vector<256x3xi32>
    %c-1_i32_31 = arith.constant -1 : i32
    %63 = vector.broadcast %c-1_i32_31 : i32 to vector<256x3xi32>
    %64 = arith.addi %9, %63 : vector<256x3xi32>
    %c16_i32_32 = arith.constant 16 : i32
    %65 = vector.broadcast %c16_i32_32 : i32 to vector<256x3xi32>
    %66 = arith.cmpi slt, %64, %65 : vector<256x3xi32>
    %67 = arith.andi %62, %66 : vector<256x3xi1>
    %c1_i32 = arith.constant 1 : i32
    %68 = vector.broadcast %c1_i32 : i32 to vector<256x3xi32>
    %69 = arith.addi %11, %68 : vector<256x3xi32>
    %c0_i32_33 = arith.constant 0 : i32
    %70 = vector.broadcast %c0_i32_33 : i32 to vector<256x3xi32>
    %71 = arith.cmpi sge, %69, %70 : vector<256x3xi32>
    %72 = arith.andi %67, %71 : vector<256x3xi1>
    %c1_i32_34 = arith.constant 1 : i32
    %73 = vector.broadcast %c1_i32_34 : i32 to vector<256x3xi32>
    %74 = arith.addi %11, %73 : vector<256x3xi32>
    %c16_i32_35 = arith.constant 16 : i32
    %75 = vector.broadcast %c16_i32_35 : i32 to vector<256x3xi32>
    %76 = arith.cmpi slt, %74, %75 : vector<256x3xi32>
    %77 = arith.andi %72, %76 : vector<256x3xi1>
    %cst_36 = arith.constant 0.000000e+00 : f32
    %78 = vector.broadcast %cst_36 : f32 to vector<256x3xf32>
    %79 = arith.select %77, %58, %78 : vector<256x3xi1>, vector<256x3xf32>
    %c0_37 = arith.constant 0 : index
    %c6 = arith.constant 6 : index
    %80 = vector.load %arg21[%c0_37, %c6] : memref<256x32xf32, #tpu.memory_space<vmem>>, vector<256x3xf32>
    tpu.vector_store %arg21[%c0_37, %c6], %79 {strides = array<i32>} : memref<256x32xf32, #tpu.memory_space<vmem>>, vector<256x3xf32>,
    %c16 = arith.constant 16 : index
    %c0_38 = arith.constant 0 : index
    %81 = vector.load %arg18[%c16, %c0_38] : memref<290x3xf32, #tpu.memory_space<vmem>>, vector<256x3xf32>
    %c0_i32_39 = arith.constant 0 : i32
    %82 = vector.broadcast %c0_i32_39 : i32 to vector<256x3xi32>
    %83 = arith.addi %9, %82 : vector<256x3xi32>
    %c0_i32_40 = arith.constant 0 : i32
    %84 = vector.broadcast %c0_i32_40 : i32 to vector<256x3xi32>
    %85 = arith.cmpi sge, %83, %84 : vector<256x3xi32>
    %c0_i32_41 = arith.constant 0 : i32
    %86 = vector.broadcast %c0_i32_41 : i32 to vector<256x3xi32>
    %87 = arith.addi %9, %86 : vector<256x3xi32>
    %c16_i32_42 = arith.constant 16 : i32
    %88 = vector.broadcast %c16_i32_42 : i32 to vector<256x3xi32>
    %89 = arith.cmpi slt, %87, %88 : vector<256x3xi32>
    %90 = arith.andi %85, %89 : vector<256x3xi1>
    %c-1_i32_43 = arith.constant -1 : i32
    %91 = vector.broadcast %c-1_i32_43 : i32 to vector<256x3xi32>
    %92 = arith.addi %11, %91 : vector<256x3xi32>
    %c0_i32_44 = arith.constant 0 : i32
    %93 = vector.broadcast %c0_i32_44 : i32 to vector<256x3xi32>
    %94 = arith.cmpi sge, %92, %93 : vector<256x3xi32>
    %95 = arith.andi %90, %94 : vector<256x3xi1>
    %c-1_i32_45 = arith.constant -1 : i32
    %96 = vector.broadcast %c-1_i32_45 : i32 to vector<256x3xi32>
    %97 = arith.addi %11, %96 : vector<256x3xi32>
    %c16_i32_46 = arith.constant 16 : i32
    %98 = vector.broadcast %c16_i32_46 : i32 to vector<256x3xi32>
    %99 = arith.cmpi slt, %97, %98 : vector<256x3xi32>
    %100 = arith.andi %95, %99 : vector<256x3xi1>
    %cst_47 = arith.constant 0.000000e+00 : f32
    %101 = vector.broadcast %cst_47 : f32 to vector<256x3xf32>
    %102 = arith.select %100, %81, %101 : vector<256x3xi1>, vector<256x3xf32>
    %c0_48 = arith.constant 0 : index
    %c9 = arith.constant 9 : index
    %103 = vector.load %arg21[%c0_48, %c9] : memref<256x32xf32, #tpu.memory_space<vmem>>, vector<256x3xf32>
    tpu.vector_store %arg21[%c0_48, %c9], %102 {strides = array<i32>} : memref<256x32xf32, #tpu.memory_space<vmem>>, vector<256x3xf32>,
    %c17_49 = arith.constant 17 : index
    %c0_50 = arith.constant 0 : index
    %104 = vector.load %arg18[%c17_49, %c0_50] : memref<290x3xf32, #tpu.memory_space<vmem>>, vector<256x3xf32>
    %c0_i32_51 = arith.constant 0 : i32
    %105 = vector.broadcast %c0_i32_51 : i32 to vector<256x3xi32>
    %106 = arith.addi %9, %105 : vector<256x3xi32>
    %c0_i32_52 = arith.constant 0 : i32
    %107 = vector.broadcast %c0_i32_52 : i32 to vector<256x3xi32>
    %108 = arith.cmpi sge, %106, %107 : vector<256x3xi32>
    %c0_i32_53 = arith.constant 0 : i32
    %109 = vector.broadcast %c0_i32_53 : i32 to vector<256x3xi32>
    %110 = arith.addi %9, %109 : vector<256x3xi32>
    %c16_i32_54 = arith.constant 16 : i32
    %111 = vector.broadcast %c16_i32_54 : i32 to vector<256x3xi32>
    %112 = arith.cmpi slt, %110, %111 : vector<256x3xi32>
    %113 = arith.andi %108, %112 : vector<256x3xi1>
    %c0_i32_55 = arith.constant 0 : i32
    %114 = vector.broadcast %c0_i32_55 : i32 to vector<256x3xi32>
    %115 = arith.addi %11, %114 : vector<256x3xi32>
    %c0_i32_56 = arith.constant 0 : i32
    %116 = vector.broadcast %c0_i32_56 : i32 to vector<256x3xi32>
    %117 = arith.cmpi sge, %115, %116 : vector<256x3xi32>
    %118 = arith.andi %113, %117 : vector<256x3xi1>
    %c0_i32_57 = arith.constant 0 : i32
    %119 = vector.broadcast %c0_i32_57 : i32 to vector<256x3xi32>
    %120 = arith.addi %11, %119 : vector<256x3xi32>
    %c16_i32_58 = arith.constant 16 : i32
    %121 = vector.broadcast %c16_i32_58 : i32 to vector<256x3xi32>
    %122 = arith.cmpi slt, %120, %121 : vector<256x3xi32>
    %123 = arith.andi %118, %122 : vector<256x3xi1>
    %cst_59 = arith.constant 0.000000e+00 : f32
    %124 = vector.broadcast %cst_59 : f32 to vector<256x3xf32>
    %125 = arith.select %123, %104, %124 : vector<256x3xi1>, vector<256x3xf32>
    %c0_60 = arith.constant 0 : index
    %c12 = arith.constant 12 : index
    %126 = vector.load %arg21[%c0_60, %c12] : memref<256x32xf32, #tpu.memory_space<vmem>>, vector<256x3xf32>
    tpu.vector_store %arg21[%c0_60, %c12], %125 {strides = array<i32>} : memref<256x32xf32, #tpu.memory_space<vmem>>, vector<256x3xf32>,
    %c18 = arith.constant 18 : index
    %c0_61 = arith.constant 0 : index
    %127 = vector.load %arg18[%c18, %c0_61] : memref<290x3xf32, #tpu.memory_space<vmem>>, vector<256x3xf32>
    %c0_i32_62 = arith.constant 0 : i32
    %128 = vector.broadcast %c0_i32_62 : i32 to vector<256x3xi32>
    %129 = arith.addi %9, %128 : vector<256x3xi32>
    %c0_i32_63 = arith.constant 0 : i32
    %130 = vector.broadcast %c0_i32_63 : i32 to vector<256x3xi32>
    %131 = arith.cmpi sge, %129, %130 : vector<256x3xi32>
    %c0_i32_64 = arith.constant 0 : i32
    %132 = vector.broadcast %c0_i32_64 : i32 to vector<256x3xi32>
    %133 = arith.addi %9, %132 : vector<256x3xi32>
    %c16_i32_65 = arith.constant 16 : i32
    %134 = vector.broadcast %c16_i32_65 : i32 to vector<256x3xi32>
    %135 = arith.cmpi slt, %133, %134 : vector<256x3xi32>
    %136 = arith.andi %131, %135 : vector<256x3xi1>
    %c1_i32_66 = arith.constant 1 : i32
    %137 = vector.broadcast %c1_i32_66 : i32 to vector<256x3xi32>
    %138 = arith.addi %11, %137 : vector<256x3xi32>
    %c0_i32_67 = arith.constant 0 : i32
    %139 = vector.broadcast %c0_i32_67 : i32 to vector<256x3xi32>
    %140 = arith.cmpi sge, %138, %139 : vector<256x3xi32>
    %141 = arith.andi %136, %140 : vector<256x3xi1>
    %c1_i32_68 = arith.constant 1 : i32
    %142 = vector.broadcast %c1_i32_68 : i32 to vector<256x3xi32>
    %143 = arith.addi %11, %142 : vector<256x3xi32>
    %c16_i32_69 = arith.constant 16 : i32
    %144 = vector.broadcast %c16_i32_69 : i32 to vector<256x3xi32>
    %145 = arith.cmpi slt, %143, %144 : vector<256x3xi32>
    %146 = arith.andi %141, %145 : vector<256x3xi1>
    %cst_70 = arith.constant 0.000000e+00 : f32
    %147 = vector.broadcast %cst_70 : f32 to vector<256x3xf32>
    %148 = arith.select %146, %127, %147 : vector<256x3xi1>, vector<256x3xf32>
    %c0_71 = arith.constant 0 : index
    %c15 = arith.constant 15 : index
    %149 = vector.load %arg21[%c0_71, %c15] : memref<256x32xf32, #tpu.memory_space<vmem>>, vector<256x3xf32>
    tpu.vector_store %arg21[%c0_71, %c15], %148 {strides = array<i32>} : memref<256x32xf32, #tpu.memory_space<vmem>>, vector<256x3xf32>,
    %c32 = arith.constant 32 : index
    %c0_72 = arith.constant 0 : index
    %150 = vector.load %arg18[%c32, %c0_72] : memref<290x3xf32, #tpu.memory_space<vmem>>, vector<256x3xf32>
    %c1_i32_73 = arith.constant 1 : i32
    %151 = vector.broadcast %c1_i32_73 : i32 to vector<256x3xi32>
    %152 = arith.addi %9, %151 : vector<256x3xi32>
    %c0_i32_74 = arith.constant 0 : i32
    %153 = vector.broadcast %c0_i32_74 : i32 to vector<256x3xi32>
    %154 = arith.cmpi sge, %152, %153 : vector<256x3xi32>
    %c1_i32_75 = arith.constant 1 : i32
    %155 = vector.broadcast %c1_i32_75 : i32 to vector<256x3xi32>
    %156 = arith.addi %9, %155 : vector<256x3xi32>
    %c16_i32_76 = arith.constant 16 : i32
    %157 = vector.broadcast %c16_i32_76 : i32 to vector<256x3xi32>
    %158 = arith.cmpi slt, %156, %157 : vector<256x3xi32>
    %159 = arith.andi %154, %158 : vector<256x3xi1>
    %c-1_i32_77 = arith.constant -1 : i32
    %160 = vector.broadcast %c-1_i32_77 : i32 to vector<256x3xi32>
    %161 = arith.addi %11, %160 : vector<256x3xi32>
    %c0_i32_78 = arith.constant 0 : i32
    %162 = vector.broadcast %c0_i32_78 : i32 to vector<256x3xi32>
    %163 = arith.cmpi sge, %161, %162 : vector<256x3xi32>
    %164 = arith.andi %159, %163 : vector<256x3xi1>
    %c-1_i32_79 = arith.constant -1 : i32
    %165 = vector.broadcast %c-1_i32_79 : i32 to vector<256x3xi32>
    %166 = arith.addi %11, %165 : vector<256x3xi32>
    %c16_i32_80 = arith.constant 16 : i32
    %167 = vector.broadcast %c16_i32_80 : i32 to vector<256x3xi32>
    %168 = arith.cmpi slt, %166, %167 : vector<256x3xi32>
    %169 = arith.andi %164, %168 : vector<256x3xi1>
    %cst_81 = arith.constant 0.000000e+00 : f32
    %170 = vector.broadcast %cst_81 : f32 to vector<256x3xf32>
    %171 = arith.select %169, %150, %170 : vector<256x3xi1>, vector<256x3xf32>
    %c0_82 = arith.constant 0 : index
    %c18_83 = arith.constant 18 : index
    %172 = vector.load %arg21[%c0_82, %c18_83] : memref<256x32xf32, #tpu.memory_space<vmem>>, vector<256x3xf32>
    tpu.vector_store %arg21[%c0_82, %c18_83], %171 {strides = array<i32>} : memref<256x32xf32, #tpu.memory_space<vmem>>, vector<256x3xf32>,
    %c33 = arith.constant 33 : index
    %c0_84 = arith.constant 0 : index
    %173 = vector.load %arg18[%c33, %c0_84] : memref<290x3xf32, #tpu.memory_space<vmem>>, vector<256x3xf32>
    %c1_i32_85 = arith.constant 1 : i32
    %174 = vector.broadcast %c1_i32_85 : i32 to vector<256x3xi32>
    %175 = arith.addi %9, %174 : vector<256x3xi32>
    %c0_i32_86 = arith.constant 0 : i32
    %176 = vector.broadcast %c0_i32_86 : i32 to vector<256x3xi32>
    %177 = arith.cmpi sge, %175, %176 : vector<256x3xi32>
    %c1_i32_87 = arith.constant 1 : i32
    %178 = vector.broadcast %c1_i32_87 : i32 to vector<256x3xi32>
    %179 = arith.addi %9, %178 : vector<256x3xi32>
    %c16_i32_88 = arith.constant 16 : i32
    %180 = vector.broadcast %c16_i32_88 : i32 to vector<256x3xi32>
    %181 = arith.cmpi slt, %179, %180 : vector<256x3xi32>
    %182 = arith.andi %177, %181 : vector<256x3xi1>
    %c0_i32_89 = arith.constant 0 : i32
    %183 = vector.broadcast %c0_i32_89 : i32 to vector<256x3xi32>
    %184 = arith.addi %11, %183 : vector<256x3xi32>
    %c0_i32_90 = arith.constant 0 : i32
    %185 = vector.broadcast %c0_i32_90 : i32 to vector<256x3xi32>
    %186 = arith.cmpi sge, %184, %185 : vector<256x3xi32>
    %187 = arith.andi %182, %186 : vector<256x3xi1>
    %c0_i32_91 = arith.constant 0 : i32
    %188 = vector.broadcast %c0_i32_91 : i32 to vector<256x3xi32>
    %189 = arith.addi %11, %188 : vector<256x3xi32>
    %c16_i32_92 = arith.constant 16 : i32
    %190 = vector.broadcast %c16_i32_92 : i32 to vector<256x3xi32>
    %191 = arith.cmpi slt, %189, %190 : vector<256x3xi32>
    %192 = arith.andi %187, %191 : vector<256x3xi1>
    %cst_93 = arith.constant 0.000000e+00 : f32
    %193 = vector.broadcast %cst_93 : f32 to vector<256x3xf32>
    %194 = arith.select %192, %173, %193 : vector<256x3xi1>, vector<256x3xf32>
    %c0_94 = arith.constant 0 : index
    %c21 = arith.constant 21 : index
    %195 = vector.load %arg21[%c0_94, %c21] : memref<256x32xf32, #tpu.memory_space<vmem>>, vector<256x3xf32>
    tpu.vector_store %arg21[%c0_94, %c21], %194 {strides = array<i32>} : memref<256x32xf32, #tpu.memory_space<vmem>>, vector<256x3xf32>,
    %c34 = arith.constant 34 : index
    %c0_95 = arith.constant 0 : index
    %196 = vector.load %arg18[%c34, %c0_95] : memref<290x3xf32, #tpu.memory_space<vmem>>, vector<256x3xf32>
    %c1_i32_96 = arith.constant 1 : i32
    %197 = vector.broadcast %c1_i32_96 : i32 to vector<256x3xi32>
    %198 = arith.addi %9, %197 : vector<256x3xi32>
    %c0_i32_97 = arith.constant 0 : i32
    %199 = vector.broadcast %c0_i32_97 : i32 to vector<256x3xi32>
    %200 = arith.cmpi sge, %198, %199 : vector<256x3xi32>
    %c1_i32_98 = arith.constant 1 : i32
    %201 = vector.broadcast %c1_i32_98 : i32 to vector<256x3xi32>
    %202 = arith.addi %9, %201 : vector<256x3xi32>
    %c16_i32_99 = arith.constant 16 : i32
    %203 = vector.broadcast %c16_i32_99 : i32 to vector<256x3xi32>
    %204 = arith.cmpi slt, %202, %203 : vector<256x3xi32>
    %205 = arith.andi %200, %204 : vector<256x3xi1>
    %c1_i32_100 = arith.constant 1 : i32
    %206 = vector.broadcast %c1_i32_100 : i32 to vector<256x3xi32>
    %207 = arith.addi %11, %206 : vector<256x3xi32>
    %c0_i32_101 = arith.constant 0 : i32
    %208 = vector.broadcast %c0_i32_101 : i32 to vector<256x3xi32>
    %209 = arith.cmpi sge, %207, %208 : vector<256x3xi32>
    %210 = arith.andi %205, %209 : vector<256x3xi1>
    %c1_i32_102 = arith.constant 1 : i32
    %211 = vector.broadcast %c1_i32_102 : i32 to vector<256x3xi32>
    %212 = arith.addi %11, %211 : vector<256x3xi32>
    %c16_i32_103 = arith.constant 16 : i32
    %213 = vector.broadcast %c16_i32_103 : i32 to vector<256x3xi32>
    %214 = arith.cmpi slt, %212, %213 : vector<256x3xi32>
    %215 = arith.andi %210, %214 : vector<256x3xi1>
    %cst_104 = arith.constant 0.000000e+00 : f32
    %216 = vector.broadcast %cst_104 : f32 to vector<256x3xf32>
    %217 = arith.select %215, %196, %216 : vector<256x3xi1>, vector<256x3xf32>
    %c0_105 = arith.constant 0 : index
    %c24 = arith.constant 24 : index
    %218 = vector.load %arg21[%c0_105, %c24] : memref<256x32xf32, #tpu.memory_space<vmem>>, vector<256x3xf32>
    tpu.vector_store %arg21[%c0_105, %c24], %217 {strides = array<i32>} : memref<256x32xf32, #tpu.memory_space<vmem>>, vector<256x3xf32>,
    %c0_106 = arith.constant 0 : index
    %c0_107 = arith.constant 0 : index
    %219 = vector.load %arg21[%c0_106, %c0_107] : memref<256x32xf32, #tpu.memory_space<vmem>>, vector<256x32xf32>
    %220 = arith.truncf %219 : vector<256x32xf32> to vector<256x32xbf16>
    %c0_108 = arith.constant 0 : index
    %c0_109 = arith.constant 0 : index
    %221 = vector.load %arg2[%c0_108, %c0_109] : memref<32x16xbf16, #tpu.memory_space<vmem>>, vector<32x16xbf16>
    %cst_110 = arith.constant dense<0.000000e+00> : vector<256x16xf32>
    %222 = tpu.matmul %220, %221, %cst_110 {dimension_numbers = #tpu.dot_dimension_numbers<[1], [0], [0], [1], [0, 0, 1, 1], [], []>} : vector<256x32xbf16>, vector<32x16xbf16>, vector<256x16xf32> -> vector<256x16xf32>
    %c0_111 = arith.constant 0 : index
    %c0_112 = arith.constant 0 : index
    %223 = vector.load %arg3[%c0_111, %c0_112] : memref<1x16xf32, #tpu.memory_space<vmem>>, vector<1x16xf32>
    %224 = vector.broadcast %223 : vector<1x16xf32> to vector<256x16xf32>
    %225 = arith.mulf %222, %224 : vector<256x16xf32>
    %c0_113 = arith.constant 0 : index
    %c0_114 = arith.constant 0 : index
    %226 = vector.load %arg4[%c0_113, %c0_114] : memref<1x16xf32, #tpu.memory_space<vmem>>, vector<1x16xf32>
    %227 = vector.broadcast %226 : vector<1x16xf32> to vector<256x16xf32>
    %228 = arith.addf %225, %227 : vector<256x16xf32>
    %cst_115 = arith.constant 0.000000e+00 : f32
    %229 = vector.broadcast %cst_115 : f32 to vector<256x16xf32>
    %230 = arith.maximumf %228, %229 : vector<256x16xf32>
    %231 = tpu.iota {dimensions = array<i32: 0>} : vector<64x256xi32>
    %232 = tpu.iota {dimensions = array<i32: 1>} : vector<64x256xi32>
    %c3_i32 = arith.constant 3 : i32
    %233 = vector.broadcast %c3_i32 : i32 to vector<64x256xi32>
    %234 = arith.shrsi %231, %233 : vector<64x256xi32>
    %c7_i32 = arith.constant 7 : i32
    %235 = vector.broadcast %c7_i32 : i32 to vector<64x256xi32>
    %236 = arith.andi %231, %235 : vector<64x256xi32>
    %c2_i32 = arith.constant 2 : i32
    %237 = vector.broadcast %c2_i32 : i32 to vector<64x256xi32>
    %238 = arith.muli %237, %234 : vector<64x256xi32>
    %c0_i32_116 = arith.constant 0 : i32
    %239 = vector.broadcast %c0_i32_116 : i32 to vector<64x256xi32>
    %240 = arith.addi %238, %239 : vector<64x256xi32>
    %c16_i32_117 = arith.constant 16 : i32
    %241 = vector.broadcast %c16_i32_117 : i32 to vector<64x256xi32>
    %242 = arith.muli %240, %241 : vector<64x256xi32>
    %c2_i32_118 = arith.constant 2 : i32
    %243 = vector.broadcast %c2_i32_118 : i32 to vector<64x256xi32>
    %244 = arith.muli %243, %236 : vector<64x256xi32>
    %c0_i32_119 = arith.constant 0 : i32
    %245 = vector.broadcast %c0_i32_119 : i32 to vector<64x256xi32>
    %246 = arith.addi %244, %245 : vector<64x256xi32>
    %247 = arith.addi %242, %246 : vector<64x256xi32>
    %248 = arith.cmpi eq, %232, %247 : vector<64x256xi32>
    %cst_120 = arith.constant 1.000000e+00 : f32
    %cst_121 = arith.constant 0.000000e+00 : f32
    %249 = vector.broadcast %cst_120 : f32 to vector<64x256xf32>
    %250 = vector.broadcast %cst_121 : f32 to vector<64x256xf32>
    %251 = arith.select %248, %249, %250 : vector<64x256xi1>, vector<64x256xf32>
    %cst_122 = arith.constant dense<0.000000e+00> : vector<64x16xf32>
    %252 = tpu.matmul %251, %230, %cst_122 {dimension_numbers = #tpu.dot_dimension_numbers<[1], [0], [0], [1], [0, 0, 1, 1], [], []>} : vector<64x256xf32>, vector<256x16xf32>, vector<64x16xf32> -> vector<64x16xf32>
    %c2_i32_123 = arith.constant 2 : i32
    %253 = vector.broadcast %c2_i32_123 : i32 to vector<64x256xi32>
    %254 = arith.muli %253, %234 : vector<64x256xi32>
    %c0_i32_124 = arith.constant 0 : i32
    %255 = vector.broadcast %c0_i32_124 : i32 to vector<64x256xi32>
    %256 = arith.addi %254, %255 : vector<64x256xi32>
    %c16_i32_125 = arith.constant 16 : i32
    %257 = vector.broadcast %c16_i32_125 : i32 to vector<64x256xi32>
    %258 = arith.muli %256, %257 : vector<64x256xi32>
    %c2_i32_126 = arith.constant 2 : i32
    %259 = vector.broadcast %c2_i32_126 : i32 to vector<64x256xi32>
    %260 = arith.muli %259, %236 : vector<64x256xi32>
    %c1_i32_127 = arith.constant 1 : i32
    %261 = vector.broadcast %c1_i32_127 : i32 to vector<64x256xi32>
    %262 = arith.addi %260, %261 : vector<64x256xi32>
    %263 = arith.addi %258, %262 : vector<64x256xi32>
    %264 = arith.cmpi eq, %232, %263 : vector<64x256xi32>
    %cst_128 = arith.constant 1.000000e+00 : f32
    %cst_129 = arith.constant 0.000000e+00 : f32
    %265 = vector.broadcast %cst_128 : f32 to vector<64x256xf32>
    %266 = vector.broadcast %cst_129 : f32 to vector<64x256xf32>
    %267 = arith.select %264, %265, %266 : vector<64x256xi1>, vector<64x256xf32>
    %cst_130 = arith.constant dense<0.000000e+00> : vector<64x16xf32>
    %268 = tpu.matmul %267, %230, %cst_130 {dimension_numbers = #tpu.dot_dimension_numbers<[1], [0], [0], [1], [0, 0, 1, 1], [], []>} : vector<64x256xf32>, vector<256x16xf32>, vector<64x16xf32> -> vector<64x16xf32>
    %269 = arith.maximumf %252, %268 : vector<64x16xf32>
    %c2_i32_131 = arith.constant 2 : i32
    %270 = vector.broadcast %c2_i32_131 : i32 to vector<64x256xi32>
    %271 = arith.muli %270, %234 : vector<64x256xi32>
    %c1_i32_132 = arith.constant 1 : i32
    %272 = vector.broadcast %c1_i32_132 : i32 to vector<64x256xi32>
    %273 = arith.addi %271, %272 : vector<64x256xi32>
    %c16_i32_133 = arith.constant 16 : i32
    %274 = vector.broadcast %c16_i32_133 : i32 to vector<64x256xi32>
    %275 = arith.muli %273, %274 : vector<64x256xi32>
    %c2_i32_134 = arith.constant 2 : i32
    %276 = vector.broadcast %c2_i32_134 : i32 to vector<64x256xi32>
    %277 = arith.muli %276, %236 : vector<64x256xi32>
    %c0_i32_135 = arith.constant 0 : i32
    %278 = vector.broadcast %c0_i32_135 : i32 to vector<64x256xi32>
    %279 = arith.addi %277, %278 : vector<64x256xi32>
    %280 = arith.addi %275, %279 : vector<64x256xi32>
    %281 = arith.cmpi eq, %232, %280 : vector<64x256xi32>
    %cst_136 = arith.constant 1.000000e+00 : f32
    %cst_137 = arith.constant 0.000000e+00 : f32
    %282 = vector.broadcast %cst_136 : f32 to vector<64x256xf32>
    %283 = vector.broadcast %cst_137 : f32 to vector<64x256xf32>
    %284 = arith.select %281, %282, %283 : vector<64x256xi1>, vector<64x256xf32>
    %cst_138 = arith.constant dense<0.000000e+00> : vector<64x16xf32>
    %285 = tpu.matmul %284, %230, %cst_138 {dimension_numbers = #tpu.dot_dimension_numbers<[1], [0], [0], [1], [0, 0, 1, 1], [], []>} : vector<64x256xf32>, vector<256x16xf32>, vector<64x16xf32> -> vector<64x16xf32>
    %286 = arith.maximumf %269, %285 : vector<64x16xf32>
    %c2_i32_139 = arith.constant 2 : i32
    %287 = vector.broadcast %c2_i32_139 : i32 to vector<64x256xi32>
    %288 = arith.muli %287, %234 : vector<64x256xi32>
    %c1_i32_140 = arith.constant 1 : i32
    %289 = vector.broadcast %c1_i32_140 : i32 to vector<64x256xi32>
    %290 = arith.addi %288, %289 : vector<64x256xi32>
    %c16_i32_141 = arith.constant 16 : i32
    %291 = vector.broadcast %c16_i32_141 : i32 to vector<64x256xi32>
    %292 = arith.muli %290, %291 : vector<64x256xi32>
    %c2_i32_142 = arith.constant 2 : i32
    %293 = vector.broadcast %c2_i32_142 : i32 to vector<64x256xi32>
    %294 = arith.muli %293, %236 : vector<64x256xi32>
    %c1_i32_143 = arith.constant 1 : i32
    %295 = vector.broadcast %c1_i32_143 : i32 to vector<64x256xi32>
    %296 = arith.addi %294, %295 : vector<64x256xi32>
    %297 = arith.addi %292, %296 : vector<64x256xi32>
    %298 = arith.cmpi eq, %232, %297 : vector<64x256xi32>
    %cst_144 = arith.constant 1.000000e+00 : f32
    %cst_145 = arith.constant 0.000000e+00 : f32
    %299 = vector.broadcast %cst_144 : f32 to vector<64x256xf32>
    %300 = vector.broadcast %cst_145 : f32 to vector<64x256xf32>
    %301 = arith.select %298, %299, %300 : vector<64x256xi1>, vector<64x256xf32>
    %cst_146 = arith.constant dense<0.000000e+00> : vector<64x16xf32>
    %302 = tpu.matmul %301, %230, %cst_146 {dimension_numbers = #tpu.dot_dimension_numbers<[1], [0], [0], [1], [0, 0, 1, 1], [], []>} : vector<64x256xf32>, vector<256x16xf32>, vector<64x16xf32> -> vector<64x16xf32>
    %303 = arith.maximumf %286, %302 : vector<64x16xf32>
    %cst_147 = arith.constant 0.000000e+00 : f32
    %304 = vector.broadcast %cst_147 : f32 to vector<82x16xf32>
    %c0_148 = arith.constant 0 : index
    %c0_149 = arith.constant 0 : index
    %305 = vector.load %arg19[%c0_148, %c0_149] : memref<82x16xf32, #tpu.memory_space<vmem>>, vector<82x16xf32>
    tpu.vector_store %arg19[%c0_148, %c0_149], %304 {strides = array<i32>} : memref<82x16xf32, #tpu.memory_space<vmem>>, vector<82x16xf32>,
    %c9_150 = arith.constant 9 : index
    %c0_151 = arith.constant 0 : index
    %306 = vector.load %arg19[%c9_150, %c0_151] : memref<82x16xf32, #tpu.memory_space<vmem>>, vector<64x16xf32>
    tpu.vector_store %arg19[%c9_150, %c0_151], %303 {strides = array<i32>} : memref<82x16xf32, #tpu.memory_space<vmem>>, vector<64x16xf32>,
    %307 = tpu.iota {dimensions = array<i32: 0>} : vector<64x16xi32>
    %c3_i32_152 = arith.constant 3 : i32
    %308 = vector.broadcast %c3_i32_152 : i32 to vector<64x16xi32>
    %309 = arith.shrsi %307, %308 : vector<64x16xi32>
    %c7_i32_153 = arith.constant 7 : i32
    %310 = vector.broadcast %c7_i32_153 : i32 to vector<64x16xi32>
    %311 = arith.andi %307, %310 : vector<64x16xi32>
    %c0_154 = arith.constant 0 : index
    %c0_155 = arith.constant 0 : index
    %312 = vector.load %arg19[%c0_154, %c0_155] : memref<82x16xf32, #tpu.memory_space<vmem>>, vector<64x16xf32>
    %c-1_i32_156 = arith.constant -1 : i32
    %313 = vector.broadcast %c-1_i32_156 : i32 to vector<64x16xi32>
    %314 = arith.addi %309, %313 : vector<64x16xi32>
    %c0_i32_157 = arith.constant 0 : i32
    %315 = vector.broadcast %c0_i32_157 : i32 to vector<64x16xi32>
    %316 = arith.cmpi sge, %314, %315 : vector<64x16xi32>
    %c-1_i32_158 = arith.constant -1 : i32
    %317 = vector.broadcast %c-1_i32_158 : i32 to vector<64x16xi32>
    %318 = arith.addi %309, %317 : vector<64x16xi32>
    %c8_i32 = arith.constant 8 : i32
    %319 = vector.broadcast %c8_i32 : i32 to vector<64x16xi32>
    %320 = arith.cmpi slt, %318, %319 : vector<64x16xi32>
    %321 = arith.andi %316, %320 : vector<64x16xi1>
    %c-1_i32_159 = arith.constant -1 : i32
    %322 = vector.broadcast %c-1_i32_159 : i32 to vector<64x16xi32>
    %323 = arith.addi %311, %322 : vector<64x16xi32>
    %c0_i32_160 = arith.constant 0 : i32
    %324 = vector.broadcast %c0_i32_160 : i32 to vector<64x16xi32>
    %325 = arith.cmpi sge, %323, %324 : vector<64x16xi32>
    %326 = arith.andi %321, %325 : vector<64x16xi1>
    %c-1_i32_161 = arith.constant -1 : i32
    %327 = vector.broadcast %c-1_i32_161 : i32 to vector<64x16xi32>
    %328 = arith.addi %311, %327 : vector<64x16xi32>
    %c8_i32_162 = arith.constant 8 : i32
    %329 = vector.broadcast %c8_i32_162 : i32 to vector<64x16xi32>
    %330 = arith.cmpi slt, %328, %329 : vector<64x16xi32>
    %331 = arith.andi %326, %330 : vector<64x16xi1>
    %cst_163 = arith.constant 0.000000e+00 : f32
    %332 = vector.broadcast %cst_163 : f32 to vector<64x16xf32>
    %333 = arith.select %331, %312, %332 : vector<64x16xi1>, vector<64x16xf32>
    %c0_164 = arith.constant 0 : index
    %c0_165 = arith.constant 0 : index
    %334 = vector.load %arg22[%c0_164, %c0_165] : memref<64x144xf32, #tpu.memory_space<vmem>>, vector<64x16xf32>
    tpu.vector_store %arg22[%c0_164, %c0_165], %333 {strides = array<i32>} : memref<64x144xf32, #tpu.memory_space<vmem>>, vector<64x16xf32>,
    %c1_166 = arith.constant 1 : index
    %c0_167 = arith.constant 0 : index
    %335 = vector.load %arg19[%c1_166, %c0_167] : memref<82x16xf32, #tpu.memory_space<vmem>>, vector<64x16xf32>
    %c-1_i32_168 = arith.constant -1 : i32
    %336 = vector.broadcast %c-1_i32_168 : i32 to vector<64x16xi32>
    %337 = arith.addi %309, %336 : vector<64x16xi32>
    %c0_i32_169 = arith.constant 0 : i32
    %338 = vector.broadcast %c0_i32_169 : i32 to vector<64x16xi32>
    %339 = arith.cmpi sge, %337, %338 : vector<64x16xi32>
    %c-1_i32_170 = arith.constant -1 : i32
    %340 = vector.broadcast %c-1_i32_170 : i32 to vector<64x16xi32>
    %341 = arith.addi %309, %340 : vector<64x16xi32>
    %c8_i32_171 = arith.constant 8 : i32
    %342 = vector.broadcast %c8_i32_171 : i32 to vector<64x16xi32>
    %343 = arith.cmpi slt, %341, %342 : vector<64x16xi32>
    %344 = arith.andi %339, %343 : vector<64x16xi1>
    %c0_i32_172 = arith.constant 0 : i32
    %345 = vector.broadcast %c0_i32_172 : i32 to vector<64x16xi32>
    %346 = arith.addi %311, %345 : vector<64x16xi32>
    %c0_i32_173 = arith.constant 0 : i32
    %347 = vector.broadcast %c0_i32_173 : i32 to vector<64x16xi32>
    %348 = arith.cmpi sge, %346, %347 : vector<64x16xi32>
    %349 = arith.andi %344, %348 : vector<64x16xi1>
    %c0_i32_174 = arith.constant 0 : i32
    %350 = vector.broadcast %c0_i32_174 : i32 to vector<64x16xi32>
    %351 = arith.addi %311, %350 : vector<64x16xi32>
    %c8_i32_175 = arith.constant 8 : i32
    %352 = vector.broadcast %c8_i32_175 : i32 to vector<64x16xi32>
    %353 = arith.cmpi slt, %351, %352 : vector<64x16xi32>
    %354 = arith.andi %349, %353 : vector<64x16xi1>
    %cst_176 = arith.constant 0.000000e+00 : f32
    %355 = vector.broadcast %cst_176 : f32 to vector<64x16xf32>
    %356 = arith.select %354, %335, %355 : vector<64x16xi1>, vector<64x16xf32>
    %c0_177 = arith.constant 0 : index
    %c16_178 = arith.constant 16 : index
    %357 = vector.load %arg22[%c0_177, %c16_178] : memref<64x144xf32, #tpu.memory_space<vmem>>, vector<64x16xf32>
    tpu.vector_store %arg22[%c0_177, %c16_178], %356 {strides = array<i32>} : memref<64x144xf32, #tpu.memory_space<vmem>>, vector<64x16xf32>,
    %c2_179 = arith.constant 2 : index
    %c0_180 = arith.constant 0 : index
    %358 = vector.load %arg19[%c2_179, %c0_180] : memref<82x16xf32, #tpu.memory_space<vmem>>, vector<64x16xf32>
    %c-1_i32_181 = arith.constant -1 : i32
    %359 = vector.broadcast %c-1_i32_181 : i32 to vector<64x16xi32>
    %360 = arith.addi %309, %359 : vector<64x16xi32>
    %c0_i32_182 = arith.constant 0 : i32
    %361 = vector.broadcast %c0_i32_182 : i32 to vector<64x16xi32>
    %362 = arith.cmpi sge, %360, %361 : vector<64x16xi32>
    %c-1_i32_183 = arith.constant -1 : i32
    %363 = vector.broadcast %c-1_i32_183 : i32 to vector<64x16xi32>
    %364 = arith.addi %309, %363 : vector<64x16xi32>
    %c8_i32_184 = arith.constant 8 : i32
    %365 = vector.broadcast %c8_i32_184 : i32 to vector<64x16xi32>
    %366 = arith.cmpi slt, %364, %365 : vector<64x16xi32>
    %367 = arith.andi %362, %366 : vector<64x16xi1>
    %c1_i32_185 = arith.constant 1 : i32
    %368 = vector.broadcast %c1_i32_185 : i32 to vector<64x16xi32>
    %369 = arith.addi %311, %368 : vector<64x16xi32>
    %c0_i32_186 = arith.constant 0 : i32
    %370 = vector.broadcast %c0_i32_186 : i32 to vector<64x16xi32>
    %371 = arith.cmpi sge, %369, %370 : vector<64x16xi32>
    %372 = arith.andi %367, %371 : vector<64x16xi1>
    %c1_i32_187 = arith.constant 1 : i32
    %373 = vector.broadcast %c1_i32_187 : i32 to vector<64x16xi32>
    %374 = arith.addi %311, %373 : vector<64x16xi32>
    %c8_i32_188 = arith.constant 8 : i32
    %375 = vector.broadcast %c8_i32_188 : i32 to vector<64x16xi32>
    %376 = arith.cmpi slt, %374, %375 : vector<64x16xi32>
    %377 = arith.andi %372, %376 : vector<64x16xi1>
    %cst_189 = arith.constant 0.000000e+00 : f32
    %378 = vector.broadcast %cst_189 : f32 to vector<64x16xf32>
    %379 = arith.select %377, %358, %378 : vector<64x16xi1>, vector<64x16xf32>
    %c0_190 = arith.constant 0 : index
    %c32_191 = arith.constant 32 : index
    %380 = vector.load %arg22[%c0_190, %c32_191] : memref<64x144xf32, #tpu.memory_space<vmem>>, vector<64x16xf32>
    tpu.vector_store %arg22[%c0_190, %c32_191], %379 {strides = array<i32>} : memref<64x144xf32, #tpu.memory_space<vmem>>, vector<64x16xf32>,
    %c8 = arith.constant 8 : index
    %c0_192 = arith.constant 0 : index
    %381 = vector.load %arg19[%c8, %c0_192] : memref<82x16xf32, #tpu.memory_space<vmem>>, vector<64x16xf32>
    %c0_i32_193 = arith.constant 0 : i32
    %382 = vector.broadcast %c0_i32_193 : i32 to vector<64x16xi32>
    %383 = arith.addi %309, %382 : vector<64x16xi32>
    %c0_i32_194 = arith.constant 0 : i32
    %384 = vector.broadcast %c0_i32_194 : i32 to vector<64x16xi32>
    %385 = arith.cmpi sge, %383, %384 : vector<64x16xi32>
    %c0_i32_195 = arith.constant 0 : i32
    %386 = vector.broadcast %c0_i32_195 : i32 to vector<64x16xi32>
    %387 = arith.addi %309, %386 : vector<64x16xi32>
    %c8_i32_196 = arith.constant 8 : i32
    %388 = vector.broadcast %c8_i32_196 : i32 to vector<64x16xi32>
    %389 = arith.cmpi slt, %387, %388 : vector<64x16xi32>
    %390 = arith.andi %385, %389 : vector<64x16xi1>
    %c-1_i32_197 = arith.constant -1 : i32
    %391 = vector.broadcast %c-1_i32_197 : i32 to vector<64x16xi32>
    %392 = arith.addi %311, %391 : vector<64x16xi32>
    %c0_i32_198 = arith.constant 0 : i32
    %393 = vector.broadcast %c0_i32_198 : i32 to vector<64x16xi32>
    %394 = arith.cmpi sge, %392, %393 : vector<64x16xi32>
    %395 = arith.andi %390, %394 : vector<64x16xi1>
    %c-1_i32_199 = arith.constant -1 : i32
    %396 = vector.broadcast %c-1_i32_199 : i32 to vector<64x16xi32>
    %397 = arith.addi %311, %396 : vector<64x16xi32>
    %c8_i32_200 = arith.constant 8 : i32
    %398 = vector.broadcast %c8_i32_200 : i32 to vector<64x16xi32>
    %399 = arith.cmpi slt, %397, %398 : vector<64x16xi32>
    %400 = arith.andi %395, %399 : vector<64x16xi1>
    %cst_201 = arith.constant 0.000000e+00 : f32
    %401 = vector.broadcast %cst_201 : f32 to vector<64x16xf32>
    %402 = arith.select %400, %381, %401 : vector<64x16xi1>, vector<64x16xf32>
    %c0_202 = arith.constant 0 : index
    %c48 = arith.constant 48 : index
    %403 = vector.load %arg22[%c0_202, %c48] : memref<64x144xf32, #tpu.memory_space<vmem>>, vector<64x16xf32>
    tpu.vector_store %arg22[%c0_202, %c48], %402 {strides = array<i32>} : memref<64x144xf32, #tpu.memory_space<vmem>>, vector<64x16xf32>,
    %c9_203 = arith.constant 9 : index
    %c0_204 = arith.constant 0 : index
    %404 = vector.load %arg19[%c9_203, %c0_204] : memref<82x16xf32, #tpu.memory_space<vmem>>, vector<64x16xf32>
    %c0_i32_205 = arith.constant 0 : i32
    %405 = vector.broadcast %c0_i32_205 : i32 to vector<64x16xi32>
    %406 = arith.addi %309, %405 : vector<64x16xi32>
    %c0_i32_206 = arith.constant 0 : i32
    %407 = vector.broadcast %c0_i32_206 : i32 to vector<64x16xi32>
    %408 = arith.cmpi sge, %406, %407 : vector<64x16xi32>
    %c0_i32_207 = arith.constant 0 : i32
    %409 = vector.broadcast %c0_i32_207 : i32 to vector<64x16xi32>
    %410 = arith.addi %309, %409 : vector<64x16xi32>
    %c8_i32_208 = arith.constant 8 : i32
    %411 = vector.broadcast %c8_i32_208 : i32 to vector<64x16xi32>
    %412 = arith.cmpi slt, %410, %411 : vector<64x16xi32>
    %413 = arith.andi %408, %412 : vector<64x16xi1>
    %c0_i32_209 = arith.constant 0 : i32
    %414 = vector.broadcast %c0_i32_209 : i32 to vector<64x16xi32>
    %415 = arith.addi %311, %414 : vector<64x16xi32>
    %c0_i32_210 = arith.constant 0 : i32
    %416 = vector.broadcast %c0_i32_210 : i32 to vector<64x16xi32>
    %417 = arith.cmpi sge, %415, %416 : vector<64x16xi32>
    %418 = arith.andi %413, %417 : vector<64x16xi1>
    %c0_i32_211 = arith.constant 0 : i32
    %419 = vector.broadcast %c0_i32_211 : i32 to vector<64x16xi32>
    %420 = arith.addi %311, %419 : vector<64x16xi32>
    %c8_i32_212 = arith.constant 8 : i32
    %421 = vector.broadcast %c8_i32_212 : i32 to vector<64x16xi32>
    %422 = arith.cmpi slt, %420, %421 : vector<64x16xi32>
    %423 = arith.andi %418, %422 : vector<64x16xi1>
    %cst_213 = arith.constant 0.000000e+00 : f32
    %424 = vector.broadcast %cst_213 : f32 to vector<64x16xf32>
    %425 = arith.select %423, %404, %424 : vector<64x16xi1>, vector<64x16xf32>
    %c0_214 = arith.constant 0 : index
    %c64 = arith.constant 64 : index
    %426 = vector.load %arg22[%c0_214, %c64] : memref<64x144xf32, #tpu.memory_space<vmem>>, vector<64x16xf32>
    tpu.vector_store %arg22[%c0_214, %c64], %425 {strides = array<i32>} : memref<64x144xf32, #tpu.memory_space<vmem>>, vector<64x16xf32>,
    %c10 = arith.constant 10 : index
    %c0_215 = arith.constant 0 : index
    %427 = vector.load %arg19[%c10, %c0_215] : memref<82x16xf32, #tpu.memory_space<vmem>>, vector<64x16xf32>
    %c0_i32_216 = arith.constant 0 : i32
    %428 = vector.broadcast %c0_i32_216 : i32 to vector<64x16xi32>
    %429 = arith.addi %309, %428 : vector<64x16xi32>
    %c0_i32_217 = arith.constant 0 : i32
    %430 = vector.broadcast %c0_i32_217 : i32 to vector<64x16xi32>
    %431 = arith.cmpi sge, %429, %430 : vector<64x16xi32>
    %c0_i32_218 = arith.constant 0 : i32
    %432 = vector.broadcast %c0_i32_218 : i32 to vector<64x16xi32>
    %433 = arith.addi %309, %432 : vector<64x16xi32>
    %c8_i32_219 = arith.constant 8 : i32
    %434 = vector.broadcast %c8_i32_219 : i32 to vector<64x16xi32>
    %435 = arith.cmpi slt, %433, %434 : vector<64x16xi32>
    %436 = arith.andi %431, %435 : vector<64x16xi1>
    %c1_i32_220 = arith.constant 1 : i32
    %437 = vector.broadcast %c1_i32_220 : i32 to vector<64x16xi32>
    %438 = arith.addi %311, %437 : vector<64x16xi32>
    %c0_i32_221 = arith.constant 0 : i32
    %439 = vector.broadcast %c0_i32_221 : i32 to vector<64x16xi32>
    %440 = arith.cmpi sge, %438, %439 : vector<64x16xi32>
    %441 = arith.andi %436, %440 : vector<64x16xi1>
    %c1_i32_222 = arith.constant 1 : i32
    %442 = vector.broadcast %c1_i32_222 : i32 to vector<64x16xi32>
    %443 = arith.addi %311, %442 : vector<64x16xi32>
    %c8_i32_223 = arith.constant 8 : i32
    %444 = vector.broadcast %c8_i32_223 : i32 to vector<64x16xi32>
    %445 = arith.cmpi slt, %443, %444 : vector<64x16xi32>
    %446 = arith.andi %441, %445 : vector<64x16xi1>
    %cst_224 = arith.constant 0.000000e+00 : f32
    %447 = vector.broadcast %cst_224 : f32 to vector<64x16xf32>
    %448 = arith.select %446, %427, %447 : vector<64x16xi1>, vector<64x16xf32>
    %c0_225 = arith.constant 0 : index
    %c80 = arith.constant 80 : index
    %449 = vector.load %arg22[%c0_225, %c80] : memref<64x144xf32, #tpu.memory_space<vmem>>, vector<64x16xf32>
    tpu.vector_store %arg22[%c0_225, %c80], %448 {strides = array<i32>} : memref<64x144xf32, #tpu.memory_space<vmem>>, vector<64x16xf32>,
    %c16_226 = arith.constant 16 : index
    %c0_227 = arith.constant 0 : index
    %450 = vector.load %arg19[%c16_226, %c0_227] : memref<82x16xf32, #tpu.memory_space<vmem>>, vector<64x16xf32>
    %c1_i32_228 = arith.constant 1 : i32
    %451 = vector.broadcast %c1_i32_228 : i32 to vector<64x16xi32>
    %452 = arith.addi %309, %451 : vector<64x16xi32>
    %c0_i32_229 = arith.constant 0 : i32
    %453 = vector.broadcast %c0_i32_229 : i32 to vector<64x16xi32>
    %454 = arith.cmpi sge, %452, %453 : vector<64x16xi32>
    %c1_i32_230 = arith.constant 1 : i32
    %455 = vector.broadcast %c1_i32_230 : i32 to vector<64x16xi32>
    %456 = arith.addi %309, %455 : vector<64x16xi32>
    %c8_i32_231 = arith.constant 8 : i32
    %457 = vector.broadcast %c8_i32_231 : i32 to vector<64x16xi32>
    %458 = arith.cmpi slt, %456, %457 : vector<64x16xi32>
    %459 = arith.andi %454, %458 : vector<64x16xi1>
    %c-1_i32_232 = arith.constant -1 : i32
    %460 = vector.broadcast %c-1_i32_232 : i32 to vector<64x16xi32>
    %461 = arith.addi %311, %460 : vector<64x16xi32>
    %c0_i32_233 = arith.constant 0 : i32
    %462 = vector.broadcast %c0_i32_233 : i32 to vector<64x16xi32>
    %463 = arith.cmpi sge, %461, %462 : vector<64x16xi32>
    %464 = arith.andi %459, %463 : vector<64x16xi1>
    %c-1_i32_234 = arith.constant -1 : i32
    %465 = vector.broadcast %c-1_i32_234 : i32 to vector<64x16xi32>
    %466 = arith.addi %311, %465 : vector<64x16xi32>
    %c8_i32_235 = arith.constant 8 : i32
    %467 = vector.broadcast %c8_i32_235 : i32 to vector<64x16xi32>
    %468 = arith.cmpi slt, %466, %467 : vector<64x16xi32>
    %469 = arith.andi %464, %468 : vector<64x16xi1>
    %cst_236 = arith.constant 0.000000e+00 : f32
    %470 = vector.broadcast %cst_236 : f32 to vector<64x16xf32>
    %471 = arith.select %469, %450, %470 : vector<64x16xi1>, vector<64x16xf32>
    %c0_237 = arith.constant 0 : index
    %c96 = arith.constant 96 : index
    %472 = vector.load %arg22[%c0_237, %c96] : memref<64x144xf32, #tpu.memory_space<vmem>>, vector<64x16xf32>
    tpu.vector_store %arg22[%c0_237, %c96], %471 {strides = array<i32>} : memref<64x144xf32, #tpu.memory_space<vmem>>, vector<64x16xf32>,
    %c17_238 = arith.constant 17 : index
    %c0_239 = arith.constant 0 : index
    %473 = vector.load %arg19[%c17_238, %c0_239] : memref<82x16xf32, #tpu.memory_space<vmem>>, vector<64x16xf32>
    %c1_i32_240 = arith.constant 1 : i32
    %474 = vector.broadcast %c1_i32_240 : i32 to vector<64x16xi32>
    %475 = arith.addi %309, %474 : vector<64x16xi32>
    %c0_i32_241 = arith.constant 0 : i32
    %476 = vector.broadcast %c0_i32_241 : i32 to vector<64x16xi32>
    %477 = arith.cmpi sge, %475, %476 : vector<64x16xi32>
    %c1_i32_242 = arith.constant 1 : i32
    %478 = vector.broadcast %c1_i32_242 : i32 to vector<64x16xi32>
    %479 = arith.addi %309, %478 : vector<64x16xi32>
    %c8_i32_243 = arith.constant 8 : i32
    %480 = vector.broadcast %c8_i32_243 : i32 to vector<64x16xi32>
    %481 = arith.cmpi slt, %479, %480 : vector<64x16xi32>
    %482 = arith.andi %477, %481 : vector<64x16xi1>
    %c0_i32_244 = arith.constant 0 : i32
    %483 = vector.broadcast %c0_i32_244 : i32 to vector<64x16xi32>
    %484 = arith.addi %311, %483 : vector<64x16xi32>
    %c0_i32_245 = arith.constant 0 : i32
    %485 = vector.broadcast %c0_i32_245 : i32 to vector<64x16xi32>
    %486 = arith.cmpi sge, %484, %485 : vector<64x16xi32>
    %487 = arith.andi %482, %486 : vector<64x16xi1>
    %c0_i32_246 = arith.constant 0 : i32
    %488 = vector.broadcast %c0_i32_246 : i32 to vector<64x16xi32>
    %489 = arith.addi %311, %488 : vector<64x16xi32>
    %c8_i32_247 = arith.constant 8 : i32
    %490 = vector.broadcast %c8_i32_247 : i32 to vector<64x16xi32>
    %491 = arith.cmpi slt, %489, %490 : vector<64x16xi32>
    %492 = arith.andi %487, %491 : vector<64x16xi1>
    %cst_248 = arith.constant 0.000000e+00 : f32
    %493 = vector.broadcast %cst_248 : f32 to vector<64x16xf32>
    %494 = arith.select %492, %473, %493 : vector<64x16xi1>, vector<64x16xf32>
    %c0_249 = arith.constant 0 : index
    %c112 = arith.constant 112 : index
    %495 = vector.load %arg22[%c0_249, %c112] : memref<64x144xf32, #tpu.memory_space<vmem>>, vector<64x16xf32>
    tpu.vector_store %arg22[%c0_249, %c112], %494 {strides = array<i32>} : memref<64x144xf32, #tpu.memory_space<vmem>>, vector<64x16xf32>,
    %c18_250 = arith.constant 18 : index
    %c0_251 = arith.constant 0 : index
    %496 = vector.load %arg19[%c18_250, %c0_251] : memref<82x16xf32, #tpu.memory_space<vmem>>, vector<64x16xf32>
    %c1_i32_252 = arith.constant 1 : i32
    %497 = vector.broadcast %c1_i32_252 : i32 to vector<64x16xi32>
    %498 = arith.addi %309, %497 : vector<64x16xi32>
    %c0_i32_253 = arith.constant 0 : i32
    %499 = vector.broadcast %c0_i32_253 : i32 to vector<64x16xi32>
    %500 = arith.cmpi sge, %498, %499 : vector<64x16xi32>
    %c1_i32_254 = arith.constant 1 : i32
    %501 = vector.broadcast %c1_i32_254 : i32 to vector<64x16xi32>
    %502 = arith.addi %309, %501 : vector<64x16xi32>
    %c8_i32_255 = arith.constant 8 : i32
    %503 = vector.broadcast %c8_i32_255 : i32 to vector<64x16xi32>
    %504 = arith.cmpi slt, %502, %503 : vector<64x16xi32>
    %505 = arith.andi %500, %504 : vector<64x16xi1>
    %c1_i32_256 = arith.constant 1 : i32
    %506 = vector.broadcast %c1_i32_256 : i32 to vector<64x16xi32>
    %507 = arith.addi %311, %506 : vector<64x16xi32>
    %c0_i32_257 = arith.constant 0 : i32
    %508 = vector.broadcast %c0_i32_257 : i32 to vector<64x16xi32>
    %509 = arith.cmpi sge, %507, %508 : vector<64x16xi32>
    %510 = arith.andi %505, %509 : vector<64x16xi1>
    %c1_i32_258 = arith.constant 1 : i32
    %511 = vector.broadcast %c1_i32_258 : i32 to vector<64x16xi32>
    %512 = arith.addi %311, %511 : vector<64x16xi32>
    %c8_i32_259 = arith.constant 8 : i32
    %513 = vector.broadcast %c8_i32_259 : i32 to vector<64x16xi32>
    %514 = arith.cmpi slt, %512, %513 : vector<64x16xi32>
    %515 = arith.andi %510, %514 : vector<64x16xi1>
    %cst_260 = arith.constant 0.000000e+00 : f32
    %516 = vector.broadcast %cst_260 : f32 to vector<64x16xf32>
    %517 = arith.select %515, %496, %516 : vector<64x16xi1>, vector<64x16xf32>
    %c0_261 = arith.constant 0 : index
    %c128 = arith.constant 128 : index
    %518 = vector.load %arg22[%c0_261, %c128] : memref<64x144xf32, #tpu.memory_space<vmem>>, vector<64x16xf32>
    tpu.vector_store %arg22[%c0_261, %c128], %517 {strides = array<i32>} : memref<64x144xf32, #tpu.memory_space<vmem>>, vector<64x16xf32>,
    %c0_262 = arith.constant 0 : index
    %c0_263 = arith.constant 0 : index
    %519 = vector.load %arg22[%c0_262, %c0_263] : memref<64x144xf32, #tpu.memory_space<vmem>>, vector<64x144xf32>
    %520 = arith.truncf %519 : vector<64x144xf32> to vector<64x144xbf16>
    %c0_264 = arith.constant 0 : index
    %c0_265 = arith.constant 0 : index
    %521 = vector.load %arg5[%c0_264, %c0_265] : memref<144x32xbf16, #tpu.memory_space<vmem>>, vector<144x32xbf16>
    %cst_266 = arith.constant dense<0.000000e+00> : vector<64x32xf32>
    %522 = tpu.matmul %520, %521, %cst_266 {dimension_numbers = #tpu.dot_dimension_numbers<[1], [0], [0], [1], [0, 0, 1, 1], [], []>} : vector<64x144xbf16>, vector<144x32xbf16>, vector<64x32xf32> -> vector<64x32xf32>
    %c0_267 = arith.constant 0 : index
    %c0_268 = arith.constant 0 : index
    %523 = vector.load %arg6[%c0_267, %c0_268] : memref<1x32xf32, #tpu.memory_space<vmem>>, vector<1x32xf32>
    %524 = vector.broadcast %523 : vector<1x32xf32> to vector<64x32xf32>
    %525 = arith.mulf %522, %524 : vector<64x32xf32>
    %c0_269 = arith.constant 0 : index
    %c0_270 = arith.constant 0 : index
    %526 = vector.load %arg7[%c0_269, %c0_270] : memref<1x32xf32, #tpu.memory_space<vmem>>, vector<1x32xf32>
    %527 = vector.broadcast %526 : vector<1x32xf32> to vector<64x32xf32>
    %528 = arith.addf %525, %527 : vector<64x32xf32>
    %cst_271 = arith.constant 0.000000e+00 : f32
    %529 = vector.broadcast %cst_271 : f32 to vector<64x32xf32>
    %530 = arith.maximumf %528, %529 : vector<64x32xf32>
    %531 = tpu.iota {dimensions = array<i32: 0>} : vector<16x64xi32>
    %532 = tpu.iota {dimensions = array<i32: 1>} : vector<16x64xi32>
    %c2_i32_272 = arith.constant 2 : i32
    %533 = vector.broadcast %c2_i32_272 : i32 to vector<16x64xi32>
    %534 = arith.shrsi %531, %533 : vector<16x64xi32>
    %c3_i32_273 = arith.constant 3 : i32
    %535 = vector.broadcast %c3_i32_273 : i32 to vector<16x64xi32>
    %536 = arith.andi %531, %535 : vector<16x64xi32>
    %c2_i32_274 = arith.constant 2 : i32
    %537 = vector.broadcast %c2_i32_274 : i32 to vector<16x64xi32>
    %538 = arith.muli %537, %534 : vector<16x64xi32>
    %c0_i32_275 = arith.constant 0 : i32
    %539 = vector.broadcast %c0_i32_275 : i32 to vector<16x64xi32>
    %540 = arith.addi %538, %539 : vector<16x64xi32>
    %c8_i32_276 = arith.constant 8 : i32
    %541 = vector.broadcast %c8_i32_276 : i32 to vector<16x64xi32>
    %542 = arith.muli %540, %541 : vector<16x64xi32>
    %c2_i32_277 = arith.constant 2 : i32
    %543 = vector.broadcast %c2_i32_277 : i32 to vector<16x64xi32>
    %544 = arith.muli %543, %536 : vector<16x64xi32>
    %c0_i32_278 = arith.constant 0 : i32
    %545 = vector.broadcast %c0_i32_278 : i32 to vector<16x64xi32>
    %546 = arith.addi %544, %545 : vector<16x64xi32>
    %547 = arith.addi %542, %546 : vector<16x64xi32>
    %548 = arith.cmpi eq, %532, %547 : vector<16x64xi32>
    %cst_279 = arith.constant 1.000000e+00 : f32
    %cst_280 = arith.constant 0.000000e+00 : f32
    %549 = vector.broadcast %cst_279 : f32 to vector<16x64xf32>
    %550 = vector.broadcast %cst_280 : f32 to vector<16x64xf32>
    %551 = arith.select %548, %549, %550 : vector<16x64xi1>, vector<16x64xf32>
    %cst_281 = arith.constant dense<0.000000e+00> : vector<16x32xf32>
    %552 = tpu.matmul %551, %530, %cst_281 {dimension_numbers = #tpu.dot_dimension_numbers<[1], [0], [0], [1], [0, 0, 1, 1], [], []>} : vector<16x64xf32>, vector<64x32xf32>, vector<16x32xf32> -> vector<16x32xf32>
    %c2_i32_282 = arith.constant 2 : i32
    %553 = vector.broadcast %c2_i32_282 : i32 to vector<16x64xi32>
    %554 = arith.muli %553, %534 : vector<16x64xi32>
    %c0_i32_283 = arith.constant 0 : i32
    %555 = vector.broadcast %c0_i32_283 : i32 to vector<16x64xi32>
    %556 = arith.addi %554, %555 : vector<16x64xi32>
    %c8_i32_284 = arith.constant 8 : i32
    %557 = vector.broadcast %c8_i32_284 : i32 to vector<16x64xi32>
    %558 = arith.muli %556, %557 : vector<16x64xi32>
    %c2_i32_285 = arith.constant 2 : i32
    %559 = vector.broadcast %c2_i32_285 : i32 to vector<16x64xi32>
    %560 = arith.muli %559, %536 : vector<16x64xi32>
    %c1_i32_286 = arith.constant 1 : i32
    %561 = vector.broadcast %c1_i32_286 : i32 to vector<16x64xi32>
    %562 = arith.addi %560, %561 : vector<16x64xi32>
    %563 = arith.addi %558, %562 : vector<16x64xi32>
    %564 = arith.cmpi eq, %532, %563 : vector<16x64xi32>
    %cst_287 = arith.constant 1.000000e+00 : f32
    %cst_288 = arith.constant 0.000000e+00 : f32
    %565 = vector.broadcast %cst_287 : f32 to vector<16x64xf32>
    %566 = vector.broadcast %cst_288 : f32 to vector<16x64xf32>
    %567 = arith.select %564, %565, %566 : vector<16x64xi1>, vector<16x64xf32>
    %cst_289 = arith.constant dense<0.000000e+00> : vector<16x32xf32>
    %568 = tpu.matmul %567, %530, %cst_289 {dimension_numbers = #tpu.dot_dimension_numbers<[1], [0], [0], [1], [0, 0, 1, 1], [], []>} : vector<16x64xf32>, vector<64x32xf32>, vector<16x32xf32> -> vector<16x32xf32>
    %569 = arith.maximumf %552, %568 : vector<16x32xf32>
    %c2_i32_290 = arith.constant 2 : i32
    %570 = vector.broadcast %c2_i32_290 : i32 to vector<16x64xi32>
    %571 = arith.muli %570, %534 : vector<16x64xi32>
    %c1_i32_291 = arith.constant 1 : i32
    %572 = vector.broadcast %c1_i32_291 : i32 to vector<16x64xi32>
    %573 = arith.addi %571, %572 : vector<16x64xi32>
    %c8_i32_292 = arith.constant 8 : i32
    %574 = vector.broadcast %c8_i32_292 : i32 to vector<16x64xi32>
    %575 = arith.muli %573, %574 : vector<16x64xi32>
    %c2_i32_293 = arith.constant 2 : i32
    %576 = vector.broadcast %c2_i32_293 : i32 to vector<16x64xi32>
    %577 = arith.muli %576, %536 : vector<16x64xi32>
    %c0_i32_294 = arith.constant 0 : i32
    %578 = vector.broadcast %c0_i32_294 : i32 to vector<16x64xi32>
    %579 = arith.addi %577, %578 : vector<16x64xi32>
    %580 = arith.addi %575, %579 : vector<16x64xi32>
    %581 = arith.cmpi eq, %532, %580 : vector<16x64xi32>
    %cst_295 = arith.constant 1.000000e+00 : f32
    %cst_296 = arith.constant 0.000000e+00 : f32
    %582 = vector.broadcast %cst_295 : f32 to vector<16x64xf32>
    %583 = vector.broadcast %cst_296 : f32 to vector<16x64xf32>
    %584 = arith.select %581, %582, %583 : vector<16x64xi1>, vector<16x64xf32>
    %cst_297 = arith.constant dense<0.000000e+00> : vector<16x32xf32>
    %585 = tpu.matmul %584, %530, %cst_297 {dimension_numbers = #tpu.dot_dimension_numbers<[1], [0], [0], [1], [0, 0, 1, 1], [], []>} : vector<16x64xf32>, vector<64x32xf32>, vector<16x32xf32> -> vector<16x32xf32>
    %586 = arith.maximumf %569, %585 : vector<16x32xf32>
    %c2_i32_298 = arith.constant 2 : i32
    %587 = vector.broadcast %c2_i32_298 : i32 to vector<16x64xi32>
    %588 = arith.muli %587, %534 : vector<16x64xi32>
    %c1_i32_299 = arith.constant 1 : i32
    %589 = vector.broadcast %c1_i32_299 : i32 to vector<16x64xi32>
    %590 = arith.addi %588, %589 : vector<16x64xi32>
    %c8_i32_300 = arith.constant 8 : i32
    %591 = vector.broadcast %c8_i32_300 : i32 to vector<16x64xi32>
    %592 = arith.muli %590, %591 : vector<16x64xi32>
    %c2_i32_301 = arith.constant 2 : i32
    %593 = vector.broadcast %c2_i32_301 : i32 to vector<16x64xi32>
    %594 = arith.muli %593, %536 : vector<16x64xi32>
    %c1_i32_302 = arith.constant 1 : i32
    %595 = vector.broadcast %c1_i32_302 : i32 to vector<16x64xi32>
    %596 = arith.addi %594, %595 : vector<16x64xi32>
    %597 = arith.addi %592, %596 : vector<16x64xi32>
    %598 = arith.cmpi eq, %532, %597 : vector<16x64xi32>
    %cst_303 = arith.constant 1.000000e+00 : f32
    %cst_304 = arith.constant 0.000000e+00 : f32
    %599 = vector.broadcast %cst_303 : f32 to vector<16x64xf32>
    %600 = vector.broadcast %cst_304 : f32 to vector<16x64xf32>
    %601 = arith.select %598, %599, %600 : vector<16x64xi1>, vector<16x64xf32>
    %cst_305 = arith.constant dense<0.000000e+00> : vector<16x32xf32>
    %602 = tpu.matmul %601, %530, %cst_305 {dimension_numbers = #tpu.dot_dimension_numbers<[1], [0], [0], [1], [0, 0, 1, 1], [], []>} : vector<16x64xf32>, vector<64x32xf32>, vector<16x32xf32> -> vector<16x32xf32>
    %603 = arith.maximumf %586, %602 : vector<16x32xf32>
    %cst_306 = arith.constant 0.000000e+00 : f32
    %604 = vector.broadcast %cst_306 : f32 to vector<26x32xf32>
    %c0_307 = arith.constant 0 : index
    %c0_308 = arith.constant 0 : index
    %605 = vector.load %arg20[%c0_307, %c0_308] : memref<26x32xf32, #tpu.memory_space<vmem>>, vector<26x32xf32>
    tpu.vector_store %arg20[%c0_307, %c0_308], %604 {strides = array<i32>} : memref<26x32xf32, #tpu.memory_space<vmem>>, vector<26x32xf32>,
    %c5 = arith.constant 5 : index
    %c0_309 = arith.constant 0 : index
    %606 = vector.load %arg20[%c5, %c0_309] : memref<26x32xf32, #tpu.memory_space<vmem>>, vector<16x32xf32>
    tpu.vector_store %arg20[%c5, %c0_309], %603 {strides = array<i32>} : memref<26x32xf32, #tpu.memory_space<vmem>>, vector<16x32xf32>,
    %607 = tpu.iota {dimensions = array<i32: 0>} : vector<16x32xi32>
    %c2_i32_310 = arith.constant 2 : i32
    %608 = vector.broadcast %c2_i32_310 : i32 to vector<16x32xi32>
    %609 = arith.shrsi %607, %608 : vector<16x32xi32>
    %c3_i32_311 = arith.constant 3 : i32
    %610 = vector.broadcast %c3_i32_311 : i32 to vector<16x32xi32>
    %611 = arith.andi %607, %610 : vector<16x32xi32>
    %c0_312 = arith.constant 0 : index
    %c0_313 = arith.constant 0 : index
    %612 = vector.load %arg20[%c0_312, %c0_313] : memref<26x32xf32, #tpu.memory_space<vmem>>, vector<16x32xf32>
    %c-1_i32_314 = arith.constant -1 : i32
    %613 = vector.broadcast %c-1_i32_314 : i32 to vector<16x32xi32>
    %614 = arith.addi %609, %613 : vector<16x32xi32>
    %c0_i32_315 = arith.constant 0 : i32
    %615 = vector.broadcast %c0_i32_315 : i32 to vector<16x32xi32>
    %616 = arith.cmpi sge, %614, %615 : vector<16x32xi32>
    %c-1_i32_316 = arith.constant -1 : i32
    %617 = vector.broadcast %c-1_i32_316 : i32 to vector<16x32xi32>
    %618 = arith.addi %609, %617 : vector<16x32xi32>
    %c4_i32_317 = arith.constant 4 : i32
    %619 = vector.broadcast %c4_i32_317 : i32 to vector<16x32xi32>
    %620 = arith.cmpi slt, %618, %619 : vector<16x32xi32>
    %621 = arith.andi %616, %620 : vector<16x32xi1>
    %c-1_i32_318 = arith.constant -1 : i32
    %622 = vector.broadcast %c-1_i32_318 : i32 to vector<16x32xi32>
    %623 = arith.addi %611, %622 : vector<16x32xi32>
    %c0_i32_319 = arith.constant 0 : i32
    %624 = vector.broadcast %c0_i32_319 : i32 to vector<16x32xi32>
    %625 = arith.cmpi sge, %623, %624 : vector<16x32xi32>
    %626 = arith.andi %621, %625 : vector<16x32xi1>
    %c-1_i32_320 = arith.constant -1 : i32
    %627 = vector.broadcast %c-1_i32_320 : i32 to vector<16x32xi32>
    %628 = arith.addi %611, %627 : vector<16x32xi32>
    %c4_i32_321 = arith.constant 4 : i32
    %629 = vector.broadcast %c4_i32_321 : i32 to vector<16x32xi32>
    %630 = arith.cmpi slt, %628, %629 : vector<16x32xi32>
    %631 = arith.andi %626, %630 : vector<16x32xi1>
    %cst_322 = arith.constant 0.000000e+00 : f32
    %632 = vector.broadcast %cst_322 : f32 to vector<16x32xf32>
    %633 = arith.select %631, %612, %632 : vector<16x32xi1>, vector<16x32xf32>
    %c0_323 = arith.constant 0 : index
    %c0_324 = arith.constant 0 : index
    %634 = vector.load %arg23[%c0_323, %c0_324] : memref<16x288xf32, #tpu.memory_space<vmem>>, vector<16x32xf32>
    tpu.vector_store %arg23[%c0_323, %c0_324], %633 {strides = array<i32>} : memref<16x288xf32, #tpu.memory_space<vmem>>, vector<16x32xf32>,
    %c1_325 = arith.constant 1 : index
    %c0_326 = arith.constant 0 : index
    %635 = vector.load %arg20[%c1_325, %c0_326] : memref<26x32xf32, #tpu.memory_space<vmem>>, vector<16x32xf32>
    %c-1_i32_327 = arith.constant -1 : i32
    %636 = vector.broadcast %c-1_i32_327 : i32 to vector<16x32xi32>
    %637 = arith.addi %609, %636 : vector<16x32xi32>
    %c0_i32_328 = arith.constant 0 : i32
    %638 = vector.broadcast %c0_i32_328 : i32 to vector<16x32xi32>
    %639 = arith.cmpi sge, %637, %638 : vector<16x32xi32>
    %c-1_i32_329 = arith.constant -1 : i32
    %640 = vector.broadcast %c-1_i32_329 : i32 to vector<16x32xi32>
    %641 = arith.addi %609, %640 : vector<16x32xi32>
    %c4_i32_330 = arith.constant 4 : i32
    %642 = vector.broadcast %c4_i32_330 : i32 to vector<16x32xi32>
    %643 = arith.cmpi slt, %641, %642 : vector<16x32xi32>
    %644 = arith.andi %639, %643 : vector<16x32xi1>
    %c0_i32_331 = arith.constant 0 : i32
    %645 = vector.broadcast %c0_i32_331 : i32 to vector<16x32xi32>
    %646 = arith.addi %611, %645 : vector<16x32xi32>
    %c0_i32_332 = arith.constant 0 : i32
    %647 = vector.broadcast %c0_i32_332 : i32 to vector<16x32xi32>
    %648 = arith.cmpi sge, %646, %647 : vector<16x32xi32>
    %649 = arith.andi %644, %648 : vector<16x32xi1>
    %c0_i32_333 = arith.constant 0 : i32
    %650 = vector.broadcast %c0_i32_333 : i32 to vector<16x32xi32>
    %651 = arith.addi %611, %650 : vector<16x32xi32>
    %c4_i32_334 = arith.constant 4 : i32
    %652 = vector.broadcast %c4_i32_334 : i32 to vector<16x32xi32>
    %653 = arith.cmpi slt, %651, %652 : vector<16x32xi32>
    %654 = arith.andi %649, %653 : vector<16x32xi1>
    %cst_335 = arith.constant 0.000000e+00 : f32
    %655 = vector.broadcast %cst_335 : f32 to vector<16x32xf32>
    %656 = arith.select %654, %635, %655 : vector<16x32xi1>, vector<16x32xf32>
    %c0_336 = arith.constant 0 : index
    %c32_337 = arith.constant 32 : index
    %657 = vector.load %arg23[%c0_336, %c32_337] : memref<16x288xf32, #tpu.memory_space<vmem>>, vector<16x32xf32>
    tpu.vector_store %arg23[%c0_336, %c32_337], %656 {strides = array<i32>} : memref<16x288xf32, #tpu.memory_space<vmem>>, vector<16x32xf32>,
    %c2_338 = arith.constant 2 : index
    %c0_339 = arith.constant 0 : index
    %658 = vector.load %arg20[%c2_338, %c0_339] : memref<26x32xf32, #tpu.memory_space<vmem>>, vector<16x32xf32>
    %c-1_i32_340 = arith.constant -1 : i32
    %659 = vector.broadcast %c-1_i32_340 : i32 to vector<16x32xi32>
    %660 = arith.addi %609, %659 : vector<16x32xi32>
    %c0_i32_341 = arith.constant 0 : i32
    %661 = vector.broadcast %c0_i32_341 : i32 to vector<16x32xi32>
    %662 = arith.cmpi sge, %660, %661 : vector<16x32xi32>
    %c-1_i32_342 = arith.constant -1 : i32
    %663 = vector.broadcast %c-1_i32_342 : i32 to vector<16x32xi32>
    %664 = arith.addi %609, %663 : vector<16x32xi32>
    %c4_i32_343 = arith.constant 4 : i32
    %665 = vector.broadcast %c4_i32_343 : i32 to vector<16x32xi32>
    %666 = arith.cmpi slt, %664, %665 : vector<16x32xi32>
    %667 = arith.andi %662, %666 : vector<16x32xi1>
    %c1_i32_344 = arith.constant 1 : i32
    %668 = vector.broadcast %c1_i32_344 : i32 to vector<16x32xi32>
    %669 = arith.addi %611, %668 : vector<16x32xi32>
    %c0_i32_345 = arith.constant 0 : i32
    %670 = vector.broadcast %c0_i32_345 : i32 to vector<16x32xi32>
    %671 = arith.cmpi sge, %669, %670 : vector<16x32xi32>
    %672 = arith.andi %667, %671 : vector<16x32xi1>
    %c1_i32_346 = arith.constant 1 : i32
    %673 = vector.broadcast %c1_i32_346 : i32 to vector<16x32xi32>
    %674 = arith.addi %611, %673 : vector<16x32xi32>
    %c4_i32_347 = arith.constant 4 : i32
    %675 = vector.broadcast %c4_i32_347 : i32 to vector<16x32xi32>
    %676 = arith.cmpi slt, %674, %675 : vector<16x32xi32>
    %677 = arith.andi %672, %676 : vector<16x32xi1>
    %cst_348 = arith.constant 0.000000e+00 : f32
    %678 = vector.broadcast %cst_348 : f32 to vector<16x32xf32>
    %679 = arith.select %677, %658, %678 : vector<16x32xi1>, vector<16x32xf32>
    %c0_349 = arith.constant 0 : index
    %c64_350 = arith.constant 64 : index
    %680 = vector.load %arg23[%c0_349, %c64_350] : memref<16x288xf32, #tpu.memory_space<vmem>>, vector<16x32xf32>
    tpu.vector_store %arg23[%c0_349, %c64_350], %679 {strides = array<i32>} : memref<16x288xf32, #tpu.memory_space<vmem>>, vector<16x32xf32>,
    %c4 = arith.constant 4 : index
    %c0_351 = arith.constant 0 : index
    %681 = vector.load %arg20[%c4, %c0_351] : memref<26x32xf32, #tpu.memory_space<vmem>>, vector<16x32xf32>
    %c0_i32_352 = arith.constant 0 : i32
    %682 = vector.broadcast %c0_i32_352 : i32 to vector<16x32xi32>
    %683 = arith.addi %609, %682 : vector<16x32xi32>
    %c0_i32_353 = arith.constant 0 : i32
    %684 = vector.broadcast %c0_i32_353 : i32 to vector<16x32xi32>
    %685 = arith.cmpi sge, %683, %684 : vector<16x32xi32>
    %c0_i32_354 = arith.constant 0 : i32
    %686 = vector.broadcast %c0_i32_354 : i32 to vector<16x32xi32>
    %687 = arith.addi %609, %686 : vector<16x32xi32>
    %c4_i32_355 = arith.constant 4 : i32
    %688 = vector.broadcast %c4_i32_355 : i32 to vector<16x32xi32>
    %689 = arith.cmpi slt, %687, %688 : vector<16x32xi32>
    %690 = arith.andi %685, %689 : vector<16x32xi1>
    %c-1_i32_356 = arith.constant -1 : i32
    %691 = vector.broadcast %c-1_i32_356 : i32 to vector<16x32xi32>
    %692 = arith.addi %611, %691 : vector<16x32xi32>
    %c0_i32_357 = arith.constant 0 : i32
    %693 = vector.broadcast %c0_i32_357 : i32 to vector<16x32xi32>
    %694 = arith.cmpi sge, %692, %693 : vector<16x32xi32>
    %695 = arith.andi %690, %694 : vector<16x32xi1>
    %c-1_i32_358 = arith.constant -1 : i32
    %696 = vector.broadcast %c-1_i32_358 : i32 to vector<16x32xi32>
    %697 = arith.addi %611, %696 : vector<16x32xi32>
    %c4_i32_359 = arith.constant 4 : i32
    %698 = vector.broadcast %c4_i32_359 : i32 to vector<16x32xi32>
    %699 = arith.cmpi slt, %697, %698 : vector<16x32xi32>
    %700 = arith.andi %695, %699 : vector<16x32xi1>
    %cst_360 = arith.constant 0.000000e+00 : f32
    %701 = vector.broadcast %cst_360 : f32 to vector<16x32xf32>
    %702 = arith.select %700, %681, %701 : vector<16x32xi1>, vector<16x32xf32>
    %c0_361 = arith.constant 0 : index
    %c96_362 = arith.constant 96 : index
    %703 = vector.load %arg23[%c0_361, %c96_362] : memref<16x288xf32, #tpu.memory_space<vmem>>, vector<16x32xf32>
    tpu.vector_store %arg23[%c0_361, %c96_362], %702 {strides = array<i32>} : memref<16x288xf32, #tpu.memory_space<vmem>>, vector<16x32xf32>,
    %c5_363 = arith.constant 5 : index
    %c0_364 = arith.constant 0 : index
    %704 = vector.load %arg20[%c5_363, %c0_364] : memref<26x32xf32, #tpu.memory_space<vmem>>, vector<16x32xf32>
    %c0_i32_365 = arith.constant 0 : i32
    %705 = vector.broadcast %c0_i32_365 : i32 to vector<16x32xi32>
    %706 = arith.addi %609, %705 : vector<16x32xi32>
    %c0_i32_366 = arith.constant 0 : i32
    %707 = vector.broadcast %c0_i32_366 : i32 to vector<16x32xi32>
    %708 = arith.cmpi sge, %706, %707 : vector<16x32xi32>
    %c0_i32_367 = arith.constant 0 : i32
    %709 = vector.broadcast %c0_i32_367 : i32 to vector<16x32xi32>
    %710 = arith.addi %609, %709 : vector<16x32xi32>
    %c4_i32_368 = arith.constant 4 : i32
    %711 = vector.broadcast %c4_i32_368 : i32 to vector<16x32xi32>
    %712 = arith.cmpi slt, %710, %711 : vector<16x32xi32>
    %713 = arith.andi %708, %712 : vector<16x32xi1>
    %c0_i32_369 = arith.constant 0 : i32
    %714 = vector.broadcast %c0_i32_369 : i32 to vector<16x32xi32>
    %715 = arith.addi %611, %714 : vector<16x32xi32>
    %c0_i32_370 = arith.constant 0 : i32
    %716 = vector.broadcast %c0_i32_370 : i32 to vector<16x32xi32>
    %717 = arith.cmpi sge, %715, %716 : vector<16x32xi32>
    %718 = arith.andi %713, %717 : vector<16x32xi1>
    %c0_i32_371 = arith.constant 0 : i32
    %719 = vector.broadcast %c0_i32_371 : i32 to vector<16x32xi32>
    %720 = arith.addi %611, %719 : vector<16x32xi32>
    %c4_i32_372 = arith.constant 4 : i32
    %721 = vector.broadcast %c4_i32_372 : i32 to vector<16x32xi32>
    %722 = arith.cmpi slt, %720, %721 : vector<16x32xi32>
    %723 = arith.andi %718, %722 : vector<16x32xi1>
    %cst_373 = arith.constant 0.000000e+00 : f32
    %724 = vector.broadcast %cst_373 : f32 to vector<16x32xf32>
    %725 = arith.select %723, %704, %724 : vector<16x32xi1>, vector<16x32xf32>
    %c0_374 = arith.constant 0 : index
    %c128_375 = arith.constant 128 : index
    %726 = vector.load %arg23[%c0_374, %c128_375] : memref<16x288xf32, #tpu.memory_space<vmem>>, vector<16x32xf32>
    tpu.vector_store %arg23[%c0_374, %c128_375], %725 {strides = array<i32>} : memref<16x288xf32, #tpu.memory_space<vmem>>, vector<16x32xf32>,
    %c6_376 = arith.constant 6 : index
    %c0_377 = arith.constant 0 : index
    %727 = vector.load %arg20[%c6_376, %c0_377] : memref<26x32xf32, #tpu.memory_space<vmem>>, vector<16x32xf32>
    %c0_i32_378 = arith.constant 0 : i32
    %728 = vector.broadcast %c0_i32_378 : i32 to vector<16x32xi32>
    %729 = arith.addi %609, %728 : vector<16x32xi32>
    %c0_i32_379 = arith.constant 0 : i32
    %730 = vector.broadcast %c0_i32_379 : i32 to vector<16x32xi32>
    %731 = arith.cmpi sge, %729, %730 : vector<16x32xi32>
    %c0_i32_380 = arith.constant 0 : i32
    %732 = vector.broadcast %c0_i32_380 : i32 to vector<16x32xi32>
    %733 = arith.addi %609, %732 : vector<16x32xi32>
    %c4_i32_381 = arith.constant 4 : i32
    %734 = vector.broadcast %c4_i32_381 : i32 to vector<16x32xi32>
    %735 = arith.cmpi slt, %733, %734 : vector<16x32xi32>
    %736 = arith.andi %731, %735 : vector<16x32xi1>
    %c1_i32_382 = arith.constant 1 : i32
    %737 = vector.broadcast %c1_i32_382 : i32 to vector<16x32xi32>
    %738 = arith.addi %611, %737 : vector<16x32xi32>
    %c0_i32_383 = arith.constant 0 : i32
    %739 = vector.broadcast %c0_i32_383 : i32 to vector<16x32xi32>
    %740 = arith.cmpi sge, %738, %739 : vector<16x32xi32>
    %741 = arith.andi %736, %740 : vector<16x32xi1>
    %c1_i32_384 = arith.constant 1 : i32
    %742 = vector.broadcast %c1_i32_384 : i32 to vector<16x32xi32>
    %743 = arith.addi %611, %742 : vector<16x32xi32>
    %c4_i32_385 = arith.constant 4 : i32
    %744 = vector.broadcast %c4_i32_385 : i32 to vector<16x32xi32>
    %745 = arith.cmpi slt, %743, %744 : vector<16x32xi32>
    %746 = arith.andi %741, %745 : vector<16x32xi1>
    %cst_386 = arith.constant 0.000000e+00 : f32
    %747 = vector.broadcast %cst_386 : f32 to vector<16x32xf32>
    %748 = arith.select %746, %727, %747 : vector<16x32xi1>, vector<16x32xf32>
    %c0_387 = arith.constant 0 : index
    %c160 = arith.constant 160 : index
    %749 = vector.load %arg23[%c0_387, %c160] : memref<16x288xf32, #tpu.memory_space<vmem>>, vector<16x32xf32>
    tpu.vector_store %arg23[%c0_387, %c160], %748 {strides = array<i32>} : memref<16x288xf32, #tpu.memory_space<vmem>>, vector<16x32xf32>,
    %c8_388 = arith.constant 8 : index
    %c0_389 = arith.constant 0 : index
    %750 = vector.load %arg20[%c8_388, %c0_389] : memref<26x32xf32, #tpu.memory_space<vmem>>, vector<16x32xf32>
    %c1_i32_390 = arith.constant 1 : i32
    %751 = vector.broadcast %c1_i32_390 : i32 to vector<16x32xi32>
    %752 = arith.addi %609, %751 : vector<16x32xi32>
    %c0_i32_391 = arith.constant 0 : i32
    %753 = vector.broadcast %c0_i32_391 : i32 to vector<16x32xi32>
    %754 = arith.cmpi sge, %752, %753 : vector<16x32xi32>
    %c1_i32_392 = arith.constant 1 : i32
    %755 = vector.broadcast %c1_i32_392 : i32 to vector<16x32xi32>
    %756 = arith.addi %609, %755 : vector<16x32xi32>
    %c4_i32_393 = arith.constant 4 : i32
    %757 = vector.broadcast %c4_i32_393 : i32 to vector<16x32xi32>
    %758 = arith.cmpi slt, %756, %757 : vector<16x32xi32>
    %759 = arith.andi %754, %758 : vector<16x32xi1>
    %c-1_i32_394 = arith.constant -1 : i32
    %760 = vector.broadcast %c-1_i32_394 : i32 to vector<16x32xi32>
    %761 = arith.addi %611, %760 : vector<16x32xi32>
    %c0_i32_395 = arith.constant 0 : i32
    %762 = vector.broadcast %c0_i32_395 : i32 to vector<16x32xi32>
    %763 = arith.cmpi sge, %761, %762 : vector<16x32xi32>
    %764 = arith.andi %759, %763 : vector<16x32xi1>
    %c-1_i32_396 = arith.constant -1 : i32
    %765 = vector.broadcast %c-1_i32_396 : i32 to vector<16x32xi32>
    %766 = arith.addi %611, %765 : vector<16x32xi32>
    %c4_i32_397 = arith.constant 4 : i32
    %767 = vector.broadcast %c4_i32_397 : i32 to vector<16x32xi32>
    %768 = arith.cmpi slt, %766, %767 : vector<16x32xi32>
    %769 = arith.andi %764, %768 : vector<16x32xi1>
    %cst_398 = arith.constant 0.000000e+00 : f32
    %770 = vector.broadcast %cst_398 : f32 to vector<16x32xf32>
    %771 = arith.select %769, %750, %770 : vector<16x32xi1>, vector<16x32xf32>
    %c0_399 = arith.constant 0 : index
    %c192 = arith.constant 192 : index
    %772 = vector.load %arg23[%c0_399, %c192] : memref<16x288xf32, #tpu.memory_space<vmem>>, vector<16x32xf32>
    tpu.vector_store %arg23[%c0_399, %c192], %771 {strides = array<i32>} : memref<16x288xf32, #tpu.memory_space<vmem>>, vector<16x32xf32>,
    %c9_400 = arith.constant 9 : index
    %c0_401 = arith.constant 0 : index
    %773 = vector.load %arg20[%c9_400, %c0_401] : memref<26x32xf32, #tpu.memory_space<vmem>>, vector<16x32xf32>
    %c1_i32_402 = arith.constant 1 : i32
    %774 = vector.broadcast %c1_i32_402 : i32 to vector<16x32xi32>
    %775 = arith.addi %609, %774 : vector<16x32xi32>
    %c0_i32_403 = arith.constant 0 : i32
    %776 = vector.broadcast %c0_i32_403 : i32 to vector<16x32xi32>
    %777 = arith.cmpi sge, %775, %776 : vector<16x32xi32>
    %c1_i32_404 = arith.constant 1 : i32
    %778 = vector.broadcast %c1_i32_404 : i32 to vector<16x32xi32>
    %779 = arith.addi %609, %778 : vector<16x32xi32>
    %c4_i32_405 = arith.constant 4 : i32
    %780 = vector.broadcast %c4_i32_405 : i32 to vector<16x32xi32>
    %781 = arith.cmpi slt, %779, %780 : vector<16x32xi32>
    %782 = arith.andi %777, %781 : vector<16x32xi1>
    %c0_i32_406 = arith.constant 0 : i32
    %783 = vector.broadcast %c0_i32_406 : i32 to vector<16x32xi32>
    %784 = arith.addi %611, %783 : vector<16x32xi32>
    %c0_i32_407 = arith.constant 0 : i32
    %785 = vector.broadcast %c0_i32_407 : i32 to vector<16x32xi32>
    %786 = arith.cmpi sge, %784, %785 : vector<16x32xi32>
    %787 = arith.andi %782, %786 : vector<16x32xi1>
    %c0_i32_408 = arith.constant 0 : i32
    %788 = vector.broadcast %c0_i32_408 : i32 to vector<16x32xi32>
    %789 = arith.addi %611, %788 : vector<16x32xi32>
    %c4_i32_409 = arith.constant 4 : i32
    %790 = vector.broadcast %c4_i32_409 : i32 to vector<16x32xi32>
    %791 = arith.cmpi slt, %789, %790 : vector<16x32xi32>
    %792 = arith.andi %787, %791 : vector<16x32xi1>
    %cst_410 = arith.constant 0.000000e+00 : f32
    %793 = vector.broadcast %cst_410 : f32 to vector<16x32xf32>
    %794 = arith.select %792, %773, %793 : vector<16x32xi1>, vector<16x32xf32>
    %c0_411 = arith.constant 0 : index
    %c224 = arith.constant 224 : index
    %795 = vector.load %arg23[%c0_411, %c224] : memref<16x288xf32, #tpu.memory_space<vmem>>, vector<16x32xf32>
    tpu.vector_store %arg23[%c0_411, %c224], %794 {strides = array<i32>} : memref<16x288xf32, #tpu.memory_space<vmem>>, vector<16x32xf32>,
    %c10_412 = arith.constant 10 : index
    %c0_413 = arith.constant 0 : index
    %796 = vector.load %arg20[%c10_412, %c0_413] : memref<26x32xf32, #tpu.memory_space<vmem>>, vector<16x32xf32>
    %c1_i32_414 = arith.constant 1 : i32
    %797 = vector.broadcast %c1_i32_414 : i32 to vector<16x32xi32>
    %798 = arith.addi %609, %797 : vector<16x32xi32>
    %c0_i32_415 = arith.constant 0 : i32
    %799 = vector.broadcast %c0_i32_415 : i32 to vector<16x32xi32>
    %800 = arith.cmpi sge, %798, %799 : vector<16x32xi32>
    %c1_i32_416 = arith.constant 1 : i32
    %801 = vector.broadcast %c1_i32_416 : i32 to vector<16x32xi32>
    %802 = arith.addi %609, %801 : vector<16x32xi32>
    %c4_i32_417 = arith.constant 4 : i32
    %803 = vector.broadcast %c4_i32_417 : i32 to vector<16x32xi32>
    %804 = arith.cmpi slt, %802, %803 : vector<16x32xi32>
    %805 = arith.andi %800, %804 : vector<16x32xi1>
    %c1_i32_418 = arith.constant 1 : i32
    %806 = vector.broadcast %c1_i32_418 : i32 to vector<16x32xi32>
    %807 = arith.addi %611, %806 : vector<16x32xi32>
    %c0_i32_419 = arith.constant 0 : i32
    %808 = vector.broadcast %c0_i32_419 : i32 to vector<16x32xi32>
    %809 = arith.cmpi sge, %807, %808 : vector<16x32xi32>
    %810 = arith.andi %805, %809 : vector<16x32xi1>
    %c1_i32_420 = arith.constant 1 : i32
    %811 = vector.broadcast %c1_i32_420 : i32 to vector<16x32xi32>
    %812 = arith.addi %611, %811 : vector<16x32xi32>
    %c4_i32_421 = arith.constant 4 : i32
    %813 = vector.broadcast %c4_i32_421 : i32 to vector<16x32xi32>
    %814 = arith.cmpi slt, %812, %813 : vector<16x32xi32>
    %815 = arith.andi %810, %814 : vector<16x32xi1>
    %cst_422 = arith.constant 0.000000e+00 : f32
    %816 = vector.broadcast %cst_422 : f32 to vector<16x32xf32>
    %817 = arith.select %815, %796, %816 : vector<16x32xi1>, vector<16x32xf32>
    %c0_423 = arith.constant 0 : index
    %c256 = arith.constant 256 : index
    %818 = vector.load %arg23[%c0_423, %c256] : memref<16x288xf32, #tpu.memory_space<vmem>>, vector<16x32xf32>
    tpu.vector_store %arg23[%c0_423, %c256], %817 {strides = array<i32>} : memref<16x288xf32, #tpu.memory_space<vmem>>, vector<16x32xf32>,
    %c0_424 = arith.constant 0 : index
    %c0_425 = arith.constant 0 : index
    %819 = vector.load %arg23[%c0_424, %c0_425] : memref<16x288xf32, #tpu.memory_space<vmem>>, vector<16x288xf32>
    %820 = arith.truncf %819 : vector<16x288xf32> to vector<16x288xbf16>
    %c0_426 = arith.constant 0 : index
    %c0_427 = arith.constant 0 : index
    %821 = vector.load %arg8[%c0_426, %c0_427] : memref<288x64xbf16, #tpu.memory_space<vmem>>, vector<288x64xbf16>
    %cst_428 = arith.constant dense<0.000000e+00> : vector<16x64xf32>
    %822 = tpu.matmul %820, %821, %cst_428 {dimension_numbers = #tpu.dot_dimension_numbers<[1], [0], [0], [1], [0, 0, 1, 1], [], []>} : vector<16x288xbf16>, vector<288x64xbf16>, vector<16x64xf32> -> vector<16x64xf32>
    %c0_429 = arith.constant 0 : index
    %c0_430 = arith.constant 0 : index
    %823 = vector.load %arg9[%c0_429, %c0_430] : memref<1x64xf32, #tpu.memory_space<vmem>>, vector<1x64xf32>
    %824 = vector.broadcast %823 : vector<1x64xf32> to vector<16x64xf32>
    %825 = arith.mulf %822, %824 : vector<16x64xf32>
    %c0_431 = arith.constant 0 : index
    %c0_432 = arith.constant 0 : index
    %826 = vector.load %arg10[%c0_431, %c0_432] : memref<1x64xf32, #tpu.memory_space<vmem>>, vector<1x64xf32>
    %827 = vector.broadcast %826 : vector<1x64xf32> to vector<16x64xf32>
    %828 = arith.addf %825, %827 : vector<16x64xf32>
    %cst_433 = arith.constant 0.000000e+00 : f32
    %829 = vector.broadcast %cst_433 : f32 to vector<16x64xf32>
    %830 = arith.maximumf %828, %829 : vector<16x64xf32>
    %831 = tpu.iota {dimensions = array<i32: 0>} : vector<4x16xi32>
    %832 = tpu.iota {dimensions = array<i32: 1>} : vector<4x16xi32>
    %c1_i32_434 = arith.constant 1 : i32
    %833 = vector.broadcast %c1_i32_434 : i32 to vector<4x16xi32>
    %834 = arith.shrsi %831, %833 : vector<4x16xi32>
    %c1_i32_435 = arith.constant 1 : i32
    %835 = vector.broadcast %c1_i32_435 : i32 to vector<4x16xi32>
    %836 = arith.andi %831, %835 : vector<4x16xi32>
    %c2_i32_436 = arith.constant 2 : i32
    %837 = vector.broadcast %c2_i32_436 : i32 to vector<4x16xi32>
    %838 = arith.muli %837, %834 : vector<4x16xi32>
    %c0_i32_437 = arith.constant 0 : i32
    %839 = vector.broadcast %c0_i32_437 : i32 to vector<4x16xi32>
    %840 = arith.addi %838, %839 : vector<4x16xi32>
    %c4_i32_438 = arith.constant 4 : i32
    %841 = vector.broadcast %c4_i32_438 : i32 to vector<4x16xi32>
    %842 = arith.muli %840, %841 : vector<4x16xi32>
    %c2_i32_439 = arith.constant 2 : i32
    %843 = vector.broadcast %c2_i32_439 : i32 to vector<4x16xi32>
    %844 = arith.muli %843, %836 : vector<4x16xi32>
    %c0_i32_440 = arith.constant 0 : i32
    %845 = vector.broadcast %c0_i32_440 : i32 to vector<4x16xi32>
    %846 = arith.addi %844, %845 : vector<4x16xi32>
    %847 = arith.addi %842, %846 : vector<4x16xi32>
    %848 = arith.cmpi eq, %832, %847 : vector<4x16xi32>
    %cst_441 = arith.constant 1.000000e+00 : f32
    %cst_442 = arith.constant 0.000000e+00 : f32
    %849 = vector.broadcast %cst_441 : f32 to vector<4x16xf32>
    %850 = vector.broadcast %cst_442 : f32 to vector<4x16xf32>
    %851 = arith.select %848, %849, %850 : vector<4x16xi1>, vector<4x16xf32>
    %cst_443 = arith.constant dense<0.000000e+00> : vector<4x64xf32>
    %852 = tpu.matmul %851, %830, %cst_443 {dimension_numbers = #tpu.dot_dimension_numbers<[1], [0], [0], [1], [0, 0, 1, 1], [], []>} : vector<4x16xf32>, vector<16x64xf32>, vector<4x64xf32> -> vector<4x64xf32>
    %c2_i32_444 = arith.constant 2 : i32
    %853 = vector.broadcast %c2_i32_444 : i32 to vector<4x16xi32>
    %854 = arith.muli %853, %834 : vector<4x16xi32>
    %c0_i32_445 = arith.constant 0 : i32
    %855 = vector.broadcast %c0_i32_445 : i32 to vector<4x16xi32>
    %856 = arith.addi %854, %855 : vector<4x16xi32>
    %c4_i32_446 = arith.constant 4 : i32
    %857 = vector.broadcast %c4_i32_446 : i32 to vector<4x16xi32>
    %858 = arith.muli %856, %857 : vector<4x16xi32>
    %c2_i32_447 = arith.constant 2 : i32
    %859 = vector.broadcast %c2_i32_447 : i32 to vector<4x16xi32>
    %860 = arith.muli %859, %836 : vector<4x16xi32>
    %c1_i32_448 = arith.constant 1 : i32
    %861 = vector.broadcast %c1_i32_448 : i32 to vector<4x16xi32>
    %862 = arith.addi %860, %861 : vector<4x16xi32>
    %863 = arith.addi %858, %862 : vector<4x16xi32>
    %864 = arith.cmpi eq, %832, %863 : vector<4x16xi32>
    %cst_449 = arith.constant 1.000000e+00 : f32
    %cst_450 = arith.constant 0.000000e+00 : f32
    %865 = vector.broadcast %cst_449 : f32 to vector<4x16xf32>
    %866 = vector.broadcast %cst_450 : f32 to vector<4x16xf32>
    %867 = arith.select %864, %865, %866 : vector<4x16xi1>, vector<4x16xf32>
    %cst_451 = arith.constant dense<0.000000e+00> : vector<4x64xf32>
    %868 = tpu.matmul %867, %830, %cst_451 {dimension_numbers = #tpu.dot_dimension_numbers<[1], [0], [0], [1], [0, 0, 1, 1], [], []>} : vector<4x16xf32>, vector<16x64xf32>, vector<4x64xf32> -> vector<4x64xf32>
    %869 = arith.maximumf %852, %868 : vector<4x64xf32>
    %c2_i32_452 = arith.constant 2 : i32
    %870 = vector.broadcast %c2_i32_452 : i32 to vector<4x16xi32>
    %871 = arith.muli %870, %834 : vector<4x16xi32>
    %c1_i32_453 = arith.constant 1 : i32
    %872 = vector.broadcast %c1_i32_453 : i32 to vector<4x16xi32>
    %873 = arith.addi %871, %872 : vector<4x16xi32>
    %c4_i32_454 = arith.constant 4 : i32
    %874 = vector.broadcast %c4_i32_454 : i32 to vector<4x16xi32>
    %875 = arith.muli %873, %874 : vector<4x16xi32>
    %c2_i32_455 = arith.constant 2 : i32
    %876 = vector.broadcast %c2_i32_455 : i32 to vector<4x16xi32>
    %877 = arith.muli %876, %836 : vector<4x16xi32>
    %c0_i32_456 = arith.constant 0 : i32
    %878 = vector.broadcast %c0_i32_456 : i32 to vector<4x16xi32>
    %879 = arith.addi %877, %878 : vector<4x16xi32>
    %880 = arith.addi %875, %879 : vector<4x16xi32>
    %881 = arith.cmpi eq, %832, %880 : vector<4x16xi32>
    %cst_457 = arith.constant 1.000000e+00 : f32
    %cst_458 = arith.constant 0.000000e+00 : f32
    %882 = vector.broadcast %cst_457 : f32 to vector<4x16xf32>
    %883 = vector.broadcast %cst_458 : f32 to vector<4x16xf32>
    %884 = arith.select %881, %882, %883 : vector<4x16xi1>, vector<4x16xf32>
    %cst_459 = arith.constant dense<0.000000e+00> : vector<4x64xf32>
    %885 = tpu.matmul %884, %830, %cst_459 {dimension_numbers = #tpu.dot_dimension_numbers<[1], [0], [0], [1], [0, 0, 1, 1], [], []>} : vector<4x16xf32>, vector<16x64xf32>, vector<4x64xf32> -> vector<4x64xf32>
    %886 = arith.maximumf %869, %885 : vector<4x64xf32>
    %c2_i32_460 = arith.constant 2 : i32
    %887 = vector.broadcast %c2_i32_460 : i32 to vector<4x16xi32>
    %888 = arith.muli %887, %834 : vector<4x16xi32>
    %c1_i32_461 = arith.constant 1 : i32
    %889 = vector.broadcast %c1_i32_461 : i32 to vector<4x16xi32>
    %890 = arith.addi %888, %889 : vector<4x16xi32>
    %c4_i32_462 = arith.constant 4 : i32
    %891 = vector.broadcast %c4_i32_462 : i32 to vector<4x16xi32>
    %892 = arith.muli %890, %891 : vector<4x16xi32>
    %c2_i32_463 = arith.constant 2 : i32
    %893 = vector.broadcast %c2_i32_463 : i32 to vector<4x16xi32>
    %894 = arith.muli %893, %836 : vector<4x16xi32>
    %c1_i32_464 = arith.constant 1 : i32
    %895 = vector.broadcast %c1_i32_464 : i32 to vector<4x16xi32>
    %896 = arith.addi %894, %895 : vector<4x16xi32>
    %897 = arith.addi %892, %896 : vector<4x16xi32>
    %898 = arith.cmpi eq, %832, %897 : vector<4x16xi32>
    %cst_465 = arith.constant 1.000000e+00 : f32
    %cst_466 = arith.constant 0.000000e+00 : f32
    %899 = vector.broadcast %cst_465 : f32 to vector<4x16xf32>
    %900 = vector.broadcast %cst_466 : f32 to vector<4x16xf32>
    %901 = arith.select %898, %899, %900 : vector<4x16xi1>, vector<4x16xf32>
    %cst_467 = arith.constant dense<0.000000e+00> : vector<4x64xf32>
    %902 = tpu.matmul %901, %830, %cst_467 {dimension_numbers = #tpu.dot_dimension_numbers<[1], [0], [0], [1], [0, 0, 1, 1], [], []>} : vector<4x16xf32>, vector<16x64xf32>, vector<4x64xf32> -> vector<4x64xf32>
    %903 = arith.maximumf %886, %902 : vector<4x64xf32>
    %904 = vector.extract_strided_slice %903 {offsets = [0, 0], sizes = [1, 64], strides = [1, 1]} : vector<4x64xf32> to vector<1x64xf32>
    %c0_468 = arith.constant 0 : index
    %c0_469 = arith.constant 0 : index
    %905 = vector.load %arg24[%c0_468, %c0_469] : memref<1x256xf32, #tpu.memory_space<vmem>>, vector<1x64xf32>
    tpu.vector_store %arg24[%c0_468, %c0_469], %904 {strides = array<i32>} : memref<1x256xf32, #tpu.memory_space<vmem>>, vector<1x64xf32>,
    %906 = vector.extract_strided_slice %903 {offsets = [1, 0], sizes = [1, 64], strides = [1, 1]} : vector<4x64xf32> to vector<1x64xf32>
    %c0_470 = arith.constant 0 : index
    %c64_471 = arith.constant 64 : index
    %907 = vector.load %arg24[%c0_470, %c64_471] : memref<1x256xf32, #tpu.memory_space<vmem>>, vector<1x64xf32>
    tpu.vector_store %arg24[%c0_470, %c64_471], %906 {strides = array<i32>} : memref<1x256xf32, #tpu.memory_space<vmem>>, vector<1x64xf32>,
    %908 = vector.extract_strided_slice %903 {offsets = [2, 0], sizes = [1, 64], strides = [1, 1]} : vector<4x64xf32> to vector<1x64xf32>
    %c0_472 = arith.constant 0 : index
    %c128_473 = arith.constant 128 : index
    %909 = vector.load %arg24[%c0_472, %c128_473] : memref<1x256xf32, #tpu.memory_space<vmem>>, vector<1x64xf32>
    tpu.vector_store %arg24[%c0_472, %c128_473], %908 {strides = array<i32>} : memref<1x256xf32, #tpu.memory_space<vmem>>, vector<1x64xf32>,
    %910 = vector.extract_strided_slice %903 {offsets = [3, 0], sizes = [1, 64], strides = [1, 1]} : vector<4x64xf32> to vector<1x64xf32>
    %c0_474 = arith.constant 0 : index
    %c192_475 = arith.constant 192 : index
    %911 = vector.load %arg24[%c0_474, %c192_475] : memref<1x256xf32, #tpu.memory_space<vmem>>, vector<1x64xf32>
    tpu.vector_store %arg24[%c0_474, %c192_475], %910 {strides = array<i32>} : memref<1x256xf32, #tpu.memory_space<vmem>>, vector<1x64xf32>,
    %c0_476 = arith.constant 0 : index
    %c0_477 = arith.constant 0 : index
    %912 = vector.load %arg24[%c0_476, %c0_477] : memref<1x256xf32, #tpu.memory_space<vmem>>, vector<1x256xf32>
    %913 = arith.truncf %912 : vector<1x256xf32> to vector<1x256xbf16>
    %c0_478 = arith.constant 0 : index
    %c0_479 = arith.constant 0 : index
    %914 = vector.load %arg11[%c0_478, %c0_479] : memref<256x512xbf16, #tpu.memory_space<vmem>>, vector<256x512xbf16>
    %cst_480 = arith.constant dense<0.000000e+00> : vector<1x512xf32>
    %915 = tpu.matmul %913, %914, %cst_480 {dimension_numbers = #tpu.dot_dimension_numbers<[1], [0], [0], [1], [0, 0, 1, 1], [], []>} : vector<1x256xbf16>, vector<256x512xbf16>, vector<1x512xf32> -> vector<1x512xf32>
    %c0_481 = arith.constant 0 : index
    %c0_482 = arith.constant 0 : index
    %916 = vector.load %arg12[%c0_481, %c0_482] : memref<1x512xf32, #tpu.memory_space<vmem>>, vector<1x512xf32>
    %917 = arith.addf %915, %916 : vector<1x512xf32>
    %cst_483 = arith.constant 0.000000e+00 : f32
    %918 = vector.broadcast %cst_483 : f32 to vector<1x512xf32>
    %919 = arith.maximumf %917, %918 : vector<1x512xf32>
    %920 = arith.truncf %919 : vector<1x512xf32> to vector<1x512xbf16>
    %c0_484 = arith.constant 0 : index
    %c0_485 = arith.constant 0 : index
    %921 = vector.load %arg13[%c0_484, %c0_485] : memref<512x128xbf16, #tpu.memory_space<vmem>>, vector<512x128xbf16>
    %cst_486 = arith.constant dense<0.000000e+00> : vector<1x128xf32>
    %922 = tpu.matmul %920, %921, %cst_486 {dimension_numbers = #tpu.dot_dimension_numbers<[1], [0], [0], [1], [0, 0, 1, 1], [], []>} : vector<1x512xbf16>, vector<512x128xbf16>, vector<1x128xf32> -> vector<1x128xf32>
    %c0_487 = arith.constant 0 : index
    %c0_488 = arith.constant 0 : index
    %923 = vector.load %arg14[%c0_487, %c0_488] : memref<1x128xf32, #tpu.memory_space<vmem>>, vector<1x128xf32>
    %924 = arith.addf %922, %923 : vector<1x128xf32>
    %cst_489 = arith.constant 0.000000e+00 : f32
    %925 = vector.broadcast %cst_489 : f32 to vector<1x128xf32>
    %926 = arith.maximumf %924, %925 : vector<1x128xf32>
    %927 = arith.truncf %926 : vector<1x128xf32> to vector<1x128xbf16>
    %c0_490 = arith.constant 0 : index
    %c0_491 = arith.constant 0 : index
    %928 = vector.load %arg15[%c0_490, %c0_491] : memref<128x10xbf16, #tpu.memory_space<vmem>>, vector<128x10xbf16>
    %cst_492 = arith.constant dense<0.000000e+00> : vector<1x10xf32>
    %929 = tpu.matmul %927, %928, %cst_492 {dimension_numbers = #tpu.dot_dimension_numbers<[1], [0], [0], [1], [0, 0, 1, 1], [], []>} : vector<1x128xbf16>, vector<128x10xbf16>, vector<1x10xf32> -> vector<1x10xf32>
    %c0_493 = arith.constant 0 : index
    %c0_494 = arith.constant 0 : index
    %930 = vector.load %arg16[%c0_493, %c0_494] : memref<1x10xf32, #tpu.memory_space<vmem>>, vector<1x10xf32>
    %931 = arith.addf %929, %930 : vector<1x10xf32>
    %c0_495 = arith.constant 0 : index
    %c0_496 = arith.constant 0 : index
    %c0_497 = arith.constant 0 : index
    %932 = vector.load %arg17[%c0_495, %c0_496, %c0_497] : memref<1x1x10xf32, #tpu.memory_space<vmem>>, vector<1x1x10xf32>
    %933 = vector.shape_cast %932 : vector<1x1x10xf32> to vector<1x10xf32>
    %934 = vector.shape_cast %931 : vector<1x10xf32> to vector<1x1x10xf32>
    tpu.vector_store %arg17[%c0_495, %c0_496, %c0_497], %934 {strides = array<i32>} : memref<1x1x10xf32, #tpu.memory_space<vmem>>, vector<1x1x10xf32>,
    return
  }
  func.func @transform_0(%arg0: i32) -> (i32, i32, i32) {
    %c0_i32 = arith.constant 0 : i32
    %c0_i32_0 = arith.constant 0 : i32
    %c0_i32_1 = arith.constant 0 : i32
    return %arg0, %c0_i32, %c0_i32_0 : i32, i32, i32
  }
  func.func @transform_1(%arg0: i32) -> (i32, i32) {
    %c0_i32 = arith.constant 0 : i32
    %c0_i32_0 = arith.constant 0 : i32
    %c0_i32_1 = arith.constant 0 : i32
    return %c0_i32, %c0_i32_0 : i32, i32
  }
  func.func @transform_2(%arg0: i32) -> (i32, i32) {
    %c0_i32 = arith.constant 0 : i32
    %c0_i32_0 = arith.constant 0 : i32
    %c0_i32_1 = arith.constant 0 : i32
    return %c0_i32, %c0_i32_0 : i32, i32
  }
  func.func @transform_3(%arg0: i32) -> (i32, i32) {
    %c0_i32 = arith.constant 0 : i32
    %c0_i32_0 = arith.constant 0 : i32
    %c0_i32_1 = arith.constant 0 : i32
    return %c0_i32, %c0_i32_0 : i32, i32
  }
  func.func @transform_4(%arg0: i32) -> (i32, i32) {
    %c0_i32 = arith.constant 0 : i32
    %c0_i32_0 = arith.constant 0 : i32
    %c0_i32_1 = arith.constant 0 : i32
    return %c0_i32, %c0_i32_0 : i32, i32
  }
  func.func @transform_5(%arg0: i32) -> (i32, i32) {
    %c0_i32 = arith.constant 0 : i32
    %c0_i32_0 = arith.constant 0 : i32
    %c0_i32_1 = arith.constant 0 : i32
    return %c0_i32, %c0_i32_0 : i32, i32
  }
  func.func @transform_6(%arg0: i32) -> (i32, i32) {
    %c0_i32 = arith.constant 0 : i32
    %c0_i32_0 = arith.constant 0 : i32
    %c0_i32_1 = arith.constant 0 : i32
    return %c0_i32, %c0_i32_0 : i32, i32
  }
  func.func @transform_7(%arg0: i32) -> (i32, i32) {
    %c0_i32 = arith.constant 0 : i32
    %c0_i32_0 = arith.constant 0 : i32
    %c0_i32_1 = arith.constant 0 : i32
    return %c0_i32, %c0_i32_0 : i32, i32
  }
  func.func @transform_8(%arg0: i32) -> (i32, i32) {
    %c0_i32 = arith.constant 0 : i32
    %c0_i32_0 = arith.constant 0 : i32
    %c0_i32_1 = arith.constant 0 : i32
    return %c0_i32, %c0_i32_0 : i32, i32
  }
  func.func @transform_9(%arg0: i32) -> (i32, i32) {
    %c0_i32 = arith.constant 0 : i32
    %c0_i32_0 = arith.constant 0 : i32
    %c0_i32_1 = arith.constant 0 : i32
    return %c0_i32, %c0_i32_0 : i32, i32
  }
  func.func @transform_10(%arg0: i32) -> (i32, i32) {
    %c0_i32 = arith.constant 0 : i32
    %c0_i32_0 = arith.constant 0 : i32
    %c0_i32_1 = arith.constant 0 : i32
    return %c0_i32, %c0_i32_0 : i32, i32
  }
  func.func @transform_11(%arg0: i32) -> (i32, i32) {
    %c0_i32 = arith.constant 0 : i32
    %c0_i32_0 = arith.constant 0 : i32
    %c0_i32_1 = arith.constant 0 : i32
    return %c0_i32, %c0_i32_0 : i32, i32
  }
  func.func @transform_12(%arg0: i32) -> (i32, i32) {
    %c0_i32 = arith.constant 0 : i32
    %c0_i32_0 = arith.constant 0 : i32
    %c0_i32_1 = arith.constant 0 : i32
    return %c0_i32, %c0_i32_0 : i32, i32
  }
  func.func @transform_13(%arg0: i32) -> (i32, i32) {
    %c0_i32 = arith.constant 0 : i32
    %c0_i32_0 = arith.constant 0 : i32
    %c0_i32_1 = arith.constant 0 : i32
    return %c0_i32, %c0_i32_0 : i32, i32
  }
  func.func @transform_14(%arg0: i32) -> (i32, i32) {
    %c0_i32 = arith.constant 0 : i32
    %c0_i32_0 = arith.constant 0 : i32
    %c0_i32_1 = arith.constant 0 : i32
    return %c0_i32, %c0_i32_0 : i32, i32
  }
  func.func @transform_15(%arg0: i32) -> (i32, i32) {
    %c0_i32 = arith.constant 0 : i32
    %c0_i32_0 = arith.constant 0 : i32
    %c0_i32_1 = arith.constant 0 : i32
    return %c0_i32, %c0_i32_0 : i32, i32
  }
  func.func @transform_16(%arg0: i32) -> (i32, i32, i32) {
    %c0_i32 = arith.constant 0 : i32
    %c0_i32_0 = arith.constant 0 : i32
    %c0_i32_1 = arith.constant 0 : i32
    return %arg0, %c0_i32, %c0_i32_0 : i32, i32, i32
  }
}

</mosaic_0001>

<bundles_post_ra>
// kernel: _lambda_.1
= control target key start
LH: loop header
LB: loop body
LE: loop exit
PB: predicated region body
PF: predicated region fallthrough
CT: control target
= control target key end

     0   :  { %s14982_s0 = inlined_call_operand.vmem [shape: f32[2,256,3], index: 0, kind: input, shape index: {}]   ;;  %s14983_s1 = inlined_call_operand.vmem [shape: bf16[32,16], index: 1, kind: input, shape index: {}]   ;;  %s14984_s2 = inlined_call_operand.vmem [shape: f32[1,16], index: 2, kind: input, shape index: {}]   ;;  %s14985_s3 = inlined_call_operand.vmem [shape: f32[1,16], index: 3, kind: input, shape index: {}]   ;;  %s14986_s4 = inlined_call_operand.vmem [shape: bf16[144,32], index: 4, kind: input, shape index: {}]   ;;  %s14987_s5 = inlined_call_operand.vmem [shape: f32[1,32], index: 5, kind: input, shape index: {}]   ;;  %s14988_s6 = inlined_call_operand.vmem [shape: f32[1,32], index: 6, kind: input, shape index: {}]   ;;  %s14989_s7 = inlined_call_operand.vmem [shape: bf16[288,64], index: 7, kind: input, shape index: {}]   ;;  %s14990_s8 = inlined_call_operand.vmem [shape: f32[1,64], index: 8, kind: input, shape index: {}]   ;;  %s14991_s9 = inlined_call_operand.vmem [shape: f32[1,64], index: 9, kind: input, shape index: {}]   ;;  %s14992_s10 = inlined_call_operand.vmem [shape: bf16[256,512], index: 10, kind: input, shape index: {}]   ;;  %s14993_s11 = inlined_call_operand.vmem [shape: f32[1,512], index: 11, kind: input, shape index: {}]   ;;  %s14994_s12 = inlined_call_operand.vmem [shape: bf16[512,128], index: 12, kind: input, shape index: {}]   ;;  %s14995_s13 = inlined_call_operand.vmem [shape: f32[1,128], index: 13, kind: input, shape index: {}]   ;;  %s14996_s14 = inlined_call_operand.vmem [shape: bf16[128,10], index: 14, kind: input, shape index: {}]   ;;  %s14997_s15 = inlined_call_operand.vmem [shape: f32[1,10], index: 15, kind: input, shape index: {}]   ;;  %s14998_s16 = inlined_call_operand.hbm [shape: f32[2,1,10], index: 16, kind: output, shape index: {}]  }
   0x1   :  { %15094 = sst [smem:[#allocation20_spill]] %s14982_s0 }
   0x2   :  { %15095 = sst [smem:[#allocation21_spill]] %s14983_s1 }
   0x3   :  { %21 = vsyncpa [#allocation10], 0 }
   0x4   :  { %23 = vsyncpa [#allocation10 + $0x1], 0  ;;  %s9448_s21 = smov 0   ;;  %s9450_s22 = smov 0  }
   0x5   :  { %s9452_s23 = smov 0   ;;  %s9454_s24 = smov 0  }
   0x6 LB: > { %15096 = sst [smem:[#allocation12_spill]] %s9327_s21  ;;  %s9469_s25 = sadd.s32 4294967295, %s9339_s24   ;;  %s9339_s24 = sphi %s9454_s24, %s15948_s24   ;;  %s9335_s23 = sphi %s9452_s23, %s15950_s23   ;;  %s9331_s22 = sphi %s9450_s22, %s15952_s22   ;;  %s9327_s21 = sphi %s9448_s21, %s15951_s21  }
   0x7   : > { %15097 = sst [smem:[#allocation13_spill]] %s9335_s23  ;;  %s8060_s26 = sadd.s32 4294967294, %s9339_s24  }
   0x8   : > { %s9473_s27 = sadd.s32 1, %s9339_s24   ;;  %s377_s28 = sadd.s32 1, %s9335_s23 }
   0x9   : > { %15098 = sst [smem:[#allocation14_spill]] %s9473_s27  ;;  %s374_s29 = ssub.s32 %s9339_s24, %s9473_s27 }
   0xa   : > { %p387_p0 = scmp.ne.s32.totalorder %s9335_s23, %s9331_s22  ;;  %p375_p1 = scmp.eq.s32.totalorder %s374_s29, 0 }
   0xb   : > { %p388_p2 = scmp.eq.s32.totalorder %s9469_s25, 1  ;;  %p393_p3 = scmp.ne.s32.totalorder %s9331_s22, %s9327_s21 }
   0xc   : > { %p394_p4 = scmp.eq.s32.totalorder %s8060_s26, 1  ;;  %p8063_p7 = scmp.ge.s32.totalorder %s9339_s24, 1 }
   0xd   : > { %s9484_s30 = scalar_select %p375_p1, %s9335_s23, %s377_s28  }
   0xe   : > { %p9486_p5 = por %p388_p2, %p387_p0  ;;  %p9490_p6 = por %p394_p4, %p393_p3 }
   0xf   : > { %15099 = sst [smem:[#allocation15_spill]] %s9484_s30  ;;  %p465_p8 = scmp.lt.s32.totalorder %s9339_s24, 3 }
  0x10   : > { %s15101_s17 = scalar_select %p9490_p6, 1, 0 }
  0x11   : > { %p466_p9 = pnand %p8063_p7, %p465_p8 }
  0x12   : > { %15102 = sst [smem:[#allocation16_spill]] %s15101_s17 }
  0x13   : > { %469 = sbr.rel (%p466_p9) target bundleno = 3364 (0xd24), region = 84 }
  0x1a   : > { %vm552_vm0 = vcmask 23552   ;;  %v15040_v0 = vlaneseq  ;;  %p514_p10 = scmp.lt.s32.totalorder %s9469_s25, 1  ;;  %vm623_vm1 = vcmask 261336   ;;  %v15042_v1 = vmov 0.0   ;;  %s15104_s28 = sld [smem:[#allocation20_spill]] }
  0x1b   : > { %553 = vst.msk [vmem:[#allocation2] sm:$0xff] %vm552_vm0, %v15042_v1  ;;  %554 = vst.msk [vmem:[#allocation2 + $0x8] sm:$0xff] %vm552_vm0, %v15042_v1  ;;  %s15005_s20 = smov 9   ;;  %s14999_s26 = smov 12  }
  0x1c   : > { %555 = vst.msk [vmem:[#allocation2 + $0x10] sm:$0xff] %vm552_vm0, %v15042_v1  ;;  %556 = vst.msk [vmem:[#allocation2 + $0x18] sm:$0xff] %vm552_vm0, %v15042_v1  ;;  %v9634_v2 = vshrl.u32 %v15040_v0, 7  ;;  %s515_s18 = scalar_select %p514_p10, %s9469_s25, 1 }
  0x1d   : > { %557 = vst.msk [vmem:[#allocation2 + $0x20] sm:$0xff] %vm552_vm0, %v15042_v1  ;;  %558 = vst.msk [vmem:[#allocation2 + $0x28] sm:$0xff] %vm552_vm0, %v15042_v1  ;;  %s15154_s1 = sld [smem:[#allocation21_spill]]  ;;  %s15206_s30 = smov 24  }
  0x1e   : > { %559 = vst.msk [vmem:[#allocation2 + $0x30] sm:$0xff] %vm552_vm0, %v15042_v1  ;;  %560 = vst.msk [vmem:[#allocation2 + $0x38] sm:$0xff] %vm552_vm0, %v15042_v1  ;;  %v9640_v3 = vshra.s32 %v9634_v2, 4  ;;  %v721_v4 = vand.u32 15, %v9634_v2  ;;  %s8305_s19 = sshll.u32 %s515_s18, 8  ;;  %v9644_v5 = vadd.s32 16, %v9634_v2 }
  0x1f   : > { %561 = vst.msk [vmem:[#allocation2 + $0x40] sm:$0xff] %vm552_vm0, %v15042_v1  ;;  %562 = vst.msk [vmem:[#allocation2 + $0x48] sm:$0xff] %vm552_vm0, %v15042_v1  ;;  %v9647_v6 = vadd.s32 24, %v9634_v2  ;;  %v9655_v7 = vadd.s32 8, %v9634_v2  ;;  %s15009_s18 = smov 3   ;;  %v9953_v49 = vadd.s32 32, %v9634_v2 }
  0x20   : > { %563 = vst.msk [vmem:[#allocation2 + $0x50] sm:$0xff] %vm552_vm0, %v15042_v1  ;;  %564 = vst.msk [vmem:[#allocation2 + $0x58] sm:$0xff] %vm552_vm0, %v15042_v1  ;;  %s9652_s29 = scalar_lea.vmem %s15104_s28, %s8305_s19  ;;  %v785_v8 = vadd.s32 4294967295, %v9640_v3  ;;  %v9658_v9 = vadd.s32 4294967295, %v721_v4  ;;  %v9662_v11 = vshra.s32 %v9644_v5, 4  ;;  %v723_v12 = vand.u32 15, %v9644_v5 }
  0x21   : > { %565 = vst.msk [vmem:[#allocation2 + $0x60] sm:$0xff] %vm552_vm0, %v15042_v1  ;;  %566 = vst.msk [vmem:[#allocation2 + $0x68] sm:$0xff] %vm552_vm0, %v15042_v1  ;;  %v520_v10 = vld [vmem:[%s9652_s29] sm:$0xff]  ;;  %v521_v13 = vld [vmem:[%s9652_s29 + $0x8] sm:$0xff]  ;;  %v9669_v14 = vshra.s32 %v9647_v6, 4  ;;  %v9672_v15 = vshra.s32 %v9655_v7, 4 }
  0x22   : > { %567 = vst.msk [vmem:[#allocation2 + $0x70] sm:$0xff] %vm552_vm0, %v15042_v1  ;;  %568 = vst.msk [vmem:[#allocation2 + $0x78] sm:$0xff] %vm552_vm0, %v15042_v1  ;;  %v722_v16 = vand.u32 15, %v9655_v7  ;;  %v522_v17 = vld [vmem:[%s9652_s29 + $0x10] sm:$0xff]  ;;  %v523_v18 = vld [vmem:[%s9652_s29 + $0x18] sm:$0xff]  ;;  %vm817_vm2 = vcmp.ge.s32.totalorder %v785_v8, 0 }
  0x23   : > { %569 = vst.msk [vmem:[#allocation2 + $0x80] sm:$0xff] %vm552_vm0, %v15042_v1  ;;  %570 = vst.msk [vmem:[#allocation2 + $0x88] sm:$0xff] %vm552_vm0, %v15042_v1  ;;  %vm849_vm3 = vcmp.lt.s32.totalorder %v785_v8, 16  ;;  %v1137_v19 = vld [vmem:[#allocation2 + $0x1] sm:$0xff]  ;;  %v787_v21 = vadd.s32 4294967295, %v9662_v11  ;;  %v724_v22 = vand.u32 15, %v9647_v6 }
  0x24   : > { %571 = vst.msk [vmem:[#allocation2 + $0x90] sm:$0xff] %vm552_vm0, %v15042_v1  ;;  %572 = vst.msk [vmem:[#allocation2 + $0x98] sm:$0xff] %vm552_vm0, %v15042_v1  ;;  %v753_v20 = vld [vmem:[#allocation2] sm:$0xff]  ;;  %vm945_vm5 = vcmp.ge.s32.totalorder %v9658_v9, 0  ;;  %v9686_v24 = vadd.s32 4294967295, %v723_v12  ;;  %v788_v26 = vadd.s32 4294967295, %v9669_v14 }
  0x25   : > { %573 = vst.msk [vmem:[#allocation2 + $0xa0] sm:$0xff] %vm552_vm0, %v15042_v1  ;;  %574 = vst.msk [vmem:[#allocation2 + $0xa8] sm:$0xff] %vm552_vm0, %v15042_v1  ;;  %v1490_v25 = vld [vmem:[#allocation2 + $0x2] sm:$0xff]  ;;  %v786_v27 = vadd.s32 4294967295, %v9672_v15  ;;  %vm819_vm7 = vcmp.ge.s32.totalorder %v787_v21, 0  ;;  %vm851_vm8 = vcmp.lt.s32.totalorder %v787_v21, 16 }
  0x26   : > { %575 = vst.msk [vmem:[#allocation2 + $0xb0] sm:$0xff] %vm552_vm0, %v15042_v1  ;;  %576 = vst.msk [vmem:[#allocation2 + $0xb8] sm:$0xff] %vm552_vm0, %v15042_v1  ;;  %v9700_v30 = vadd.s32 1, %v722_v16  ;;  %v524_v31 = vld [vmem:[%s9652_s29 + $0x20] sm:$0xff]  ;;  %v525_v32 = vld [vmem:[%s9652_s29 + $0x28] sm:$0xff]  ;;  %vm947_vm10 = vcmp.ge.s32.totalorder %v9686_v24, 0 }
  0x27   : > { %577 = vst.msk [vmem:[#allocation2 + $0xc0] sm:$0xff] %vm552_vm0, %v15042_v1  ;;  %578 = vst.msk [vmem:[#allocation2 + $0xc8] sm:$0xff] %vm552_vm0, %v15042_v1  ;;  %vm820_vm11 = vcmp.ge.s32.totalorder %v788_v26, 0  ;;  %vm852_vm12 = vcmp.lt.s32.totalorder %v788_v26, 16  ;;  %v526_v35 = vld [vmem:[%s9652_s29 + $0x30] sm:$0xff]  ;;  %vm818_vm14 = vcmp.ge.s32.totalorder %v786_v27, 0 }
  0x28   : > { %579 = vst.msk [vmem:[#allocation2 + $0xd0] sm:$0xff] %vm552_vm0, %v15042_v1  ;;  %580 = vst.msk [vmem:[#allocation2 + $0xd8] sm:$0xff] %vm552_vm0, %v15042_v1  ;;  %vm850_vm15 = vcmp.lt.s32.totalorder %v786_v27, 16  ;;  %v527_v38 = vld [vmem:[%s9652_s29 + $0x38] sm:$0xff]  ;;  %v528_v39 = vld [vmem:[%s9652_s29 + $0x40] sm:$0xff]  ;;  %v9733_v42 = vadd.s32 1, %v724_v22 }
  0x29   : > { %581 = vst.msk [vmem:[#allocation2 + $0xe0] sm:$0xff] %vm552_vm0, %v15042_v1  ;;  %582 = vst.msk [vmem:[#allocation2 + $0xe8] sm:$0xff] %vm552_vm0, %v15042_v1  ;;  %v1138_v41 = vld [vmem:[#allocation2 + $0x9] sm:$0xff]  ;;  %s15007_s19 = smov 6   ;;  %v2870_v23 = vadd.s32 1, %v9640_v3  ;;  %s15001_s28 = smov 15  }
  0x2a   : > { %583 = vst.msk [vmem:[#allocation2 + $0xf0] sm:$0xff] %vm552_vm0, %v15042_v1  ;;  %584 = vst.msk [vmem:[#allocation2 + $0xf8] sm:$0xff] %vm552_vm0, %v15042_v1  ;;  %v529_v43 = vld [vmem:[%s9652_s29 + $0x48] sm:$0xff]  ;;  %v2871_v36 = vadd.s32 1, %v9672_v15  ;;  %v9929_v9 = vadd.s32 40, %v9634_v2  ;;  %s15209_s23 = smov 3  }
  0x2b   : > { %585 = vst.msk [vmem:[#allocation2 + $0x100] sm:$0xff] %vm552_vm0, %v15042_v1  ;;  %586 = vst.msk [vmem:[#allocation2 + $0x108] sm:$0xff] %vm552_vm0, %v15042_v1  ;;  %v754_v28 = vld [vmem:[#allocation2 + $0x8] sm:$0xff]  ;;  %s9353_s27 = smov 32   ;;  %s9356_s21 = smov 80  }
  0x2c   : > { %587 = vst.msk [vmem:[#allocation2 + $0x110] sm:$0xff] %vm552_vm0, %v15042_v1  ;;  %588 = vst.msk [vmem:[#allocation2 + $0x118] sm:$0xff] %vm552_vm0, %v15042_v1  ;;  %v9958_v24 = vshra.s32 %v9929_v9, 4 }
  0x2d   : > { %624 = vst.msk [vmem:[#allocation5] sm:$0xff] %vm623_vm1, %v15042_v1  ;;  %625 = vst.msk [vmem:[#allocation5 + $0x8] sm:$0xff] %vm623_vm1, %v15042_v1 }
  0x2e   : > { %626 = vst.msk [vmem:[#allocation5 + $0x10] sm:$0xff] %vm623_vm1, %v15042_v1  ;;  %627 = vst.msk [vmem:[#allocation5 + $0x18] sm:$0xff] %vm623_vm1, %v15042_v1  ;;  %v790_v57 = vadd.s32 4294967295, %v9958_v24 }
  0x2f   : > { %628 = vst.msk [vmem:[#allocation5 + $0x20] sm:$0xff] %vm623_vm1, %v15042_v1  ;;  %629 = vst.msk [vmem:[#allocation5 + $0x28] sm:$0xff] %vm623_vm1, %v15042_v1 }
  0x30   : > { %630 = vst.msk [vmem:[#allocation5 + $0x30] sm:$0xff] %vm623_vm1, %v15042_v1  ;;  %631 = vst.msk [vmem:[#allocation5 + $0x38] sm:$0xff] %vm623_vm1, %v15042_v1 }
  0x31   : > { %632 = vst.msk [vmem:[#allocation5 + $0x40] sm:$0xff] %vm623_vm1, %v15042_v1  ;;  %633 = vst.msk [vmem:[#allocation5 + $0x48] sm:$0xff] %vm623_vm1, %v15042_v1 }
  0x32   : > { %634 = vst.msk [vmem:[#allocation5 + $0x50] sm:$0xff] %vm623_vm1, %v15042_v1  ;;  %635 = vst.msk [vmem:[#allocation5 + $0x58] sm:$0xff] %vm623_vm1, %v15042_v1 }
  0x33   : > { %636 = vst.msk [vmem:[#allocation5 + $0x60] sm:$0xff] %vm623_vm1, %v15042_v1  ;;  %637 = vst.msk [vmem:[#allocation5 + $0x68] sm:$0xff] %vm623_vm1, %v15042_v1 }
  0x34   : > { %638 = vst.msk [vmem:[#allocation5 + $0x70] sm:$0xff] %vm623_vm1, %v15042_v1  ;;  %639 = vst.msk [vmem:[#allocation5 + $0x78] sm:$0xff] %vm623_vm1, %v15042_v1 }
  0x35   : > { %640 = vst.msk [vmem:[#allocation5 + $0x80] sm:$0xff] %vm623_vm1, %v15042_v1  ;;  %641 = vst.msk [vmem:[#allocation5 + $0x88] sm:$0xff] %vm623_vm1, %v15042_v1 }
  0x36   : > { %642 = vst.msk [vmem:[#allocation5 + $0x90] sm:$0xff] %vm623_vm1, %v15042_v1  ;;  %643 = vst.msk [vmem:[#allocation5 + $0x98] sm:$0xff] %vm623_vm1, %v15042_v1 }
  0x37   : > { %644 = vst.msk [vmem:[#allocation5 + $0xa0] sm:$0xff] %vm623_vm1, %v15042_v1  ;;  %645 = vst.msk [vmem:[#allocation5 + $0xa8] sm:$0xff] %vm623_vm1, %v15042_v1 }
  0x38   : > { %646 = vst.msk [vmem:[#allocation5 + $0xb0] sm:$0xff] %vm623_vm1, %v15042_v1  ;;  %647 = vst.msk [vmem:[#allocation5 + $0xb8] sm:$0xff] %vm623_vm1, %v15042_v1 }
  0x39   : > { %648 = vst.msk [vmem:[#allocation5 + $0xc0] sm:$0xff] %vm623_vm1, %v15042_v1  ;;  %649 = vst.msk [vmem:[#allocation5 + $0xc8] sm:$0xff] %vm623_vm1, %v15042_v1 }
  0x3a   : > { %650 = vst.msk [vmem:[#allocation5 + $0xd0] sm:$0xff] %vm623_vm1, %v15042_v1  ;;  %651 = vst.msk [vmem:[#allocation5 + $0xd8] sm:$0xff] %vm623_vm1, %v15042_v1 }
  0x3b   : > { %652 = vst.msk [vmem:[#allocation5 + $0xe0] sm:$0xff] %vm623_vm1, %v15042_v1  ;;  %653 = vst.msk [vmem:[#allocation5 + $0xe8] sm:$0xff] %vm623_vm1, %v15042_v1 }
  0x3c   : > { %654 = vst.msk [vmem:[#allocation5 + $0xf0] sm:$0xff] %vm623_vm1, %v15042_v1  ;;  %655 = vst.msk [vmem:[#allocation5 + $0xf8] sm:$0xff] %vm623_vm1, %v15042_v1 }
  0x3d   : > { %15103 = vst [vmem:[#allocation17_spill] sm:$0xff] %v9634_v2  ;;  %15105 = vst [vmem:[#allocation18_spill] sm:$0xff] %v9655_v7 }
  0x3e   : > { %591 = vst.msk [vmem:[#allocation2 + $0x11] sm:$0xff] %vm552_vm0, %v520_v10  ;;  %592 = vst.msk [vmem:[#allocation2 + $0x19] sm:$0xff] %vm552_vm0, %v521_v13  ;;  %v530_v13 = vld [vmem:[%s9652_s29 + $0x50] sm:$0xff] }
  0x3f   : > { %593 = vst.msk [vmem:[#allocation2 + $0x21] sm:$0xff] %vm552_vm0, %v522_v17  ;;  %594 = vst.msk [vmem:[#allocation2 + $0x29] sm:$0xff] %vm552_vm0, %v523_v18  ;;  %v531_v17 = vld [vmem:[%s9652_s29 + $0x58] sm:$0xff] }
  0x40   : > { %vm9681_vm4 = vmand %vm817_vm2, %vm849_vm3  ;;  %595 = vst.msk [vmem:[#allocation2 + $0x31] sm:$0xff] %vm552_vm0, %v524_v31  ;;  %vm1619_vm2 = vcmp.lt.s32.totalorder %v9700_v30, 16 }
  0x41   : > { %vm9694_vm6 = vmand %vm9681_vm4, %vm945_vm5  ;;  %v1297_v29 = vsel %vm9681_vm4, %v1137_v19, 0.0  ;;  %596 = vst.msk [vmem:[#allocation2 + $0x39] sm:$0xff] %vm552_vm0, %v525_v32  ;;  %v1682_v37 = vsel %vm9681_vm4, %v1490_v25, 0.0  ;;  %vm1907_vm4 = vcmp.ge.s32.totalorder %v9640_v3, 0 }
  0x42   : > { %1361 = vrot.lane.b32.xlu0 %v1297_v29, %s15009_s18  ;;  %v1073_v33 = vsel %vm9694_vm6, %v753_v20, 0.0  ;;  %vm9707_vm9 = vmand %vm819_vm7, %vm851_vm8  ;;  %597 = vst.msk [vmem:[#allocation2 + $0x41] sm:$0xff] %vm552_vm0, %v526_v35  ;;  %vm1939_vm6 = vcmp.lt.s32.totalorder %v9640_v3, 16  ;;  %vm1621_vm8 = vcmp.lt.s32.totalorder %v9733_v42, 16  ;;  %v2872_v29 = vadd.s32 1, %v9662_v11  ;;  %v534_v35 = vld [vmem:[%s9652_s29 + $0x70] sm:$0xff] }
  0x43   : > { %vm9719_vm13 = vmand %vm9707_vm9, %vm947_vm10  ;;  %1105 = vst.msk [vmem:[#allocation5] sm:$0xff] %vm552_vm0, %v1073_v33 }
  0x44   : > { %vm9729_vm1 = vmand %vm820_vm11, %vm852_vm12  ;;  %598 = vst.msk [vmem:[#allocation2 + $0x49] sm:$0xff] %vm552_vm0, %v527_v38  ;;  %vm1909_vm12 = vcmp.ge.s32.totalorder %v9662_v11, 0 }
  0x45   : > { %599 = vst.msk [vmem:[#allocation2 + $0x51] sm:$0xff] %vm552_vm0, %v528_v39  ;;  %v1139_v44 = vld [vmem:[#allocation2 + $0x11] sm:$0xff]  ;;  %v9738_v46 = vld [vmem:[#allocation2 + $0x19] sm:$0xff]  ;;  %600 = vst.msk [vmem:[#allocation2 + $0x59] sm:$0xff] %vm552_vm0, %v529_v43 }
  0x46   : > { %v755_v45 = vld [vmem:[#allocation2 + $0x10] sm:$0xff]  ;;  %v1299_v47 = vsel %vm9707_vm9, %v1139_v44, 0.0  ;;  %1746 = vrot.lane.b32.xlu0 %v1682_v37, %s15007_s19  ;;  %vm9749_vm3 = vmand %vm818_vm14, %vm850_vm15  ;;  %v1300_v51 = vsel %vm9729_vm1, %v9738_v46, 0.0  ;;  %v9798_v59 = vld [vmem:[#allocation2 + $0x1a] sm:$0xff]  ;;  %601 = vst.msk [vmem:[#allocation2 + $0x61] sm:$0xff] %vm552_vm0, %v530_v13 }
  0x47   : > { %v1075_v48 = vsel %vm9719_vm13, %v755_v45, 0.0  ;;  %1365 = vrot.lane.b32.xlu1 %v1299_v47, %s15009_s18  ;;  %v1298_v50 = vsel %vm9749_vm3, %v1138_v41, 0.0  ;;  %vm9766_vm7 = vmand %vm9749_vm3, %vm1619_vm2  ;;  %v9770_v53 = vld [vmem:[#allocation2 + $0x12] sm:$0xff]  ;;  %v1491_v54 = vld [vmem:[#allocation2 + $0xa] sm:$0xff]  ;;  %vm1941_vm13 = vcmp.lt.s32.totalorder %v9662_v11, 16  ;;  %602 = vst.msk [vmem:[#allocation2 + $0x69] sm:$0xff] %vm552_vm0, %v531_v17 }
  0x48   : > { %1107 = vst.msk [vmem:[#allocation5 + $0x10] sm:$0xff] %vm552_vm0, %v1075_v48  ;;  %vm9773_vm11 = vmand %vm1907_vm4, %vm1939_vm6  ;;  %v1684_v56 = vsel %vm9707_vm9, %v9770_v53, 0.0  ;;  %v1683_v58 = vsel %vm9766_vm7, %v1491_v54, 0.0  ;;  %vm1908_vm9 = vcmp.ge.s32.totalorder %v9672_v15, 0  ;;  %vm1940_vm6 = vcmp.lt.s32.totalorder %v9672_v15, 16  ;;  %v9811_v63 = vld [vmem:[#allocation2 + $0x20] sm:$0xff] }
  0x49   : > { %vm9788_vm14 = vmand %vm9729_vm1, %vm1621_vm8  ;;  %v1876_v8 = vld [vmem:[#allocation2 + $0x18] sm:$0xff]  ;;  %v9837_v18 = vld [vmem:[#allocation2 + $0x28] sm:$0xff]  ;;  %v2356_v20 = vsel %vm9773_vm11, %v1139_v44, 0.0  ;;  %v2645_v3 = vsel %vm9773_vm11, %v9770_v53, 0.0  ;;  %v1074_v34 = vsel %vm9749_vm3, %v754_v28, 0.0  ;;  %v2873_v44 = vadd.s32 1, %v9669_v14 }
  0x4a   : > { %1363 = vrot.lane.b32.xlu0 %v1298_v50, %s15009_s18  ;;  %vm2003_vm15 = vmand %vm9773_vm11, %vm945_vm5  ;;  %v1685_v62 = vsel %vm9788_vm14, %v9798_v59, 0.0  ;;  %vm1942_vm14 = vcmp.lt.s32.totalorder %v9669_v14, 16  ;;  %v9851_v22 = vld [vmem:[#allocation2 + $0x21] sm:$0xff]  ;;  %v9862_v27 = vld [vmem:[#allocation2 + $0x29] sm:$0xff]  ;;  %v1076_v31 = vsel %vm9729_vm1, %v1876_v8, 0.0  ;;  %1106 = vst.msk [vmem:[#allocation5 + $0x8] sm:$0xff] %vm552_vm0, %v1074_v34 }
  0x4b   : > { %1367 = vrot.lane.b32.xlu1 %v1300_v51, %s15009_s18  ;;  %vm9800_vm4 = vmand %vm1909_vm12, %vm1941_vm13  ;;  %v2067_v61 = vsel %vm2003_vm15, %v755_v45, 0.0  ;;  %vm1910_vm13 = vcmp.ge.s32.totalorder %v9669_v14, 0  ;;  %v9883_v33 = vld [vmem:[#allocation2 + $0x22] sm:$0xff]  ;;  %1108 = vst.msk [vmem:[#allocation5 + $0x18] sm:$0xff] %vm552_vm0, %v1076_v31  ;;  %vm2904_vm11 = vcmp.ge.s32.totalorder %v2872_v29, 0  ;;  %v9920_v41 = vld [vmem:[#allocation2 + $0x2a] sm:$0xff] }
  0x4c   : > { %vm9817_vm7 = vmand %vm9800_vm4, %vm947_vm10  ;;  %v2358_v25 = vsel %vm9800_vm4, %v9851_v22, 0.0  ;;  %v532_v37 = vld [vmem:[%s9652_s29 + $0x60] sm:$0xff]  ;;  %v2647_v38 = vsel %vm9800_vm4, %v9883_v33, 0.0  ;;  %v9938_v47 = vld [vmem:[#allocation2 + $0x30] sm:$0xff]  ;;  %v9969_v53 = vadd.s32 56, %v9634_v2  ;;  %v726_v34 = vand.u32 15, %v9929_v9 }
  0x4d   : > { %vm9821_vm12 = vmand %vm1908_vm9, %vm1940_vm6  ;;  %v2069_v12 = vsel %vm9817_vm7, %v9811_v63, 0.0  ;;  %vm2902_vm9 = vcmp.ge.s32.totalorder %v2870_v23, 0  ;;  %vm2934_vm6 = vcmp.lt.s32.totalorder %v2870_v23, 16  ;;  %603 = vst.msk [vmem:[#allocation2 + $0x71] sm:$0xff] %vm552_vm0, %v532_v37  ;;  %v533_v50 = vld [vmem:[%s9652_s29 + $0x68] sm:$0xff]  ;;  %v9971_v54 = vld [vmem:[#allocation2 + $0x38] sm:$0xff] }
  0x4e   : > { %1750 = vrot.lane.b32.xlu0 %v1684_v56, %s15007_s19  ;;  %v2068_v16 = vsel %vm9821_vm12, %v1876_v8, 0.0  ;;  %vm9839_vm15 = vmand %vm1910_vm13, %vm1942_vm14  ;;  %v2357_v26 = vsel %vm9821_vm12, %v9738_v46, 0.0  ;;  %vm2903_vm14 = vcmp.ge.s32.totalorder %v2871_v36, 0  ;;  %604 = vst.msk [vmem:[#allocation2 + $0x79] sm:$0xff] %vm552_vm0, %v533_v50  ;;  %v9978_v56 = vshra.s32 %v9953_v49, 4  ;;  %v9989_v60 = vld [vmem:[#allocation2 + $0x31] sm:$0xff] }
  0x4f   : > { %1748 = vrot.lane.b32.xlu1 %v1683_v58, %s15007_s19  ;;  %v2070_v21 = vsel %vm9839_vm15, %v9837_v18, 0.0  ;;  %v2359_v32 = vsel %vm9839_vm15, %v9862_v27, 0.0  ;;  %vm9879_vm7 = vmand %vm9821_vm12, %vm1619_vm2  ;;  %vm2936_vm12 = vcmp.lt.s32.totalorder %v2872_v29, 16  ;;  %v758_v8 = vld [vmem:[#allocation2 + $0x28] sm:$0xff]  ;;  %v10007_v13 = vld [vmem:[#allocation2 + $0x39] sm:$0xff]  ;;  %605 = vst.msk [vmem:[#allocation2 + $0x81] sm:$0xff] %vm552_vm0, %v534_v35 }
  0x50   : > { %vm9888_vm1 = vmand %vm2902_vm9, %vm2934_vm6  ;;  %v2646_v15 = vsel %vm9879_vm7, %v9798_v59, 0.0  ;;  %vm2905_vm6 = vcmp.ge.s32.totalorder %v2873_v44, 0  ;;  %vm2937_vm7 = vcmp.lt.s32.totalorder %v2873_v44, 16  ;;  %v9110_v28 = vld [vmem:[%s15154_s1] sm:$0xff]   ;;  %v760_v31 = vld [vmem:[#allocation2 + $0x38] sm:$0xff]  ;;  %v10102_v42 = vadd.s32 1, %v726_v34 }
  0x51   : > { %vm9904_vm3 = vmand %vm9839_vm15, %vm1621_vm8  ;;  %vm2935_vm15 = vcmp.lt.s32.totalorder %v2871_v36, 16  ;;  %v3351_v58 = vsel %vm9888_vm1, %v9851_v22, 0.0  ;;  %v3640_v19 = vsel %vm9888_vm1, %v9883_v33, 0.0  ;;  %v10057_v11 = vld [vmem:[#allocation2 + $0x32] sm:$0xff]  ;;  %8678 = vmatprep.subr.bf16.mxu0 %v9110_v28  ;;  %v9111_v37 = vld [vmem:[%s15154_s1 + $0x8] sm:$0xff]   ;;  %v2875_v34 = vadd.s32 1, %v9958_v24 }
  0x52   : > { %2131 = vrot.lane.b32.xlu0 %v2067_v61, %s15005_s20  ;;  %vm9916_vm4 = vmand %vm9888_vm1, %vm945_vm5  ;;  %v2648_v46 = vsel %vm9904_vm3, %v9920_v41, 0.0  ;;  %v9992_v61 = vshra.s32 %v9969_v53, 4  ;;  %vm15015_vm1 = vcmask 261120   ;;  %8679 = vmatpush3.bf16.msra.mxu0 %v9110_v28  ;;  %v10094_v44 = vld [vmem:[#allocation2 + $0x3a] sm:$0xff]  ;;  %s15198_s1 = smov 21  }
  0x53   : > { %1752 = vrot.lane.b32.xlu1 %v1685_v62, %s15007_s19  ;;  %vm9922_vm13 = vmand %vm2904_vm11, %vm2936_vm12  ;;  %v3062_v45 = vsel %vm9916_vm4, %v9811_v63, 0.0  ;;  %v789_v62 = vadd.s32 4294967295, %v9978_v56  ;;  %v9996_v63 = vadd.s32 48, %v9634_v2  ;;  %vm822_vm11 = vcmp.ge.s32.totalorder %v790_v57, 0  ;;  %6234 = vst.msk [vmem:[#allocation4] sm:$0xff] %vm15015_vm1, %v15042_v1  ;;  %8680 = vmatprep.subr.bf16.mxu0 %v9111_v37  ;;  %s15165_s19 = smov 6  }
  0x54   : > { %vm9944_vm5 = vmand %vm9922_vm13, %vm947_vm10  ;;  %vm854_vm12 = vcmp.lt.s32.totalorder %v790_v57, 16  ;;  %v3353_v4 = vsel %vm9922_vm13, %v9989_v60, 0.0  ;;  %6235 = vst.msk [vmem:[#allocation4 + $0x8] sm:$0xff] %vm15015_vm1, %v15042_v1  ;;  %v536_v39 = vld [vmem:[%s9652_s29 + $0x80] sm:$0xff] }
  0x55   : > { %vm9948_vm9 = vmand %vm2903_vm14, %vm2935_vm15  ;;  %v3064_v51 = vsel %vm9944_vm5, %v9938_v47, 0.0  ;;  %vm821_vm3 = vcmp.ge.s32.totalorder %v789_v62, 0  ;;  %vm853_vm4 = vcmp.lt.s32.totalorder %v789_v62, 16  ;;  %v10014_v17 = vshra.s32 %v9996_v63, 4  ;;  %6236 = vst.msk [vmem:[#allocation4 + $0x10] sm:$0xff] %vm15015_vm1, %v15042_v1 }
  0x56   : > { %2135 = vrot.lane.b32.xlu0 %v2069_v12, %s15005_s20  ;;  %v3063_v52 = vsel %vm9948_vm9, %v9837_v18, 0.0  ;;  %vm9973_vm10 = vmand %vm2905_vm6, %vm2937_vm7  ;;  %v3352_v10 = vsel %vm9948_vm9, %v9862_v27, 0.0  ;;  %v792_v12 = vadd.s32 4294967295, %v9992_v61  ;;  %8681 = vmatpush3.bf16.msra.mxu0 %v9111_v37  ;;  %v10279_v37 = vld [vmem:[#allocation2 + $0x4a] sm:$0xff]  ;;  %607 = vst.msk [vmem:[#allocation2 + $0x91] sm:$0xff] %vm552_vm0, %v536_v39 }
  0x57   : > { %2133 = vrot.lane.b32.xlu1 %v2068_v16, %s15005_s20  ;;  %v3065_v59 = vsel %vm9973_vm10, %v9971_v54, 0.0  ;;  %vm10009_vm14 = vmand %vm822_vm11, %vm854_vm12 }
  0x58   : > { %v1078_v18 = vsel %vm10009_vm14, %v758_v8, 0.0  ;;  %vm10027_vm15 = vmand %vm821_vm3, %vm853_vm4  ;;  %vm824_vm5 = vcmp.ge.s32.totalorder %v792_v12, 0  ;;  %vm856_vm6 = vcmp.lt.s32.totalorder %v792_v12, 16  ;;  %v1302_v40 = vsel %vm10009_vm14, %v9862_v27, 0.0  ;;  %v759_v27 = vld [vmem:[#allocation2 + $0x30] sm:$0xff]  ;;  %v10352_v8 = vld [vmem:[#allocation2 + $0x58] sm:$0xff] }
  0x59   : > { %1110 = vst.msk [vmem:[#allocation5 + $0x28] sm:$0xff] %vm552_vm0, %v1078_v18  ;;  %vm10035_vm7 = vmand %vm9948_vm9, %vm1619_vm2  ;;  %v1301_v30 = vsel %vm10027_vm15, %v9851_v22, 0.0  ;;  %v1686_v55 = vsel %vm10027_vm15, %v9883_v33, 0.0 }
  0x5a   : > { %2420 = vrot.lane.b32.xlu0 %v2356_v20, %s14999_s26  ;;  %v3354_v20 = vsel %vm9973_vm10, %v10007_v13, 0.0  ;;  %vm10049_vm2 = vmand %vm824_vm5, %vm856_vm6  ;;  %vm15017_vm5 = vcmp.lt.s32.totalorder %v10102_v42, 16  ;;  %vm1911_vm6 = vcmp.ge.s32.totalorder %v9978_v56, 0 }
  0x5b   : > { %2137 = vrot.lane.b32.xlu1 %v2070_v21, %s15005_s20  ;;  %v1080_v22 = vsel %vm10049_vm2, %v760_v31, 0.0  ;;  %vm10085_vm12 = vmand %vm9973_vm10, %vm1621_vm8  ;;  %v1304_v57 = vsel %vm10049_vm2, %v10007_v13, 0.0  ;;  %s15174_s20 = smov 9  }
  0x5c   : > { %1112 = vst.msk [vmem:[#allocation5 + $0x38] sm:$0xff] %vm552_vm0, %v1080_v22  ;;  %v3643_v48 = vsel %vm10085_vm12, %v10094_v44, 0.0  ;;  %vm1945_vm12 = vcmp.lt.s32.totalorder %v10014_v17, 16  ;;  %v10268_v22 = vld [vmem:[#allocation2 + $0x42] sm:$0xff] }
  0x5e   : > { %2424 = vrot.lane.b32.xlu0 %v2358_v25, %s14999_s26  ;;  %v791_v25 = vadd.s32 4294967295, %v10014_v17 }
  0x5f   : > { %2422 = vrot.lane.b32.xlu1 %v2357_v26, %s14999_s26  ;;  %v725_v26 = vand.u32 15, %v9953_v49 }
  0x60   : > { %vm823_vm9 = vcmp.ge.s32.totalorder %v791_v25, 0  ;;  %vm855_vm11 = vcmp.lt.s32.totalorder %v791_v25, 16  ;;  %v10219_v25 = vld [vmem:[#allocation2 + $0x41] sm:$0xff] }
  0x61   : > { %v10071_v36 = vadd.s32 4294967295, %v725_v26  ;;  %vm10098_vm3 = vmand %vm823_vm9, %vm855_vm11  ;;  %vm1913_vm11 = vcmp.ge.s32.totalorder %v10014_v17, 0 }
  0x62   : > { %2709 = vrot.lane.b32.xlu0 %v2645_v3, %s15001_s28  ;;  %v727_v3 = vand.u32 15, %v9996_v63  ;;  %v1303_v14 = vsel %vm10098_vm3, %v9989_v60, 0.0  ;;  %vm10142_vm9 = vmand %vm10009_vm14, %vm15017_vm5  ;;  %v1688_v33 = vsel %vm10098_vm3, %v10057_v11, 0.0 }
  0x63   : > { %2426 = vrot.lane.b32.xlu1 %v2359_v32, %s14999_s26  ;;  %s15003_s26 = smov 18   ;;  %v3641_v32 = vsel %vm10035_vm7, %v9920_v41, 0.0  ;;  %vm949_vm8 = vcmp.ge.s32.totalorder %v10071_v36, 0  ;;  %vm1943_vm7 = vcmp.lt.s32.totalorder %v9978_v56, 16  ;;  %vm10158_vm14 = vmand %vm1913_vm11, %vm1945_vm12  ;;  %vm1914_vm11 = vcmp.ge.s32.totalorder %v9992_v61, 0 }
  0x64   : > { %vm981_vm10 = vmand %vm10027_vm15, %vm949_vm8  ;;  %vm1946_vm12 = vcmp.lt.s32.totalorder %v9992_v61, 16  ;;  %v2362_v29 = vsel %vm10158_vm14, %v10219_v25, 0.0  ;;  %v665_v36 = vadd.s32 64, %v9634_v2 }
  0x66   : > { %2713 = vrot.lane.b32.xlu0 %v2647_v38, %s15001_s28  ;;  %v3642_v38 = vsel %vm9922_vm13, %v10057_v11, 0.0  ;;  %v10296_v43 = vshra.s32 %v665_v36, 4 }
  0x67   : > { %2711 = vrot.lane.b32.xlu1 %v2646_v15, %s15001_s28  ;;  %v10089_v15 = vadd.s32 4294967295, %v727_v3  ;;  %v10246_v3 = vld [vmem:[#allocation2 + $0x49] sm:$0xff] }
  0x69   : > { %vm951_vm13 = vcmp.ge.s32.totalorder %v10089_v15, 0 }
  0x6a   : > { %3126 = vrot.lane.b32.xlu0 %v3062_v45, %s15003_s26  ;;  %v757_v45 = vld [vmem:[#allocation2 + $0x20] sm:$0xff]  ;;  %vm983_vm4 = vmand %vm10098_vm3, %vm951_vm13  ;;  %vm1912_vm3 = vcmp.ge.s32.totalorder %v9958_v24, 0 }
  0x6b   : > { %2715 = vrot.lane.b32.xlu1 %v2648_v46, %s15001_s28  ;;  %s15013_s28 = smov 21   ;;  %v728_v46 = vand.u32 15, %v9969_v53  ;;  %v1077_v50 = vsel %vm981_vm10, %v757_v45, 0.0  ;;  %vm10148_vm10 = vmand %vm1911_vm6, %vm1943_vm7  ;;  %vm1944_vm7 = vcmp.lt.s32.totalorder %v9958_v24, 16  ;;  %v10286_v24 = vadd.s32 72, %v9634_v2 }
  0x6c   : > { %1109 = vst.msk [vmem:[#allocation5 + $0x20] sm:$0xff] %vm552_vm0, %v1077_v50  ;;  %v2360_v26 = vsel %vm10148_vm10, %v9989_v60, 0.0  ;;  %v2876_v60 = vadd.s32 1, %v10014_v17  ;;  %v2649_v35 = vsel %vm10148_vm10, %v10057_v11, 0.0  ;;  %v2877_v11 = vadd.s32 1, %v9992_v61  ;;  %v10317_v50 = vld [vmem:[#allocation2 + $0x50] sm:$0xff] }
  0x6d   : > { %v10299_v45 = vadd.s32 80, %v9634_v2  ;;  %v10308_v61 = vadd.s32 88, %v9634_v2 }
  0x6e   : > { %3130 = vrot.lane.b32.xlu0 %v3064_v51, %s15003_s26  ;;  %v1079_v51 = vsel %vm983_vm4, %v759_v27, 0.0  ;;  %vm2007_vm4 = vmand %vm10148_vm10, %vm949_vm8  ;;  %vm2939_vm10 = vcmp.lt.s32.totalorder %v2875_v34, 16  ;;  %v10305_v27 = vshra.s32 %v10286_v24, 4 }
  0x6f   : > { %3128 = vrot.lane.b32.xlu1 %v3063_v52, %s15003_s26  ;;  %v10126_v52 = vadd.s32 1, %v728_v46  ;;  %1111 = vst.msk [vmem:[#allocation5 + $0x30] sm:$0xff] %vm552_vm0, %v1079_v51  ;;  %v2071_v12 = vsel %vm2007_vm4, %v9938_v47, 0.0  ;;  %vm10214_vm4 = vmand %vm1914_vm11, %vm1946_vm12  ;;  %v10340_v15 = vshra.s32 %v10308_v61, 4 }
  0x70   : > { %v794_v62 = vadd.s32 4294967295, %v10305_v27 }
  0x71   : > { %vm15016_vm15 = vcmp.lt.s32.totalorder %v10126_v52, 16  ;;  %v796_v18 = vadd.s32 4294967295, %v10340_v15 }
  0x72   : > { %3415 = vrot.lane.b32.xlu0 %v3351_v58, %s15013_s28  ;;  %vm10173_vm6 = vmand %vm10049_vm2, %vm15016_vm15  ;;  %v729_v58 = vand.u32 15, %v665_v36 }
  0x73   : > { %3132 = vrot.lane.b32.xlu1 %v3065_v59, %s15003_s26  ;;  %s15011_s26 = smov 24   ;;  %v1689_v16 = vsel %vm10173_vm6, %v10094_v44, 0.0  ;;  %vm10195_vm2 = vmand %vm1912_vm3, %vm1944_vm7  ;;  %v537_v59 = vld [vmem:[%s9652_s29 + $0x88] sm:$0xff] }
  0x74   : > { %v2072_v21 = vsel %vm10195_vm2, %v9971_v54, 0.0  ;;  %vm10252_vm11 = vmand %vm10214_vm4, %vm15016_vm15  ;;  %608 = vst.msk [vmem:[#allocation2 + $0x99] sm:$0xff] %vm552_vm0, %v537_v59 }
  0x76   : > { %3419 = vrot.lane.b32.xlu0 %v3353_v4, %s15013_s28  ;;  %v1687_v4 = vsel %vm10142_vm9, %v9920_v41, 0.0  ;;  %v10180_v41 = vld [vmem:[#allocation2 + $0x40] sm:$0xff]  ;;  %vm10186_vm9 = vmand %vm10158_vm14, %vm951_vm13 }
  0x77   : > { %3417 = vrot.lane.b32.xlu1 %v3352_v10, %s15013_s28  ;;  %v2073_v47 = vsel %vm10186_vm9, %v10180_v41, 0.0  ;;  %vm10237_vm9 = vmand %vm10195_vm2, %vm15017_vm5 }
  0x78   : > { %v2650_v46 = vsel %vm10237_vm9, %v10094_v44, 0.0  ;;  %vm2909_vm9 = vcmp.ge.s32.totalorder %v2877_v11, 0 }
  0x7a   : > { %3704 = vrot.lane.b32.xlu0 %v3640_v19, %s15011_s26  ;;  %v2874_v19 = vadd.s32 1, %v9978_v56  ;;  %v10212_v56 = vld [vmem:[#allocation2 + $0x48] sm:$0xff] }
  0x7b   : > { %3421 = vrot.lane.b32.xlu1 %v3354_v20, %s15013_s28  ;;  %v535_v20 = vld [vmem:[%s9652_s29 + $0x78] sm:$0xff]  ;;  %v2074_v54 = vsel %vm10214_vm4, %v10212_v56, 0.0  ;;  %s15193_s28 = smov 18  }
  0x7c   : > { %606 = vst.msk [vmem:[#allocation2 + $0x89] sm:$0xff] %vm552_vm0, %v535_v20  ;;  %vm2906_vm6 = vcmp.ge.s32.totalorder %v2874_v19, 0  ;;  %vm2938_vm3 = vcmp.lt.s32.totalorder %v2874_v19, 16  ;;  %v10370_v20 = vld [vmem:[#allocation2 + $0x51] sm:$0xff] }
  0x7d   : > { %vm10228_vm7 = vmand %vm2906_vm6, %vm2938_vm3  ;;  %vm2908_vm6 = vcmp.ge.s32.totalorder %v2876_v60, 0  ;;  %vm2940_vm3 = vcmp.lt.s32.totalorder %v2876_v60, 16  ;;  %v762_v60 = vld [vmem:[#allocation2 + $0x48] sm:$0xff] }
  0x7e   : > { %1369 = vrot.lane.b32.xlu0 %v1301_v30, %s15009_s18  ;;  %vm10260_vm12 = vmand %vm10228_vm7, %vm949_vm8  ;;  %v761_v30 = vld [vmem:[#allocation2 + $0x40] sm:$0xff] }
  0x7f   : > { %3706 = vrot.lane.b32.xlu1 %v3641_v32, %s15011_s26  ;;  %v2361_v32 = vsel %vm10195_vm2, %v10007_v13, 0.0  ;;  %v2363_v13 = vsel %vm10214_vm4, %v10246_v3, 0.0  ;;  %vm10281_vm8 = vmand %vm2908_vm6, %vm2940_vm3  ;;  %vm2907_vm2 = vcmp.ge.s32.totalorder %v2875_v34, 0  ;;  %vm826_vm3 = vcmp.ge.s32.totalorder %v794_v62, 0 }
  0x80   : > { %vm10330_vm4 = vmand %vm2907_vm2, %vm2939_vm10  ;;  %vm858_vm2 = vcmp.lt.s32.totalorder %v794_v62, 16  ;;  %vm15027_vm10 = vcmask 48152   ;;  %v3357_v28 = vsel %vm10281_vm8, %v10370_v20, 0.0  ;;  %v10466_v62 = vld [vmem:[#allocation2 + $0x5a] sm:$0xff] }
  0x81   : > { %vm10383_vm1 = vmand %vm826_vm3, %vm858_vm2  ;;  %vm15201_vm3 = vcmp.lt.s32.totalorder %v10102_v42, 16  ;;  %v10429_v42 = vld [vmem:[#allocation2 + $0x52] sm:$0xff] }
  0x82   : > { %3708 = vrot.lane.b32.xlu0 %v3642_v38, %s15011_s26  ;;  %v1082_v17 = vsel %vm10383_vm1, %v762_v60, 0.0  ;;  %vm10413_vm2 = vmand %vm10330_vm4, %vm15201_vm3  ;;  %v3646_v59 = vsel %vm10281_vm8, %v10429_v42, 0.0 }
  0x83   : > { %1371 = vrot.lane.b32.xlu1 %v1302_v40, %s15009_s18  ;;  %v2651_v40 = vsel %vm10158_vm14, %v10268_v22, 0.0  ;;  %vm10323_vm14 = vmand %vm10281_vm8, %vm951_vm13  ;;  %vm2941_vm13 = vcmp.lt.s32.totalorder %v2877_v11, 16  ;;  %1114 = vst.msk [vmem:[#allocation5 + $0x48] sm:$0xff] %vm552_vm0, %v1082_v17  ;;  %v539_v11 = vld [vmem:[%s9652_s29 + $0x98] sm:$0xff] }
  0x84   : > { %610 = vst.msk [vmem:[#allocation2 + $0xa9] sm:$0xff] %vm552_vm0, %v539_v11 }
  0x86   : > { %1373 = vrot.lane.b32.xlu0 %v1303_v14, %s15009_s18  ;;  %v2652_v14 = vsel %vm10252_vm11, %v10279_v37, 0.0  ;;  %vm10354_vm11 = vmand %vm2909_vm9, %vm2941_vm13 }
  0x87   : > { %3710 = vrot.lane.b32.xlu1 %v3643_v48, %s15011_s26  ;;  %s15188_s26 = smov 15   ;;  %v3066_v48 = vsel %vm10260_vm12, %v10180_v41, 0.0  ;;  %v3069_v19 = vsel %vm10354_vm11, %v10352_v8, 0.0 }
  0x8a   : > { %1754 = vrot.lane.b32.xlu0 %v1686_v55, %s15165_s19  ;;  %v793_v55 = vadd.s32 4294967295, %v10296_v43 }
  0x8b   : > { %1375 = vrot.lane.b32.xlu1 %v1304_v57, %s15009_s18  ;;  %s15179_s18 = smov 12   ;;  %v10336_v57 = vshra.s32 %v10299_v45, 4 }
  0x8c   : > { %vm825_vm12 = vcmp.ge.s32.totalorder %v793_v55, 0  ;;  %vm857_vm6 = vcmp.lt.s32.totalorder %v793_v55, 16 }
  0x8d   : > { %v795_v10 = vadd.s32 4294967295, %v10336_v57  ;;  %vm10375_vm9 = vmand %vm825_vm12, %vm857_vm6  ;;  %vm860_vm12 = vcmp.lt.s32.totalorder %v796_v18, 16 }
  0x8e   : > { %1758 = vrot.lane.b32.xlu0 %v1688_v33, %s15165_s19  ;;  %v3068_v33 = vsel %vm10323_vm14, %v10317_v50, 0.0  ;;  %vm15019_vm14 = vcmask 72752  }
  0x8f   : > { %1756 = vrot.lane.b32.xlu1 %v1687_v4, %s15165_s19  ;;  %v3067_v4 = vsel %vm10330_vm4, %v10212_v56, 0.0  ;;  %vm827_vm13 = vcmp.ge.s32.totalorder %v795_v10, 0  ;;  %v3644_v56 = vsel %vm10228_vm7, %v10268_v22, 0.0  ;;  %vm859_vm15 = vcmp.lt.s32.totalorder %v795_v10, 16 }
  0x92   : > { %2139 = vrot.lane.b32.xlu0 %v2071_v12, %s15174_s20  ;;  %v10360_v12 = vadd.s32 4294967295, %v729_v58  ;;  %v538_v58 = vld [vmem:[%s9652_s29 + $0x90] sm:$0xff] }
  0x93   : > { %1760 = vrot.lane.b32.xlu1 %v1689_v16, %s15165_s19  ;;  %v3355_v16 = vsel %vm10228_vm7, %v10219_v25, 0.0  ;;  %vm828_vm7 = vcmp.ge.s32.totalorder %v796_v18, 0  ;;  %609 = vst.msk [vmem:[#allocation2 + $0xa1] sm:$0xff] %vm552_vm0, %v538_v58 }
  0x94   : > { %vm953_vm5 = vcmp.ge.s32.totalorder %v10360_v12, 0  ;;  %v2881_v12 = vadd.s32 1, %v10340_v15 }
  0x95   : > { %vm985_vm6 = vmand %vm10375_vm9, %vm953_vm5 }
  0x96   : > { %2143 = vrot.lane.b32.xlu0 %v2073_v47, %s15174_s20  ;;  %v10372_v47 = vld [vmem:[#allocation2 + $0x59] sm:$0xff]  ;;  %v1081_v31 = vsel %vm985_vm6, %v761_v30, 0.0  ;;  %vm10423_vm6 = vmand %vm827_vm13, %vm859_vm15  ;;  %vm15210_vm13 = vcmp.lt.s32.totalorder %v10126_v52, 16 }
  0x97   : > { %2141 = vrot.lane.b32.xlu1 %v2072_v21, %s15174_s20  ;;  %1113 = vst.msk [vmem:[#allocation5 + $0x40] sm:$0xff] %vm552_vm0, %v1081_v31  ;;  %vm10474_vm8 = vmand %vm10354_vm11, %vm15210_vm13  ;;  %vm15022_vm13 = vcmask 121952   ;;  %v1692_v23 = vsel %vm10423_vm6, %v10429_v42, 0.0 }
  0x98   : > { %v3647_v52 = vsel %vm10474_vm8, %v10466_v62, 0.0 }
  0x9a   : > { %2428 = vrot.lane.b32.xlu0 %v2360_v26, %s15179_s18  ;;  %v731_v26 = vand.u32 15, %v10299_v45  ;;  %v763_v45 = vld [vmem:[#allocation2 + $0x50] sm:$0xff] }
  0x9b   : > { %2145 = vrot.lane.b32.xlu1 %v2074_v54, %s15174_s20  ;;  %v3356_v54 = vsel %vm10330_vm4, %v10246_v3, 0.0  ;;  %vm10433_vm4 = vmand %vm828_vm7, %vm860_vm12  ;;  %vm15020_vm7 = vcmask 97352   ;;  %vm1915_vm12 = vcmp.ge.s32.totalorder %v10296_v43, 0 }
  0x9e   : > { %2432 = vrot.lane.b32.xlu0 %v2362_v29, %s15179_s18 }
  0x9f   : > { %2430 = vrot.lane.b32.xlu1 %v2361_v32, %s15179_s18  ;;  %v3358_v32 = vsel %vm10354_vm11, %v10372_v47, 0.0 }
  0xa2   : > { %2717 = vrot.lane.b32.xlu0 %v2649_v35, %s15188_s26  ;;  %v10417_v35 = vadd.s32 4294967295, %v731_v26 }
  0xa3   : > { %2434 = vrot.lane.b32.xlu1 %v2363_v13, %s15179_s18 }
  0xa4   : > { %vm955_vm3 = vcmp.ge.s32.totalorder %v10417_v35, 0  ;;  %v671_v35 = vadd.s32 112, %v9634_v2 }
  0xa5   : > { %vm987_vm15 = vmand %vm10423_vm6, %vm955_vm3 }
  0xa6   : > { %2721 = vrot.lane.b32.xlu0 %v2651_v40, %s15188_s26  ;;  %v1305_v40 = vsel %vm10375_vm9, %v10219_v25, 0.0  ;;  %v1083_v44 = vsel %vm987_vm15, %v763_v45, 0.0  ;;  %v730_v25 = vand.u32 15, %v10286_v24  ;;  %v1306_v24 = vsel %vm10383_vm1, %v10246_v3, 0.0 }
  0xa7   : > { %2719 = vrot.lane.b32.xlu1 %v2650_v46, %s15188_s26  ;;  %v764_v46 = vld [vmem:[#allocation2 + $0x58] sm:$0xff]  ;;  %1115 = vst.msk [vmem:[#allocation5 + $0x50] sm:$0xff] %vm552_vm0, %v1083_v44  ;;  %v1307_v3 = vsel %vm10423_vm6, %v10370_v20, 0.0 }
  0xa8   : > { %v1084_v51 = vsel %vm10433_vm4, %v764_v46, 0.0 }
  0xa9   : > { %1116 = vst.msk [vmem:[#allocation5 + $0x58] sm:$0xff] %vm552_vm0, %v1084_v51 }
  0xaa   : > { %3134 = vrot.lane.b32.xlu0 %v3066_v48, %s15193_s28 }
  0xab   : > { %2723 = vrot.lane.b32.xlu1 %v2652_v14, %s15188_s26  ;;  %v3645_v14 = vsel %vm10413_vm2, %v10279_v37, 0.0  ;;  %vm1947_vm2 = vcmp.lt.s32.totalorder %v10296_v43, 16 }
  0xac   : > { %vm10514_vm8 = vmand %vm1915_vm12, %vm1947_vm2 }
  0xad   : > { %vm10541_vm2 = vmand %vm10514_vm8, %vm953_vm5 }
  0xae   : > { %3138 = vrot.lane.b32.xlu0 %v3068_v33, %s15193_s28 }
  0xaf   : > { %3136 = vrot.lane.b32.xlu1 %v3067_v4, %s15193_s28  ;;  %v732_v4 = vand.u32 15, %v10308_v61 }
  0xb1   : > { %v10489_v41 = vadd.s32 1, %v732_v4 }
  0xb2   : > { %3423 = vrot.lane.b32.xlu0 %v3355_v16, %s15198_s1  ;;  %v10478_v16 = vadd.s32 1, %v730_v25  ;;  %v10605_v25 = vld [vmem:[#allocation2 + $0x61] sm:$0xff] }
  0xb3   : > { %3140 = vrot.lane.b32.xlu1 %v3069_v19, %s15193_s28  ;;  %v1690_v19 = vsel %vm10375_vm9, %v10268_v22, 0.0  ;;  %vm15026_vm9 = vcmp.lt.s32.totalorder %v10489_v41, 16 }
  0xb4   : > { %v1362_v29 = vpop.permute.xlu0 %1361  ;;  %vm1627_vm11 = vcmp.lt.s32.totalorder %v10478_v16, 16  ;;  %vm10530_vm12 = vmand %vm10433_vm4, %vm15026_vm9  ;;  %v10954_v16 = vld [vmem:[#allocation2 + $0x80] sm:$0xff] }
  0xb5   : > { %1458 = vst.msk [vmem:[#allocation5] sm:$0xff] %vm15027_vm10, %v1362_v29  ;;  %vm10508_vm15 = vmand %vm10383_vm1, %vm1627_vm11  ;;  %vm1949_vm1 = vcmp.lt.s32.totalorder %v10336_v57, 16  ;;  %v1693_v34 = vsel %vm10530_vm12, %v10466_v62, 0.0  ;;  %vm15021_vm12 = vcmask 146552  }
  0xb6   : > { %3427 = vrot.lane.b32.xlu0 %v3357_v28, %s15198_s1  ;;  %v1691_v30 = vsel %vm10508_vm15, %v10279_v37, 0.0  ;;  %vm1948_vm15 = vcmp.lt.s32.totalorder %v10305_v27, 16  ;;  %v2075_v37 = vsel %vm10541_vm2, %v10317_v50, 0.0  ;;  %vm1918_vm2 = vcmp.ge.s32.totalorder %v10340_v15, 0  ;;  %v541_v50 = vld [vmem:[%s9652_s29 + $0xa8] sm:$0xff] }
  0xb7   : > { %3425 = vrot.lane.b32.xlu1 %v3356_v54, %s15198_s1  ;;  %612 = vst.msk [vmem:[#allocation2 + $0xb9] sm:$0xff] %vm552_vm0, %v541_v50  ;;  %v767_v50 = vld [vmem:[#allocation2 + $0x70] sm:$0xff] }
  0xb8   : > { %v1747_v36 = vpop.permute.xlu0 %1746 }
  0xb9   : > { %v1366_v13 = vpop.permute.xlu1 %1365  ;;  %1843 = vst.msk [vmem:[#allocation5] sm:$0xff] %vm15019_vm14, %v1747_v36 }
  0xba   : > { %1460 = vst.msk [vmem:[#allocation5 + $0x10] sm:$0xff] %vm15027_vm10, %v1366_v13  ;;  %3712 = vrot.lane.b32.xlu0 %v3644_v56, %s15206_s30  ;;  %v1308_v56 = vsel %vm10433_vm4, %v10372_v47, 0.0  ;;  %vm1916_vm4 = vcmp.ge.s32.totalorder %v10305_v27, 0 }
  0xbb   : > { %3429 = vrot.lane.b32.xlu1 %v3358_v32, %s15198_s1  ;;  %v10558_v32 = vld [vmem:[#allocation2 + $0x60] sm:$0xff] }
  0xbc   : > { %v1364_v48 = vpop.permute.xlu0 %1363 }
  0xbd   : > { %v1368_v55 = vpop.permute.xlu1 %1367  ;;  %1459 = vst.msk [vmem:[#allocation5 + $0x8] sm:$0xff] %vm15027_vm10, %v1364_v48  ;;  %v10590_v48 = vld [vmem:[#allocation2 + $0x68] sm:$0xff] }
  0xbe   : > { %1461 = vst.msk [vmem:[#allocation5 + $0x18] sm:$0xff] %vm15027_vm10, %v1368_v55  ;;  %1377 = vrot.lane.b32.xlu0 %v1305_v40, %s15209_s23 }
  0xbf   : > { %3714 = vrot.lane.b32.xlu1 %v3645_v14, %s15206_s30 }
  0xc0   : > { %v1751_v33 = vpop.permute.xlu0 %1750 }
  0xc1   : > { %v1749_v10 = vpop.permute.xlu1 %1748  ;;  %1845 = vst.msk [vmem:[#allocation5 + $0x10] sm:$0xff] %vm15019_vm14, %v1751_v33 }
  0xc2   : > { %1844 = vst.msk [vmem:[#allocation5 + $0x8] sm:$0xff] %vm15019_vm14, %v1749_v10  ;;  %3716 = vrot.lane.b32.xlu0 %v3646_v59, %s15206_s30  ;;  %v2878_v59 = vadd.s32 1, %v10296_v43  ;;  %v10619_v10 = vld [vmem:[#allocation2 + $0x69] sm:$0xff]  ;;  %v2880_v43 = vadd.s32 1, %v10336_v57 }
  0xc3   : > { %1379 = vrot.lane.b32.xlu1 %v1306_v24, %s15209_s23 }
  0xc4   : > { %v2132_v61 = vpop.permute.xlu0 %2131 }
  0xc5   : > { %v1753_v18 = vpop.permute.xlu1 %1752  ;;  %2228 = vst.msk [vmem:[#allocation5] sm:$0xff] %vm15020_vm7, %v2132_v61 }
  0xc6   : > { %1846 = vst.msk [vmem:[#allocation5 + $0x18] sm:$0xff] %vm15019_vm14, %v1753_v18  ;;  %1381 = vrot.lane.b32.xlu0 %v1307_v3, %s15209_s23  ;;  %vm1917_vm14 = vcmp.ge.s32.totalorder %v10336_v57, 0  ;;  %v10639_v57 = vld [vmem:[#allocation2 + $0x62] sm:$0xff]  ;;  %v669_v18 = vadd.s32 96, %v9634_v2 }
  0xc7   : > { %3718 = vrot.lane.b32.xlu1 %v3647_v52, %s15206_s30  ;;  %vm10546_vm6 = vmand %vm1917_vm14, %vm1949_vm1 }
  0xc8   : > { %v2136_v26 = vpop.permute.xlu0 %2135  ;;  %vm10567_vm14 = vmand %vm10546_vm6, %vm955_vm3 }
  0xc9   : > { %v2134_v22 = vpop.permute.xlu1 %2133  ;;  %2230 = vst.msk [vmem:[#allocation5 + $0x10] sm:$0xff] %vm15020_vm7, %v2136_v26  ;;  %vm10572_vm1 = vmand %vm1916_vm4, %vm1948_vm15  ;;  %v2077_v40 = vsel %vm10567_vm14, %v10558_v32, 0.0  ;;  %vm2910_vm15 = vcmp.ge.s32.totalorder %v2878_v59, 0  ;;  %vm2942_vm14 = vcmp.lt.s32.totalorder %v2878_v59, 16  ;;  %v2655_v26 = vsel %vm10546_vm6, %v10639_v57, 0.0 }
  0xca   : > { %2229 = vst.msk [vmem:[#allocation5 + $0x8] sm:$0xff] %vm15020_vm7, %v2134_v22  ;;  %1762 = vrot.lane.b32.xlu0 %v1690_v19, %s15165_s19  ;;  %v2076_v45 = vsel %vm10572_vm1, %v10352_v8, 0.0  ;;  %v2364_v8 = vsel %vm10514_vm8, %v10370_v20, 0.0  ;;  %v2366_v20 = vsel %vm10546_vm6, %v10605_v25, 0.0  ;;  %v2365_v24 = vsel %vm10572_vm1, %v10372_v47, 0.0  ;;  %v540_v19 = vld [vmem:[%s9652_s29 + $0xa0] sm:$0xff] }
  0xcb   : > { %1383 = vrot.lane.b32.xlu1 %v1308_v56, %s15209_s23  ;;  %v2653_v47 = vsel %vm10514_vm8, %v10429_v42, 0.0  ;;  %vm15023_vm8 = vcmask 195752   ;;  %v2879_v56 = vadd.s32 1, %v10305_v27  ;;  %611 = vst.msk [vmem:[#allocation2 + $0xb1] sm:$0xff] %vm552_vm0, %v540_v19  ;;  %v765_v19 = vld [vmem:[#allocation2 + $0x60] sm:$0xff] }
  0xcc   : > { %v2421_v60 = vpop.permute.xlu0 %2420 }
  0xcd   : > { %v2138_v31 = vpop.permute.xlu1 %2137  ;;  %2517 = vst.msk [vmem:[#allocation5] sm:$0xff] %vm15022_vm13, %v2421_v60  ;;  %v11012_v60 = vld [vmem:[#allocation2 + $0x89] sm:$0xff] }
  0xce   : > { %2231 = vst.msk [vmem:[#allocation5 + $0x18] sm:$0xff] %vm15020_vm7, %v2138_v31  ;;  %1766 = vrot.lane.b32.xlu0 %v1692_v23, %s15165_s19  ;;  %vm1950_vm7 = vcmp.lt.s32.totalorder %v10340_v15, 16  ;;  %v10676_v23 = vadd.s32 104, %v9634_v2 }
  0xcf   : > { %1764 = vrot.lane.b32.xlu1 %v1691_v30, %s15165_s19  ;;  %vm10592_vm4 = vmand %vm1918_vm2, %vm1950_vm7  ;;  %vm15024_vm7 = vcmask 171152   ;;  %v10679_v30 = vld [vmem:[#allocation2 + $0x6a] sm:$0xff] }
  0xd0   : > { %v2425_v36 = vpop.permute.xlu0 %2424  ;;  %v2078_v51 = vsel %vm10592_vm4, %v10590_v48, 0.0  ;;  %v2367_v38 = vsel %vm10592_vm4, %v10619_v10, 0.0  ;;  %vm10635_vm2 = vmand %vm10572_vm1, %vm1627_vm11  ;;  %vm2912_vm1 = vcmp.ge.s32.totalorder %v2880_v43, 0 }
  0xd1   : > { %v2423_v39 = vpop.permute.xlu1 %2422  ;;  %2519 = vst.msk [vmem:[#allocation5 + $0x10] sm:$0xff] %vm15022_vm13, %v2425_v36  ;;  %v2654_v27 = vsel %vm10635_vm2, %v10466_v62, 0.0  ;;  %v10685_v62 = vshra.s32 %v669_v18, 4  ;;  %v10708_v36 = vshra.s32 %v10676_v23, 4 }
  0xd2   : > { %2518 = vst.msk [vmem:[#allocation5 + $0x8] sm:$0xff] %vm15022_vm13, %v2423_v39  ;;  %2147 = vrot.lane.b32.xlu0 %v2075_v37, %s15174_s20  ;;  %v10697_v37 = vld [vmem:[#allocation2 + $0x70] sm:$0xff] }
  0xd3   : > { %1768 = vrot.lane.b32.xlu1 %v1693_v34, %s15165_s19  ;;  %v733_v34 = vand.u32 15, %v669_v18  ;;  %v797_v39 = vadd.s32 4294967295, %v10685_v62  ;;  %v798_v44 = vadd.s32 4294967295, %v10708_v36 }
  0xd4   : > { %v2710_v46 = vpop.permute.xlu0 %2709 }
  0xd5   : > { %v2427_v14 = vpop.permute.xlu1 %2426  ;;  %2806 = vst.msk [vmem:[#allocation5] sm:$0xff] %vm15021_vm12, %v2710_v46 }
  0xd6   : > { %2520 = vst.msk [vmem:[#allocation5 + $0x18] sm:$0xff] %vm15022_vm13, %v2427_v14  ;;  %2151 = vrot.lane.b32.xlu0 %v2077_v40, %s15174_s20  ;;  %vm2944_vm13 = vcmp.lt.s32.totalorder %v2880_v43, 16  ;;  %v10725_v40 = vadd.s32 120, %v9634_v2  ;;  %v10731_v14 = vadd.s32 4294967295, %v733_v34 }
  0xd7   : > { %2149 = vrot.lane.b32.xlu1 %v2076_v45, %s15174_s20  ;;  %vm10681_vm6 = vmand %vm2912_vm1, %vm2944_vm13  ;;  %vm2913_vm1 = vcmp.ge.s32.totalorder %v2881_v12, 0 }
  0xd8   : > { %v2714_v55 = vpop.permute.xlu0 %2713  ;;  %vm10703_vm13 = vmand %vm10681_vm6, %vm955_vm3  ;;  %vm3800_vm3 = vcmask 220352   ;;  %v10751_v59 = vshra.s32 %v10725_v40, 4 }
  0xd9   : > { %v2712_v58 = vpop.permute.xlu1 %2711  ;;  %2808 = vst.msk [vmem:[#allocation5 + $0x10] sm:$0xff] %vm15021_vm12, %v2714_v55  ;;  %v3072_v11 = vsel %vm10703_vm13, %v10697_v37, 0.0 }
  0xda   : > { %2807 = vst.msk [vmem:[#allocation5 + $0x8] sm:$0xff] %vm15021_vm12, %v2712_v58  ;;  %2436 = vrot.lane.b32.xlu0 %v2364_v8, %s15179_s18  ;;  %v800_v18 = vadd.s32 4294967295, %v10751_v59 }
  0xdb   : > { %2153 = vrot.lane.b32.xlu1 %v2078_v51, %s15174_s20  ;;  %v10735_v51 = vld [vmem:[#allocation2 + $0x78] sm:$0xff] }
  0xdc   : > { %v3127_v33 = vpop.permute.xlu0 %3126 }
  0xdd   : > { %v2716_v4 = vpop.permute.xlu1 %2715  ;;  %3223 = vst.msk [vmem:[#allocation5] sm:$0xff] %vm15024_vm7, %v3127_v33  ;;  %v10756_v33 = vld [vmem:[#allocation2 + $0x71] sm:$0xff] }
  0xde   : > { %2809 = vst.msk [vmem:[#allocation5 + $0x18] sm:$0xff] %vm15021_vm12, %v2716_v4  ;;  %2440 = vrot.lane.b32.xlu0 %v2366_v20, %s15179_s18  ;;  %vm10642_vm12 = vmand %vm2910_vm15, %vm2942_vm14  ;;  %v3361_v52 = vsel %vm10681_vm6, %v10756_v33, 0.0 }
  0xdf   : > { %2438 = vrot.lane.b32.xlu1 %v2365_v24, %s15179_s18  ;;  %vm10660_vm15 = vmand %vm10592_vm4, %vm15026_vm9  ;;  %vm2943_vm4 = vcmp.lt.s32.totalorder %v2879_v56, 16  ;;  %v3359_v58 = vsel %vm10642_vm12, %v10605_v25, 0.0 }
  0xe0   : > { %v3131_v3 = vpop.permute.xlu0 %3130  ;;  %vm10671_vm14 = vmand %vm10642_vm12, %vm953_vm5  ;;  %vm2911_vm5 = vcmp.ge.s32.totalorder %v2879_v56, 0  ;;  %v2656_v31 = vsel %vm10660_vm15, %v10679_v30, 0.0  ;;  %vm2945_vm15 = vcmp.lt.s32.totalorder %v2881_v12, 16  ;;  %v766_v56 = vld [vmem:[#allocation2 + $0x68] sm:$0xff] }
  0xe1   : > { %v3129_v61 = vpop.permute.xlu1 %3128  ;;  %3225 = vst.msk [vmem:[#allocation5 + $0x10] sm:$0xff] %vm15024_vm7, %v3131_v3  ;;  %v3070_v29 = vsel %vm10671_vm14, %v10558_v32, 0.0  ;;  %vm10711_vm2 = vmand %vm2911_vm5, %vm2943_vm4  ;;  %vm829_vm5 = vcmp.ge.s32.totalorder %v797_v39, 0  ;;  %vm861_vm4 = vcmp.lt.s32.totalorder %v797_v39, 16  ;;  %v735_v3 = vand.u32 15, %v671_v35 }
  0xe2   : > { %3224 = vst.msk [vmem:[#allocation5 + $0x8] sm:$0xff] %vm15024_vm7, %v3129_v61  ;;  %2725 = vrot.lane.b32.xlu0 %v2653_v47, %s15188_s26  ;;  %v3071_v45 = vsel %vm10711_vm2, %v10590_v48, 0.0  ;;  %vm10738_vm14 = vmand %vm2913_vm1, %vm2945_vm15  ;;  %v10744_v48 = vshra.s32 %v671_v35, 4  ;;  %vm15025_vm1 = vcmp.ge.s32.totalorder %v10731_v14, 0  ;;  %vm830_vm15 = vcmp.ge.s32.totalorder %v798_v44, 0 }
  0xe3   : > { %2442 = vrot.lane.b32.xlu1 %v2367_v38, %s15179_s18  ;;  %v3073_v20 = vsel %vm10738_vm14, %v10735_v51, 0.0  ;;  %vm10758_vm13 = vmand %vm829_vm5, %vm861_vm4  ;;  %v10798_v12 = vadd.s32 4294967295, %v735_v3  ;;  %v736_v3 = vand.u32 15, %v10725_v40 }
  0xe4   : > { %v3416_v22 = vpop.permute.xlu0 %3415  ;;  %v799_v38 = vadd.s32 4294967295, %v10744_v48  ;;  %v1309_v13 = vsel %vm10758_vm13, %v10605_v25, 0.0 }
  0xe5   : > { %v3133_v28 = vpop.permute.xlu1 %3132  ;;  %3512 = vst.msk [vmem:[#allocation5] sm:$0xff] %vm15023_vm8, %v3416_v22 }
  0xe6   : > { %3226 = vst.msk [vmem:[#allocation5 + $0x18] sm:$0xff] %vm15024_vm7, %v3133_v28  ;;  %2729 = vrot.lane.b32.xlu0 %v2655_v26, %s15188_s26  ;;  %vm10768_vm7 = vmand %vm10758_vm13, %vm15025_vm1  ;;  %v3360_v26 = vsel %vm10711_vm2, %v10619_v10, 0.0  ;;  %v10792_v28 = vld [vmem:[#allocation2 + $0x79] sm:$0xff]  ;;  %vm863_vm4 = vcmp.lt.s32.totalorder %v799_v38, 16 }
  0xe7   : > { %2727 = vrot.lane.b32.xlu1 %v2654_v27, %s15188_s26  ;;  %v1085_v27 = vsel %vm10768_vm7, %v765_v19, 0.0  ;;  %vm832_vm7 = vcmp.ge.s32.totalorder %v800_v18, 0  ;;  %vm10811_vm1 = vmand %vm10711_vm2, %vm1627_vm11  ;;  %vm959_vm11 = vcmp.ge.s32.totalorder %v10798_v12, 0  ;;  %v10860_v19 = vld [vmem:[#allocation2 + $0x7a] sm:$0xff] }
  0xe8   : > { %v3420_v17 = vpop.permute.xlu0 %3419  ;;  %1117 = vst.msk [vmem:[#allocation5 + $0x60] sm:$0xff] %vm552_vm0, %v1085_v27  ;;  %v1694_v27 = vsel %vm10758_vm13, %v10639_v57, 0.0 }
  0xe9   : > { %v3418_v32 = vpop.permute.xlu1 %3417  ;;  %3514 = vst.msk [vmem:[#allocation5 + $0x10] sm:$0xff] %vm15023_vm8, %v3420_v17  ;;  %v3362_v17 = vsel %vm10738_vm14, %v10792_v28, 0.0 }
  0xea   : > { %3513 = vst.msk [vmem:[#allocation5 + $0x8] sm:$0xff] %vm15023_vm8, %v3418_v32  ;;  %3142 = vrot.lane.b32.xlu0 %v3070_v29, %s15193_s28 }
  0xeb   : > { %2731 = vrot.lane.b32.xlu1 %v2656_v31, %s15188_s26  ;;  %v3648_v31 = vsel %vm10642_vm12, %v10639_v57, 0.0 }
  0xec   : > { %v3705_v46 = vpop.permute.xlu0 %3704 }
  0xed   : > { %v3422_v8 = vpop.permute.xlu1 %3421  ;;  %3801 = vst.msk [vmem:[#allocation5] sm:$0xff] %vm3800_vm3, %v3705_v46 }
  0xee   : > { %3515 = vst.msk [vmem:[#allocation5 + $0x18] sm:$0xff] %vm15023_vm8, %v3422_v8  ;;  %3146 = vrot.lane.b32.xlu0 %v3072_v11, %s15193_s28  ;;  %vm862_vm8 = vcmp.lt.s32.totalorder %v798_v44, 16  ;;  %v768_v11 = vld [vmem:[#allocation2 + $0x78] sm:$0xff] }
  0xef   : > { %3144 = vrot.lane.b32.xlu1 %v3071_v45, %s15193_s28  ;;  %vm10779_vm5 = vmand %vm830_vm15, %vm862_vm8  ;;  %vm831_vm8 = vcmp.ge.s32.totalorder %v799_v38, 0  ;;  %vm864_vm15 = vcmp.lt.s32.totalorder %v800_v18, 16  ;;  %v3649_v45 = vsel %vm10811_vm1, %v10679_v30, 0.0  ;;  %v10839_v44 = vld [vmem:[#allocation2 + $0x72] sm:$0xff] }
  0xf0   : > { %v1370_v24 = vpop.permute.xlu0 %1369  ;;  %v1086_v22 = vsel %vm10779_vm5, %v766_v56, 0.0  ;;  %vm10816_vm12 = vmand %vm831_vm8, %vm863_vm4  ;;  %vm15257_vm8 = vcmask 261120   ;;  %vm15258_vm4 = vcmask 72752   ;;  %v3650_v47 = vsel %vm10681_vm6, %v10839_v44, 0.0 }
  0xf1   : > { %v3707_v43 = vpop.permute.xlu1 %3706  ;;  %1462 = vst.msk [vmem:[#allocation5 + $0x20] sm:$0xff] %vm15027_vm10, %v1370_v24  ;;  %vm10822_vm9 = vmand %vm832_vm7, %vm864_vm15  ;;  %v542_v24 = vld [vmem:[%s9652_s29 + $0xb0] sm:$0xff]  ;;  %vm15260_vm7 = vcmp.lt.s32.totalorder %v10489_v41, 16  ;;  %v1311_v40 = vsel %vm10816_vm12, %v10756_v33, 0.0  ;;  %v1696_v4 = vsel %vm10816_vm12, %v10839_v44, 0.0 }
  0xf2   : > { %3802 = vst.msk [vmem:[#allocation5 + $0x8] sm:$0xff] %vm3800_vm3, %v3707_v43  ;;  %3431 = vrot.lane.b32.xlu0 %v3359_v58, %s15198_s1  ;;  %vm991_vm2 = vmand %vm10816_vm12, %vm959_vm11  ;;  %v1088_v25 = vsel %vm10822_vm9, %v768_v11, 0.0  ;;  %vm15278_vm12 = vcmask 121952   ;;  %v543_v11 = vld [vmem:[%s9652_s29 + $0xb8] sm:$0xff] }
  0xf3   : > { %3148 = vrot.lane.b32.xlu1 %v3073_v20, %s15193_s28  ;;  %1118 = vst.msk [vmem:[#allocation5 + $0x68] sm:$0xff] %vm552_vm0, %v1086_v22  ;;  %v1087_v8 = vsel %vm991_vm2, %v767_v50, 0.0  ;;  %v734_v20 = vand.u32 15, %v10676_v23  ;;  %1120 = vst.msk [vmem:[#allocation5 + $0x78] sm:$0xff] %vm552_vm0, %v1088_v25  ;;  %v1310_v23 = vsel %vm10779_vm5, %v10619_v10, 0.0  ;;  %v1312_v22 = vsel %vm10822_vm9, %v10792_v28, 0.0 }
  0xf4   : > { %v3709_v54 = vpop.permute.xlu0 %3708  ;;  %v3833_v29 = vld [vmem:[#allocation5] sm:$0xff]  ;;  %1119 = vst.msk [vmem:[#allocation5 + $0x70] sm:$0xff] %vm552_vm0, %v1087_v8  ;;  %613 = vst.msk [vmem:[#allocation2 + $0xc1] sm:$0xff] %vm552_vm0, %v542_v24 }
  0xf5   : > { %v1372_v21 = vpop.permute.xlu1 %1371  ;;  %3803 = vst.msk [vmem:[#allocation5 + $0x10] sm:$0xff] %vm3800_vm3, %v3709_v54  ;;  %vm15259_vm1 = vmmov %vm15258_vm4  ;;  %v10870_v56 = vadd.s32 1, %v734_v20 }
  0xf6   : > { %1463 = vst.msk [vmem:[#allocation5 + $0x28] sm:$0xff] %vm15027_vm10, %v1372_v21  ;;  %3435 = vrot.lane.b32.xlu0 %v3361_v52, %s15198_s1  ;;  %vm10866_vm15 = vmand %vm10738_vm14, %vm15260_vm7  ;;  %vm15265_vm14 = vcmask 97352   ;;  %vm1951_vm7 = vcmp.lt.s32.totalorder %v10685_v62, 16 }
  0xf7   : > { %3433 = vrot.lane.b32.xlu1 %v3360_v26, %s15198_s1  ;;  %vm15263_vm6 = vmmov %vm15259_vm1  ;;  %v3651_v41 = vsel %vm10866_vm15, %v10860_v19, 0.0  ;;  %v10882_v26 = vadd.s32 1, %v736_v3  ;;  %614 = vst.msk [vmem:[#allocation2 + $0xc9] sm:$0xff] %vm552_vm0, %v543_v11 }
  0xf8   : > { %v1374_v15 = vpop.permute.xlu0 %1373  ;;  %vm15264_vm2 = vmmov %vm15257_vm8 }
  0xf9   : > { %v3711_v32 = vpop.permute.xlu1 %3710  ;;  %v3834_v39 = vld [vmem:[#allocation5 + $0x8] sm:$0xff]  ;;  %1464 = vst.msk [vmem:[#allocation5 + $0x30] sm:$0xff] %vm15027_vm10, %v1374_v15 }
  0xfa   : > { %3804 = vst.msk [vmem:[#allocation5 + $0x18] sm:$0xff] %vm3800_vm3, %v3711_v32  ;;  %v3865_v35 = vpack.c.bf16 %v3834_v39, %v3833_v29  ;;  %3720 = vrot.lane.b32.xlu0 %v3648_v31, %s15206_s30 }
  0xfb   : > { %3437 = vrot.lane.b32.xlu1 %v3362_v17, %s15198_s1 }
  0xfc   : > { %8682 = vmatprep.mubr.msk.bf16.mxu0 %vm15257_vm8, %v3865_v35  ;;  %v1755_v46 = vpop.permute.xlu0 %1754  ;;  %v3835_v43 = vld [vmem:[#allocation5 + $0x10] sm:$0xff]  ;;  %vm1631_vm8 = vcmp.lt.s32.totalorder %v10870_v56, 16  ;;  %v11342_v56 = vld [vmem:[#allocation2 + $0xa0] sm:$0xff] }
  0xfd   : > { %v1376_v58 = vpop.permute.xlu1 %1375  ;;  %1847 = vst.msk [vmem:[#allocation5 + $0x20] sm:$0xff] %vm15258_vm4, %v1755_v46  ;;  %vm15266_vm4 = vmmov %vm15259_vm1 }
  0xfe   : > { %1465 = vst.msk [vmem:[#allocation5 + $0x38] sm:$0xff] %vm15027_vm10, %v1376_v58  ;;  %1385 = vrot.lane.b32.xlu0 %v1309_v13, %s15209_s23  ;;  %vm10901_vm15 = vmand %vm10779_vm5, %vm1631_vm8  ;;  %vm1953_vm5 = vcmp.lt.s32.totalorder %v10744_v48, 16  ;;  %vm1952_vm10 = vcmp.lt.s32.totalorder %v10708_v36, 16  ;;  %v10983_v58 = vld [vmem:[#allocation2 + $0x88] sm:$0xff]  ;;  %v675_v13 = vadd.s32 144, %v9634_v2 }
  0xff   : > { %3722 = vrot.lane.b32.xlu1 %v3649_v45, %s15206_s30  ;;  %v1695_v17 = vsel %vm10901_vm15, %v10679_v30, 0.0  ;;  %vm1920_vm15 = vcmp.ge.s32.totalorder %v10708_v36, 0 }
 0x100   : > { %v1759_v38 = vpop.permute.xlu0 %1758 }
 0x101   : > { %v1757_v52 = vpop.permute.xlu1 %1756  ;;  %v3836_v18 = vld [vmem:[#allocation5 + $0x18] sm:$0xff]  ;;  %1849 = vst.msk [vmem:[#allocation5 + $0x30] sm:$0xff] %vm15259_vm1, %v1759_v38  ;;  %vm1919_vm1 = vcmp.ge.s32.totalorder %v10685_v62, 0  ;;  %v2882_v38 = vadd.s32 1, %v10685_v62  ;;  %v2884_v62 = vadd.s32 1, %v10744_v48 }
 0x102   : > { %1848 = vst.msk [vmem:[#allocation5 + $0x28] sm:$0xff] %vm15263_vm6, %v1757_v52  ;;  %v3866_v10 = vpack.c.bf16 %v3836_v18, %v3835_v43  ;;  %3724 = vrot.lane.b32.xlu0 %v3650_v47, %s15206_s30  ;;  %vm15029_vm6 = vcmp.lt.s32.totalorder %v10882_v26, 16  ;;  %v10998_v47 = vld [vmem:[#allocation2 + $0x81] sm:$0xff] }
 0x103   : > { %1387 = vrot.lane.b32.xlu1 %v1310_v23, %s15209_s23 }
 0x104   : > { %8683 = vmatmul.mubr.msk.bf16.vlgmr.msra.gmra.mrb[0].mxu0 %vm15264_vm2, %v3866_v10  ;;  %v2140_v55 = vpop.permute.xlu0 %2139  ;;  %vm15269_vm2 = vmmov %vm15265_vm14 }
 0x105   : > { %v1761_v54 = vpop.permute.xlu1 %1760  ;;  %2232 = vst.msk [vmem:[#allocation5 + $0x20] sm:$0xff] %vm15265_vm14, %v2140_v55  ;;  %vm10907_vm14 = vmand %vm1919_vm1, %vm1951_vm7  ;;  %vm15275_vm7 = vcmp.ge.s32.totalorder %v10731_v14, 0 }
 0x106   : > { %1850 = vst.msk [vmem:[#allocation5 + $0x38] sm:$0xff] %vm15266_vm4, %v1761_v54  ;;  %1389 = vrot.lane.b32.xlu0 %v1311_v40, %s15209_s23  ;;  %vm15272_vm13 = vmmov %vm15269_vm2  ;;  %vm1921_vm4 = vcmp.ge.s32.totalorder %v10744_v48, 0  ;;  %v11032_v48 = vld [vmem:[#allocation2 + $0x82] sm:$0xff] }
 0x107   : > { %3726 = vrot.lane.b32.xlu1 %v3651_v41, %s15206_s30  ;;  %vm10923_vm1 = vmand %vm10822_vm9, %vm15029_vm6  ;;  %v544_v54 = vld [vmem:[%s9652_s29 + $0xc0] sm:$0xff] }
 0x108   : > { %v2144_v21 = vpop.permute.xlu0 %2143  ;;  %vm10939_vm9 = vmand %vm1921_vm4, %vm1953_vm5  ;;  %v1697_v42 = vsel %vm10923_vm1, %v10860_v19, 0.0  ;;  %615 = vst.msk [vmem:[#allocation2 + $0xd1] sm:$0xff] %vm552_vm0, %v544_v54  ;;  %v769_v54 = vld [vmem:[#allocation2 + $0x80] sm:$0xff] }
 0x109   : > { %v2142_v31 = vpop.permute.xlu1 %2141  ;;  %2234 = vst.msk [vmem:[#allocation5 + $0x30] sm:$0xff] %vm15269_vm2, %v2144_v21  ;;  %vm10934_vm2 = vmand %vm10907_vm14, %vm15275_vm7  ;;  %v2659_v21 = vsel %vm10939_vm9, %v11032_v48, 0.0 }
 0x10a   : > { %2233 = vst.msk [vmem:[#allocation5 + $0x28] sm:$0xff] %vm15272_vm13, %v2142_v31  ;;  %1770 = vrot.lane.b32.xlu0 %v1694_v27, %s15165_s19  ;;  %v2079_v30 = vsel %vm10934_vm2, %v10697_v37, 0.0  ;;  %vm10960_vm4 = vmand %vm10939_vm9, %vm959_vm11  ;;  %vm1922_vm2 = vcmp.ge.s32.totalorder %v10751_v59, 0  ;;  %v2883_v27 = vadd.s32 1, %v10708_v36  ;;  %v11058_v36 = vadd.s32 136, %v9634_v2  ;;  %v545_v37 = vld [vmem:[%s9652_s29 + $0xc8] sm:$0xff] }
 0x10b   : > { %1391 = vrot.lane.b32.xlu1 %v1312_v22, %s15209_s23  ;;  %vm15283_vm5 = vmmov %vm15278_vm12  ;;  %v2081_v45 = vsel %vm10960_vm4, %v10954_v16, 0.0  ;;  %v673_v22 = vadd.s32 128, %v9634_v2  ;;  %616 = vst.msk [vmem:[#allocation2 + $0xd9] sm:$0xff] %vm552_vm0, %v545_v37  ;;  %v772_v37 = vld [vmem:[#allocation2 + $0x98] sm:$0xff] }
 0x10c   : > { %v2429_v15 = vpop.permute.xlu0 %2428  ;;  %vm10965_vm7 = vmand %vm1920_vm15, %vm1952_vm10  ;;  %vm15287_vm10 = vcmask 146552  }
 0x10d   : > { %v2146_v32 = vpop.permute.xlu1 %2145  ;;  %2521 = vst.msk [vmem:[#allocation5 + $0x20] sm:$0xff] %vm15278_vm12, %v2429_v15  ;;  %vm15286_vm1 = vmmov %vm15283_vm5  ;;  %vm1954_vm12 = vcmp.lt.s32.totalorder %v10751_v59, 16  ;;  %v2080_v46 = vsel %vm10965_vm7, %v10735_v51, 0.0  ;;  %v2368_v51 = vsel %vm10907_vm14, %v10756_v33, 0.0  ;;  %v2370_v33 = vsel %vm10939_vm9, %v10998_v47, 0.0  ;;  %v11400_v15 = vld [vmem:[#allocation2 + $0xa9] sm:$0xff] }
 0x10e   : > { %2235 = vst.msk [vmem:[#allocation5 + $0x38] sm:$0xff] %vm15272_vm13, %v2146_v32  ;;  %1774 = vrot.lane.b32.xlu0 %v1696_v4, %s15165_s19  ;;  %vm10985_vm13 = vmand %vm1922_vm2, %vm1954_vm12  ;;  %v2369_v3 = vsel %vm10965_vm7, %v10792_v28, 0.0  ;;  %vm2914_vm12 = vcmp.ge.s32.totalorder %v2882_v38, 0  ;;  %v2657_v28 = vsel %vm10907_vm14, %v10839_v44, 0.0  ;;  %v11088_v32 = vshra.s32 %v11058_v36, 4  ;;  %v11180_v4 = vld [vmem:[#allocation2 + $0x99] sm:$0xff] }
 0x10f   : > { %1772 = vrot.lane.b32.xlu1 %v1695_v17, %s15165_s19  ;;  %vm15290_vm15 = vmmov %vm15286_vm1  ;;  %v2082_v24 = vsel %vm10985_vm13, %v10983_v58, 0.0  ;;  %v2371_v10 = vsel %vm10985_vm13, %v11012_v60, 0.0  ;;  %v11072_v17 = vld [vmem:[#allocation2 + $0x8a] sm:$0xff] }
 0x110   : > { %v2433_v35 = vpop.permute.xlu0 %2432  ;;  %vm15291_vm4 = vmmov %vm15287_vm10 }
 0x111   : > { %v2431_v50 = vpop.permute.xlu1 %2430  ;;  %2523 = vst.msk [vmem:[#allocation5 + $0x30] sm:$0xff] %vm15283_vm5, %v2433_v35  ;;  %vm15292_vm5 = vmmov %vm15291_vm4 }
 0x112   : > { %2522 = vst.msk [vmem:[#allocation5 + $0x28] sm:$0xff] %vm15286_vm1, %v2431_v50  ;;  %2155 = vrot.lane.b32.xlu0 %v2079_v30, %s15174_s20  ;;  %vm15293_vm1 = vcmask 171152   ;;  %vm15294_vm2 = vmmov %vm15291_vm4  ;;  %v11093_v30 = vld [vmem:[#allocation2 + $0x90] sm:$0xff]  ;;  %v737_v50 = vand.u32 15, %v673_v22 }
 0x113   : > { %1776 = vrot.lane.b32.xlu1 %v1697_v42, %s15165_s19  ;;  %vm15300_vm14 = vmmov %vm15293_vm1 }
 0x114   : > { %v2718_v8 = vpop.permute.xlu0 %2717 }
 0x115   : > { %v2435_v25 = vpop.permute.xlu1 %2434  ;;  %2810 = vst.msk [vmem:[#allocation5 + $0x20] sm:$0xff] %vm15287_vm10, %v2718_v8  ;;  %vm2946_vm10 = vcmp.lt.s32.totalorder %v2882_v38, 16 }
 0x116   : > { %2524 = vst.msk [vmem:[#allocation5 + $0x38] sm:$0xff] %vm15290_vm15, %v2435_v25  ;;  %2159 = vrot.lane.b32.xlu0 %v2081_v45, %s15174_s20  ;;  %vm11028_vm15 = vmand %vm10965_vm7, %vm1631_vm8  ;;  %vm2916_vm7 = vcmp.ge.s32.totalorder %v2884_v62, 0  ;;  %v802_v45 = vadd.s32 4294967295, %v11088_v32 }
 0x117   : > { %2157 = vrot.lane.b32.xlu1 %v2080_v46, %s15174_s20  ;;  %v2658_v31 = vsel %vm11028_vm15, %v10860_v19, 0.0  ;;  %v2885_v19 = vadd.s32 1, %v10751_v59  ;;  %v11119_v46 = vadd.s32 152, %v9634_v2 }
 0x118   : > { %v2722_v43 = vpop.permute.xlu0 %2721 }
 0x119   : > { %v2720_v23 = vpop.permute.xlu1 %2719  ;;  %2812 = vst.msk [vmem:[#allocation5 + $0x30] sm:$0xff] %vm15291_vm4, %v2722_v43  ;;  %vm15297_vm4 = vmmov %vm15293_vm1  ;;  %v11136_v43 = vshra.s32 %v675_v13, 4  ;;  %v11145_v38 = vshra.s32 %v11119_v46, 4 }
 0x11a   : > { %2811 = vst.msk [vmem:[#allocation5 + $0x28] sm:$0xff] %vm15292_vm5, %v2720_v23  ;;  %2444 = vrot.lane.b32.xlu0 %v2368_v51, %s15179_s18  ;;  %vm11035_vm5 = vmand %vm2914_vm12, %vm2946_vm10  ;;  %vm15303_vm12 = vcmp.ge.s32.totalorder %v10731_v14, 0  ;;  %v11081_v14 = vshra.s32 %v673_v22, 4  ;;  %v11126_v51 = vld [vmem:[#allocation2 + $0x98] sm:$0xff] }
 0x11b   : > { %2161 = vrot.lane.b32.xlu1 %v2082_v24, %s15174_s20  ;;  %vm11067_vm9 = vmand %vm11035_vm5, %vm15303_vm12  ;;  %v3363_v23 = vsel %vm11035_vm5, %v10998_v47, 0.0 }
 0x11c   : > { %v3135_v52 = vpop.permute.xlu0 %3134  ;;  %vm15309_vm15 = vmmov %vm15297_vm4  ;;  %v3074_v34 = vsel %vm11067_vm9, %v10954_v16, 0.0  ;;  %vm2917_vm9 = vcmp.ge.s32.totalorder %v2885_v19, 0  ;;  %v801_v12 = vadd.s32 4294967295, %v11081_v14 }
 0x11d   : > { %v2724_v18 = vpop.permute.xlu1 %2723  ;;  %3227 = vst.msk [vmem:[#allocation5 + $0x20] sm:$0xff] %vm15293_vm1, %v3135_v52  ;;  %vm2948_vm1 = vcmp.lt.s32.totalorder %v2884_v62, 16  ;;  %v11150_v52 = vld [vmem:[#allocation2 + $0x91] sm:$0xff] }
 0x11e   : > { %2813 = vst.msk [vmem:[#allocation5 + $0x38] sm:$0xff] %vm15294_vm2, %v2724_v18  ;;  %2448 = vrot.lane.b32.xlu0 %v2370_v33, %s15179_s18  ;;  %vm11053_vm2 = vmand %vm10985_vm13, %vm15029_vm6  ;;  %vm15306_vm13 = vcmask 195752  }
 0x11f   : > { %2446 = vrot.lane.b32.xlu1 %v2369_v3, %s15179_s18  ;;  %vm11074_vm10 = vmand %vm2916_vm7, %vm2948_vm1  ;;  %v2660_v59 = vsel %vm11053_vm2, %v11072_v17, 0.0 }
 0x120   : > { %v3139_v40 = vpop.permute.xlu0 %3138  ;;  %vm11099_vm7 = vmand %vm11074_vm10, %vm959_vm11  ;;  %v3365_v41 = vsel %vm11074_vm10, %v11150_v52, 0.0 }
 0x121   : > { %v3137_v55 = vpop.permute.xlu1 %3136  ;;  %3229 = vst.msk [vmem:[#allocation5 + $0x30] sm:$0xff] %vm15297_vm4, %v3139_v40  ;;  %vm2915_vm4 = vcmp.ge.s32.totalorder %v2883_v27, 0  ;;  %vm15312_vm1 = vmmov %vm15306_vm13  ;;  %v3076_v11 = vsel %vm11099_vm7, %v11093_v30, 0.0  ;;  %vm834_vm7 = vcmp.ge.s32.totalorder %v802_v45, 0  ;;  %v739_v40 = vand.u32 15, %v675_v13 }
 0x122   : > { %3228 = vst.msk [vmem:[#allocation5 + $0x28] sm:$0xff] %vm15300_vm14, %v3137_v55  ;;  %2733 = vrot.lane.b32.xlu0 %v2657_v28, %s15188_s26  ;;  %vm2947_vm14 = vcmp.lt.s32.totalorder %v2883_v27, 16  ;;  %vm15315_vm2 = vmmov %vm15312_vm1  ;;  %v804_v55 = vadd.s32 4294967295, %v11145_v38  ;;  %v770_v27 = vld [vmem:[#allocation2 + $0x88] sm:$0xff] }
 0x123   : > { %2450 = vrot.lane.b32.xlu1 %v2371_v10, %s15179_s18  ;;  %vm11104_vm12 = vmand %vm2915_vm4, %vm2947_vm14  ;;  %vm833_vm4 = vcmp.ge.s32.totalorder %v801_v12, 0  ;;  %vm865_vm14 = vcmp.lt.s32.totalorder %v801_v12, 16  ;;  %v803_v10 = vadd.s32 4294967295, %v11136_v43 }
 0x124   : > { %v3424_v57 = vpop.permute.xlu0 %3423  ;;  %v3075_v8 = vsel %vm11104_vm12, %v10983_v58, 0.0  ;;  %v11138_v58 = vadd.s32 4294967295, %v737_v50  ;;  %v3364_v22 = vsel %vm11104_vm12, %v11012_v60, 0.0  ;;  %v771_v50 = vld [vmem:[#allocation2 + $0x90] sm:$0xff] }
 0x125   : > { %v3141_v61 = vpop.permute.xlu1 %3140  ;;  %3516 = vst.msk [vmem:[#allocation5 + $0x20] sm:$0xff] %vm15306_vm13, %v3424_v57  ;;  %vm2949_vm13 = vcmp.lt.s32.totalorder %v2885_v19, 16 }
 0x126   : > { %3230 = vst.msk [vmem:[#allocation5 + $0x38] sm:$0xff] %vm15309_vm15, %v3141_v61  ;;  %2737 = vrot.lane.b32.xlu0 %v2659_v21, %s15188_s26  ;;  %vm11130_vm11 = vmand %vm2917_vm9, %vm2949_vm13  ;;  %vm15319_vm9 = vcmask 48152   ;;  %v11186_v61 = vadd.s32 4294967295, %v739_v40  ;;  %v740_v40 = vand.u32 15, %v11119_v46 }
 0x127   : > { %2735 = vrot.lane.b32.xlu1 %v2658_v31, %s15188_s26  ;;  %vm15318_vm15 = vmmov %vm15312_vm1  ;;  %v3077_v33 = vsel %vm11130_vm11, %v11126_v51, 0.0 }
 0x128   : > { %v3428_v39 = vpop.permute.xlu0 %3427 }
 0x129   : > { %v3426_v35 = vpop.permute.xlu1 %3425  ;;  %3518 = vst.msk [vmem:[#allocation5 + $0x30] sm:$0xff] %vm15312_vm1, %v3428_v39  ;;  %vm866_vm1 = vcmp.lt.s32.totalorder %v802_v45, 16 }
 0x12a   : > { %3517 = vst.msk [vmem:[#allocation5 + $0x28] sm:$0xff] %vm15315_vm2, %v3426_v35  ;;  %3150 = vrot.lane.b32.xlu0 %v3074_v34, %s15193_s28  ;;  %vm11153_vm2 = vmand %vm833_vm4, %vm865_vm14  ;;  %v3652_v34 = vsel %vm11035_vm5, %v11032_v48, 0.0 }
 0x12b   : > { %2739 = vrot.lane.b32.xlu1 %v2660_v59, %s15188_s26  ;;  %vm11159_vm13 = vmand %vm834_vm7, %vm866_vm1  ;;  %vm835_vm7 = vcmp.ge.s32.totalorder %v803_v10, 0  ;;  %vm867_vm1 = vcmp.lt.s32.totalorder %v803_v10, 16  ;;  %v3366_v59 = vsel %vm11130_vm11, %v11180_v4, 0.0  ;;  %v1313_v16 = vsel %vm11153_vm2, %v10998_v47, 0.0 }
 0x12c   : > { %v3713_v25 = vpop.permute.xlu0 %3712  ;;  %v1090_v31 = vsel %vm11159_vm13, %v770_v27, 0.0  ;;  %vm15324_vm14 = vmmov %vm15319_vm9 }
 0x12d   : > { %v3430_v20 = vpop.permute.xlu1 %3429  ;;  %3805 = vst.msk [vmem:[#allocation5 + $0x20] sm:$0xff] %vm3800_vm3, %v3713_v25  ;;  %vm11204_vm5 = vmand %vm835_vm7, %vm867_vm1  ;;  %vm15333_vm7 = vcmask 72752   ;;  %vm15334_vm1 = vcmask 48152  }
 0x12e   : > { %3519 = vst.msk [vmem:[#allocation5 + $0x38] sm:$0xff] %vm15318_vm15, %v3430_v20  ;;  %3154 = vrot.lane.b32.xlu0 %v3076_v11, %s15193_s28  ;;  %vm15028_vm15 = vcmp.ge.s32.totalorder %v11138_v58, 0  ;;  %v1315_v46 = vsel %vm11204_vm5, %v11150_v52, 0.0 }
 0x12f   : > { %3152 = vrot.lane.b32.xlu1 %v3075_v8, %s15193_s28  ;;  %vm993_vm4 = vmand %vm11153_vm2, %vm15028_vm15  ;;  %1122 = vst.msk [vmem:[#allocation5 + $0x88] sm:$0xff] %vm552_vm0, %v1090_v31  ;;  %vm15327_vm15 = vcmask 48152   ;;  %v11227_v8 = vld [vmem:[#allocation2 + $0x92] sm:$0xff] }
 0x130   : > { %v1378_v3 = vpop.permute.xlu0 %1377  ;;  %v1089_v29 = vsel %vm993_vm4, %v769_v54, 0.0  ;;  %vm868_vm4 = vcmp.lt.s32.totalorder %v804_v55, 16  ;;  %v11248_v54 = vld [vmem:[#allocation2 + $0x9a] sm:$0xff]  ;;  %v1700_v62 = vsel %vm11204_vm5, %v11227_v8, 0.0 }
 0x131   : > { %v3715_v18 = vpop.permute.xlu1 %3714  ;;  %1466 = vst.msk [vmem:[#allocation5 + $0x40] sm:$0xff] %vm15319_vm9, %v1378_v3  ;;  %vm836_vm9 = vcmp.ge.s32.totalorder %v804_v55, 0 }
 0x132   : > { %3806 = vst.msk [vmem:[#allocation5 + $0x28] sm:$0xff] %vm3800_vm3, %v3715_v18  ;;  %3439 = vrot.lane.b32.xlu0 %v3363_v23, %s15198_s1  ;;  %vm11210_vm6 = vmand %vm836_vm9, %vm868_vm4  ;;  %v738_v23 = vand.u32 15, %v11058_v36  ;;  %v3654_v18 = vsel %vm11074_vm10, %v11227_v8, 0.0  ;;  %v1314_v36 = vsel %vm11159_vm13, %v11012_v60, 0.0  ;;  %vm15336_vm4 = vcmp.lt.s32.totalorder %v10882_v26, 16 }
 0x133   : > { %3156 = vrot.lane.b32.xlu1 %v3077_v33, %s15193_s28  ;;  %1121 = vst.msk [vmem:[#allocation5 + $0x80] sm:$0xff] %vm552_vm0, %v1089_v29  ;;  %v1092_v47 = vsel %vm11210_vm6, %v772_v37, 0.0  ;;  %v546_v33 = vld [vmem:[%s9652_s29 + $0xd0] sm:$0xff]  ;;  %vm15335_vm9 = vmmov %vm15333_vm7  ;;  %v1698_v29 = vsel %vm11153_vm2, %v11032_v48, 0.0  ;;  %v1316_v31 = vsel %vm11210_vm6, %v11180_v4, 0.0  ;;  %v547_v37 = vld [vmem:[%s9652_s29 + $0xd8] sm:$0xff] }
 0x134   : > { %v3717_v21 = vpop.permute.xlu0 %3716  ;;  %v3837_v19 = vld [vmem:[#allocation5 + $0x20] sm:$0xff]  ;;  %1124 = vst.msk [vmem:[#allocation5 + $0x98] sm:$0xff] %vm552_vm0, %v1092_v47  ;;  %617 = vst.msk [vmem:[#allocation2 + $0xe1] sm:$0xff] %vm552_vm0, %v546_v33  ;;  %v11258_v27 = vadd.s32 1, %v738_v23 }
 0x135   : > { %v1380_v57 = vpop.permute.xlu1 %1379  ;;  %3807 = vst.msk [vmem:[#allocation5 + $0x30] sm:$0xff] %vm3800_vm3, %v3717_v21  ;;  %vm15339_vm10 = vmmov %vm15333_vm7 }
 0x136   : > { %1467 = vst.msk [vmem:[#allocation5 + $0x48] sm:$0xff] %vm15324_vm14, %v1380_v57  ;;  %3443 = vrot.lane.b32.xlu0 %v3365_v41, %s15198_s1  ;;  %vm11199_vm14 = vmand %vm11104_vm12, %vm1631_vm8  ;;  %vm963_vm8 = vcmp.ge.s32.totalorder %v11186_v61, 0 }
 0x137   : > { %3441 = vrot.lane.b32.xlu1 %v3364_v22, %s15198_s1  ;;  %vm995_vm12 = vmand %vm11204_vm5, %vm963_vm8  ;;  %v3653_v11 = vsel %vm11199_vm14, %v11072_v17, 0.0  ;;  %v11270_v22 = vadd.s32 1, %v740_v40  ;;  %vm15353_vm5 = vcmask 121952   ;;  %618 = vst.msk [vmem:[#allocation2 + $0xe9] sm:$0xff] %vm552_vm0, %v547_v37 }
 0x138   : > { %v1382_v39 = vpop.permute.xlu0 %1381  ;;  %v1091_v25 = vsel %vm995_vm12, %v771_v50, 0.0  ;;  %vm11254_vm14 = vmand %vm11130_vm11, %vm15336_vm4  ;;  %vm15341_vm11 = vcmask 97352  }
 0x139   : > { %v3719_v35 = vpop.permute.xlu1 %3718  ;;  %v3838_v12 = vld [vmem:[#allocation5 + $0x28] sm:$0xff]  ;;  %1468 = vst.msk [vmem:[#allocation5 + $0x50] sm:$0xff] %vm15327_vm15, %v1382_v39  ;;  %vm15332_vm15 = vcmask 261120   ;;  %v3655_v26 = vsel %vm11254_vm14, %v11248_v54, 0.0  ;;  %vm15031_vm14 = vcmp.lt.s32.totalorder %v11270_v22, 16 }
 0x13a   : > { %3808 = vst.msk [vmem:[#allocation5 + $0x38] sm:$0xff] %vm3800_vm3, %v3719_v35  ;;  %v3867_v13 = vpack.c.bf16 %v3838_v12, %v3837_v19  ;;  %3728 = vrot.lane.b32.xlu0 %v3652_v34, %s15206_s30  ;;  %vm15340_vm12 = vmmov %vm15332_vm15 }
 0x13b   : > { %3445 = vrot.lane.b32.xlu1 %v3366_v59, %s15198_s1  ;;  %1123 = vst.msk [vmem:[#allocation5 + $0x90] sm:$0xff] %vm552_vm0, %v1091_v25 }
 0x13c   : > { %8686 = vmatprep.mubr.msk.bf16.mxu0 %vm15332_vm15, %v3867_v13  ;;  %v1763_v45 = vpop.permute.xlu0 %1762  ;;  %v3839_v3 = vld [vmem:[#allocation5 + $0x30] sm:$0xff]  ;;  %vm1635_vm15 = vcmp.lt.s32.totalorder %v11258_v27, 16  ;;  %v11730_v27 = vld [vmem:[#allocation2 + $0xc0] sm:$0xff] }
 0x13d   : > { %v1384_v20 = vpop.permute.xlu1 %1383  ;;  %1851 = vst.msk [vmem:[#allocation5 + $0x40] sm:$0xff] %vm15333_vm7, %v1763_v45  ;;  %vm11289_vm4 = vmand %vm11159_vm13, %vm1635_vm15  ;;  %vm1957_vm13 = vcmp.lt.s32.totalorder %v11136_v43, 16 }
 0x13e   : > { %1469 = vst.msk [vmem:[#allocation5 + $0x58] sm:$0xff] %vm15334_vm1, %v1384_v20  ;;  %1393 = vrot.lane.b32.xlu0 %v1313_v16, %s15209_s23  ;;  %vm1923_vm1 = vcmp.ge.s32.totalorder %v11081_v14, 0  ;;  %v1699_v59 = vsel %vm11289_vm4, %v11072_v17, 0.0  ;;  %vm1924_vm4 = vcmp.ge.s32.totalorder %v11088_v32, 0  ;;  %v11371_v20 = vld [vmem:[#allocation2 + $0xa8] sm:$0xff]  ;;  %v679_v16 = vadd.s32 176, %v9634_v2 }
 0x13f   : > { %3730 = vrot.lane.b32.xlu1 %v3653_v11, %s15206_s30 }
 0x140   : > { %v1767_v10 = vpop.permute.xlu0 %1766 }
 0x141   : > { %v1765_v41 = vpop.permute.xlu1 %1764  ;;  %v3840_v55 = vld [vmem:[#allocation5 + $0x38] sm:$0xff]  ;;  %1853 = vst.msk [vmem:[#allocation5 + $0x50] sm:$0xff] %vm15335_vm9, %v1767_v10  ;;  %vm1955_vm9 = vcmp.lt.s32.totalorder %v11081_v14, 16  ;;  %v2886_v10 = vadd.s32 1, %v11081_v14  ;;  %v2888_v14 = vadd.s32 1, %v11136_v43 }
 0x142   : > { %1852 = vst.msk [vmem:[#allocation5 + $0x48] sm:$0xff] %vm15339_vm10, %v1765_v41  ;;  %v3868_v60 = vpack.c.bf16 %v3840_v55, %v3839_v3  ;;  %3732 = vrot.lane.b32.xlu0 %v3654_v18, %s15206_s30  ;;  %vm15344_vm10 = vmmov %vm15341_vm11  ;;  %v11386_v18 = vld [vmem:[#allocation2 + $0xa1] sm:$0xff] }
 0x143   : > { %1395 = vrot.lane.b32.xlu1 %v1314_v36, %s15209_s23  ;;  %vm15347_vm2 = vmmov %vm15344_vm10 }
 0x144   : > { %8687 = vmatmul.mubr.msk.bf16.gmra.mrb[4].mxu0 %vm15340_vm12, %v3868_v60  ;;  %v2148_v24 = vpop.permute.xlu0 %2147  ;;  %vm11295_vm12 = vmand %vm1923_vm1, %vm1955_vm9  ;;  %vm15350_vm1 = vcmp.ge.s32.totalorder %v11138_v58, 0 }
 0x145   : > { %v1769_v21 = vpop.permute.xlu1 %1768  ;;  %2236 = vst.msk [vmem:[#allocation5 + $0x40] sm:$0xff] %vm15341_vm11, %v2148_v24  ;;  %vm1925_vm11 = vcmp.ge.s32.totalorder %v11136_v43, 0  ;;  %vm11322_vm9 = vmand %vm11295_vm12, %vm15350_vm1  ;;  %v11420_v43 = vld [vmem:[#allocation2 + $0xa2] sm:$0xff] }
 0x146   : > { %1854 = vst.msk [vmem:[#allocation5 + $0x58] sm:$0xff] %vm15333_vm7, %v1769_v21  ;;  %1397 = vrot.lane.b32.xlu0 %v1315_v46, %s15209_s23  ;;  %vm11311_vm7 = vmand %vm11210_vm6, %vm15031_vm14  ;;  %v2083_v17 = vsel %vm11322_vm9, %v11093_v30, 0.0  ;;  %vm1926_vm9 = vcmp.ge.s32.totalorder %v11145_v38, 0  ;;  %v548_v21 = vld [vmem:[%s9652_s29 + $0xe0] sm:$0xff]  ;;  %v549_v30 = vld [vmem:[%s9652_s29 + $0xe8] sm:$0xff] }
 0x147   : > { %3734 = vrot.lane.b32.xlu1 %v3655_v26, %s15206_s30  ;;  %vm11327_vm6 = vmand %vm1925_vm11, %vm1957_vm13  ;;  %v1701_v44 = vsel %vm11311_vm7, %v11248_v54, 0.0  ;;  %619 = vst.msk [vmem:[#allocation2 + $0xf1] sm:$0xff] %vm552_vm0, %v548_v21  ;;  %v773_v21 = vld [vmem:[#allocation2 + $0xa0] sm:$0xff] }
 0x148   : > { %v2152_v57 = vpop.permute.xlu0 %2151  ;;  %vm11348_vm11 = vmand %vm11327_vm6, %vm963_vm8  ;;  %620 = vst.msk [vmem:[#allocation2 + $0xf9] sm:$0xff] %vm552_vm0, %v549_v30  ;;  %v776_v30 = vld [vmem:[#allocation2 + $0xb8] sm:$0xff] }
 0x149   : > { %v2150_v34 = vpop.permute.xlu1 %2149  ;;  %2238 = vst.msk [vmem:[#allocation5 + $0x50] sm:$0xff] %vm15344_vm10, %v2152_v57  ;;  %vm15356_vm10 = vmmov %vm15347_vm2  ;;  %v2085_v11 = vsel %vm11348_vm11, %v11342_v56, 0.0  ;;  %v2663_v57 = vsel %vm11327_vm6, %v11420_v43, 0.0 }
 0x14a   : > { %2237 = vst.msk [vmem:[#allocation5 + $0x48] sm:$0xff] %vm15347_vm2, %v2150_v34  ;;  %1778 = vrot.lane.b32.xlu0 %v1698_v29, %s15165_s19  ;;  %vm1956_vm2 = vcmp.lt.s32.totalorder %v11088_v32, 16  ;;  %vm15359_vm13 = vmmov %vm15353_vm5  ;;  %v2887_v29 = vadd.s32 1, %v11088_v32  ;;  %v11446_v32 = vadd.s32 168, %v9634_v2 }
 0x14b   : > { %1399 = vrot.lane.b32.xlu1 %v1316_v31, %s15209_s23  ;;  %vm11353_vm1 = vmand %vm1924_vm4, %vm1956_vm2  ;;  %v677_v31 = vadd.s32 160, %v9634_v2 }
 0x14c   : > { %v2437_v39 = vpop.permute.xlu0 %2436  ;;  %vm15362_vm7 = vmmov %vm15353_vm5  ;;  %v2084_v45 = vsel %vm11353_vm1, %v11126_v51, 0.0  ;;  %v2372_v51 = vsel %vm11295_vm12, %v11150_v52, 0.0  ;;  %v2374_v52 = vsel %vm11327_vm6, %v11386_v18, 0.0  ;;  %v2373_v40 = vsel %vm11353_vm1, %v11180_v4, 0.0 }
 0x14d   : > { %v2154_v35 = vpop.permute.xlu1 %2153  ;;  %2525 = vst.msk [vmem:[#allocation5 + $0x40] sm:$0xff] %vm15353_vm5, %v2437_v39  ;;  %vm1958_vm5 = vcmp.lt.s32.totalorder %v11145_v38, 16  ;;  %vm15366_vm2 = vmmov %vm15362_vm7  ;;  %v2661_v4 = vsel %vm11295_vm12, %v11227_v8, 0.0  ;;  %v11788_v39 = vld [vmem:[#allocation2 + $0xc9] sm:$0xff] }
 0x14e   : > { %2239 = vst.msk [vmem:[#allocation5 + $0x58] sm:$0xff] %vm15356_vm10, %v2154_v35  ;;  %1782 = vrot.lane.b32.xlu0 %v1700_v62, %s15165_s19  ;;  %vm15363_vm10 = vcmask 146552   ;;  %vm11373_vm4 = vmand %vm1926_vm9, %vm1958_vm5  ;;  %vm2918_vm5 = vcmp.ge.s32.totalorder %v2886_v10, 0  ;;  %v11476_v35 = vshra.s32 %v11446_v32, 4  ;;  %v11568_v62 = vld [vmem:[#allocation2 + $0xb9] sm:$0xff] }
 0x14f   : > { %1780 = vrot.lane.b32.xlu1 %v1699_v59, %s15165_s19  ;;  %v2086_v33 = vsel %vm11373_vm4, %v11371_v20, 0.0  ;;  %vm15367_vm11 = vmmov %vm15363_vm10  ;;  %v2375_v60 = vsel %vm11373_vm4, %v11400_v15, 0.0  ;;  %v11460_v59 = vld [vmem:[#allocation2 + $0xaa] sm:$0xff] }
 0x150   : > { %v2441_v13 = vpop.permute.xlu0 %2440  ;;  %vm15370_vm9 = vmmov %vm15363_vm10 }
 0x151   : > { %v2439_v50 = vpop.permute.xlu1 %2438  ;;  %2527 = vst.msk [vmem:[#allocation5 + $0x50] sm:$0xff] %vm15359_vm13, %v2441_v13  ;;  %vm15368_vm13 = vmmov %vm15363_vm10 }
 0x152   : > { %2526 = vst.msk [vmem:[#allocation5 + $0x48] sm:$0xff] %vm15362_vm7, %v2439_v50  ;;  %2163 = vrot.lane.b32.xlu0 %v2083_v17, %s15174_s20  ;;  %vm15369_vm7 = vcmask 171152   ;;  %v11481_v17 = vld [vmem:[#allocation2 + $0xb0] sm:$0xff]  ;;  %v741_v50 = vand.u32 15, %v677_v31 }
 0x153   : > { %1784 = vrot.lane.b32.xlu1 %v1701_v44, %s15165_s19  ;;  %vm15376_vm12 = vmmov %vm15369_vm7 }
 0x154   : > { %v2726_v25 = vpop.permute.xlu0 %2725 }
 0x155   : > { %v2443_v47 = vpop.permute.xlu1 %2442  ;;  %2814 = vst.msk [vmem:[#allocation5 + $0x40] sm:$0xff] %vm15363_vm10, %v2726_v25  ;;  %vm2950_vm10 = vcmp.lt.s32.totalorder %v2886_v10, 16 }
 0x156   : > { %2528 = vst.msk [vmem:[#allocation5 + $0x58] sm:$0xff] %vm15366_vm2, %v2443_v47  ;;  %2167 = vrot.lane.b32.xlu0 %v2085_v11, %s15174_s20  ;;  %vm11416_vm2 = vmand %vm11353_vm1, %vm1635_vm15  ;;  %vm2920_vm1 = vcmp.ge.s32.totalorder %v2888_v14, 0  ;;  %v806_v11 = vadd.s32 4294967295, %v11476_v35 }
 0x157   : > { %2165 = vrot.lane.b32.xlu1 %v2084_v45, %s15174_s20  ;;  %v2662_v34 = vsel %vm11416_vm2, %v11248_v54, 0.0  ;;  %v2889_v54 = vadd.s32 1, %v11145_v38  ;;  %v11507_v45 = vadd.s32 184, %v9634_v2 }
 0x158   : > { %v2730_v3 = vpop.permute.xlu0 %2729 }
 0x159   : > { %v2728_v36 = vpop.permute.xlu1 %2727  ;;  %2816 = vst.msk [vmem:[#allocation5 + $0x50] sm:$0xff] %vm15367_vm11, %v2730_v3  ;;  %vm15373_vm11 = vmmov %vm15369_vm7  ;;  %v11524_v3 = vshra.s32 %v679_v16, 4  ;;  %v11533_v10 = vshra.s32 %v11507_v45, 4 }
 0x15a   : > { %2815 = vst.msk [vmem:[#allocation5 + $0x48] sm:$0xff] %vm15368_vm13, %v2728_v36  ;;  %2452 = vrot.lane.b32.xlu0 %v2372_v51, %s15179_s18  ;;  %vm11423_vm13 = vmand %vm2918_vm5, %vm2950_vm10  ;;  %vm15379_vm5 = vcmp.ge.s32.totalorder %v11138_v58, 0  ;;  %v11469_v58 = vshra.s32 %v677_v31, 4  ;;  %v11514_v51 = vld [vmem:[#allocation2 + $0xb8] sm:$0xff] }
 0x15b   : > { %2169 = vrot.lane.b32.xlu1 %v2086_v33, %s15174_s20  ;;  %vm11455_vm6 = vmand %vm11423_vm13, %vm15379_vm5  ;;  %v3367_v36 = vsel %vm11423_vm13, %v11386_v18, 0.0 }
 0x15c   : > { %v3143_v41 = vpop.permute.xlu0 %3142  ;;  %vm15385_vm2 = vmmov %vm15373_vm11  ;;  %v3078_v42 = vsel %vm11455_vm6, %v11342_v56, 0.0  ;;  %vm2921_vm6 = vcmp.ge.s32.totalorder %v2889_v54, 0  ;;  %v805_v61 = vadd.s32 4294967295, %v11469_v58 }
 0x15d   : > { %v2732_v55 = vpop.permute.xlu1 %2731  ;;  %3231 = vst.msk [vmem:[#allocation5 + $0x40] sm:$0xff] %vm15369_vm7, %v3143_v41  ;;  %vm2952_vm7 = vcmp.lt.s32.totalorder %v2888_v14, 16  ;;  %v11538_v41 = vld [vmem:[#allocation2 + $0xb1] sm:$0xff] }
 0x15e   : > { %2817 = vst.msk [vmem:[#allocation5 + $0x58] sm:$0xff] %vm15370_vm9, %v2732_v55  ;;  %2456 = vrot.lane.b32.xlu0 %v2374_v52, %s15179_s18  ;;  %vm11441_vm9 = vmand %vm11373_vm4, %vm15031_vm14  ;;  %vm15382_vm4 = vcmask 195752  }
 0x15f   : > { %2454 = vrot.lane.b32.xlu1 %v2373_v40, %s15179_s18  ;;  %vm11462_vm10 = vmand %vm2920_vm1, %vm2952_vm7  ;;  %v2664_v38 = vsel %vm11441_vm9, %v11460_v59, 0.0 }
 0x160   : > { %v3147_v46 = vpop.permute.xlu0 %3146  ;;  %vm11487_vm1 = vmand %vm11462_vm10, %vm963_vm8  ;;  %v3369_v26 = vsel %vm11462_vm10, %v11538_v41, 0.0 }
 0x161   : > { %v3145_v24 = vpop.permute.xlu1 %3144  ;;  %3233 = vst.msk [vmem:[#allocation5 + $0x50] sm:$0xff] %vm15373_vm11, %v3147_v46  ;;  %vm2919_vm11 = vcmp.ge.s32.totalorder %v2887_v29, 0  ;;  %vm15388_vm7 = vmmov %vm15382_vm4  ;;  %v3080_v37 = vsel %vm11487_vm1, %v11481_v17, 0.0  ;;  %vm838_vm1 = vcmp.ge.s32.totalorder %v806_v11, 0  ;;  %v743_v46 = vand.u32 15, %v679_v16 }
 0x162   : > { %3232 = vst.msk [vmem:[#allocation5 + $0x48] sm:$0xff] %vm15376_vm12, %v3145_v24  ;;  %2741 = vrot.lane.b32.xlu0 %v2661_v4, %s15188_s26  ;;  %vm2951_vm12 = vcmp.lt.s32.totalorder %v2887_v29, 16  ;;  %vm15391_vm9 = vmmov %vm15382_vm4  ;;  %v808_v24 = vadd.s32 4294967295, %v11533_v10  ;;  %v774_v29 = vld [vmem:[#allocation2 + $0xa8] sm:$0xff] }
 0x163   : > { %2458 = vrot.lane.b32.xlu1 %v2375_v60, %s15179_s18  ;;  %vm11492_vm5 = vmand %vm2919_vm11, %vm2951_vm12  ;;  %vm837_vm11 = vcmp.ge.s32.totalorder %v805_v61, 0  ;;  %vm869_vm12 = vcmp.lt.s32.totalorder %v805_v61, 16  ;;  %v807_v60 = vadd.s32 4294967295, %v11524_v3  ;;  %v11846_v4 = vld [vmem:[#allocation2 + $0xca] sm:$0xff] }
 0x164   : > { %v3432_v48 = vpop.permute.xlu0 %3431  ;;  %v3079_v25 = vsel %vm11492_vm5, %v11371_v20, 0.0  ;;  %v11526_v20 = vadd.s32 4294967295, %v741_v50  ;;  %v3368_v31 = vsel %vm11492_vm5, %v11400_v15, 0.0  ;;  %v775_v50 = vld [vmem:[#allocation2 + $0xb0] sm:$0xff] }
 0x165   : > { %v3149_v28 = vpop.permute.xlu1 %3148  ;;  %3520 = vst.msk [vmem:[#allocation5 + $0x40] sm:$0xff] %vm15382_vm4, %v3432_v48  ;;  %vm2953_vm4 = vcmp.lt.s32.totalorder %v2889_v54, 16 }
 0x166   : > { %3234 = vst.msk [vmem:[#allocation5 + $0x58] sm:$0xff] %vm15385_vm2, %v3149_v28  ;;  %2745 = vrot.lane.b32.xlu0 %v2663_v57, %s15188_s26  ;;  %vm11518_vm8 = vmand %vm2921_vm6, %vm2953_vm4  ;;  %vm15395_vm6 = vcmask 48152   ;;  %v11574_v28 = vadd.s32 4294967295, %v743_v46  ;;  %v744_v46 = vand.u32 15, %v11507_v45 }
 0x167   : > { %2743 = vrot.lane.b32.xlu1 %v2662_v34, %s15188_s26  ;;  %vm15394_vm2 = vmmov %vm15388_vm7  ;;  %v3081_v52 = vsel %vm11518_vm8, %v11514_v51, 0.0 }
 0x168   : > { %v3436_v12 = vpop.permute.xlu0 %3435 }
 0x169   : > { %v3434_v13 = vpop.permute.xlu1 %3433  ;;  %3522 = vst.msk [vmem:[#allocation5 + $0x50] sm:$0xff] %vm15388_vm7, %v3436_v12  ;;  %vm870_vm7 = vcmp.lt.s32.totalorder %v806_v11, 16 }
 0x16a   : > { %3521 = vst.msk [vmem:[#allocation5 + $0x48] sm:$0xff] %vm15391_vm9, %v3434_v13  ;;  %3158 = vrot.lane.b32.xlu0 %v3078_v42, %s15193_s28  ;;  %vm11541_vm9 = vmand %vm837_vm11, %vm869_vm12  ;;  %v3656_v42 = vsel %vm11423_vm13, %v11420_v43, 0.0 }
 0x16b   : > { %2747 = vrot.lane.b32.xlu1 %v2664_v38, %s15188_s26  ;;  %vm11547_vm4 = vmand %vm838_vm1, %vm870_vm7  ;;  %vm839_vm1 = vcmp.ge.s32.totalorder %v807_v60, 0  ;;  %vm871_vm7 = vcmp.lt.s32.totalorder %v807_v60, 16  ;;  %v3370_v38 = vsel %vm11518_vm8, %v11568_v62, 0.0  ;;  %v1317_v56 = vsel %vm11541_vm9, %v11386_v18, 0.0 }
 0x16c   : > { %v3721_v47 = vpop.permute.xlu0 %3720  ;;  %v1094_v34 = vsel %vm11547_vm4, %v774_v29, 0.0  ;;  %vm15400_vm12 = vmmov %vm15395_vm6 }
 0x16d   : > { %v3438_v23 = vpop.permute.xlu1 %3437  ;;  %3809 = vst.msk [vmem:[#allocation5 + $0x40] sm:$0xff] %vm3800_vm3, %v3721_v47  ;;  %vm11592_vm13 = vmand %vm839_vm1, %vm871_vm7  ;;  %vm15409_vm1 = vcmask 72752   ;;  %vm15410_vm7 = vcmask 48152  }
 0x16e   : > { %3523 = vst.msk [vmem:[#allocation5 + $0x58] sm:$0xff] %vm15394_vm2, %v3438_v23  ;;  %3162 = vrot.lane.b32.xlu0 %v3080_v37, %s15193_s28  ;;  %vm15030_vm2 = vcmp.ge.s32.totalorder %v11526_v20, 0  ;;  %v1319_v45 = vsel %vm11592_vm13, %v11538_v41, 0.0 }
 0x16f   : > { %3160 = vrot.lane.b32.xlu1 %v3079_v25, %s15193_s28  ;;  %vm997_vm11 = vmand %vm11541_vm9, %vm15030_vm2  ;;  %1126 = vst.msk [vmem:[#allocation5 + $0xa8] sm:$0xff] %vm552_vm0, %v1094_v34  ;;  %vm15403_vm2 = vcmask 48152   ;;  %v11615_v25 = vld [vmem:[#allocation2 + $0xb2] sm:$0xff] }
 0x170   : > { %v1386_v40 = vpop.permute.xlu0 %1385  ;;  %v1093_v19 = vsel %vm997_vm11, %v773_v21, 0.0  ;;  %vm872_vm11 = vcmp.lt.s32.totalorder %v808_v24, 16  ;;  %v11636_v21 = vld [vmem:[#allocation2 + $0xba] sm:$0xff]  ;;  %v1704_v14 = vsel %vm11592_vm13, %v11615_v25, 0.0 }
 0x171   : > { %v3723_v55 = vpop.permute.xlu1 %3722  ;;  %1470 = vst.msk [vmem:[#allocation5 + $0x60] sm:$0xff] %vm15395_vm6, %v1386_v40  ;;  %vm840_vm6 = vcmp.ge.s32.totalorder %v808_v24, 0 }
 0x172   : > { %3810 = vst.msk [vmem:[#allocation5 + $0x48] sm:$0xff] %vm3800_vm3, %v3723_v55  ;;  %3447 = vrot.lane.b32.xlu0 %v3367_v36, %s15198_s1  ;;  %vm11598_vm14 = vmand %vm840_vm6, %vm872_vm11  ;;  %v742_v36 = vand.u32 15, %v11446_v32  ;;  %v3658_v55 = vsel %vm11462_vm10, %v11615_v25, 0.0  ;;  %v1318_v32 = vsel %vm11547_vm4, %v11400_v15, 0.0  ;;  %vm15412_vm11 = vcmp.lt.s32.totalorder %v11270_v22, 16 }
 0x173   : > { %3164 = vrot.lane.b32.xlu1 %v3081_v52, %s15193_s28  ;;  %1125 = vst.msk [vmem:[#allocation5 + $0xa0] sm:$0xff] %vm552_vm0, %v1093_v19  ;;  %v1096_v18 = vsel %vm11598_vm14, %v776_v30, 0.0  ;;  %v550_v52 = vld [vmem:[%s9652_s29 + $0xf0] sm:$0xff]  ;;  %vm15411_vm6 = vmmov %vm15409_vm1  ;;  %v1702_v19 = vsel %vm11541_vm9, %v11420_v43, 0.0  ;;  %v1320_v34 = vsel %vm11598_vm14, %v11568_v62, 0.0  ;;  %v551_v30 = vld [vmem:[%s9652_s29 + $0xf8] sm:$0xff] }
 0x174   : > { %v3725_v57 = vpop.permute.xlu0 %3724  ;;  %v3841_v54 = vld [vmem:[#allocation5 + $0x40] sm:$0xff]  ;;  %1128 = vst.msk [vmem:[#allocation5 + $0xb8] sm:$0xff] %vm552_vm0, %v1096_v18  ;;  %621 = vst.msk [vmem:[#allocation2 + $0x101] sm:$0xff] %vm552_vm0, %v550_v52  ;;  %v11646_v29 = vadd.s32 1, %v742_v36 }
 0x175   : > { %v1388_v48 = vpop.permute.xlu1 %1387  ;;  %3811 = vst.msk [vmem:[#allocation5 + $0x50] sm:$0xff] %vm3800_vm3, %v3725_v57  ;;  %vm15415_vm10 = vmmov %vm15409_vm1 }
 0x176   : > { %1471 = vst.msk [vmem:[#allocation5 + $0x68] sm:$0xff] %vm15400_vm12, %v1388_v48  ;;  %3451 = vrot.lane.b32.xlu0 %v3369_v26, %s15198_s1  ;;  %vm11587_vm12 = vmand %vm11492_vm5, %vm1635_vm15  ;;  %vm967_vm15 = vcmp.ge.s32.totalorder %v11574_v28, 0 }
 0x177   : > { %3449 = vrot.lane.b32.xlu1 %v3368_v31, %s15198_s1  ;;  %vm999_vm5 = vmand %vm11592_vm13, %vm967_vm15  ;;  %v3657_v37 = vsel %vm11587_vm12, %v11460_v59, 0.0  ;;  %v11658_v31 = vadd.s32 1, %v744_v46  ;;  %vm15429_vm13 = vcmask 121952   ;;  %622 = vst.msk [vmem:[#allocation2 + $0x109] sm:$0xff] %vm552_vm0, %v551_v30  ;;  %v11892_v30 = vadd.s32 216, %v9634_v2 }
 0x178   : > { %v1390_v12 = vpop.permute.xlu0 %1389  ;;  %v1095_v47 = vsel %vm999_vm5, %v775_v50, 0.0  ;;  %vm11642_vm12 = vmand %vm11518_vm8, %vm15412_vm11  ;;  %vm15417_vm8 = vcmask 97352  }
 0x179   : > { %v3727_v13 = vpop.permute.xlu1 %3726  ;;  %v3842_v61 = vld [vmem:[#allocation5 + $0x48] sm:$0xff]  ;;  %1472 = vst.msk [vmem:[#allocation5 + $0x70] sm:$0xff] %vm15403_vm2, %v1390_v12  ;;  %vm15408_vm2 = vcmask 261120   ;;  %v3659_v22 = vsel %vm11642_vm12, %v11636_v21, 0.0  ;;  %vm15032_vm12 = vcmp.lt.s32.totalorder %v11658_v31, 16  ;;  %vm15423_vm9 = vmmov %vm15417_vm8 }
 0x17a   : > { %3812 = vst.msk [vmem:[#allocation5 + $0x58] sm:$0xff] %vm3800_vm3, %v3727_v13  ;;  %v3869_v16 = vpack.c.bf16 %v3842_v61, %v3841_v54  ;;  %3736 = vrot.lane.b32.xlu0 %v3656_v42, %s15206_s30  ;;  %vm15416_vm5 = vmmov %vm15408_vm2  ;;  %v11867_v61 = vld [vmem:[#allocation2 + $0xd0] sm:$0xff] }
 0x17b   : > { %3453 = vrot.lane.b32.xlu1 %v3370_v38, %s15198_s1  ;;  %1127 = vst.msk [vmem:[#allocation5 + $0xb0] sm:$0xff] %vm552_vm0, %v1095_v47 }
 0x17c   : > { %8690 = vmatprep.mubr.msk.bf16.mxu0 %vm15408_vm2, %v3869_v16  ;;  %v1771_v11 = vpop.permute.xlu0 %1770  ;;  %v3843_v40 = vld [vmem:[#allocation5 + $0x50] sm:$0xff]  ;;  %vm1639_vm2 = vcmp.lt.s32.totalorder %v11646_v29, 16 }
 0x17d   : > { %v1392_v23 = vpop.permute.xlu1 %1391  ;;  %1855 = vst.msk [vmem:[#allocation5 + $0x60] sm:$0xff] %vm15409_vm1, %v1771_v11  ;;  %vm11677_vm11 = vmand %vm11547_vm4, %vm1639_vm2  ;;  %vm1961_vm4 = vcmp.lt.s32.totalorder %v11524_v3, 16 }
 0x17e   : > { %1473 = vst.msk [vmem:[#allocation5 + $0x78] sm:$0xff] %vm15410_vm7, %v1392_v23  ;;  %1401 = vrot.lane.b32.xlu0 %v1317_v56, %s15209_s23  ;;  %vm1927_vm7 = vcmp.ge.s32.totalorder %v11469_v58, 0  ;;  %v1703_v38 = vsel %vm11677_vm11, %v11460_v59, 0.0  ;;  %vm1928_vm11 = vcmp.ge.s32.totalorder %v11476_v35, 0  ;;  %v11759_v23 = vld [vmem:[#allocation2 + $0xc8] sm:$0xff] }
 0x17f   : > { %3738 = vrot.lane.b32.xlu1 %v3657_v37, %s15206_s30 }
 0x180   : > { %v1775_v60 = vpop.permute.xlu0 %1774 }
 0x181   : > { %v1773_v26 = vpop.permute.xlu1 %1772  ;;  %v3844_v24 = vld [vmem:[#allocation5 + $0x58] sm:$0xff]  ;;  %1857 = vst.msk [vmem:[#allocation5 + $0x70] sm:$0xff] %vm15411_vm6, %v1775_v60  ;;  %vm1959_vm6 = vcmp.lt.s32.totalorder %v11469_v58, 16  ;;  %v2890_v60 = vadd.s32 1, %v11469_v58  ;;  %v2892_v58 = vadd.s32 1, %v11524_v3 }
 0x182   : > { %1856 = vst.msk [vmem:[#allocation5 + $0x68] sm:$0xff] %vm15415_vm10, %v1773_v26  ;;  %v3870_v15 = vpack.c.bf16 %v3844_v24, %v3843_v40  ;;  %3740 = vrot.lane.b32.xlu0 %v3658_v55, %s15206_s30  ;;  %vm15420_vm10 = vmmov %vm15417_vm8  ;;  %v11774_v55 = vld [vmem:[#allocation2 + $0xc1] sm:$0xff] }
 0x183   : > { %1403 = vrot.lane.b32.xlu1 %v1318_v32, %s15209_s23 }
 0x184   : > { %8691 = vmatmul.mubr.msk.bf16.gmra.mrb[8].mxu0 %vm15416_vm5, %v3870_v15  ;;  %v2156_v33 = vpop.permute.xlu0 %2155  ;;  %vm11683_vm5 = vmand %vm1927_vm7, %vm1959_vm6  ;;  %vm15426_vm7 = vcmp.ge.s32.totalorder %v11526_v20, 0 }
 0x185   : > { %v1777_v57 = vpop.permute.xlu1 %1776  ;;  %2240 = vst.msk [vmem:[#allocation5 + $0x60] sm:$0xff] %vm15417_vm8, %v2156_v33  ;;  %vm1929_vm8 = vcmp.ge.s32.totalorder %v11524_v3, 0  ;;  %vm11710_vm6 = vmand %vm11683_vm5, %vm15426_vm7  ;;  %v11808_v3 = vld [vmem:[#allocation2 + $0xc2] sm:$0xff] }
 0x186   : > { %1858 = vst.msk [vmem:[#allocation5 + $0x78] sm:$0xff] %vm15409_vm1, %v1777_v57  ;;  %1405 = vrot.lane.b32.xlu0 %v1319_v45, %s15209_s23  ;;  %vm11699_vm1 = vmand %vm11598_vm14, %vm15032_vm12  ;;  %v2087_v59 = vsel %vm11710_vm6, %v11481_v17, 0.0  ;;  %vm1930_vm6 = vcmp.ge.s32.totalorder %v11533_v10, 0  ;;  %v2891_v57 = vadd.s32 1, %v11476_v35 }
 0x187   : > { %3742 = vrot.lane.b32.xlu1 %v3659_v22, %s15206_s30  ;;  %vm11715_vm14 = vmand %vm1929_vm8, %vm1961_vm4  ;;  %v1705_v8 = vsel %vm11699_vm1, %v11636_v21, 0.0  ;;  %v777_v22 = vld [vmem:[#allocation2 + $0xc0] sm:$0xff] }
 0x188   : > { %v2160_v48 = vpop.permute.xlu0 %2159  ;;  %vm11736_vm8 = vmand %vm11715_vm14, %vm967_vm15 }
 0x189   : > { %v2158_v42 = vpop.permute.xlu1 %2157  ;;  %2242 = vst.msk [vmem:[#allocation5 + $0x70] sm:$0xff] %vm15420_vm10, %v2160_v48  ;;  %vm15432_vm10 = vmmov %vm15423_vm9  ;;  %v2089_v37 = vsel %vm11736_vm8, %v11730_v27, 0.0 }
 0x18a   : > { %2241 = vst.msk [vmem:[#allocation5 + $0x68] sm:$0xff] %vm15423_vm9, %v2158_v42  ;;  %1786 = vrot.lane.b32.xlu0 %v1702_v19, %s15165_s19  ;;  %vm1960_vm9 = vcmp.lt.s32.totalorder %v11476_v35, 16  ;;  %vm15435_vm4 = vmmov %vm15429_vm13  ;;  %v681_v19 = vadd.s32 192, %v9634_v2  ;;  %v11832_v35 = vadd.s32 200, %v9634_v2 }
 0x18b   : > { %1407 = vrot.lane.b32.xlu1 %v1320_v34, %s15209_s23  ;;  %vm11741_vm7 = vmand %vm1928_vm11, %vm1960_vm9  ;;  %v2667_v34 = vsel %vm11715_vm14, %v11808_v3, 0.0 }
 0x18c   : > { %v2445_v12 = vpop.permute.xlu0 %2444  ;;  %vm15438_vm1 = vmmov %vm15435_vm4  ;;  %v2088_v11 = vsel %vm11741_vm7, %v11514_v51, 0.0  ;;  %v2376_v51 = vsel %vm11683_vm5, %v11538_v41, 0.0  ;;  %v2378_v41 = vsel %vm11715_vm14, %v11774_v55, 0.0  ;;  %v2377_v46 = vsel %vm11741_vm7, %v11568_v62, 0.0 }
 0x18d   : > { %v2162_v13 = vpop.permute.xlu1 %2161  ;;  %2529 = vst.msk [vmem:[#allocation5 + $0x60] sm:$0xff] %vm15429_vm13, %v2445_v12  ;;  %vm1962_vm13 = vcmp.lt.s32.totalorder %v11533_v10, 16  ;;  %vm15442_vm9 = vmmov %vm15438_vm1  ;;  %v2665_v62 = vsel %vm11683_vm5, %v11615_v25, 0.0  ;;  %v11862_v44 = vshra.s32 %v11832_v35, 4  ;;  %v745_v56 = vand.u32 15, %v681_v19 }
 0x18e   : > { %2243 = vst.msk [vmem:[#allocation5 + $0x78] sm:$0xff] %vm15432_vm10, %v2162_v13  ;;  %1790 = vrot.lane.b32.xlu0 %v1704_v14, %s15165_s19  ;;  %vm15439_vm10 = vcmask 146552   ;;  %vm11761_vm11 = vmand %vm1930_vm6, %vm1962_vm13  ;;  %vm2922_vm13 = vcmp.ge.s32.totalorder %v2890_v60, 0 }
 0x18f   : > { %1788 = vrot.lane.b32.xlu1 %v1703_v38, %s15165_s19  ;;  %v2090_v52 = vsel %vm11761_vm11, %v11759_v23, 0.0  ;;  %vm15443_vm8 = vmmov %vm15439_vm10  ;;  %v2379_v15 = vsel %vm11761_vm11, %v11788_v39, 0.0  ;;  %v810_v17 = vadd.s32 4294967295, %v11862_v44 }
 0x190   : > { %v2449_v16 = vpop.permute.xlu0 %2448 }
 0x191   : > { %v2447_v50 = vpop.permute.xlu1 %2446  ;;  %2531 = vst.msk [vmem:[#allocation5 + $0x70] sm:$0xff] %vm15435_vm4, %v2449_v16  ;;  %vm15444_vm4 = vmmov %vm15443_vm8 }
 0x192   : > { %2530 = vst.msk [vmem:[#allocation5 + $0x68] sm:$0xff] %vm15438_vm1, %v2447_v50  ;;  %2171 = vrot.lane.b32.xlu0 %v2087_v59, %s15174_s20  ;;  %vm15445_vm1 = vcmask 171152   ;;  %vm15446_vm6 = vmmov %vm15444_vm4 }
 0x193   : > { %1792 = vrot.lane.b32.xlu1 %v1705_v8, %s15165_s19  ;;  %vm15452_vm5 = vmmov %vm15445_vm1 }
 0x194   : > { %v2734_v47 = vpop.permute.xlu0 %2733 }
 0x195   : > { %v2451_v18 = vpop.permute.xlu1 %2450  ;;  %2818 = vst.msk [vmem:[#allocation5 + $0x60] sm:$0xff] %vm15439_vm10, %v2734_v47  ;;  %vm2954_vm10 = vcmp.lt.s32.totalorder %v2890_v60, 16 }
 0x196   : > { %2532 = vst.msk [vmem:[#allocation5 + $0x78] sm:$0xff] %vm15442_vm9, %v2451_v18  ;;  %2175 = vrot.lane.b32.xlu0 %v2089_v37, %s15174_s20  ;;  %vm11804_vm9 = vmand %vm11741_vm7, %vm1639_vm2  ;;  %vm2956_vm7 = vcmp.lt.s32.totalorder %v2892_v58, 16  ;;  %v11898_v18 = vld [vmem:[#allocation2 + $0xd8] sm:$0xff] }
 0x197   : > { %2173 = vrot.lane.b32.xlu1 %v2088_v11, %s15174_s20  ;;  %v2666_v54 = vsel %vm11804_vm9, %v11636_v21, 0.0  ;;  %v2893_v21 = vadd.s32 1, %v11533_v10  ;;  %vm15461_vm9 = vmmov %vm15452_vm5 }
 0x198   : > { %v2738_v40 = vpop.permute.xlu0 %2737 }
 0x199   : > { %v2736_v32 = vpop.permute.xlu1 %2735  ;;  %2820 = vst.msk [vmem:[#allocation5 + $0x70] sm:$0xff] %vm15443_vm8, %v2738_v40  ;;  %vm15449_vm8 = vmmov %vm15445_vm1  ;;  %v11916_v40 = vshra.s32 %v11892_v30, 4 }
 0x19a   : > { %2819 = vst.msk [vmem:[#allocation5 + $0x68] sm:$0xff] %vm15444_vm4, %v2736_v32  ;;  %2460 = vrot.lane.b32.xlu0 %v2376_v51, %s15179_s18  ;;  %vm11811_vm4 = vmand %vm2922_vm13, %vm2954_vm10  ;;  %vm15455_vm13 = vcmp.ge.s32.totalorder %v11526_v20, 0  ;;  %v11855_v20 = vshra.s32 %v681_v19, 4 }
 0x19b   : > { %2177 = vrot.lane.b32.xlu1 %v2090_v52, %s15174_s20  ;;  %vm11841_vm14 = vmand %vm11811_vm4, %vm15455_vm13  ;;  %v3371_v52 = vsel %vm11811_vm4, %v11774_v55, 0.0 }
 0x19c   : > { %v3151_v26 = vpop.permute.xlu0 %3150  ;;  %v3082_v12 = vsel %vm11841_vm14, %v11730_v27, 0.0  ;;  %vm2925_vm14 = vcmp.ge.s32.totalorder %v2893_v21, 0  ;;  %v809_v28 = vadd.s32 4294967295, %v11855_v20  ;;  %v683_v27 = vadd.s32 208, %v9634_v2 }
 0x19d   : > { %v2740_v24 = vpop.permute.xlu1 %2739  ;;  %3235 = vst.msk [vmem:[#allocation5 + $0x60] sm:$0xff] %vm15445_vm1, %v3151_v26  ;;  %vm2924_vm1 = vcmp.ge.s32.totalorder %v2892_v58, 0 }
 0x19e   : > { %2821 = vst.msk [vmem:[#allocation5 + $0x78] sm:$0xff] %vm15446_vm6, %v2740_v24  ;;  %2464 = vrot.lane.b32.xlu0 %v2378_v41, %s15179_s18  ;;  %vm11827_vm6 = vmand %vm11761_vm11, %vm15032_vm12  ;;  %vm15458_vm11 = vcmask 195752   ;;  %v11907_v51 = vshra.s32 %v683_v27, 4  ;;  %v11921_v41 = vld [vmem:[#allocation2 + $0xd1] sm:$0xff]  ;;  %v12186_v24 = vld [vmem:[#allocation2 + $0xe9] sm:$0xff] }
 0x19f   : > { %2462 = vrot.lane.b32.xlu1 %v2377_v46, %s15179_s18  ;;  %vm11848_vm10 = vmand %vm2924_vm1, %vm2956_vm7  ;;  %v2668_v10 = vsel %vm11827_vm6, %v11846_v4, 0.0 }
 0x1a0   : > { %v3155_v45 = vpop.permute.xlu0 %3154  ;;  %vm11873_vm1 = vmand %vm11848_vm10, %vm967_vm15  ;;  %v811_v58 = vadd.s32 4294967295, %v11907_v51 }
 0x1a1   : > { %v3153_v33 = vpop.permute.xlu1 %3152  ;;  %3237 = vst.msk [vmem:[#allocation5 + $0x70] sm:$0xff] %vm15449_vm8, %v3155_v45  ;;  %vm2923_vm8 = vcmp.ge.s32.totalorder %v2891_v57, 0  ;;  %vm15464_vm7 = vmmov %vm15458_vm11  ;;  %v3084_v50 = vsel %vm11873_vm1, %v11867_v61, 0.0  ;;  %vm842_vm1 = vcmp.ge.s32.totalorder %v810_v17, 0  ;;  %v812_v45 = vadd.s32 4294967295, %v11916_v40 }
 0x1a2   : > { %3236 = vst.msk [vmem:[#allocation5 + $0x68] sm:$0xff] %vm15452_vm5, %v3153_v33  ;;  %2749 = vrot.lane.b32.xlu0 %v2665_v62, %s15188_s26  ;;  %vm2955_vm5 = vcmp.lt.s32.totalorder %v2891_v57, 16  ;;  %vm15467_vm6 = vmmov %vm15464_vm7  ;;  %v747_v62 = vand.u32 15, %v683_v27  ;;  %v778_v33 = vld [vmem:[#allocation2 + $0xc8] sm:$0xff]  ;;  %v779_v27 = vld [vmem:[#allocation2 + $0xd0] sm:$0xff] }
 0x1a3   : > { %2466 = vrot.lane.b32.xlu1 %v2379_v15, %s15179_s18  ;;  %vm11878_vm13 = vmand %vm2923_vm8, %vm2955_vm5  ;;  %vm841_vm8 = vcmp.ge.s32.totalorder %v809_v28, 0  ;;  %vm873_vm5 = vcmp.lt.s32.totalorder %v809_v28, 16  ;;  %v3373_v15 = vsel %vm11848_vm10, %v11921_v41, 0.0 }
 0x1a4   : > { %v3440_v42 = vpop.permute.xlu0 %3439  ;;  %v3083_v37 = vsel %vm11878_vm13, %v11759_v23, 0.0  ;;  %v11909_v23 = vadd.s32 4294967295, %v745_v56  ;;  %v3372_v57 = vsel %vm11878_vm13, %v11788_v39, 0.0  ;;  %v11958_v43 = vadd.s32 4294967295, %v747_v62  ;;  %v780_v56 = vld [vmem:[#allocation2 + $0xd8] sm:$0xff] }
 0x1a5   : > { %v3157_v14 = vpop.permute.xlu1 %3156  ;;  %3524 = vst.msk [vmem:[#allocation5 + $0x60] sm:$0xff] %vm15458_vm11, %v3440_v42  ;;  %vm2957_vm11 = vcmp.lt.s32.totalorder %v2893_v21, 16  ;;  %v11952_v42 = vld [vmem:[#allocation2 + $0xd9] sm:$0xff]  ;;  %v3660_v21 = vsel %vm11811_vm4, %v11808_v3, 0.0 }
 0x1a6   : > { %3238 = vst.msk [vmem:[#allocation5 + $0x78] sm:$0xff] %vm15461_vm9, %v3157_v14  ;;  %2753 = vrot.lane.b32.xlu0 %v2667_v34, %s15188_s26  ;;  %vm11901_vm15 = vmand %vm2925_vm14, %vm2957_vm11  ;;  %vm15471_vm14 = vcmask 48152   ;;  %vm589_vm11 = vcmask 17408   ;;  %vm15033_vm12 = vcmp.ge.s32.totalorder %v11909_v23, 0 }
 0x1a7   : > { %2751 = vrot.lane.b32.xlu1 %v2666_v54, %s15188_s26  ;;  %vm15470_vm9 = vmmov %vm15467_vm6  ;;  %v3085_v32 = vsel %vm11901_vm15, %v11898_v18, 0.0  ;;  %590 = vst.msk [vmem:[#allocation2 + $0x120] sm:$0x3] %vm589_vm11, %v15042_v1  ;;  %vm876_vm11 = vcmp.lt.s32.totalorder %v812_v45, 16  ;;  %v13052_v1 = vshra.s32 %v9969_v53, 3 }
 0x1a8   : > { %v3444_v13 = vpop.permute.xlu0 %3443 }
 0x1a9   : > { %v3442_v8 = vpop.permute.xlu1 %3441  ;;  %3526 = vst.msk [vmem:[#allocation5 + $0x70] sm:$0xff] %vm15464_vm7, %v3444_v13  ;;  %vm874_vm7 = vcmp.lt.s32.totalorder %v810_v17, 16 }
 0x1aa   : > { %3525 = vst.msk [vmem:[#allocation5 + $0x68] sm:$0xff] %vm15467_vm6, %v3442_v8  ;;  %3166 = vrot.lane.b32.xlu0 %v3082_v12, %s15193_s28  ;;  %vm11924_vm6 = vmand %vm841_vm8, %vm873_vm5  ;;  %v3374_v12 = vsel %vm11901_vm15, %v11952_v42, 0.0 }
 0x1ab   : > { %2755 = vrot.lane.b32.xlu1 %v2668_v10, %s15188_s26  ;;  %vm1001_vm8 = vmand %vm11924_vm6, %vm15033_vm12  ;;  %v1321_v16 = vsel %vm11924_vm6, %v11774_v55, 0.0 }
 0x1ac   : > { %v3729_v11 = vpop.permute.xlu0 %3728  ;;  %v1097_v34 = vsel %vm1001_vm8, %v777_v22, 0.0  ;;  %vm15476_vm5 = vmmov %vm15471_vm14 }
 0x1ad   : > { %v3446_v47 = vpop.permute.xlu1 %3445  ;;  %3813 = vst.msk [vmem:[#allocation5 + $0x60] sm:$0xff] %vm3800_vm3, %v3729_v11  ;;  %vm11971_vm8 = vmand %vm11878_vm13, %vm1639_vm2  ;;  %vm971_vm2 = vcmp.ge.s32.totalorder %v11958_v43, 0 }
 0x1ae   : > { %3527 = vst.msk [vmem:[#allocation5 + $0x78] sm:$0xff] %vm15470_vm9, %v3446_v47  ;;  %3170 = vrot.lane.b32.xlu0 %v3084_v50, %s15193_s28  ;;  %vm11930_vm9 = vmand %vm842_vm1, %vm874_vm7  ;;  %vm843_vm1 = vcmp.ge.s32.totalorder %v811_v58, 0  ;;  %vm875_vm7 = vcmp.lt.s32.totalorder %v811_v58, 16  ;;  %v3661_v50 = vsel %vm11971_vm8, %v11846_v4, 0.0  ;;  %v748_v58 = vand.u32 15, %v11892_v30 }
 0x1af   : > { %3168 = vrot.lane.b32.xlu1 %v3083_v37, %s15193_s28  ;;  %v1098_v48 = vsel %vm11930_vm9, %v778_v33, 0.0  ;;  %1129 = vst.msk [vmem:[#allocation5 + $0xc0] sm:$0xff] %vm552_vm0, %v1097_v34  ;;  %vm11976_vm4 = vmand %vm843_vm1, %vm875_vm7  ;;  %vm15483_vm1 = vcmask 261120   ;;  %v11999_v37 = vld [vmem:[#allocation2 + $0xd2] sm:$0xff]  ;;  %vm15484_vm7 = vcmask 72752   ;;  %vm15487_vm8 = vcmp.lt.s32.totalorder %v11658_v31, 16 }
 0x1b0   : > { %v1394_v60 = vpop.permute.xlu0 %1393  ;;  %1130 = vst.msk [vmem:[#allocation5 + $0xc8] sm:$0xff] %vm552_vm0, %v1098_v48  ;;  %vm1003_vm13 = vmand %vm11976_vm4, %vm971_vm2  ;;  %v1323_v30 = vsel %vm11976_vm4, %v11921_v41, 0.0  ;;  %v12040_v33 = vadd.s32 1, %v748_v58  ;;  %v1708_v26 = vsel %vm11976_vm4, %v11999_v37, 0.0  ;;  %vm15504_vm4 = vcmask 121952  }
 0x1b1   : > { %v3731_v46 = vpop.permute.xlu1 %3730  ;;  %1474 = vst.msk [vmem:[#allocation5 + $0x80] sm:$0xff] %vm15471_vm14, %v1394_v60  ;;  %vm844_vm14 = vcmp.ge.s32.totalorder %v812_v45, 0  ;;  %v1099_v11 = vsel %vm1003_vm13, %v779_v27, 0.0  ;;  %v3662_v60 = vsel %vm11848_vm10, %v11999_v37, 0.0  ;;  %v12018_v45 = vld [vmem:[#allocation2 + $0xda] sm:$0xff]  ;;  %vm15490_vm10 = vmmov %vm15484_vm7 }
 0x1b2   : > { %3814 = vst.msk [vmem:[#allocation5 + $0x68] sm:$0xff] %vm3800_vm3, %v3731_v46  ;;  %3455 = vrot.lane.b32.xlu0 %v3371_v52, %s15198_s1  ;;  %vm11982_vm12 = vmand %vm844_vm14, %vm876_vm11  ;;  %v746_v52 = vand.u32 15, %v11832_v35  ;;  %v1322_v46 = vsel %vm11930_vm9, %v11788_v39, 0.0 }
 0x1b3   : > { %3172 = vrot.lane.b32.xlu1 %v3085_v32, %s15193_s28  ;;  %v1100_v55 = vsel %vm11982_vm12, %v780_v56, 0.0  ;;  %1131 = vst.msk [vmem:[#allocation5 + $0xd0] sm:$0xff] %vm552_vm0, %v1099_v11  ;;  %vm15485_vm14 = vmmov %vm15476_vm5  ;;  %v1324_v34 = vsel %vm11982_vm12, %v11952_v42, 0.0  ;;  %v12141_v11 = vld [vmem:[%s14984_s2] ss:$0 sm:$0xff] }
 0x1b4   : > { %v3733_v19 = vpop.permute.xlu0 %3732  ;;  %v3845_v14 = vld [vmem:[#allocation5 + $0x60] sm:$0xff]  ;;  %1132 = vst.msk [vmem:[#allocation5 + $0xd8] sm:$0xff] %vm552_vm0, %v1100_v55  ;;  %vm15486_vm11 = vmmov %vm15484_vm7  ;;  %v12028_v22 = vadd.s32 1, %v746_v52  ;;  %v12144_v55 = vld [vmem:[#allocation2 + $0xe8] sm:$0xff] }
 0x1b5   : > { %v1396_v54 = vpop.permute.xlu1 %1395  ;;  %3815 = vst.msk [vmem:[#allocation5 + $0x70] sm:$0xff] %vm3800_vm3, %v3733_v19  ;;  %vm15491_vm13 = vmmov %vm15483_vm1  ;;  %v1706_v19 = vsel %vm11924_vm6, %v11808_v3, 0.0  ;;  %v12156_v52 = vld [vmem:[%s14985_s3] ss:$0 sm:$0xff] }
 0x1b6   : > { %1475 = vst.msk [vmem:[#allocation5 + $0x88] sm:$0xff] %vm15476_vm5, %v1396_v54  ;;  %3459 = vrot.lane.b32.xlu0 %v3373_v15, %s15198_s1 }
 0x1b7   : > { %3457 = vrot.lane.b32.xlu1 %v3372_v57, %s15198_s1 }
 0x1b8   : > { %v1398_v10 = vpop.permute.xlu0 %1397 }
 0x1b9   : > { %v3735_v59 = vpop.permute.xlu1 %3734  ;;  %v3846_v8 = vld [vmem:[#allocation5 + $0x68] sm:$0xff]  ;;  %1476 = vst.msk [vmem:[#allocation5 + $0x90] sm:$0xff] %vm15476_vm5, %v1398_v10  ;;  %vm12024_vm5 = vmand %vm11901_vm15, %vm15487_vm8  ;;  %vm15492_vm15 = vcmask 97352   ;;  %v2896_v10 = vadd.s32 1, %v11907_v51 }
 0x1ba   : > { %3816 = vst.msk [vmem:[#allocation5 + $0x78] sm:$0xff] %vm3800_vm3, %v3735_v59  ;;  %v3871_v28 = vpack.c.bf16 %v3846_v8, %v3845_v14  ;;  %3744 = vrot.lane.b32.xlu0 %v3660_v21, %s15206_s30  ;;  %v3663_v31 = vsel %vm12024_vm5, %v12018_v45, 0.0  ;;  %vm15039_vm5 = vcmp.lt.s32.totalorder %v12040_v33, 16 }
 0x1bb   : > { %3461 = vrot.lane.b32.xlu1 %v3374_v12, %s15198_s1 }
 0x1bc   : > { %8694 = vmatprep.mubr.msk.bf16.mxu0 %vm15483_vm1, %v3871_v28  ;;  %v1779_v17 = vpop.permute.xlu0 %1778  ;;  %v3847_v32 = vld [vmem:[#allocation5 + $0x70] sm:$0xff]  ;;  %vm1643_vm1 = vcmp.lt.s32.totalorder %v12028_v22, 16  ;;  %v12112_v28 = vld [vmem:[#allocation2 + $0xe0] sm:$0xff] }
 0x1bd   : > { %v1400_v47 = vpop.permute.xlu1 %1399  ;;  %1859 = vst.msk [vmem:[#allocation5 + $0x80] sm:$0xff] %vm15484_vm7, %v1779_v17  ;;  %vm12059_vm8 = vmand %vm11930_vm9, %vm1643_vm1  ;;  %vm1965_vm9 = vcmp.lt.s32.totalorder %v11907_v51, 16 }
 0x1be   : > { %1477 = vst.msk [vmem:[#allocation5 + $0x98] sm:$0xff] %vm15485_vm14, %v1400_v47  ;;  %1409 = vrot.lane.b32.xlu0 %v1321_v16, %s15209_s23  ;;  %vm1931_vm14 = vcmp.ge.s32.totalorder %v11855_v20, 0  ;;  %v1707_v21 = vsel %vm12059_vm8, %v11846_v4, 0.0  ;;  %vm1932_vm8 = vcmp.ge.s32.totalorder %v11862_v44, 0  ;;  %v12249_v47 = vld [vmem:[#allocation2 + $0xea] sm:$0xff] }
 0x1bf   : > { %3746 = vrot.lane.b32.xlu1 %v3661_v50, %s15206_s30 }
 0x1c0   : > { %v1783_v35 = vpop.permute.xlu0 %1782 }
 0x1c1   : > { %v1781_v62 = vpop.permute.xlu1 %1780  ;;  %v3848_v15 = vld [vmem:[#allocation5 + $0x78] sm:$0xff]  ;;  %1861 = vst.msk [vmem:[#allocation5 + $0x90] sm:$0xff] %vm15486_vm11, %v1783_v35  ;;  %vm1963_vm11 = vcmp.lt.s32.totalorder %v11855_v20, 16 }
 0x1c2   : > { %1860 = vst.msk [vmem:[#allocation5 + $0x88] sm:$0xff] %vm15490_vm10, %v1781_v62  ;;  %v3872_v39 = vpack.c.bf16 %v3848_v15, %v3847_v32  ;;  %3748 = vrot.lane.b32.xlu0 %v3662_v60, %s15206_s30  ;;  %vm15495_vm10 = vmmov %vm15492_vm15  ;;  %v12165_v62 = vld [vmem:[#allocation2 + $0xe1] sm:$0xff] }
 0x1c3   : > { %1411 = vrot.lane.b32.xlu1 %v1322_v46, %s15209_s23  ;;  %vm15498_vm6 = vmmov %vm15495_vm10 }
 0x1c4   : > { %8695 = vmatmul.mubr.msk.bf16.gmra.mrb[12].mxu0 %vm15491_vm13, %v3872_v39  ;;  %v2164_v36 = vpop.permute.xlu0 %2163  ;;  %vm12065_vm13 = vmand %vm1931_vm14, %vm1963_vm11  ;;  %vm15501_vm14 = vcmp.ge.s32.totalorder %v11909_v23, 0 }
 0x1c5   : > { %v1785_v57 = vpop.permute.xlu1 %1784  ;;  %2244 = vst.msk [vmem:[#allocation5 + $0x80] sm:$0xff] %vm15492_vm15, %v2164_v36  ;;  %vm1933_vm15 = vcmp.ge.s32.totalorder %v11907_v51, 0  ;;  %vm12092_vm11 = vmand %vm12065_vm13, %vm15501_vm14  ;;  %v2380_v32 = vsel %vm12065_vm13, %v11921_v41, 0.0 }
 0x1c6   : > { %1862 = vst.msk [vmem:[#allocation5 + $0x98] sm:$0xff] %vm15484_vm7, %v1785_v57  ;;  %1413 = vrot.lane.b32.xlu0 %v1323_v30, %s15209_s23  ;;  %vm12081_vm7 = vmand %vm11982_vm12, %vm15039_vm5  ;;  %v2091_v4 = vsel %vm12092_vm11, %v11867_v61, 0.0  ;;  %v2894_v30 = vadd.s32 1, %v11855_v20  ;;  %v2895_v61 = vadd.s32 1, %v11862_v44 }
 0x1c7   : > { %3750 = vrot.lane.b32.xlu1 %v3663_v31, %s15206_s30  ;;  %vm12097_vm12 = vmand %vm1933_vm15, %vm1965_vm9  ;;  %v1709_v8 = vsel %vm12081_vm7, %v12018_v45, 0.0  ;;  %vm1934_vm7 = vcmp.ge.s32.totalorder %v11916_v40, 0 }
 0x1c8   : > { %v2168_v48 = vpop.permute.xlu0 %2167  ;;  %vm12118_vm15 = vmand %vm12097_vm12, %vm971_vm2 }
 0x1c9   : > { %v2166_v14 = vpop.permute.xlu1 %2165  ;;  %2246 = vst.msk [vmem:[#allocation5 + $0x90] sm:$0xff] %vm15495_vm10, %v2168_v48  ;;  %vm15507_vm10 = vmmov %vm15498_vm6  ;;  %v2093_v27 = vsel %vm12118_vm15, %v12112_v28, 0.0 }
 0x1ca   : > { %2245 = vst.msk [vmem:[#allocation5 + $0x88] sm:$0xff] %vm15498_vm6, %v2166_v14  ;;  %1794 = vrot.lane.b32.xlu0 %v1706_v19, %s15165_s19  ;;  %vm1964_vm6 = vcmp.lt.s32.totalorder %v11862_v44, 16  ;;  %vm15510_vm9 = vmmov %vm15504_vm4 }
 0x1cb   : > { %1415 = vrot.lane.b32.xlu1 %v1324_v34, %s15209_s23  ;;  %vm12123_vm14 = vmand %vm1932_vm8, %vm1964_vm6  ;;  %v2382_v34 = vsel %vm12097_vm12, %v12165_v62, 0.0 }
 0x1cc   : > { %v2453_v12 = vpop.permute.xlu0 %2452  ;;  %vm15513_vm11 = vmmov %vm15504_vm4  ;;  %v2092_v56 = vsel %vm12123_vm14, %v11898_v18, 0.0  ;;  %v2381_v48 = vsel %vm12123_vm14, %v11952_v42, 0.0 }
 0x1cd   : > { %v2170_v13 = vpop.permute.xlu1 %2169  ;;  %2533 = vst.msk [vmem:[#allocation5 + $0x80] sm:$0xff] %vm15504_vm4, %v2453_v12  ;;  %vm1966_vm4 = vcmp.lt.s32.totalorder %v11916_v40, 16  ;;  %vm15517_vm6 = vmmov %vm15510_vm9 }
 0x1ce   : > { %2247 = vst.msk [vmem:[#allocation5 + $0x98] sm:$0xff] %vm15507_vm10, %v2170_v13  ;;  %1798 = vrot.lane.b32.xlu0 %v1708_v26, %s15165_s19  ;;  %vm15514_vm10 = vcmask 146552   ;;  %vm12146_vm8 = vmand %vm1934_vm7, %vm1966_vm4  ;;  %vm2926_vm7 = vcmp.ge.s32.totalorder %v2894_v30, 0 }
 0x1cf   : > { %1796 = vrot.lane.b32.xlu1 %v1707_v21, %s15165_s19  ;;  %v2094_v35 = vsel %vm12146_vm8, %v12144_v55, 0.0  ;;  %vm15518_vm15 = vmmov %vm15514_vm10 }
 0x1d0   : > { %v2457_v25 = vpop.permute.xlu0 %2456 }
 0x1d1   : > { %v2455_v16 = vpop.permute.xlu1 %2454  ;;  %2535 = vst.msk [vmem:[#allocation5 + $0x90] sm:$0xff] %vm15510_vm9, %v2457_v25  ;;  %vm15519_vm9 = vmmov %vm15514_vm10  ;;  %v2383_v25 = vsel %vm12146_vm8, %v12186_v24, 0.0 }
 0x1d2   : > { %2534 = vst.msk [vmem:[#allocation5 + $0x88] sm:$0xff] %vm15513_vm11, %v2455_v16  ;;  %2179 = vrot.lane.b32.xlu0 %v2091_v4, %s15174_s20  ;;  %vm15520_vm11 = vcmask 171152   ;;  %vm15521_vm4 = vmmov %vm15519_vm9  ;;  %v2669_v4 = vsel %vm12065_vm13, %v11999_v37, 0.0  ;;  %v12208_v16 = vld [vmem:[#allocation2 + $0xe2] sm:$0xff] }
 0x1d3   : > { %1800 = vrot.lane.b32.xlu1 %v1709_v8, %s15165_s19  ;;  %vm15524_vm13 = vmmov %vm15520_vm11 }
 0x1d4   : > { %v2742_v50 = vpop.permute.xlu0 %2741 }
 0x1d5   : > { %v2459_v17 = vpop.permute.xlu1 %2458  ;;  %2822 = vst.msk [vmem:[#allocation5 + $0x80] sm:$0xff] %vm15514_vm10, %v2742_v50  ;;  %vm2958_vm10 = vcmp.lt.s32.totalorder %v2894_v30, 16  ;;  %v12223_v50 = vadd.s32 232, %v9634_v2 }
 0x1d6   : > { %2536 = vst.msk [vmem:[#allocation5 + $0x98] sm:$0xff] %vm15517_vm6, %v2459_v17  ;;  %2183 = vrot.lane.b32.xlu0 %v2093_v27, %s15174_s20  ;;  %vm12204_vm6 = vmand %vm12123_vm14, %vm1643_vm1  ;;  %vm2928_vm14 = vcmp.ge.s32.totalorder %v2896_v10, 0  ;;  %v2671_v17 = vsel %vm12097_vm12, %v12208_v16, 0.0  ;;  %vm15533_vm12 = vcmask 195752  }
 0x1d7   : > { %2181 = vrot.lane.b32.xlu1 %v2092_v56, %s15174_s20  ;;  %v8684_v18 = vpop.f32.mrb[0].mxu0  ;;  %v685_v56 = vadd.s32 224, %v9634_v2  ;;  %v2670_v44 = vsel %vm12204_vm6, %v12018_v45, 0.0  ;;  %v12261_v45 = vshra.s32 %v12223_v50, 4 }
 0x1d8   : > { %v4116_v60 = vmul.f32 %v8684_v18, %v12141_v11  ;;  %v3980_v46 = vpop.f32.mrb[1].mxu0  ;;  %v2746_v58 = vpop.permute.xlu0 %2745 }
 0x1d9   : > { %v4114_v15 = vmul.f32 %v12141_v11, %v3980_v46  ;;  %v2744_v38 = vpop.permute.xlu1 %2743  ;;  %v8685_v39 = vpop.f32.mrb[2].mxu0  ;;  %2824 = vst.msk [vmem:[#allocation5 + $0x90] sm:$0xff] %vm15518_vm15, %v2746_v58  ;;  %vm12214_vm15 = vmand %vm2926_vm7, %vm2958_vm10  ;;  %v814_v43 = vadd.s32 4294967295, %v12261_v45  ;;  %v12560_v46 = vld [vmem:[#allocation2 + $0x101] sm:$0xff] }
 0x1da   : > { %v4155_v41 = vadd.f32 %v12156_v52, %v4116_v60  ;;  %2823 = vst.msk [vmem:[#allocation5 + $0x88] sm:$0xff] %vm15519_vm9, %v2744_v38  ;;  %v4117_v31 = vmul.f32 %v8685_v39, %v12141_v11  ;;  %v3983_v36 = vpop.f32.mrb[3].mxu0  ;;  %2468 = vrot.lane.b32.xlu0 %v2380_v32, %s15179_s18  ;;  %vm15527_vm9 = vmmov %vm15520_vm11  ;;  %v12270_v39 = vld [vmem:[#allocation2 + $0xf0] sm:$0xff] }
 0x1db   : > { %v4153_v57 = vadd.f32 %v12156_v52, %v4114_v15  ;;  %v4115_v19 = vmul.f32 %v12141_v11, %v3983_v36  ;;  %2185 = vrot.lane.b32.xlu1 %v2094_v35, %s15174_s20  ;;  %vm12233_vm7 = vmand %vm12146_vm8, %vm15039_vm5  ;;  %v12255_v35 = vshra.s32 %v685_v56, 4  ;;  %v749_v36 = vand.u32 15, %v685_v56 }
 0x1dc   : > { %v4156_v20 = vadd.f32 %v12156_v52, %v4117_v31  ;;  %v3159_v54 = vpop.permute.xlu0 %3158  ;;  %v4187_v21 = vmax.f32 %v4155_v41, 0.0  ;;  %vm15536_vm6 = vmmov %vm15527_vm9  ;;  %v2672_v15 = vsel %vm12233_vm7, %v12249_v47, 0.0 }
 0x1dd   : > { %v4154_v14 = vadd.f32 %v12156_v52, %v4115_v19  ;;  %v2748_v26 = vpop.permute.xlu1 %2747  ;;  %3239 = vst.msk [vmem:[#allocation5 + $0x80] sm:$0xff] %vm15520_vm11, %v3159_v54  ;;  %v4185_v13 = vmax.f32 %v4153_v57, 0.0  ;;  %vm2960_vm11 = vcmp.lt.s32.totalorder %v2896_v10, 16  ;;  %v813_v31 = vadd.s32 4294967295, %v12255_v35 }
 0x1de   : > { %v4188_v12 = vmax.f32 %v4156_v20, 0.0  ;;  %2825 = vst.msk [vmem:[#allocation5 + $0x98] sm:$0xff] %vm15521_vm4, %v2748_v26  ;;  %2472 = vrot.lane.b32.xlu0 %v2382_v34, %s15179_s18  ;;  %vm15530_vm4 = vcmp.ge.s32.totalorder %v11909_v23, 0  ;;  %vm12251_vm8 = vmand %vm2928_vm14, %vm2960_vm11  ;;  %v2897_v23 = vadd.s32 1, %v11916_v40  ;;  %v687_v57 = vadd.s32 240, %v9634_v2 }
 0x1df   : > { %v4186_v42 = vmax.f32 %v4154_v14, 0.0  ;;  %2470 = vrot.lane.b32.xlu1 %v2381_v48, %s15179_s18  ;;  %vm12244_vm10 = vmand %vm12214_vm15, %vm15530_vm4  ;;  %v12295_v34 = vadd.s32 248, %v9634_v2  ;;  %v12301_v14 = vld [vmem:[#allocation2 + $0xf8] sm:$0xff]  ;;  %v3375_v10 = vsel %vm12214_vm15, %v12165_v62, 0.0 }
 0x1e0   : > { %v12195_v8 = vpack.c.bf16 %v4188_v12, %v4187_v21  ;;  %v3163_v29 = vpop.permute.xlu0 %3162  ;;  %v3086_v58 = vsel %vm12244_vm10, %v12112_v28, 0.0  ;;  %vm12276_vm14 = vmand %vm12251_vm8, %vm971_vm2  ;;  %vm2929_vm10 = vcmp.ge.s32.totalorder %v2897_v23, 0  ;;  %v12307_v21 = vadd.s32 4294967295, %v749_v36 }
 0x1e1   : > { %v12210_v27 = vpack.c.bf16 %v4186_v42, %v4185_v13  ;;  %v3161_v37 = vpop.permute.xlu1 %3160  ;;  %3241 = vst.msk [vmem:[#allocation5 + $0x90] sm:$0xff] %vm15524_vm13, %v3163_v29  ;;  %vm2927_vm13 = vcmp.ge.s32.totalorder %v2895_v61, 0  ;;  %vm15539_vm11 = vmmov %vm15533_vm12  ;;  %v3088_v19 = vsel %vm12276_vm14, %v12270_v39, 0.0  ;;  %vm846_vm14 = vcmp.ge.s32.totalorder %v814_v43, 0 }
 0x1e2   : > { %3240 = vst.msk [vmem:[#allocation5 + $0x88] sm:$0xff] %vm15527_vm9, %v3161_v37  ;;  %2757 = vrot.lane.b32.xlu0 %v2669_v4, %s15188_s26  ;;  %vm2959_vm9 = vcmp.lt.s32.totalorder %v2895_v61, 16  ;;  %vm15542_vm7 = vmmov %vm15539_vm11  ;;  %v12311_v12 = vshra.s32 %v687_v57, 4  ;;  %v12318_v13 = vshra.s32 %v12295_v34, 4  ;;  %v751_v61 = vand.u32 15, %v687_v57 }
 0x1e3   : > { %2474 = vrot.lane.b32.xlu1 %v2383_v25, %s15179_s18  ;;  %vm12281_vm4 = vmand %vm2927_vm13, %vm2959_vm9  ;;  %vm877_vm13 = vcmp.lt.s32.totalorder %v813_v31, 16  ;;  %v12323_v25 = vld [vmem:[#allocation2 + $0xf1] sm:$0xff] }
 0x1e4   : > { %v3448_v32 = vpop.permute.xlu0 %3447  ;;  %v3087_v20 = vsel %vm12281_vm4, %v12144_v55, 0.0  ;;  %vm15545_vm9 = vmmov %vm15542_vm7  ;;  %v815_v56 = vadd.s32 4294967295, %v12311_v12  ;;  %v3377_v18 = vsel %vm12251_vm8, %v12323_v25, 0.0  ;;  %v3376_v59 = vsel %vm12281_vm4, %v12186_v24, 0.0 }
 0x1e5   : > { %v3165_v60 = vpop.permute.xlu1 %3164  ;;  %3528 = vst.msk [vmem:[#allocation5 + $0x80] sm:$0xff] %vm15533_vm12, %v3448_v32  ;;  %vm2961_vm12 = vcmp.lt.s32.totalorder %v2897_v23, 16  ;;  %v12357_v23 = vld [vmem:[#allocation2 + $0xf9] sm:$0xff] }
 0x1e6   : > { %3242 = vst.msk [vmem:[#allocation5 + $0x98] sm:$0xff] %vm15536_vm6, %v3165_v60  ;;  %2761 = vrot.lane.b32.xlu0 %v2671_v17, %s15188_s26  ;;  %vm12303_vm2 = vmand %vm2929_vm10, %vm2961_vm12  ;;  %vm845_vm6 = vcmp.ge.s32.totalorder %v813_v31, 0  ;;  %vm15548_vm10 = vcmask 48152  }
 0x1e7   : > { %2759 = vrot.lane.b32.xlu1 %v2670_v44, %s15188_s26  ;;  %v3089_v42 = vsel %vm12303_vm2, %v12301_v14, 0.0  ;;  %v816_v44 = vadd.s32 4294967295, %v12318_v13 }
 0x1e8   : > { %v3452_v38 = vpop.permute.xlu0 %3451 }
 0x1e9   : > { %v3450_v30 = vpop.permute.xlu1 %3449  ;;  %3530 = vst.msk [vmem:[#allocation5 + $0x90] sm:$0xff] %vm15539_vm11, %v3452_v38  ;;  %vm878_vm11 = vcmp.lt.s32.totalorder %v814_v43, 16  ;;  %v3378_v38 = vsel %vm12303_vm2, %v12357_v23, 0.0 }
 0x1ea   : > { %3529 = vst.msk [vmem:[#allocation5 + $0x88] sm:$0xff] %vm15542_vm7, %v3450_v30  ;;  %3174 = vrot.lane.b32.xlu0 %v3086_v58, %s15193_s28  ;;  %vm12325_vm7 = vmand %vm845_vm6, %vm877_vm13 }
 0x1eb   : > { %2763 = vrot.lane.b32.xlu1 %v2672_v15, %s15188_s26  ;;  %vm12330_vm12 = vmand %vm846_vm14, %vm878_vm11  ;;  %vm847_vm14 = vcmp.ge.s32.totalorder %v815_v56, 0  ;;  %vm879_vm11 = vcmp.lt.s32.totalorder %v815_v56, 16  ;;  %v3664_v15 = vsel %vm12214_vm15, %v12208_v16, 0.0  ;;  %v1325_v41 = vsel %vm12325_vm7, %v12165_v62, 0.0 }
 0x1ec   : > { %v3737_v48 = vpop.permute.xlu0 %3736  ;;  %v1102_v17 = vsel %vm12330_vm12, %v12144_v55, 0.0  ;;  %vm15551_vm13 = vmmov %vm15548_vm10  ;;  %v752_v56 = vand.u32 15, %v12295_v34 }
 0x1ed   : > { %v3454_v54 = vpop.permute.xlu1 %3453  ;;  %3817 = vst.msk [vmem:[#allocation5 + $0x80] sm:$0xff] %vm3800_vm3, %v3737_v48  ;;  %vm12379_vm15 = vmand %vm847_vm14, %vm879_vm11  ;;  %vm15560_vm14 = vcmask 72752   ;;  %vm15561_vm11 = vcmask 48152  }
 0x1ee   : > { %3531 = vst.msk [vmem:[#allocation5 + $0x98] sm:$0xff] %vm15545_vm9, %v3454_v54  ;;  %3178 = vrot.lane.b32.xlu0 %v3088_v19, %s15193_s28  ;;  %vm15038_vm9 = vcmp.ge.s32.totalorder %v12307_v21, 0  ;;  %v1327_v34 = vsel %vm12379_vm15, %v12323_v25, 0.0 }
 0x1ef   : > { %3176 = vrot.lane.b32.xlu1 %v3087_v20, %s15193_s28  ;;  %vm1005_vm6 = vmand %vm12325_vm7, %vm15038_vm9  ;;  %1134 = vst.msk [vmem:[#allocation5 + $0xe8] sm:$0xff] %vm552_vm0, %v1102_v17  ;;  %vm15554_vm9 = vcmask 48152   ;;  %v12402_v20 = vld [vmem:[#allocation2 + $0xf2] sm:$0xff] }
 0x1f0   : > { %v1402_v4 = vpop.permute.xlu0 %1401  ;;  %v1101_v32 = vsel %vm1005_vm6, %v12112_v28, 0.0  ;;  %v12361_v28 = vadd.s32 4294967295, %v751_v61  ;;  %vm880_vm6 = vcmp.lt.s32.totalorder %v816_v44, 16  ;;  %v1712_v29 = vsel %vm12379_vm15, %v12402_v20, 0.0 }
 0x1f1   : > { %v3739_v51 = vpop.permute.xlu1 %3738  ;;  %1478 = vst.msk [vmem:[#allocation5 + $0xa0] sm:$0xff] %vm15548_vm10, %v1402_v4  ;;  %vm848_vm10 = vcmp.ge.s32.totalorder %v816_v44, 0  ;;  %v3666_v4 = vsel %vm12251_vm8, %v12402_v20, 0.0 }
 0x1f2   : > { %3818 = vst.msk [vmem:[#allocation5 + $0x88] sm:$0xff] %vm3800_vm3, %v3739_v51  ;;  %3463 = vrot.lane.b32.xlu0 %v3375_v10, %s15198_s1  ;;  %vm12385_vm5 = vmand %vm848_vm10, %vm880_vm6  ;;  %v750_v10 = vand.u32 15, %v12223_v50  ;;  %v1326_v51 = vsel %vm12330_vm12, %v12186_v24, 0.0  ;;  %vm15563_vm10 = vcmp.lt.s32.totalorder %v12040_v33, 16 }
 0x1f3   : > { %3180 = vrot.lane.b32.xlu1 %v3089_v42, %s15193_s28  ;;  %1133 = vst.msk [vmem:[#allocation5 + $0xe0] sm:$0xff] %vm552_vm0, %v1101_v32  ;;  %v1104_v62 = vsel %vm12385_vm5, %v12301_v14, 0.0  ;;  %vm12429_vm6 = vmand %vm12303_vm2, %vm15563_vm10  ;;  %v12445_v32 = vadd.s32 1, %v752_v56  ;;  %vm15568_vm2 = vcmask 97352  }
 0x1f4   : > { %v3741_v60 = vpop.permute.xlu0 %3740  ;;  %v3849_v58 = vld [vmem:[#allocation5 + $0x80] sm:$0xff]  ;;  %1136 = vst.msk [vmem:[#allocation5 + $0xf8] sm:$0xff] %vm552_vm0, %v1104_v62  ;;  %v12433_v44 = vadd.s32 1, %v750_v10 }
 0x1f5   : > { %v1404_v55 = vpop.permute.xlu1 %1403  ;;  %3819 = vst.msk [vmem:[#allocation5 + $0x90] sm:$0xff] %vm3800_vm3, %v3741_v60  ;;  %v1710_v60 = vsel %vm12325_vm7, %v12208_v16, 0.0  ;;  %vm1649_vm10 = vcmp.lt.s32.totalorder %v12445_v32, 16  ;;  %vm15575_vm7 = vmmov %vm15568_vm2 }
 0x1f6   : > { %1479 = vst.msk [vmem:[#allocation5 + $0xa8] sm:$0xff] %vm15551_vm13, %v1404_v55  ;;  %3467 = vrot.lane.b32.xlu0 %v3377_v18, %s15198_s1  ;;  %vm12374_vm13 = vmand %vm12281_vm4, %vm1643_vm1  ;;  %vm975_vm1 = vcmp.ge.s32.totalorder %v12361_v28, 0  ;;  %v12423_v18 = vld [vmem:[#allocation2 + $0xfa] sm:$0xff]  ;;  %v1328_v55 = vsel %vm12385_vm5, %v12357_v23, 0.0 }
 0x1f7   : > { %3465 = vrot.lane.b32.xlu1 %v3376_v59, %s15198_s1  ;;  %vm1007_vm4 = vmand %vm12379_vm15, %vm975_vm1  ;;  %v3665_v57 = vsel %vm12374_vm13, %v12249_v47, 0.0  ;;  %v3667_v33 = vsel %vm12429_vm6, %v12423_v18, 0.0  ;;  %vm15581_vm15 = vcmask 121952  }
 0x1f8   : > { %v1406_v40 = vpop.permute.xlu0 %1405  ;;  %v1103_v48 = vsel %vm1007_vm4, %v12270_v39, 0.0  ;;  %vm1647_vm4 = vcmp.lt.s32.totalorder %v12433_v44, 16  ;;  %vm15572_vm6 = vmmov %vm15568_vm2  ;;  %v3575_v44 = vld [vmem:[#allocation2 + $0x11a] sm:$0xff] }
 0x1f9   : > { %v3743_v31 = vpop.permute.xlu1 %3742  ;;  %v3850_v36 = vld [vmem:[#allocation5 + $0x88] sm:$0xff]  ;;  %1480 = vst.msk [vmem:[#allocation5 + $0xb0] sm:$0xff] %vm15554_vm9, %v1406_v40  ;;  %vm15559_vm9 = vcmask 261120  }
 0x1fa   : > { %3820 = vst.msk [vmem:[#allocation5 + $0x98] sm:$0xff] %vm3800_vm3, %v3743_v31  ;;  %v3873_v43 = vpack.c.bf16 %v3850_v36, %v3849_v58  ;;  %3752 = vrot.lane.b32.xlu0 %v3664_v15, %s15206_s30  ;;  %vm15567_vm13 = vmmov %vm15559_vm9 }
 0x1fb   : > { %3469 = vrot.lane.b32.xlu1 %v3378_v38, %s15198_s1  ;;  %1135 = vst.msk [vmem:[#allocation5 + $0xf0] sm:$0xff] %vm552_vm0, %v1103_v48  ;;  %vm15562_vm0 = vmmov %vm15560_vm14 }
 0x1fc   : > { %8698 = vmatprep.mubr.msk.bf16.mxu0 %vm15559_vm9, %v3873_v43  ;;  %v1787_v19 = vpop.permute.xlu0 %1786  ;;  %v3851_v42 = vld [vmem:[#allocation5 + $0x90] sm:$0xff]  ;;  %vm15566_vm8 = vmmov %vm15562_vm0 }
 0x1fd   : > { %v1408_v54 = vpop.permute.xlu1 %1407  ;;  %1863 = vst.msk [vmem:[#allocation5 + $0xa0] sm:$0xff] %vm15560_vm14, %v1787_v19  ;;  %vm15569_vm9 = vmmov %vm15562_vm0  ;;  %vm1935_vm14 = vcmp.ge.s32.totalorder %v12255_v35, 0 }
 0x1fe   : > { %1481 = vst.msk [vmem:[#allocation5 + $0xb8] sm:$0xff] %vm15561_vm11, %v1408_v54  ;;  %1417 = vrot.lane.b32.xlu0 %v1325_v41, %s15209_s23  ;;  %vm1967_vm11 = vcmp.lt.s32.totalorder %v12255_v35, 16  ;;  %v12517_v41 = vld [vmem:[#allocation2 + $0x100] sm:$0xff] }
 0x1ff   : > { %3754 = vrot.lane.b32.xlu1 %v3665_v57, %s15206_s30 }
 0x200   : > { %v1791_v50 = vpop.permute.xlu0 %1790 }
 0x201   : > { %v1789_v61 = vpop.permute.xlu1 %1788  ;;  %v3852_v17 = vld [vmem:[#allocation5 + $0x98] sm:$0xff]  ;;  %1865 = vst.msk [vmem:[#allocation5 + $0xb0] sm:$0xff] %vm15562_vm0, %v1791_v50  ;;  %vm12464_vm0 = vmand %vm12330_vm12, %vm1647_vm4  ;;  %vm1969_vm12 = vcmp.lt.s32.totalorder %v12311_v12, 16 }
 0x202   : > { %1864 = vst.msk [vmem:[#allocation5 + $0xa8] sm:$0xff] %vm15566_vm8, %v1789_v61  ;;  %v3874_v24 = vpack.c.bf16 %v3852_v17, %v3851_v42  ;;  %3756 = vrot.lane.b32.xlu0 %v3666_v4, %s15206_s30  ;;  %vm12470_vm8 = vmand %vm1935_vm14, %vm1967_vm11  ;;  %v1711_v40 = vsel %vm12464_vm0, %v12249_v47, 0.0  ;;  %vm1936_vm0 = vcmp.ge.s32.totalorder %v12261_v45, 0  ;;  %v12544_v42 = vld [vmem:[#allocation2 + $0x108] sm:$0xff] }
 0x203   : > { %1419 = vrot.lane.b32.xlu1 %v1326_v51, %s15209_s23  ;;  %vm15584_vm11 = vmmov %vm15572_vm6  ;;  %v12640_v4 = vld [vmem:[#allocation2 + $0x10a] sm:$0xff] }
 0x204   : > { %8699 = vmatmul.mubr.msk.bf16.gmra.mrb[16].mxu0 %vm15567_vm13, %v3874_v24  ;;  %v2172_v26 = vpop.permute.xlu0 %2171  ;;  %vm1937_vm13 = vcmp.ge.s32.totalorder %v12311_v12, 0 }
 0x205   : > { %v1793_v59 = vpop.permute.xlu1 %1792  ;;  %2248 = vst.msk [vmem:[#allocation5 + $0xa0] sm:$0xff] %vm15568_vm2, %v2172_v26  ;;  %vm12486_vm2 = vmand %vm12385_vm5, %vm1649_vm10  ;;  %v2898_v26 = vadd.s32 1, %v12255_v35 }
 0x206   : > { %1866 = vst.msk [vmem:[#allocation5 + $0xb8] sm:$0xff] %vm15569_vm9, %v1793_v59  ;;  %1421 = vrot.lane.b32.xlu0 %v1327_v34, %s15209_s23  ;;  %vm15578_vm9 = vcmp.ge.s32.totalorder %v12307_v21, 0  ;;  %vm12502_vm5 = vmand %vm1937_vm13, %vm1969_vm12  ;;  %v1713_v43 = vsel %vm12486_vm2, %v12423_v18, 0.0  ;;  %vm1938_vm2 = vcmp.ge.s32.totalorder %v12318_v13, 0 }
 0x207   : > { %3758 = vrot.lane.b32.xlu1 %v3667_v33, %s15206_s30  ;;  %vm12497_vm14 = vmand %vm12470_vm8, %vm15578_vm9  ;;  %v2386_v15 = vsel %vm12502_vm5, %v12560_v46, 0.0 }
 0x208   : > { %v2176_v58 = vpop.permute.xlu0 %2175  ;;  %v2095_v47 = vsel %vm12497_vm14, %v12270_v39, 0.0  ;;  %vm15587_vm13 = vmmov %vm15581_vm15  ;;  %vm1970_vm14 = vcmp.lt.s32.totalorder %v12318_v13, 16  ;;  %v2899_v39 = vadd.s32 1, %v12261_v45 }
 0x209   : > { %v2174_v38 = vpop.permute.xlu1 %2173  ;;  %2250 = vst.msk [vmem:[#allocation5 + $0xb0] sm:$0xff] %vm15572_vm6, %v2176_v58  ;;  %vm1968_vm6 = vcmp.lt.s32.totalorder %v12261_v45, 16  ;;  %vm15590_vm9 = vmmov %vm15587_vm13 }
 0x20a   : > { %2249 = vst.msk [vmem:[#allocation5 + $0xa8] sm:$0xff] %vm15575_vm7, %v2174_v38  ;;  %1802 = vrot.lane.b32.xlu0 %v1710_v60, %s15165_s19  ;;  %vm12523_vm7 = vmand %vm12502_vm5, %vm975_vm1 }
 0x20b   : > { %1423 = vrot.lane.b32.xlu1 %v1328_v55, %s15209_s23  ;;  %vm12528_vm12 = vmand %vm1936_vm0, %vm1968_vm6  ;;  %v2097_v48 = vsel %vm12523_vm7, %v12517_v41, 0.0 }
 0x20c   : > { %v2461_v30 = vpop.permute.xlu0 %2460  ;;  %v2096_v62 = vsel %vm12528_vm12, %v12301_v14, 0.0  ;;  %vm15594_vm0 = vmmov %vm15590_vm9  ;;  %v2384_v14 = vsel %vm12470_vm8, %v12323_v25, 0.0  ;;  %v2385_v38 = vsel %vm12528_vm12, %v12357_v23, 0.0 }
 0x20d   : > { %v2178_v36 = vpop.permute.xlu1 %2177  ;;  %2537 = vst.msk [vmem:[#allocation5 + $0xa0] sm:$0xff] %vm15581_vm15, %v2461_v30  ;;  %vm15591_vm15 = vcmask 146552   ;;  %v12581_v30 = vld [vmem:[#allocation2 + $0x109] sm:$0xff] }
 0x20e   : > { %2251 = vst.msk [vmem:[#allocation5 + $0xb8] sm:$0xff] %vm15584_vm11, %v2178_v36  ;;  %1806 = vrot.lane.b32.xlu0 %v1712_v29, %s15165_s19  ;;  %vm12546_vm11 = vmand %vm1938_vm2, %vm1970_vm14  ;;  %vm2962_vm14 = vcmp.lt.s32.totalorder %v2898_v26, 16 }
 0x20f   : > { %1804 = vrot.lane.b32.xlu1 %v1711_v40, %s15165_s19  ;;  %v2098_v61 = vsel %vm12546_vm11, %v12544_v42, 0.0  ;;  %vm15595_vm6 = vmmov %vm15591_vm15 }
 0x210   : > { %v2465_v22 = vpop.permute.xlu0 %2464  ;;  %vm15596_vm7 = vmmov %vm15595_vm6 }
 0x211   : > { %v2463_v19 = vpop.permute.xlu1 %2462  ;;  %2539 = vst.msk [vmem:[#allocation5 + $0xb0] sm:$0xff] %vm15587_vm13, %v2465_v22  ;;  %vm15597_vm13 = vcmask 171152   ;;  %vm15598_vm2 = vmmov %vm15595_vm6  ;;  %v2673_v22 = vsel %vm12470_vm8, %v12402_v20, 0.0 }
 0x212   : > { %2538 = vst.msk [vmem:[#allocation5 + $0xa8] sm:$0xff] %vm15590_vm9, %v2463_v19  ;;  %2187 = vrot.lane.b32.xlu0 %v2095_v47, %s15174_s20  ;;  %vm2930_vm9 = vcmp.ge.s32.totalorder %v2898_v26, 0  ;;  %v2900_v47 = vadd.s32 1, %v12311_v12  ;;  %v2387_v19 = vsel %vm12546_vm11, %v12581_v30, 0.0  ;;  %vm15601_vm8 = vmmov %vm15597_vm13 }
 0x213   : > { %1808 = vrot.lane.b32.xlu1 %v1713_v43, %s15165_s19 }
 0x214   : > { %v2750_v54 = vpop.permute.xlu0 %2749 }
 0x215   : > { %v2467_v10 = vpop.permute.xlu1 %2466  ;;  %2826 = vst.msk [vmem:[#allocation5 + $0xa0] sm:$0xff] %vm15591_vm15, %v2750_v54  ;;  %vm12599_vm15 = vmand %vm12528_vm12, %vm1647_vm4  ;;  %vm2932_vm12 = vcmp.ge.s32.totalorder %v2900_v47, 0 }
 0x216   : > { %2540 = vst.msk [vmem:[#allocation5 + $0xb8] sm:$0xff] %vm15594_vm0, %v2467_v10  ;;  %2191 = vrot.lane.b32.xlu0 %v2097_v48, %s15174_s20  ;;  %vm12609_vm0 = vmand %vm2930_vm9, %vm2962_vm14  ;;  %v2674_v45 = vsel %vm12599_vm15, %v12423_v18, 0.0  ;;  %vm15607_vm9 = vcmp.ge.s32.totalorder %v12307_v21, 0  ;;  %vm2931_vm15 = vcmp.ge.s32.totalorder %v2899_v39, 0  ;;  %v2901_v21 = vadd.s32 1, %v12318_v13 }
 0x217   : > { %2189 = vrot.lane.b32.xlu1 %v2096_v62, %s15174_s20  ;;  %v8688_v51 = vpop.f32.mrb[4].mxu0  ;;  %v12603_v62 = vld [vmem:[#allocation2 + $0x102] sm:$0xff] }
 0x218   : > { %v4120_v50 = vmul.f32 %v8688_v51, %v12141_v11  ;;  %v3996_v56 = vpop.f32.mrb[5].mxu0  ;;  %v2754_v17 = vpop.permute.xlu0 %2753  ;;  %v2675_v10 = vsel %vm12502_vm5, %v12603_v62, 0.0  ;;  %vm15610_vm5 = vcmask 195752  }
 0x219   : > { %v4118_v24 = vmul.f32 %v12141_v11, %v3996_v56  ;;  %v2752_v34 = vpop.permute.xlu1 %2751  ;;  %v8689_v33 = vpop.f32.mrb[6].mxu0  ;;  %2828 = vst.msk [vmem:[#allocation5 + $0xb0] sm:$0xff] %vm15595_vm6, %v2754_v17  ;;  %vm15604_vm6 = vmmov %vm15601_vm8 }
 0x21a   : > { %v4159_v25 = vadd.f32 %v12156_v52, %v4120_v50  ;;  %2827 = vst.msk [vmem:[#allocation5 + $0xa8] sm:$0xff] %vm15596_vm7, %v2752_v34  ;;  %v4121_v59 = vmul.f32 %v8689_v33, %v12141_v11  ;;  %v3999_v60 = vpop.f32.mrb[7].mxu0  ;;  %2476 = vrot.lane.b32.xlu0 %v2384_v14, %s15179_s18  ;;  %vm2964_vm7 = vcmp.lt.s32.totalorder %v2900_v47, 16  ;;  %vm15613_vm14 = vmmov %vm15604_vm6 }
 0x21b   : > { %v4157_v55 = vadd.f32 %v12156_v52, %v4118_v24  ;;  %v4119_v58 = vmul.f32 %v12141_v11, %v3999_v60  ;;  %2193 = vrot.lane.b32.xlu1 %v2098_v61, %s15174_s20  ;;  %v2868_v24 = vld [vmem:[#allocation2 + $0x110] sm:$0xff]  ;;  %s9355_s20 = smov 64  }
 0x21c   : > { %v4160_v35 = vadd.f32 %v12156_v52, %v4121_v59  ;;  %v3167_v29 = vpop.permute.xlu0 %3166  ;;  %v4191_v31 = vmax.f32 %v4159_v25, 0.0  ;;  %v2869_v59 = vld [vmem:[#allocation2 + $0x118] sm:$0xff] }
 0x21d   : > { %v4158_v37 = vadd.f32 %v12156_v52, %v4119_v58  ;;  %v2756_v40 = vpop.permute.xlu1 %2755  ;;  %3243 = vst.msk [vmem:[#allocation5 + $0xa0] sm:$0xff] %vm15597_vm13, %v3167_v29  ;;  %v4189_v43 = vmax.f32 %v4157_v55, 0.0  ;;  %vm12624_vm13 = vmand %vm12546_vm11, %vm1649_vm10  ;;  %v3379_v55 = vsel %vm12609_vm0, %v12560_v46, 0.0 }
 0x21e   : > { %v4192_v36 = vmax.f32 %v4160_v35, 0.0  ;;  %2829 = vst.msk [vmem:[#allocation5 + $0xb8] sm:$0xff] %vm15598_vm2, %v2756_v40  ;;  %2480 = vrot.lane.b32.xlu0 %v2386_v15, %s15179_s18  ;;  %vm12635_vm2 = vmand %vm12609_vm0, %vm15607_vm9  ;;  %v2676_v61 = vsel %vm12624_vm13, %v12640_v4, 0.0  ;;  %vm2933_vm13 = vcmp.ge.s32.totalorder %v2901_v21, 0  ;;  %v3285_v15 = vld [vmem:[#allocation2 + $0x111] sm:$0xff]  ;;  %v3286_v40 = vld [vmem:[#allocation2 + $0x119] sm:$0xff] }
 0x21f   : > { %v4190_v23 = vmax.f32 %v4158_v37, 0.0  ;;  %2478 = vrot.lane.b32.xlu1 %v2385_v38, %s15179_s18  ;;  %vm12642_vm11 = vmand %vm2932_vm12, %vm2964_vm7  ;;  %v3090_v18 = vsel %vm12635_vm2, %v12517_v41, 0.0  ;;  %vm2965_vm2 = vcmp.lt.s32.totalorder %v2901_v21, 16 }
 0x220   : > { %v12590_v57 = vpack.c.bf16 %v4192_v36, %v4191_v31  ;;  %v3171_v48 = vpop.permute.xlu0 %3170  ;;  %vm15616_vm12 = vmmov %vm15610_vm5  ;;  %v3381_v38 = vsel %vm12642_vm11, %v3285_v15, 0.0  ;;  %v3668_v36 = vsel %vm12609_vm0, %v12603_v62, 0.0  ;;  %vm15625_vm0 = vcmask 261120  }
 0x221   : > { %v12605_v54 = vpack.c.bf16 %v4190_v23, %v4189_v43  ;;  %v3169_v20 = vpop.permute.xlu1 %3168  ;;  %3245 = vst.msk [vmem:[#allocation5 + $0xb0] sm:$0xff] %vm15601_vm8, %v3171_v48  ;;  %vm2963_vm8 = vcmp.lt.s32.totalorder %v2899_v39, 16  ;;  %vm15619_vm9 = vmmov %vm15610_vm5  ;;  %v3574_v43 = vld [vmem:[#allocation2 + $0x112] sm:$0xff] }
 0x222   : > { %3244 = vst.msk [vmem:[#allocation5 + $0xa8] sm:$0xff] %vm15604_vm6, %v3169_v20  ;;  %2765 = vrot.lane.b32.xlu0 %v2673_v22, %s15188_s26  ;;  %vm12660_vm6 = vmand %vm12642_vm11, %vm975_vm1  ;;  %v3670_v48 = vsel %vm12642_vm11, %v3574_v43, 0.0 }
 0x223   : > { %2482 = vrot.lane.b32.xlu1 %v2387_v19, %s15179_s18  ;;  %vm12665_vm7 = vmand %vm2931_vm15, %vm2963_vm8  ;;  %v3092_v28 = vsel %vm12660_vm6, %v2868_v24, 0.0  ;;  %s9357_s18 = smov 96  }
 0x224   : > { %v3456_v14 = vpop.permute.xlu0 %3455  ;;  %v3091_v41 = vsel %vm12665_vm7, %v12544_v42, 0.0  ;;  %vm12678_vm1 = vmand %vm2933_vm13, %vm2965_vm2  ;;  %v3380_v46 = vsel %vm12665_vm7, %v12581_v30, 0.0 }
 0x225   : > { %v3173_v50 = vpop.permute.xlu1 %3172  ;;  %3532 = vst.msk [vmem:[#allocation5 + $0xa0] sm:$0xff] %vm15610_vm5, %v3456_v14  ;;  %v3093_v42 = vsel %vm12678_vm1, %v2869_v59, 0.0  ;;  %v3382_v47 = vsel %vm12678_vm1, %v3286_v40, 0.0  ;;  %vm3637_vm6 = vmand %vm12665_vm7, %vm1647_vm4 }
 0x226   : > { %3246 = vst.msk [vmem:[#allocation5 + $0xb8] sm:$0xff] %vm15613_vm14, %v3173_v50  ;;  %2769 = vrot.lane.b32.xlu0 %v2675_v10, %s15188_s26  ;;  %vm15622_vm14 = vcmask 48152   ;;  %v3669_v12 = vsel %vm3637_vm6, %v12640_v4, 0.0  ;;  %vm3639_vm4 = vmand %vm12678_vm1, %vm1649_vm10  ;;  %vm15631_vm10 = vcmask 97352  }
 0x227   : > { %2767 = vrot.lane.b32.xlu1 %v2674_v45, %s15188_s26  ;;  %vm15623_vm15 = vmmov %vm15622_vm14  ;;  %v3671_v39 = vsel %vm3639_vm4, %v3575_v44, 0.0 }
 0x228   : > { %v3460_v17 = vpop.permute.xlu0 %3459  ;;  %vm15624_vm8 = vmmov %vm15622_vm14 }
 0x229   : > { %v3458_v13 = vpop.permute.xlu1 %3457  ;;  %3534 = vst.msk [vmem:[#allocation5 + $0xb0] sm:$0xff] %vm15616_vm12, %v3460_v17  ;;  %vm15626_vm12 = vcmask 72752   ;;  %vm15627_vm7 = vmmov %vm15624_vm8 }
 0x22a   : > { %3533 = vst.msk [vmem:[#allocation5 + $0xa8] sm:$0xff] %vm15619_vm9, %v3458_v13  ;;  %3182 = vrot.lane.b32.xlu0 %v3090_v18, %s15193_s28  ;;  %vm15628_vm11 = vmmov %vm15626_vm12 }
 0x22b   : > { %2771 = vrot.lane.b32.xlu1 %v2676_v61, %s15188_s26  ;;  %vm15629_vm9 = vmmov %vm15628_vm11  ;;  %s9354_s26 = smov 48  }
 0x22c   : > { %v3745_v26 = vpop.permute.xlu0 %3744  ;;  %vm15630_vm13 = vmmov %vm15625_vm0 }
 0x22d   : > { %v3462_v25 = vpop.permute.xlu1 %3461  ;;  %3821 = vst.msk [vmem:[#allocation5 + $0xa0] sm:$0xff] %vm3800_vm3, %v3745_v26  ;;  %vm15632_vm2 = vmmov %vm15629_vm9 }
 0x22e   : > { %3535 = vst.msk [vmem:[#allocation5 + $0xb8] sm:$0xff] %vm15610_vm5, %v3462_v25  ;;  %3186 = vrot.lane.b32.xlu0 %v3092_v28, %s15193_s28  ;;  %vm15633_vm1 = vmmov %vm15631_vm10 }
 0x22f   : > { %3184 = vrot.lane.b32.xlu1 %v3091_v41, %s15193_s28  ;;  %vm15634_vm5 = vmmov %vm15633_vm1 }
 0x230   : > { %v1410_v58 = vpop.permute.xlu0 %1409 }
 0x231   : > { %v3747_v35 = vpop.permute.xlu1 %3746  ;;  %1482 = vst.msk [vmem:[#allocation5 + $0xc0] sm:$0xff] %vm15622_vm14, %v1410_v58  ;;  %vm15635_vm14 = vcmask 121952  }
 0x232   : > { %3822 = vst.msk [vmem:[#allocation5 + $0xa8] sm:$0xff] %vm3800_vm3, %v3747_v35  ;;  %3471 = vrot.lane.b32.xlu0 %v3379_v55, %s15198_s1 }
 0x233   : > { %3188 = vrot.lane.b32.xlu1 %v3093_v42, %s15193_s28  ;;  %s9358_s28 = smov 112  }
 0x234   : > { %v3749_v29 = vpop.permute.xlu0 %3748  ;;  %v3853_v31 = vld [vmem:[#allocation5 + $0xa0] sm:$0xff] }
 0x235   : > { %v1412_v37 = vpop.permute.xlu1 %1411  ;;  %3823 = vst.msk [vmem:[#allocation5 + $0xb0] sm:$0xff] %vm3800_vm3, %v3749_v29 }
 0x236   : > { %1483 = vst.msk [vmem:[#allocation5 + $0xc8] sm:$0xff] %vm15623_vm15, %v1412_v37  ;;  %3475 = vrot.lane.b32.xlu0 %v3381_v38, %s15198_s1  ;;  %vm15636_vm15 = vmmov %vm15633_vm1 }
 0x237   : > { %3473 = vrot.lane.b32.xlu1 %v3380_v46, %s15198_s1 }
 0x238   : > { %v1414_v30 = vpop.permute.xlu0 %1413 }
 0x239   : > { %v3751_v23 = vpop.permute.xlu1 %3750  ;;  %v3854_v22 = vld [vmem:[#allocation5 + $0xa8] sm:$0xff]  ;;  %1484 = vst.msk [vmem:[#allocation5 + $0xd0] sm:$0xff] %vm15624_vm8, %v1414_v30  ;;  %vm15637_vm8 = vmmov %vm15635_vm14 }
 0x23a   : > { %3824 = vst.msk [vmem:[#allocation5 + $0xb8] sm:$0xff] %vm3800_vm3, %v3751_v23  ;;  %v3875_v19 = vpack.c.bf16 %v3854_v22, %v3853_v31  ;;  %3760 = vrot.lane.b32.xlu0 %v3668_v36, %s15206_s30  ;;  %vm15638_vm6 = vmmov %vm15637_vm8 }
 0x23b   : > { %3477 = vrot.lane.b32.xlu1 %v3382_v47, %s15198_s1 }
 0x23c   : > { %8702 = vmatprep.mubr.msk.bf16.mxu0 %vm15625_vm0, %v3875_v19  ;;  %v1795_v62 = vpop.permute.xlu0 %1794  ;;  %v3855_v16 = vld [vmem:[#allocation5 + $0xb0] sm:$0xff]  ;;  %vm15639_vm0 = vcmask 146552  }
 0x23d   : > { %v1416_v20 = vpop.permute.xlu1 %1415  ;;  %1867 = vst.msk [vmem:[#allocation5 + $0xc0] sm:$0xff] %vm15626_vm12, %v1795_v62  ;;  %vm15640_vm12 = vmmov %vm15638_vm6 }
 0x23e   : > { %1485 = vst.msk [vmem:[#allocation5 + $0xd8] sm:$0xff] %vm15627_vm7, %v1416_v20  ;;  %3764 = vrot.lane.b32.xlu0 %v3670_v48, %s15206_s30  ;;  %vm15641_vm4 = vmmov %vm15639_vm0 }
 0x23f   : > { %3762 = vrot.lane.b32.xlu1 %v3669_v12, %s15206_s30  ;;  %vm15642_vm7 = vmmov %vm15639_vm0 }
 0x240   : > { %v1799_v10 = vpop.permute.xlu0 %1798 }
 0x241   : > { %v1797_v51 = vpop.permute.xlu1 %1796  ;;  %v3856_v45 = vld [vmem:[#allocation5 + $0xb8] sm:$0xff]  ;;  %1869 = vst.msk [vmem:[#allocation5 + $0xd0] sm:$0xff] %vm15628_vm11, %v1799_v10  ;;  %vm15643_vm11 = vcmask 171152  }
 0x242   : > { %1868 = vst.msk [vmem:[#allocation5 + $0xc8] sm:$0xff] %vm15629_vm9, %v1797_v51  ;;  %v3876_v14 = vpack.c.bf16 %v3856_v45, %v3855_v16  ;;  %vm15644_vm9 = vmmov %vm15639_vm0 }
 0x243   : > { %3766 = vrot.lane.b32.xlu1 %v3671_v39, %s15206_s30  ;;  %s9351_s30 = smov 16  }
 0x244   : > { %8703 = vmatmul.mubr.msk.bf16.gmra.mrb[20].mxu0 %vm15630_vm13, %v3876_v14  ;;  %v2180_v32 = vpop.permute.xlu0 %2179  ;;  %vm15645_vm13 = vmmov %vm15643_vm11 }
 0x245   : > { %v1801_v3 = vpop.permute.xlu1 %1800  ;;  %2252 = vst.msk [vmem:[#allocation5 + $0xc0] sm:$0xff] %vm15631_vm10, %v2180_v32  ;;  %vm15646_vm10 = vmmov %vm15643_vm11 }
 0x246   : > { %1870 = vst.msk [vmem:[#allocation5 + $0xd8] sm:$0xff] %vm15632_vm2, %v1801_v3  ;;  %vm15647_vm2 = vcmask 195752  }
 0x248   : > { %v2184_v50 = vpop.permute.xlu0 %2183 }
 0x249   : > { %v2182_v4 = vpop.permute.xlu1 %2181  ;;  %2254 = vst.msk [vmem:[#allocation5 + $0xd0] sm:$0xff] %vm15633_vm1, %v2184_v50  ;;  %vm15648_vm1 = vmmov %vm15646_vm10 }
 0x24a   : > { %2253 = vst.msk [vmem:[#allocation5 + $0xc8] sm:$0xff] %vm15634_vm5, %v2182_v4  ;;  %vm15649_vm5 = vmmov %vm15647_vm2 }
 0x24c   : > { %v2469_v56 = vpop.permute.xlu0 %2468 }
 0x24d   : > { %v2186_v21 = vpop.permute.xlu1 %2185  ;;  %2541 = vst.msk [vmem:[#allocation5 + $0xc0] sm:$0xff] %vm15635_vm14, %v2469_v56  ;;  %vm15650_vm14 = vmmov %vm15647_vm2 }
 0x24e   : > { %2255 = vst.msk [vmem:[#allocation5 + $0xd8] sm:$0xff] %vm15636_vm15, %v2186_v21  ;;  %vm15651_vm15 = vmmov %vm15647_vm2 }
 0x250   : > { %v2473_v18 = vpop.permute.xlu0 %2472 }
 0x251   : > { %v2471_v61 = vpop.permute.xlu1 %2470  ;;  %2543 = vst.msk [vmem:[#allocation5 + $0xd0] sm:$0xff] %vm15637_vm8, %v2473_v18  ;;  %vm15652_vm8 = vcmask 48152  }
 0x252   : > { %2542 = vst.msk [vmem:[#allocation5 + $0xc8] sm:$0xff] %vm15638_vm6, %v2471_v61  ;;  %vm15653_vm6 = vmmov %vm15652_vm8 }
 0x254   : > { %v2758_v17 = vpop.permute.xlu0 %2757 }
 0x255   : > { %v2475_v24 = vpop.permute.xlu1 %2474  ;;  %2830 = vst.msk [vmem:[#allocation5 + $0xc0] sm:$0xff] %vm15639_vm0, %v2758_v17  ;;  %vm15654_vm0 = vmmov %vm15653_vm6 }
 0x256   : > { %2544 = vst.msk [vmem:[#allocation5 + $0xd8] sm:$0xff] %vm15640_vm12, %v2475_v24  ;;  %vm15655_vm12 = vcmask 261120  }
 0x257   : > { %v8692_v34 = vpop.f32.mrb[8].mxu0 }
 0x258   : > { %v4124_v13 = vmul.f32 %v8692_v34, %v12141_v11  ;;  %v4012_v33 = vpop.f32.mrb[9].mxu0  ;;  %v2762_v28 = vpop.permute.xlu0 %2761 }
 0x259   : > { %v4122_v41 = vmul.f32 %v12141_v11, %v4012_v33  ;;  %v2760_v26 = vpop.permute.xlu1 %2759  ;;  %v8693_v25 = vpop.f32.mrb[10].mxu0  ;;  %2832 = vst.msk [vmem:[#allocation5 + $0xd0] sm:$0xff] %vm15641_vm4, %v2762_v28  ;;  %vm15656_vm4 = vcmask 72752  }
 0x25a   : > { %v4163_v59 = vadd.f32 %v12156_v52, %v4124_v13  ;;  %2831 = vst.msk [vmem:[#allocation5 + $0xc8] sm:$0xff] %vm15642_vm7, %v2760_v26  ;;  %v4125_v60 = vmul.f32 %v8693_v25, %v12141_v11  ;;  %v4015_v55 = vpop.f32.mrb[11].mxu0  ;;  %vm15657_vm7 = vmmov %vm15654_vm0 }
 0x25b   : > { %v4161_v42 = vadd.f32 %v12156_v52, %v4122_v41  ;;  %v4123_v58 = vmul.f32 %v12141_v11, %v4015_v55 }
 0x25c   : > { %v4164_v15 = vadd.f32 %v12156_v52, %v4125_v60  ;;  %v3175_v35 = vpop.permute.xlu0 %3174  ;;  %v4195_v29 = vmax.f32 %v4163_v59, 0.0  ;;  %v12791_v59 = vld [vmem:[%s14984_s2] ss:$0 sm:$0xff] }
 0x25d   : > { %v4162_v38 = vadd.f32 %v12156_v52, %v4123_v58  ;;  %v2764_v46 = vpop.permute.xlu1 %2763  ;;  %3247 = vst.msk [vmem:[#allocation5 + $0xc0] sm:$0xff] %vm15643_vm11, %v3175_v35  ;;  %v4193_v40 = vmax.f32 %v4161_v42, 0.0  ;;  %vm15658_vm11 = vmmov %vm15656_vm4 }
 0x25e   : > { %v4196_v37 = vmax.f32 %v4164_v15, 0.0  ;;  %2833 = vst.msk [vmem:[#allocation5 + $0xd8] sm:$0xff] %vm15644_vm9, %v2764_v46  ;;  %vm15659_vm9 = vmmov %vm15656_vm4 }
 0x25f   : > { %v4194_v31 = vmax.f32 %v4162_v38, 0.0  ;;  %v12799_v38 = vld [vmem:[%s14985_s3] ss:$0 sm:$0xff] }
 0x260   : > { %v12754_v36 = vpack.c.bf16 %v4196_v37, %v4195_v29  ;;  %v3179_v47 = vpop.permute.xlu0 %3178 }
 0x261   : > { %v12756_v30 = vpack.c.bf16 %v4194_v31, %v4193_v40  ;;  %v3177_v11 = vpop.permute.xlu1 %3176  ;;  %3249 = vst.msk [vmem:[#allocation5 + $0xd0] sm:$0xff] %vm15645_vm13, %v3179_v47  ;;  %vm15660_vm13 = vmmov %vm15655_vm12 }
 0x262   : > { %3248 = vst.msk [vmem:[#allocation5 + $0xc8] sm:$0xff] %vm15646_vm10, %v3177_v11  ;;  %vm15661_vm10 = vcmask 97352  }
 0x264   : > { %v3464_v52 = vpop.permute.xlu0 %3463 }
 0x265   : > { %v3181_v43 = vpop.permute.xlu1 %3180  ;;  %3536 = vst.msk [vmem:[#allocation5 + $0xc0] sm:$0xff] %vm15647_vm2, %v3464_v52  ;;  %vm15662_vm2 = vmmov %vm15656_vm4 }
 0x266   : > { %3250 = vst.msk [vmem:[#allocation5 + $0xd8] sm:$0xff] %vm15648_vm1, %v3181_v43  ;;  %vm15663_vm1 = vmmov %vm15661_vm10 }
 0x268   : > { %v3468_v23 = vpop.permute.xlu0 %3467 }
 0x269   : > { %v3466_v22 = vpop.permute.xlu1 %3465  ;;  %3538 = vst.msk [vmem:[#allocation5 + $0xd0] sm:$0xff] %vm15649_vm5, %v3468_v23  ;;  %vm15664_vm5 = vmmov %vm15663_vm1 }
 0x26a   : > { %3537 = vst.msk [vmem:[#allocation5 + $0xc8] sm:$0xff] %vm15650_vm14, %v3466_v22  ;;  %vm15665_vm14 = vcmask 121952  }
 0x26c   : > { %v3753_v19 = vpop.permute.xlu0 %3752 }
 0x26d   : > { %v3470_v48 = vpop.permute.xlu1 %3469  ;;  %3825 = vst.msk [vmem:[#allocation5 + $0xc0] sm:$0xff] %vm3800_vm3, %v3753_v19 }
 0x26e   : > { %3539 = vst.msk [vmem:[#allocation5 + $0xd8] sm:$0xff] %vm15651_vm15, %v3470_v48  ;;  %vm15666_vm15 = vmmov %vm15663_vm1 }
 0x270   : > { %v1418_v12 = vpop.permute.xlu0 %1417 }
 0x271   : > { %v3755_v62 = vpop.permute.xlu1 %3754  ;;  %1486 = vst.msk [vmem:[#allocation5 + $0xe0] sm:$0xff] %vm15652_vm8, %v1418_v12  ;;  %vm15667_vm8 = vmmov %vm15665_vm14 }
 0x272   : > { %3826 = vst.msk [vmem:[#allocation5 + $0xc8] sm:$0xff] %vm3800_vm3, %v3755_v62 }
 0x274   : > { %v3757_v20 = vpop.permute.xlu0 %3756  ;;  %v3857_v16 = vld [vmem:[#allocation5 + $0xc0] sm:$0xff] }
 0x275   : > { %v1420_v44 = vpop.permute.xlu1 %1419  ;;  %3827 = vst.msk [vmem:[#allocation5 + $0xd0] sm:$0xff] %vm3800_vm3, %v3757_v20 }
 0x276   : > { %1487 = vst.msk [vmem:[#allocation5 + $0xe8] sm:$0xff] %vm15653_vm6, %v1420_v44  ;;  %vm15668_vm6 = vmmov %vm15667_vm8 }
 0x278   : > { %v1422_v39 = vpop.permute.xlu0 %1421 }
 0x279   : > { %v3759_v10 = vpop.permute.xlu1 %3758  ;;  %v3858_v51 = vld [vmem:[#allocation5 + $0xc8] sm:$0xff]  ;;  %1488 = vst.msk [vmem:[#allocation5 + $0xf0] sm:$0xff] %vm15654_vm0, %v1422_v39  ;;  %vm15669_vm0 = vcmask 146552  }
 0x27a   : > { %3828 = vst.msk [vmem:[#allocation5 + $0xd8] sm:$0xff] %vm3800_vm3, %v3759_v10  ;;  %v3877_v45 = vpack.c.bf16 %v3858_v51, %v3857_v16 }
 0x27c   : > { %8706 = vmatprep.mubr.msk.bf16.mxu0 %vm15655_vm12, %v3877_v45  ;;  %v1803_v14 = vpop.permute.xlu0 %1802  ;;  %v3859_v3 = vld [vmem:[#allocation5 + $0xd0] sm:$0xff]  ;;  %vm15670_vm12 = vmmov %vm15668_vm6 }
 0x27d   : > { %v1424_v32 = vpop.permute.xlu1 %1423  ;;  %1871 = vst.msk [vmem:[#allocation5 + $0xe0] sm:$0xff] %vm15656_vm4, %v1803_v14  ;;  %vm15671_vm4 = vmmov %vm15669_vm0 }
 0x27e   : > { %1489 = vst.msk [vmem:[#allocation5 + $0xf8] sm:$0xff] %vm15657_vm7, %v1424_v32  ;;  %vm15672_vm7 = vmmov %vm15669_vm0 }
 0x280   : > { %v1807_v50 = vpop.permute.xlu0 %1806 }
 0x281   : > { %v1805_v4 = vpop.permute.xlu1 %1804  ;;  %v3860_v56 = vld [vmem:[#allocation5 + $0xd8] sm:$0xff]  ;;  %1873 = vst.msk [vmem:[#allocation5 + $0xf0] sm:$0xff] %vm15658_vm11, %v1807_v50  ;;  %vm15673_vm11 = vcmask 171152  }
 0x282   : > { %1872 = vst.msk [vmem:[#allocation5 + $0xe8] sm:$0xff] %vm15659_vm9, %v1805_v4  ;;  %v3878_v21 = vpack.c.bf16 %v3860_v56, %v3859_v3  ;;  %vm15674_vm9 = vmmov %vm15669_vm0 }
 0x284   : > { %8707 = vmatmul.mubr.msk.bf16.gmra.mrb[24].mxu0 %vm15660_vm13, %v3878_v21  ;;  %v2188_v18 = vpop.permute.xlu0 %2187  ;;  %vm15675_vm13 = vmmov %vm15673_vm11 }
 0x285   : > { %v1809_v61 = vpop.permute.xlu1 %1808  ;;  %2256 = vst.msk [vmem:[#allocation5 + $0xe0] sm:$0xff] %vm15661_vm10, %v2188_v18  ;;  %vm15676_vm10 = vmmov %vm15673_vm11 }
 0x286   : > { %1874 = vst.msk [vmem:[#allocation5 + $0xf8] sm:$0xff] %vm15662_vm2, %v1809_v61  ;;  %vm15677_vm2 = vcmask 195752  }
 0x288   : > { %v2192_v17 = vpop.permute.xlu0 %2191 }
 0x289   : > { %v2190_v24 = vpop.permute.xlu1 %2189  ;;  %2258 = vst.msk [vmem:[#allocation5 + $0xf0] sm:$0xff] %vm15663_vm1, %v2192_v17  ;;  %vm15678_vm1 = vmmov %vm15676_vm10 }
 0x28a   : > { %2257 = vst.msk [vmem:[#allocation5 + $0xe8] sm:$0xff] %vm15664_vm5, %v2190_v24  ;;  %vm15679_vm5 = vmmov %vm15677_vm2 }
 0x28c   : > { %v2477_v34 = vpop.permute.xlu0 %2476 }
 0x28d   : > { %v2194_v13 = vpop.permute.xlu1 %2193  ;;  %2545 = vst.msk [vmem:[#allocation5 + $0xe0] sm:$0xff] %vm15665_vm14, %v2477_v34  ;;  %vm15680_vm14 = vmmov %vm15677_vm2 }
 0x28e   : > { %2259 = vst.msk [vmem:[#allocation5 + $0xf8] sm:$0xff] %vm15666_vm15, %v2194_v13  ;;  %vm15681_vm15 = vmmov %vm15677_vm2 }
 0x290   : > { %v2481_v33 = vpop.permute.xlu0 %2480 }
 0x291   : > { %v2479_v28 = vpop.permute.xlu1 %2478  ;;  %2547 = vst.msk [vmem:[#allocation5 + $0xf0] sm:$0xff] %vm15667_vm8, %v2481_v33  ;;  %vm15682_vm8 = vcmask 261120  }
 0x292   : > { %2546 = vst.msk [vmem:[#allocation5 + $0xe8] sm:$0xff] %vm15668_vm6, %v2479_v28  ;;  %vm15683_vm6 = vmmov %vm15682_vm8 }
 0x294   : > { %v2766_v41 = vpop.permute.xlu0 %2765 }
 0x295   : > { %v2483_v26 = vpop.permute.xlu1 %2482  ;;  %2834 = vst.msk [vmem:[#allocation5 + $0xe0] sm:$0xff] %vm15669_vm0, %v2766_v41 }
 0x296   : > { %2548 = vst.msk [vmem:[#allocation5 + $0xf8] sm:$0xff] %vm15670_vm12, %v2483_v26 }
 0x297   : > { %v8696_v25 = vpop.f32.mrb[12].mxu0 }
 0x298   : > { %v4128_v60 = vmul.f32 %v12791_v59, %v8696_v25  ;;  %v4028_v55 = vpop.f32.mrb[13].mxu0  ;;  %v2770_v42 = vpop.permute.xlu0 %2769 }
 0x299   : > { %v4126_v58 = vmul.f32 %v12791_v59, %v4028_v55  ;;  %v2768_v15 = vpop.permute.xlu1 %2767  ;;  %v8697_v35 = vpop.f32.mrb[14].mxu0  ;;  %2836 = vst.msk [vmem:[#allocation5 + $0xf0] sm:$0xff] %vm15671_vm4, %v2770_v42 }
 0x29a   : > { %v4167_v46 = vadd.f32 %v12799_v38, %v4128_v60  ;;  %2835 = vst.msk [vmem:[#allocation5 + $0xe8] sm:$0xff] %vm15672_vm7, %v2768_v15  ;;  %v4129_v29 = vmul.f32 %v12791_v59, %v8697_v35  ;;  %v4031_v37 = vpop.f32.mrb[15].mxu0 }
 0x29b   : > { %v4165_v40 = vadd.f32 %v12799_v38, %v4126_v58  ;;  %v4127_v31 = vmul.f32 %v12791_v59, %v4031_v37 }
 0x29c   : > { %v4168_v47 = vadd.f32 %v12799_v38, %v4129_v29  ;;  %v3183_v11 = vpop.permute.xlu0 %3182  ;;  %v4199_v23 = vmax.f32 %v4167_v46, 0.0 }
 0x29d   : > { %v4166_v52 = vadd.f32 %v12799_v38, %v4127_v31  ;;  %v2772_v43 = vpop.permute.xlu1 %2771  ;;  %3251 = vst.msk [vmem:[#allocation5 + $0xe0] sm:$0xff] %vm15673_vm11, %v3183_v11  ;;  %v4197_v19 = vmax.f32 %v4165_v40, 0.0 }
 0x29e   : > { %v4200_v22 = vmax.f32 %v4168_v47, 0.0  ;;  %2837 = vst.msk [vmem:[#allocation5 + $0xf8] sm:$0xff] %vm15674_vm9, %v2772_v43 }
 0x29f   : > { %v4198_v48 = vmax.f32 %v4166_v52, 0.0 }
 0x2a0   : > { %v12810_v12 = vpack.c.bf16 %v4200_v22, %v4199_v23  ;;  %v3187_v62 = vpop.permute.xlu0 %3186 }
 0x2a1   : > { %v12812_v20 = vpack.c.bf16 %v4198_v48, %v4197_v19  ;;  %v3185_v44 = vpop.permute.xlu1 %3184  ;;  %3253 = vst.msk [vmem:[#allocation5 + $0xf0] sm:$0xff] %vm15675_vm13, %v3187_v62 }
 0x2a2   : > { %3252 = vst.msk [vmem:[#allocation5 + $0xe8] sm:$0xff] %vm15676_vm10, %v3185_v44 }
 0x2a4   : > { %v3472_v16 = vpop.permute.xlu0 %3471 }
 0x2a5   : > { %v3189_v39 = vpop.permute.xlu1 %3188  ;;  %3540 = vst.msk [vmem:[#allocation5 + $0xe0] sm:$0xff] %vm15677_vm2, %v3472_v16 }
 0x2a6   : > { %3254 = vst.msk [vmem:[#allocation5 + $0xf8] sm:$0xff] %vm15678_vm1, %v3189_v39  ;;  %v12856_v39 = vshra.s32 %v9634_v2, 3 }
 0x2a8   : > { %v3476_v10 = vpop.permute.xlu0 %3475 }
 0x2a9   : > { %v3474_v51 = vpop.permute.xlu1 %3473  ;;  %3542 = vst.msk [vmem:[#allocation5 + $0xf0] sm:$0xff] %vm15679_vm5, %v3476_v10  ;;  %v12859_v10 = vand.u32 127, %v15040_v0 }
 0x2aa   : > { %3541 = vst.msk [vmem:[#allocation5 + $0xe8] sm:$0xff] %vm15680_vm14, %v3474_v51 }
 0x2ac   : > { %v3761_v45 = vpop.permute.xlu0 %3760 }
 0x2ad   : > { %v3478_v14 = vpop.permute.xlu1 %3477  ;;  %3829 = vst.msk [vmem:[#allocation5 + $0xe0] sm:$0xff] %vm3800_vm3, %v3761_v45 }
 0x2ae   : > { %3543 = vst.msk [vmem:[#allocation5 + $0xf8] sm:$0xff] %vm15681_vm15, %v3478_v14 }
 0x2b0   : > { %v3765_v32 = vpop.permute.xlu0 %3764 }
 0x2b1   : > { %v3763_v3 = vpop.permute.xlu1 %3762  ;;  %3831 = vst.msk [vmem:[#allocation5 + $0xf0] sm:$0xff] %vm3800_vm3, %v3765_v32 }
 0x2b2   : > { %3830 = vst.msk [vmem:[#allocation5 + $0xe8] sm:$0xff] %vm3800_vm3, %v3763_v3  ;;  %v12862_v3 = vand.u32 7, %v9634_v2 }
 0x2b4   : > { %v3861_v4 = vld [vmem:[#allocation5 + $0xe0] sm:$0xff] }
 0x2b5   : > { %v3767_v50 = vpop.permute.xlu1 %3766 }
 0x2b6   : > { %3832 = vst.msk [vmem:[#allocation5 + $0xf8] sm:$0xff] %vm3800_vm3, %v3767_v50  ;;  %v4236_v50 = vmul.u32 2, %v12856_v39 }
 0x2b8   : > { %v3863_v18 = vld [vmem:[#allocation5 + $0xf0] sm:$0xff] }
 0x2b9   : > { %v3862_v56 = vld [vmem:[#allocation5 + $0xe8] sm:$0xff] }
 0x2ba   : > { %v3879_v21 = vpack.c.bf16 %v3862_v56, %v3861_v4 }
 0x2bc   : > { %8710 = vmatprep.mubr.msk.bf16.mxu0 %vm15682_vm8, %v3879_v21  ;;  %v4244_v21 = vmul.u32 16, %v4236_v50 }
 0x2bd   : > { %v3864_v61 = vld [vmem:[#allocation5 + $0xf8] sm:$0xff] }
 0x2be   : > { %v3880_v17 = vpack.c.bf16 %v3864_v61, %v3863_v18  ;;  %v4252_v18 = vmul.u32 2, %v12862_v3  ;;  %v12873_v61 = vadd.s32 128, %v12859_v10 }
 0x2c0   : > { %8711 = vmatmul.mubr.msk.bf16.gmra.mrb[28].mxu0 %vm15683_vm6, %v3880_v17  ;;  %v12875_v17 = vadd.s32 %v4252_v18, %v4244_v21 }
 0x2c2   : > { %vm4269_vm3 = vcmp.eq.s32.totalorder %v12873_v61, %v12875_v17  ;;  %vm4268_vm12 = vcmp.eq.s32.totalorder %v12859_v10, %v12875_v17 }
 0x2d7   : > { %v8700_v24 = vpop.f32.mrb[16].mxu0 }
 0x2d8   : > { %v4132_v34 = vmul.f32 %v12791_v59, %v8700_v24  ;;  %v4044_v13 = vpop.f32.mrb[17].mxu0  ;;  %v9350_v24 = vmov 1.0  }
 0x2d9   : > { %v4130_v33 = vmul.f32 %v12791_v59, %v4044_v13  ;;  %v8701_v28 = vpop.f32.mrb[18].mxu0  ;;  %8086 = vmatprep.mubr.msk.f32.mxu1 %vm4269_vm3, %v9350_v24  ;;  %v4566_v13 = vadd.s32 1, %v4236_v50 }
 0x2da   : > { %v4171_v41 = vadd.f32 %v12799_v38, %v4132_v34  ;;  %v4133_v26 = vmul.f32 %v12791_v59, %v8701_v28  ;;  %v4047_v25 = vpop.f32.mrb[19].mxu0  ;;  %v4405_v34 = vadd.s32 1, %v4252_v18 }
 0x2db   : > { %v4169_v60 = vadd.f32 %v12799_v38, %v4130_v33  ;;  %v4131_v55 = vmul.f32 %v12791_v59, %v4047_v25  ;;  %v4574_v28 = vmul.u32 16, %v4566_v13 }
 0x2dc   : > { %v4172_v42 = vadd.f32 %v12799_v38, %v4133_v26  ;;  %v4203_v15 = vmax.f32 %v4171_v41, 0.0  ;;  %v12886_v33 = vadd.s32 %v4405_v34, %v4244_v21 }
 0x2dd   : > { %v4170_v58 = vadd.f32 %v12799_v38, %v4131_v55  ;;  %v4201_v46 = vmax.f32 %v4169_v60, 0.0  ;;  %v12888_v41 = vadd.s32 %v4574_v28, %v4252_v18 }
 0x2de   : > { %v4204_v35 = vmax.f32 %v4172_v42, 0.0 }
 0x2df   : > { %v4202_v29 = vmax.f32 %v4170_v58, 0.0  ;;  %vm4591_vm0 = vcmp.eq.s32.totalorder %v12873_v61, %v12888_v41  ;;  %vm4590_vm4 = vcmp.eq.s32.totalorder %v12859_v10, %v12888_v41 }
 0x2e0   : > { %v12835_v37 = vpack.c.bf16 %v4204_v35, %v4203_v15  ;;  %8118 = vmatprep.mubr.msk.f32.mxu0 %vm4591_vm0, %v9350_v24 }
 0x2e1   : > { %v12837_v40 = vpack.c.bf16 %v4202_v29, %v4201_v46 }
 0x2e3   : > { %8847 = vmatprep.subr.bf16.mxu1 %v12837_v40  ;;  %8911 = vmatprep.subr.bf16.mxu0 %v12837_v40 }
 0x2e4   : > { %8849 = vmatpush3.bf16.msra.mxu1 %v12210_v27  ;;  %8913 = vmatpush3.bf16.msra.mxu0 %v12210_v27 }
 0x2e5   : > { %8851 = vmatprep.subr.bf16.mxu1 %v12835_v37  ;;  %8915 = vmatprep.subr.bf16.mxu0 %v12835_v37 }
 0x2e8   : > { %8853 = vmatpush3.bf16.msra.mxu1 %v12195_v8  ;;  %8917 = vmatpush3.bf16.msra.mxu0 %v12195_v8 }
 0x317   : > { %v8704_v31 = vpop.f32.mrb[20].mxu0 }
 0x318   : > { %v4136_v47 = vmul.f32 %v12791_v59, %v8704_v31  ;;  %v4060_v11 = vpop.f32.mrb[21].mxu0 }
 0x319   : > { %v4134_v52 = vmul.f32 %v12791_v59, %v4060_v11  ;;  %v8705_v43 = vpop.f32.mrb[22].mxu0 }
 0x31a   : > { %v4175_v23 = vadd.f32 %v12799_v38, %v4136_v47  ;;  %v4137_v22 = vmul.f32 %v12791_v59, %v8705_v43  ;;  %v4063_v19 = vpop.f32.mrb[23].mxu0 }
 0x31b   : > { %v4173_v48 = vadd.f32 %v12799_v38, %v4134_v52  ;;  %v4135_v62 = vmul.f32 %v12791_v59, %v4063_v19 }
 0x31c   : > { %v4176_v44 = vadd.f32 %v12799_v38, %v4137_v22  ;;  %v4207_v51 = vmax.f32 %v4175_v23, 0.0 }
 0x31d   : > { %v4174_v16 = vadd.f32 %v12799_v38, %v4135_v62  ;;  %v4205_v14 = vmax.f32 %v4173_v48, 0.0  ;;  %v12907_v48 = vadd.s32 %v4574_v28, %v4405_v34 }
 0x31e   : > { %v4208_v45 = vmax.f32 %v4176_v44, 0.0 }
 0x31f   : > { %v4206_v32 = vmax.f32 %v4174_v16, 0.0 }
 0x320   : > { %v12865_v4 = vpack.c.bf16 %v4208_v45, %v4207_v51  ;;  %v12917_v51 = vshra.s32 %v9655_v7, 3 }
 0x321   : > { %v12867_v56 = vpack.c.bf16 %v4206_v32, %v4205_v14 }
 0x322   : > { %v4237_v28 = vmul.u32 2, %v12917_v51 }
 0x323   : > { %8855 = vmatprep.subr.bf16.mxu1 %v12867_v56  ;;  %8919 = vmatprep.subr.bf16.mxu0 %v12867_v56 }
 0x324   : > { %8857 = vmatpush3.bf16.msra.mxu1 %v12605_v54  ;;  %8921 = vmatpush3.bf16.msra.mxu0 %v12605_v54 }
 0x325   : > { %8859 = vmatprep.subr.bf16.mxu1 %v12865_v4  ;;  %8923 = vmatprep.subr.bf16.mxu0 %v12865_v4 }
 0x328   : > { %8861 = vmatpush3.bf16.msra.mxu1 %v12590_v57  ;;  %8925 = vmatpush3.bf16.msra.mxu0 %v12590_v57 }
 0x357   : > { %v8708_v26 = vpop.f32.mrb[24].mxu0 }
 0x358   : > { %v4140_v25 = vmul.f32 %v12791_v59, %v8708_v26  ;;  %v4076_v60 = vpop.f32.mrb[25].mxu0  ;;  %v12927_v26 = vshra.s32 %v9644_v5, 3 }
 0x359   : > { %v4138_v55 = vmul.f32 %v12791_v59, %v4076_v60  ;;  %v8709_v42 = vpop.f32.mrb[26].mxu0  ;;  %v12931_v60 = vand.u32 7, %v9655_v7  ;;  %v13094_v7 = vand.u32 7, %v9969_v53 }
 0x35a   : > { %v4179_v58 = vadd.f32 %v12799_v38, %v4140_v25  ;;  %v4141_v15 = vmul.f32 %v12791_v59, %v8709_v42  ;;  %v4079_v35 = vpop.f32.mrb[27].mxu0 }
 0x35b   : > { %v4177_v46 = vadd.f32 %v12799_v38, %v4138_v55  ;;  %v4139_v29 = vmul.f32 %v12791_v59, %v4079_v35 }
 0x35c   : > { %v4180_v31 = vadd.f32 %v12799_v38, %v4141_v15  ;;  %v4211_v11 = vmax.f32 %v4179_v58, 0.0  ;;  %v12933_v58 = vadd.s32 1, %v4237_v28 }
 0x35d   : > { %v4178_v47 = vadd.f32 %v12799_v38, %v4139_v29  ;;  %v4209_v43 = vmax.f32 %v4177_v46, 0.0  ;;  %v12939_v29 = vshra.s32 %v9647_v6, 3 }
 0x35e   : > { %v4212_v52 = vmax.f32 %v4180_v31, 0.0 }
 0x35f   : > { %v4210_v23 = vmax.f32 %v4178_v47, 0.0  ;;  %v12943_v47 = vmul.u32 16, %v4237_v28 }
 0x360   : > { %v12901_v22 = vpack.c.bf16 %v4212_v52, %v4211_v11  ;;  %v12949_v11 = vand.u32 7, %v9644_v5  ;;  %v15046_v52 = vmul.u32 16, %v12933_v58 }
 0x361   : > { %v12903_v19 = vpack.c.bf16 %v4210_v23, %v4209_v43  ;;  %v12957_v23 = vshra.s32 %v9953_v49, 3 }
 0x363   : > { %8863 = vmatprep.subr.bf16.mxu1 %v12903_v19  ;;  %8927 = vmatprep.subr.bf16.mxu0 %v12903_v19 }
 0x364   : > { %8865 = vmatpush3.bf16.msra.mxu1 %v12756_v30  ;;  %8929 = vmatpush3.bf16.msra.mxu0 %v12756_v30 }
 0x365   : > { %8867 = vmatprep.subr.bf16.mxu1 %v12901_v22  ;;  %8931 = vmatprep.subr.bf16.mxu0 %v12901_v22 }
 0x368   : > { %8869 = vmatpush3.bf16.msra.mxu1 %v12754_v36  ;;  %8933 = vmatpush3.bf16.msra.mxu0 %v12754_v36 }
 0x393   : > { %v8712_v62 = vpop.f32.mrb[28].mxu0 }
 0x394   : > { %v4144_v44 = vmul.f32 %v12791_v59, %v8712_v62  ;;  %v4092_v16 = vpop.f32.mrb[29].mxu0  ;;  %v4239_v62 = vmul.u32 2, %v12939_v29 }
 0x395   : > { %v4142_v45 = vmul.f32 %v12791_v59, %v4092_v16  ;;  %v8713_v14 = vpop.f32.mrb[30].mxu0  ;;  %v12969_v16 = vmul.u32 2, %v12949_v11 }
 0x396   : > { %v4183_v32 = vadd.f32 %v12799_v38, %v4144_v44  ;;  %v4145_v50 = vmul.f32 %v12791_v59, %v8713_v14  ;;  %v4095_v21 = vpop.f32.mrb[31].mxu0 }
 0x397   : > { %v4181_v18 = vadd.f32 %v12799_v38, %v4142_v45  ;;  %v4143_v34 = vmul.f32 %v12791_v59, %v4095_v21  ;;  %v4238_v59 = vmul.u32 2, %v12927_v26  ;;  %v12972_v45 = vand.u32 7, %v9647_v6 }
 0x398   : > { %v4184_v13 = vadd.f32 %v12799_v38, %v4145_v50  ;;  %v4215_v55 = vmax.f32 %v4183_v32, 0.0  ;;  %v12978_v50 = vadd.s32 1, %v4239_v62  ;;  %v4240_v21 = vmul.u32 2, %v12957_v23 }
 0x399   : > { %v4182_v25 = vadd.f32 %v12799_v38, %v4143_v34  ;;  %v4213_v15 = vmax.f32 %v4181_v18, 0.0  ;;  %v12946_v38 = vmul.u32 2, %v12931_v60  ;;  %v12952_v43 = vadd.s32 1, %v4238_v59 }
 0x39a   : > { %v4216_v42 = vmax.f32 %v4184_v13, 0.0  ;;  %v12966_v44 = vmul.u32 16, %v4238_v59  ;;  %v12986_v6 = vand.u32 7, %v9953_v49  ;;  %v12989_v18 = vshra.s32 %v9929_v9, 3 }
 0x39b   : > { %v4214_v35 = vmax.f32 %v4182_v25, 0.0  ;;  %v4261_v5 = vadd.s32 %v12946_v38, %v12943_v47  ;;  %v4583_v14 = vadd.s32 %v15046_v52, %v12946_v38  ;;  %v15045_v32 = vmul.u32 16, %v12952_v43 }
 0x39c   : > { %v12935_v46 = vpack.c.bf16 %v4216_v42, %v4215_v55  ;;  %v4262_v34 = vadd.s32 %v12969_v16, %v12966_v44  ;;  %v12997_v13 = vmul.u32 16, %v4239_v62  ;;  %v13000_v17 = vmul.u32 2, %v12972_v45 }
 0x39d   : > { %v12941_v31 = vpack.c.bf16 %v4214_v35, %v4213_v15  ;;  %vm4271_vm7 = vcmp.eq.s32.totalorder %v12873_v61, %v4261_v5  ;;  %vm4593_vm11 = vcmp.eq.s32.totalorder %v12873_v61, %v4583_v14  ;;  %v4584_v49 = vadd.s32 %v15045_v32, %v12969_v16 }
 0x39e   : > { %v15044_v41 = vmul.u32 16, %v12978_v50  ;;  %v13007_v28 = vadd.s32 1, %v4240_v21  ;;  %vm4270_vm9 = vcmp.eq.s32.totalorder %v12859_v10, %v4261_v5  ;;  %v13011_v25 = vmul.u32 16, %v4240_v21 }
 0x39f   : > { %8871 = vmatprep.subr.bf16.mxu1 %v12941_v31  ;;  %8935 = vmatprep.subr.bf16.mxu0 %v12941_v31  ;;  %v13017_v55 = vmul.u32 2, %v12986_v6  ;;  %v4241_v42 = vmul.u32 2, %v12989_v18  ;;  %v13021_v15 = vshra.s32 %v9996_v63, 3  ;;  %vm4592_vm13 = vcmp.eq.s32.totalorder %v12859_v10, %v4583_v14 }
 0x3a0   : > { %8873 = vmatpush3.bf16.msra.mxu1 %v12812_v20  ;;  %8937 = vmatpush3.bf16.msra.mxu0 %v12812_v20  ;;  %vm4273_vm10 = vcmp.eq.s32.totalorder %v12873_v61, %v4262_v34  ;;  %v4263_v35 = vadd.s32 %v13000_v17, %v12997_v13  ;;  %v13029_v59 = vand.u32 7, %v9929_v9  ;;  %vm4595_vm2 = vcmp.eq.s32.totalorder %v12873_v61, %v4584_v49 }
 0x3a1   : > { %8875 = vmatprep.subr.bf16.mxu1 %v12935_v46  ;;  %8939 = vmatprep.subr.bf16.mxu0 %v12935_v46  ;;  %15684 = vst [vmem:[#allocation19_spill] sm:$0xff] %v13021_v15  ;;  %v4585_v62 = vadd.s32 %v15044_v41, %v13000_v17  ;;  %v15049_v21 = vmul.u32 16, %v13007_v28  ;;  %v13039_v0 = vadd.s32 1, %v4241_v42  ;;  %vm4272_vm1 = vcmp.eq.s32.totalorder %v12859_v10, %v4262_v34 }
 0x3a2   : > { %v4264_v9 = vadd.s32 %v13017_v55, %v13011_v25  ;;  %v4242_v14 = vmul.u32 2, %v13021_v15  ;;  %vm4594_vm5 = vcmp.eq.s32.totalorder %v12859_v10, %v4584_v49  ;;  %vm4275_vm14 = vcmp.eq.s32.totalorder %v12873_v61, %v4263_v35 }
 0x3a3   : > { %v13057_v5 = vmul.u32 16, %v4241_v42  ;;  %v13060_v41 = vmul.u32 2, %v13029_v59  ;;  %v13063_v32 = vand.u32 7, %v9996_v63  ;;  %vm4597_vm15 = vcmp.eq.s32.totalorder %v12873_v61, %v4585_v62 }
 0x3a4   : > { %8877 = vmatpush3.bf16.msra.mxu1 %v12810_v12  ;;  %8941 = vmatpush3.bf16.msra.mxu0 %v12810_v12  ;;  %v4586_v52 = vadd.s32 %v15049_v21, %v13017_v55  ;;  %v13073_v42 = vadd.s32 1, %v4242_v14  ;;  %vm4274_vm8 = vcmp.eq.s32.totalorder %v12859_v10, %v4263_v35  ;;  %vm4277_vm6 = vcmp.eq.s32.totalorder %v12873_v61, %v4264_v9 }
 0x3a5   : > { %8879 = vmatprep.subr.bf16.mxu1 %v12837_v40  ;;  %v4243_v63 = vmul.u32 2, %v13052_v1  ;;  %vm4596_vm3 = vcmp.eq.s32.totalorder %v12859_v10, %v4585_v62  ;;  %v4265_v34 = vadd.s32 %v13060_v41, %v13057_v5  ;;  %v13088_v49 = vmul.u32 16, %v4242_v14 }
 0x3a6   : > { %v13091_v21 = vmul.u32 2, %v13063_v32  ;;  %vm4599_vm0 = vcmp.eq.s32.totalorder %v12873_v61, %v4586_v52  ;;  %v15685_v35 = vmul.u32 16, %v13039_v0 }
 0x3a7   : > { %8087 = vmatmul.mubr.msk.f32.vlgmr.msra.gmra.mrb[0].mxu1 %vm4268_vm12, %v9350_v24  ;;  %8119 = vmatmul.mubr.msk.f32.vlgmr.msra.gmra.mrb[32].mxu0 %vm4590_vm4, %v9350_v24  ;;  %v15054_v15 = vmul.u32 16, %v13073_v42  ;;  %v13104_v14 = vadd.s32 1, %v4243_v63  ;;  %vm4276_vm12 = vcmp.eq.s32.totalorder %v12859_v10, %v4264_v9  ;;  %vm4598_vm4 = vcmp.eq.s32.totalorder %v12859_v10, %v4586_v52 }
 0x3a8   : > { %8881 = vmatpush3.bf16.msra.mxu1 %v12210_v27  ;;  %8088 = vmatprep.mubr.msk.f32.mxu1 %vm4271_vm7, %v9350_v24  ;;  %v4587_v2 = vadd.s32 %v15685_v35, %v13060_v41  ;;  %vm4279_vm7 = vcmp.eq.s32.totalorder %v12873_v61, %v4265_v34  ;;  %v4266_v53 = vadd.s32 %v13091_v21, %v13088_v49  ;;  %v13118_v62 = vmul.u32 16, %v4243_v63 }
 0x3a9   : > { %8883 = vmatprep.subr.bf16.mxu1 %v12835_v37  ;;  %8120 = vmatprep.mubr.msk.f32.mxu0 %vm4593_vm11, %v9350_v24  ;;  %v13121_v35 = vmul.u32 2, %v13094_v7  ;;  %v4588_v52 = vadd.s32 %v15054_v15, %v13091_v21  ;;  %v4581_v9 = vmul.u32 16, %v13104_v14  ;;  %v13322_v14 = vadd.s32 1, %v13094_v7 }
 0x3aa   : > { %vm4601_vm11 = vcmp.eq.s32.totalorder %v12873_v61, %v4587_v2 }
 0x3ab   : > { %8089 = vmatmul.mubr.msk.f32.gmra.mrb[2].mxu1 %vm4270_vm9, %v9350_v24  ;;  %8121 = vmatmul.mubr.msk.f32.gmra.mrb[34].mxu0 %vm4592_vm13, %v9350_v24  ;;  %vm4278_vm9 = vcmp.eq.s32.totalorder %v12859_v10, %v4265_v34  ;;  %vm4600_vm13 = vcmp.eq.s32.totalorder %v12859_v10, %v4587_v2  ;;  %v4267_v63 = vadd.s32 %v13121_v35, %v13118_v62  ;;  %v13153_v2 = vadd.s32 1, %v12946_v38 }
 0x3ac   : > { %8885 = vmatpush3.bf16.msra.mxu1 %v12195_v8  ;;  %8090 = vmatprep.mubr.msk.f32.mxu1 %vm4273_vm10, %v9350_v24  ;;  %vm4281_vm10 = vcmp.eq.s32.totalorder %v12873_v61, %v4266_v53  ;;  %v4589_v15 = vadd.s32 %v4581_v9, %v13121_v35  ;;  %v13169_v34 = vadd.s32 1, %v12969_v16  ;;  %v13183_v16 = vadd.s32 1, %v13000_v17 }
 0x3ad   : > { %8887 = vmatprep.subr.bf16.mxu1 %v12867_v56  ;;  %8122 = vmatprep.mubr.msk.f32.mxu0 %vm4595_vm2, %v9350_v24  ;;  %vm4603_vm2 = vcmp.eq.s32.totalorder %v12873_v61, %v4588_v52  ;;  %v4414_v38 = vadd.s32 %v13153_v2, %v12943_v47 }
 0x3ae   : > { %v4415_v47 = vadd.s32 %v13169_v34, %v12966_v44 }
 0x3af   : > { %8091 = vmatmul.mubr.msk.f32.gmra.mrb[4].mxu1 %vm4272_vm1, %v9350_v24  ;;  %8123 = vmatmul.mubr.msk.f32.gmra.mrb[36].mxu0 %vm4594_vm5, %v9350_v24  ;;  %vm4280_vm1 = vcmp.eq.s32.totalorder %v12859_v10, %v4266_v53  ;;  %vm4602_vm5 = vcmp.eq.s32.totalorder %v12859_v10, %v4588_v52 }
 0x3b0   : > { %8889 = vmatpush3.bf16.msra.mxu1 %v12605_v54  ;;  %8092 = vmatprep.mubr.msk.f32.mxu1 %vm4275_vm14, %v9350_v24  ;;  %vm4283_vm14 = vcmp.eq.s32.totalorder %v12873_v61, %v4267_v63 }
 0x3b1   : > { %8891 = vmatprep.subr.bf16.mxu1 %v12865_v4  ;;  %8124 = vmatprep.mubr.msk.f32.mxu0 %vm4597_vm15, %v9350_v24  ;;  %vm4605_vm15 = vcmp.eq.s32.totalorder %v12873_v61, %v4589_v15 }
 0x3b3   : > { %8093 = vmatmul.mubr.msk.f32.gmra.mrb[6].mxu1 %vm4274_vm8, %v9350_v24  ;;  %8125 = vmatmul.mubr.msk.f32.gmra.mrb[38].mxu0 %vm4596_vm3, %v9350_v24  ;;  %vm4282_vm8 = vcmp.eq.s32.totalorder %v12859_v10, %v4267_v63  ;;  %vm4422_vm3 = vcmp.eq.s32.totalorder %v12873_v61, %v12886_v33 }
 0x3b4   : > { %8893 = vmatpush3.bf16.msra.mxu1 %v12590_v57  ;;  %8094 = vmatprep.mubr.msk.f32.mxu1 %vm4277_vm6, %v9350_v24  ;;  %vm4604_vm6 = vcmp.eq.s32.totalorder %v12859_v10, %v4589_v15 }
 0x3b5   : > { %8895 = vmatprep.subr.bf16.mxu1 %v12903_v19  ;;  %8126 = vmatprep.mubr.msk.f32.mxu0 %vm4599_vm0, %v9350_v24  ;;  %vm4421_vm0 = vcmp.eq.s32.totalorder %v12859_v10, %v12886_v33  ;;  %v4409_v33 = vadd.s32 1, %v13017_v55 }
 0x3b7   : > { %8095 = vmatmul.mubr.msk.f32.gmra.mrb[8].mxu1 %vm4276_vm12, %v9350_v24  ;;  %8127 = vmatmul.mubr.msk.f32.gmra.mrb[40].mxu0 %vm4598_vm4, %v9350_v24  ;;  %vm4424_vm12 = vcmp.eq.s32.totalorder %v12873_v61, %v4414_v38  ;;  %vm4423_vm4 = vcmp.eq.s32.totalorder %v12859_v10, %v4414_v38 }
 0x3b8   : > { %8897 = vmatpush3.bf16.msra.mxu1 %v12756_v30  ;;  %8096 = vmatprep.mubr.msk.f32.mxu1 %vm4279_vm7, %v9350_v24  ;;  %vm4426_vm7 = vcmp.eq.s32.totalorder %v12873_v61, %v4415_v47 }
 0x3b9   : > { %8899 = vmatprep.subr.bf16.mxu1 %v12901_v22  ;;  %8128 = vmatprep.mubr.msk.f32.mxu0 %vm4601_vm11, %v9350_v24  ;;  %vm4425_vm11 = vcmp.eq.s32.totalorder %v12859_v10, %v4415_v47  ;;  %v15695_v47 = vmov 0 }
 0x3bb   : > { %8097 = vmatmul.mubr.msk.f32.gmra.mrb[10].mxu1 %vm4278_vm9, %v9350_v24  ;;  %8129 = vmatmul.mubr.msk.f32.gmra.mrb[42].mxu0 %vm4600_vm13, %v9350_v24 }
 0x3bc   : > { %8901 = vmatpush3.bf16.msra.mxu1 %v12754_v36  ;;  %8098 = vmatprep.mubr.msk.f32.mxu1 %vm4281_vm10, %v9350_v24 }
 0x3bd   : > { %8903 = vmatprep.subr.bf16.mxu1 %v12941_v31  ;;  %8130 = vmatprep.mubr.msk.f32.mxu0 %vm4603_vm2, %v9350_v24 }
 0x3bf   : > { %8099 = vmatmul.mubr.msk.f32.gmra.mrb[12].mxu1 %vm4280_vm1, %v9350_v24  ;;  %8131 = vmatmul.mubr.msk.f32.gmra.mrb[44].mxu0 %vm4602_vm5, %v9350_v24 }
 0x3c0   : > { %8905 = vmatpush3.bf16.msra.mxu1 %v12812_v20  ;;  %8100 = vmatprep.mubr.msk.f32.mxu1 %vm4283_vm14, %v9350_v24 }
 0x3c1   : > { %8907 = vmatprep.subr.bf16.mxu1 %v12935_v46  ;;  %8132 = vmatprep.mubr.msk.f32.mxu0 %vm4605_vm15, %v9350_v24 }
 0x3c3   : > { %8101 = vmatmul.mubr.msk.f32.gmra.mrb[14].mxu1 %vm4282_vm8, %v9350_v24  ;;  %8133 = vmatmul.mubr.msk.f32.gmra.mrb[46].mxu0 %vm4604_vm6, %v9350_v24 }
 0x3c4   : > { %8909 = vmatpush3.bf16.msra.mxu1 %v12810_v12  ;;  %8102 = vmatprep.mubr.msk.f32.mxu1 %vm4422_vm3, %v9350_v24  ;;  %vm4744_vm3 = vcmp.eq.s32.totalorder %v12873_v61, %v12907_v48 }
 0x3c5   : > { %8943 = vmatprep.subr.bf16.mxu1 %v12837_v40  ;;  %v4416_v40 = vadd.s32 %v13183_v16, %v12997_v13 }
 0x3c7   : > { %8103 = vmatmul.mubr.msk.f32.vlgmr.msra.gmra.mrb[16].mxu1 %vm4421_vm0, %v9350_v24  ;;  %vm4428_vm9 = vcmp.eq.s32.totalorder %v12873_v61, %v4416_v40  ;;  %vm4427_vm13 = vcmp.eq.s32.totalorder %v12859_v10, %v4416_v40  ;;  %vm4743_vm0 = vcmp.eq.s32.totalorder %v12859_v10, %v12907_v48  ;;  %v15689_v48 = vmul.u32 16, %v13007_v28 }
 0x3c8   : > { %8945 = vmatpush3.bf16.msra.mxu1 %v12210_v27  ;;  %8104 = vmatprep.mubr.msk.f32.mxu1 %vm4424_vm12, %v9350_v24  ;;  %v4417_v27 = vadd.s32 %v4409_v33, %v13011_v25 }
 0x3c9   : > { %8947 = vmatprep.subr.bf16.mxu1 %v12835_v37  ;;  %v4410_v37 = vadd.s32 1, %v13060_v41 }
 0x3ca   : > { %vm4430_vm10 = vcmp.eq.s32.totalorder %v12873_v61, %v4417_v27  ;;  %vm4429_vm2 = vcmp.eq.s32.totalorder %v12859_v10, %v4417_v27 }
 0x3cb   : > { %8105 = vmatmul.mubr.msk.f32.gmra.mrb[18].mxu1 %vm4423_vm4, %v9350_v24 }
 0x3cc   : > { %8949 = vmatpush3.bf16.msra.mxu1 %v12195_v8  ;;  %8106 = vmatprep.mubr.msk.f32.mxu1 %vm4426_vm7, %v9350_v24  ;;  %v4418_v8 = vadd.s32 %v4410_v37, %v13057_v5  ;;  %v5449_v5 = vadd.s32 1, %v13052_v1 }
 0x3cd   : > { %8951 = vmatprep.subr.bf16.mxu1 %v12867_v56  ;;  %v4411_v56 = vadd.s32 1, %v13091_v21 }
 0x3ce   : > { %vm4432_vm1 = vcmp.eq.s32.totalorder %v12873_v61, %v4418_v8  ;;  %vm4431_vm5 = vcmp.eq.s32.totalorder %v12859_v10, %v4418_v8 }
 0x3cf   : > { %8107 = vmatmul.mubr.msk.f32.gmra.mrb[20].mxu1 %vm4425_vm11, %v9350_v24 }
 0x3d0   : > { %8953 = vmatpush3.bf16.msra.mxu1 %v12605_v54  ;;  %8108 = vmatprep.mubr.msk.f32.mxu1 %vm4428_vm9, %v9350_v24  ;;  %v4419_v54 = vadd.s32 %v4411_v56, %v13088_v49 }
 0x3d1   : > { %8955 = vmatprep.subr.bf16.mxu1 %v12865_v4  ;;  %v4412_v4 = vadd.s32 1, %v13121_v35  ;;  %v13325_v35 = vadd.s32 4294967295, %v13094_v7 }
 0x3d2   : > { %vm4434_vm14 = vcmp.eq.s32.totalorder %v12873_v61, %v4419_v54  ;;  %vm4433_vm15 = vcmp.eq.s32.totalorder %v12859_v10, %v4419_v54 }
 0x3d3   : > { %8109 = vmatmul.mubr.msk.f32.gmra.mrb[22].mxu1 %vm4427_vm13, %v9350_v24 }
 0x3d4   : > { %8957 = vmatpush3.bf16.msra.mxu1 %v12590_v57  ;;  %8110 = vmatprep.mubr.msk.f32.mxu1 %vm4430_vm10, %v9350_v24  ;;  %v4420_v57 = vadd.s32 %v4412_v4, %v13118_v62 }
 0x3d5   : > { %8959 = vmatprep.subr.bf16.mxu1 %v12903_v19 }
 0x3d6   : > { %vm4436_vm8 = vcmp.eq.s32.totalorder %v12873_v61, %v4420_v57  ;;  %vm4435_vm6 = vcmp.eq.s32.totalorder %v12859_v10, %v4420_v57 }
 0x3d7   : > { %8111 = vmatmul.mubr.msk.f32.gmra.mrb[24].mxu1 %vm4429_vm2, %v9350_v24 }
 0x3d8   : > { %8961 = vmatpush3.bf16.msra.mxu1 %v12756_v30  ;;  %8112 = vmatprep.mubr.msk.f32.mxu1 %vm4432_vm1, %v9350_v24 }
 0x3d9   : > { %8963 = vmatprep.subr.bf16.mxu1 %v12901_v22 }
 0x3db   : > { %8113 = vmatmul.mubr.msk.f32.gmra.mrb[26].mxu1 %vm4431_vm5, %v9350_v24 }
 0x3dc   : > { %8965 = vmatpush3.bf16.msra.mxu1 %v12754_v36  ;;  %8114 = vmatprep.mubr.msk.f32.mxu1 %vm4434_vm14, %v9350_v24  ;;  %v15686_v36 = vmul.u32 16, %v12933_v58  ;;  %v4739_v58 = vadd.s32 %v15689_v48, %v4409_v33  ;;  %v15697_v33 = vmov 0 }
 0x3dd   : > { %8967 = vmatprep.subr.bf16.mxu1 %v12941_v31 }
 0x3de   : > { %v4736_v30 = vadd.s32 %v15686_v36, %v13153_v2  ;;  %vm4752_vm10 = vcmp.eq.s32.totalorder %v12873_v61, %v4739_v58  ;;  %vm4751_vm2 = vcmp.eq.s32.totalorder %v12859_v10, %v4739_v58 }
 0x3df   : > { %8115 = vmatmul.mubr.msk.f32.gmra.mrb[28].mxu1 %vm4433_vm15, %v9350_v24 }
 0x3e0   : > { %8969 = vmatpush3.bf16.msra.mxu1 %v12812_v20  ;;  %8116 = vmatprep.mubr.msk.f32.mxu1 %vm4436_vm8, %v9350_v24  ;;  %vm4746_vm12 = vcmp.eq.s32.totalorder %v12873_v61, %v4736_v30  ;;  %v15687_v20 = vmul.u32 16, %v12952_v43  ;;  %vm4745_vm4 = vcmp.eq.s32.totalorder %v12859_v10, %v4736_v30  ;;  %v15691_v43 = vmul.u32 16, %v13073_v42 }
 0x3e1   : > { %8971 = vmatprep.subr.bf16.mxu1 %v12935_v46  ;;  %v15690_v46 = vmul.u32 16, %v13039_v0  ;;  %v4742_v0 = vadd.s32 %v4581_v9, %v4412_v4 }
 0x3e2   : > { %v4737_v22 = vadd.s32 %v15687_v20, %v13169_v34  ;;  %v4741_v44 = vadd.s32 %v15691_v43, %v4411_v56 }
 0x3e3   : > { %8117 = vmatmul.mubr.msk.f32.gmra.mrb[30].mxu1 %vm4435_vm6, %v9350_v24  ;;  %v4740_v31 = vadd.s32 %v15690_v46, %v4410_v37  ;;  %vm4758_vm8 = vcmp.eq.s32.totalorder %v12873_v61, %v4742_v0  ;;  %vm4757_vm6 = vcmp.eq.s32.totalorder %v12859_v10, %v4742_v0 }
 0x3e4   : > { %8973 = vmatpush3.bf16.msra.mxu1 %v12810_v12  ;;  %8134 = vmatprep.mubr.msk.f32.mxu1 %vm4744_vm3, %v9350_v24  ;;  %vm4748_vm7 = vcmp.eq.s32.totalorder %v12873_v61, %v4737_v22  ;;  %v15688_v12 = vmul.u32 16, %v12978_v50  ;;  %vm4747_vm11 = vcmp.eq.s32.totalorder %v12859_v10, %v4737_v22  ;;  %vm4756_vm14 = vcmp.eq.s32.totalorder %v12873_v61, %v4741_v44 }
 0x3e5   : > { %vm4754_vm1 = vcmp.eq.s32.totalorder %v12873_v61, %v4740_v31  ;;  %vm4753_vm5 = vcmp.eq.s32.totalorder %v12859_v10, %v4740_v31  ;;  %vm4755_vm15 = vcmp.eq.s32.totalorder %v12859_v10, %v4741_v44  ;;  %vm15062_vm3 = vcmask 130048  }
 0x3e6   : > { %v4738_v19 = vadd.s32 %v15688_v12, %v13183_v16  ;;  %v15692_v50 = vmov 0.0  }
 0x3e7   : > { %8135 = vmatmul.mubr.msk.f32.vlgmr.msra.gmra.mrb[32].mxu1 %vm4743_vm0, %v9350_v24  ;;  %4890 = vst.msk [vmem:[#allocation3 + $0x8] sm:$0xff] %vm15062_vm3, %v15692_v50  ;;  %4891 = vst.msk [vmem:[#allocation3 + $0x10] sm:$0xff] %vm15062_vm3, %v15692_v50 }
 0x3e8   : > { %8136 = vmatprep.mubr.msk.f32.mxu1 %vm4746_vm12, %v9350_v24  ;;  %vm4750_vm9 = vcmp.eq.s32.totalorder %v12873_v61, %v4738_v19  ;;  %vm4749_vm13 = vcmp.eq.s32.totalorder %v12859_v10, %v4738_v19  ;;  %4889 = vst.msk [vmem:[#allocation3] sm:$0xff] %vm15062_vm3, %v15692_v50  ;;  %4892 = vst.msk [vmem:[#allocation3 + $0x18] sm:$0xff] %vm15062_vm3, %v15692_v50  ;;  %v4917_v61 = vadd.s32 4294967295, %v12856_v39 }
 0x3e9   : > { %4893 = vst.msk [vmem:[#allocation3 + $0x20] sm:$0xff] %vm15062_vm3, %v15692_v50  ;;  %4894 = vst.msk [vmem:[#allocation3 + $0x28] sm:$0xff] %vm15062_vm3, %v15692_v50 }
 0x3ea   : > { %4895 = vst.msk [vmem:[#allocation3 + $0x30] sm:$0xff] %vm15062_vm3, %v15692_v50  ;;  %4896 = vst.msk [vmem:[#allocation3 + $0x38] sm:$0xff] %vm15062_vm3, %v15692_v50  ;;  %vm4925_vm0 = vcmp.ge.s32.totalorder %v4917_v61, 0  ;;  %vm4933_vm12 = vcmp.lt.s32.totalorder %v4917_v61, 8 }
 0x3eb   : > { %8137 = vmatmul.mubr.msk.f32.gmra.mrb[34].mxu1 %vm4745_vm4, %v9350_v24  ;;  %4897 = vst.msk [vmem:[#allocation3 + $0x40] sm:$0xff] %vm15062_vm3, %v15692_v50  ;;  %4898 = vst.msk [vmem:[#allocation3 + $0x48] sm:$0xff] %vm15062_vm3, %v15692_v50 }
 0x3ec   : > { %8138 = vmatprep.mubr.msk.f32.mxu1 %vm4748_vm7, %v9350_v24  ;;  %vm13310_vm4 = vmand %vm4925_vm0, %vm4933_vm12  ;;  %vm4899_vm7 = vcmask 123904   ;;  %vm5199_vm12 = vcmp.ge.s32.totalorder %v12856_v39, 0 }
 0x3ed   : > { %4900 = vst.msk [vmem:[#allocation3 + $0x50] sm:$0x3] %vm4899_vm7, %v15692_v50  ;;  %vm5207_vm7 = vcmp.lt.s32.totalorder %v12856_v39, 8 }
 0x3ef   : > { %8139 = vmatmul.mubr.msk.f32.gmra.mrb[36].mxu1 %vm4747_vm11, %v9350_v24  ;;  %v5005_v13 = vld [vmem:[#allocation3 + $0x1] sm:$0xff]  ;;  %vm5457_vm11 = vcmp.ge.s32.totalorder %v5449_v5, 0 }
 0x3f0   : > { %8140 = vmatprep.mubr.msk.f32.mxu1 %vm4750_vm9, %v9350_v24  ;;  %v5045_v17 = vsel %vm13310_vm4, %v5005_v13, 0.0  ;;  %vm5465_vm9 = vcmp.lt.s32.totalorder %v5449_v5, 8 }
 0x3f1   : > { %5061 = vrot.lane.b32.xlu0 %v5045_v17, %s9351_s30 }
 0x3f3   : > { %8141 = vmatmul.mubr.msk.f32.gmra.mrb[38].mxu1 %vm4749_vm13, %v9350_v24  ;;  %vm15056_vm13 = vcmp.lt.s32.totalorder %v13322_v14, 8 }
 0x3f4   : > { %8142 = vmatprep.mubr.msk.f32.mxu1 %vm4752_vm10, %v9350_v24  ;;  %vm15057_vm10 = vcmp.ge.s32.totalorder %v13325_v35, 0  ;;  %v5619_v16 = vld [vmem:[#allocation3 + $0x4a] sm:$0xff] }
 0x3f7   : > { %8143 = vmatmul.mubr.msk.f32.gmra.mrb[40].mxu1 %vm4751_vm2, %v9350_v24  ;;  %vm13329_vm2 = vmand %vm5457_vm11, %vm5465_vm9 }
 0x3f8   : > { %8144 = vmatprep.mubr.msk.f32.mxu1 %vm4754_vm1, %v9350_v24  ;;  %v15696_v47 = vsel %vm13329_vm2, 4294967295, %v15695_v47  ;;  %vm13337_vm1 = vmand %vm13329_vm2, %vm15057_vm10 }
 0x3f9   : > { %v15698_v33 = vsel %vm13337_vm1, 4294967295, %v15697_v33 }
 0x3fb   : > { %8145 = vmatmul.mubr.msk.f32.gmra.mrb[42].mxu1 %vm4753_vm5, %v9350_v24  ;;  %vm5635_vm5 = vmand %vm13329_vm2, %vm15056_vm13 }
 0x3fc   : > { %8146 = vmatprep.mubr.msk.f32.mxu1 %vm4756_vm14, %v9350_v24  ;;  %v5643_v8 = vsel %vm5635_vm5, %v5619_v16, 0.0  ;;  %vm13406_vm5 = vmand %vm5199_vm12, %vm5207_vm7 }
 0x3fd   : > { %5651 = vst.msk [vmem:[#allocation6 + $0x78] sm:$0xff] %vm15062_vm3, %v5643_v8 }
 0x3ff   : > { %8147 = vmatmul.mubr.msk.f32.gmra.mrb[44].mxu1 %vm4755_vm15, %v9350_v24 }
 0x400   : > { %8148 = vmatprep.mubr.msk.f32.mxu1 %vm4758_vm8, %v9350_v24  ;;  %vm15055_vm8 = vcmask 261248  }
 0x403   : > { %8149 = vmatmul.mubr.msk.f32.gmra.mrb[46].mxu1 %vm4757_vm6, %v9350_v24  ;;  %v4919_v24 = vadd.s32 4294967295, %v12927_v26 }
 0x405   : > { %vm4935_vm13 = vcmp.lt.s32.totalorder %v4919_v24, 8 }
 0x47a   : > { %v8356_v41 = vpop.f32.mrb[0].mxu1  ;;  %v8468_v28 = vpop.f32.mrb[32].mxu0 }
 0x47b   : > { %v8357_v25 = vpop.f32.mrb[1].mxu1  ;;  %v8469_v55 = vpop.f32.mrb[33].mxu0 }
 0x47c   : > { %v13318_v15 = vadd.f32 %v8357_v25, %v8356_v41  ;;  %v8470_v21 = vadd.f32 %v8469_v55, %v8468_v28 }
 0x47e   : > { %v8359_v42 = vpop.f32.mrb[2].mxu1  ;;  %v8471_v49 = vpop.f32.mrb[34].mxu0 }
 0x47f   : > { %v8360_v53 = vpop.f32.mrb[3].mxu1  ;;  %v8472_v62 = vpop.f32.mrb[35].mxu0 }
 0x480   : > { %v8361_v52 = vadd.f32 %v8360_v53, %v8359_v42  ;;  %v8473_v9 = vadd.f32 %v8472_v62, %v8471_v49 }
 0x482   : > { %v8362_v63 = vpop.f32.mrb[4].mxu1  ;;  %v8474_v2 = vpop.f32.mrb[36].mxu0 }
 0x483   : > { %v8363_v38 = vpop.f32.mrb[5].mxu1  ;;  %v8475_v34 = vpop.f32.mrb[37].mxu0 }
 0x484   : > { %v8364_v40 = vadd.f32 %v8363_v38, %v8362_v63  ;;  %v8476_v7 = vadd.f32 %v8475_v34, %v8474_v2 }
 0x486   : > { %v8365_v27 = vpop.f32.mrb[6].mxu1  ;;  %v8477_v37 = vpop.f32.mrb[38].mxu0 }
 0x487   : > { %v8366_v56 = vpop.f32.mrb[7].mxu1  ;;  %v8478_v54 = vpop.f32.mrb[39].mxu0 }
 0x488   : > { %v8367_v4 = vadd.f32 %v8366_v56, %v8365_v27  ;;  %v8479_v57 = vadd.f32 %v8478_v54, %v8477_v37 }
 0x48a   : > { %v8368_v36 = vpop.f32.mrb[8].mxu1  ;;  %v8480_v30 = vpop.f32.mrb[40].mxu0 }
 0x48b   : > { %v8369_v20 = vpop.f32.mrb[9].mxu1  ;;  %v8481_v22 = vpop.f32.mrb[41].mxu0 }
 0x48c   : > { %v8370_v12 = vadd.f32 %v8369_v20, %v8368_v36  ;;  %v8482_v19 = vadd.f32 %v8481_v22, %v8480_v30 }
 0x48e   : > { %v8371_v48 = vpop.f32.mrb[10].mxu1  ;;  %v8483_v58 = vpop.f32.mrb[42].mxu0 }
 0x48f   : > { %v8372_v46 = vpop.f32.mrb[11].mxu1  ;;  %v8484_v31 = vpop.f32.mrb[43].mxu0 }
 0x490   : > { %v8373_v43 = vadd.f32 %v8372_v46, %v8371_v48  ;;  %v8485_v44 = vadd.f32 %v8484_v31, %v8483_v58 }
 0x492   : > { %v8374_v0 = vpop.f32.mrb[12].mxu1  ;;  %v8486_v61 = vpop.f32.mrb[44].mxu0 }
 0x493   : > { %v8375_v13 = vpop.f32.mrb[13].mxu1  ;;  %v8487_v17 = vpop.f32.mrb[45].mxu0 }
 0x494   : > { %v8376_v41 = vadd.f32 %v8375_v13, %v8374_v0  ;;  %v8488_v28 = vadd.f32 %v8487_v17, %v8486_v61 }
 0x496   : > { %v8377_v25 = vpop.f32.mrb[14].mxu1  ;;  %v8489_v55 = vpop.f32.mrb[46].mxu0 }
 0x497   : > { %v8378_v5 = vpop.f32.mrb[15].mxu1  ;;  %v8490_v42 = vpop.f32.mrb[47].mxu0 }
 0x498   : > { %v13346_v49 = vadd.f32 %v8378_v5, %v8377_v25  ;;  %v13348_v53 = vadd.f32 %v8490_v42, %v8489_v55  ;;  %v13362_v55 = vadd.s32 4294967295, %v12862_v3 }
 0x49a   : > { %v8412_v62 = vpop.f32.mrb[16].mxu1  ;;  %vm15058_vm14 = vcmp.ge.s32.totalorder %v13362_v55, 0 }
 0x49b   : > { %v8413_v63 = vpop.f32.mrb[17].mxu1  ;;  %vm4965_vm15 = vmand %vm13310_vm4, %vm15058_vm14 }
 0x49c   : > { %v8414_v2 = vadd.f32 %v8413_v63, %v8412_v62  ;;  %v4918_v62 = vadd.s32 4294967295, %v12917_v51  ;;  %v9352_v63 = vmov 0   ;;  %vm13432_vm7 = vmand %vm13406_vm5, %vm15058_vm14 }
 0x49d   : > { %5760 = vmatprep.subr.bf16.mxu0 %v9352_v63 }
 0x49e   : > { %v4558_v38 = vmax.f32 %v13318_v15, %v8414_v2  ;;  %v8415_v34 = vpop.f32.mrb[18].mxu1  ;;  %vm4926_vm6 = vcmp.ge.s32.totalorder %v4918_v62, 0  ;;  %vm4934_vm0 = vcmp.lt.s32.totalorder %v4918_v62, 8 }
 0x49f   : > { %v8416_v16 = vpop.f32.mrb[19].mxu1  ;;  %vm13400_vm9 = vmand %vm4926_vm6, %vm4934_vm0  ;;  %vm5208_vm6 = vcmp.lt.s32.totalorder %v12917_v51, 8 }
 0x4a0   : > { %v13351_v27 = vmax.f32 %v4558_v38, %v8470_v21  ;;  %v8417_v37 = vadd.f32 %v8416_v16, %v8415_v34  ;;  %v5062_v38 = vpop.permute.xlu0 %5061 }
 0x4a2   : > { %v4559_v8 = vmax.f32 %v8361_v52, %v8417_v37  ;;  %v8418_v56 = vpop.f32.mrb[20].mxu1 }
 0x4a3   : > { %v8419_v54 = vpop.f32.mrb[21].mxu1 }
 0x4a4   : > { %v13353_v36 = vmax.f32 %v4559_v8, %v8473_v9  ;;  %v8420_v30 = vadd.f32 %v8419_v54, %v8418_v56  ;;  %v13386_v56 = vadd.s32 4294967295, %v12931_v60 }
 0x4a6   : > { %v4560_v20 = vmax.f32 %v8364_v40, %v8420_v30  ;;  %v8421_v22 = vpop.f32.mrb[22].mxu1 }
 0x4a7   : > { %v8422_v48 = vpop.f32.mrb[23].mxu1 }
 0x4a8   : > { %v13355_v58 = vmax.f32 %v4560_v20, %v8476_v7  ;;  %v8423_v46 = vadd.f32 %v8422_v48, %v8421_v22  ;;  %v5442_v22 = vadd.s32 1, %v12856_v39 }
 0x4aa   : > { %v4561_v31 = vmax.f32 %v8367_v4, %v8423_v46  ;;  %v8424_v0 = vpop.f32.mrb[24].mxu1  ;;  %vm5458_vm10 = vcmp.lt.s32.totalorder %v5442_v22, 8 }
 0x4ab   : > { %v8425_v15 = vpop.f32.mrb[25].mxu1 }
 0x4ac   : > { %v13357_v61 = vmax.f32 %v4561_v31, %v8479_v57  ;;  %v8426_v21 = vadd.f32 %v8425_v15, %v8424_v0  ;;  %v4909_v57 = vld [vmem:[#allocation3] sm:$0xff]  ;;  %v5443_v31 = vadd.s32 1, %v12917_v51  ;;  %v9114_v0 = vld [vmem:[%s14986_s4 + $0x10] sm:$0xff]   ;;  %v15809_v15 = vmov 0 }
 0x4ae   : > { %v4562_v13 = vmax.f32 %v8370_v12, %v8426_v21  ;;  %v8427_v17 = vpop.f32.mrb[26].mxu1  ;;  %v9112_v12 = vld [vmem:[%s14986_s4] sm:$0xff]   ;;  %v13438_v21 = vadd.s32 4294967295, %v12949_v11  ;;  %vm15723_vm1 = vcmp.ge.s32.totalorder %v5443_v31, 0 }
 0x4af   : > { %v8428_v52 = vpop.f32.mrb[27].mxu1  ;;  %5761 = vmatpush1.bf16.msra.mxu0 %v9112_v12  ;;  %v15830_v12 = vmov 0 }
 0x4b0   : > { %v13359_v25 = vmax.f32 %v4562_v13, %v8482_v19  ;;  %v8429_v9 = vadd.f32 %v8428_v52, %v8427_v17  ;;  %5762 = vmatprep.subr.bf16.mxu0 %v9352_v63 }
 0x4b2   : > { %v4563_v40 = vmax.f32 %v8373_v43, %v8429_v9  ;;  %v8430_v5 = vpop.f32.mrb[28].mxu1  ;;  %v15709_v9 = vmov 0 }
 0x4b3   : > { %v8431_v7 = vpop.f32.mrb[29].mxu1 }
 0x4b4   : > { %v13364_v42 = vmax.f32 %v4563_v40, %v8485_v44  ;;  %v8432_v4 = vadd.f32 %v8431_v7, %v8430_v5  ;;  %v4989_v44 = vsel %vm4965_vm15, %v4909_v57, 0.0  ;;  %vm15060_vm15 = vcmp.ge.s32.totalorder %v13386_v56, 0  ;;  %v9115_v57 = vld [vmem:[%s14986_s4 + $0x18] sm:$0xff]  }
 0x4b5   : > { %4997 = vst.msk [vmem:[#allocation6] sm:$0xff] %vm15062_vm3, %v4989_v44  ;;  %v4920_v40 = vadd.s32 4294967295, %v12939_v29  ;;  %v15724_v44 = vmov 0  ;;  %v15748_v7 = vmov 0 }
 0x4b6   : > { %v4564_v19 = vmax.f32 %v8376_v41, %v8432_v4  ;;  %v8433_v43 = vpop.f32.mrb[30].mxu1  ;;  %5086 = vst.msk [vmem:[#allocation6] sm:$0xff] %vm15055_vm8, %v5062_v38  ;;  %v13382_v41 = vadd.s32 1, %v12862_v3  ;;  %v13394_v3 = vadd.s32 1, %v12931_v60  ;;  %vm5200_vm8 = vcmp.ge.s32.totalorder %v12917_v51, 0 }
 0x4b7   : > { %v8434_v2 = vpop.f32.mrb[31].mxu1  ;;  %vm13453_vm14 = vmand %vm5200_vm8, %vm5208_vm6  ;;  %v13467_v51 = vadd.s32 1, %v12949_v11  ;;  %vm15713_vm8 = vcmp.ge.s32.totalorder %v5442_v22, 0  ;;  %v15714_v4 = vmov 0  ;;  %v15717_v11 = vmov 0 }
 0x4b8   : > { %v13377_v34 = vmax.f32 %v4564_v19, %v8488_v28  ;;  %v8435_v16 = vadd.f32 %v8434_v2, %v8433_v43  ;;  %vm15059_vm11 = vcmp.lt.s32.totalorder %v13382_v41, 8  ;;  %vm15061_vm12 = vcmp.lt.s32.totalorder %v13394_v3, 8  ;;  %vm13473_vm6 = vmand %vm15713_vm8, %vm5458_vm10 }
 0x4b9   : > { %vm13420_vm0 = vmand %vm13310_vm4, %vm15059_vm11  ;;  %v15710_v9 = vsel %vm13453_vm14, 4294967295, %v15709_v9  ;;  %v15715_v4 = vsel %vm13473_vm6, 4294967295, %v15714_v4  ;;  %vm4927_vm8 = vcmp.ge.s32.totalorder %v4919_v24, 0  ;;  %v5444_v19 = vadd.s32 1, %v12927_v26 }
 0x4ba   : > { %v4565_v37 = vmax.f32 %v13346_v49, %v8435_v16  ;;  %v8524_v8 = vpop.f32.mrb[32].mxu1  ;;  %v9113_v49 = vld [vmem:[%s14986_s4 + $0x8] sm:$0xff]   ;;  %vm13444_vm4 = vmand %vm13400_vm9, %vm15060_vm15  ;;  %v13506_v2 = vadd.s32 4294967295, %v12972_v45  ;;  %v15727_v22 = vmov 0  ;;  %v13564_v24 = vadd.s32 4294967295, %v12986_v6 }
 0x4bb   : > { %v8525_v54 = vpop.f32.mrb[33].mxu1  ;;  %5763 = vmatpush1.bf16.msra.mxu0 %v9113_v49  ;;  %vm13462_vm11 = vmand %vm13400_vm9, %vm15061_vm12  ;;  %vm15716_vm12 = vcmp.ge.s32.totalorder %v13386_v56, 0  ;;  %vm5460_vm2 = vcmp.lt.s32.totalorder %v5444_v19, 8 }
 0x4bc   : > { %v13391_v28 = vmax.f32 %v4565_v37, %v13348_v53  ;;  %v8526_v30 = vadd.f32 %v8525_v54, %v8524_v8  ;;  %5764 = vmatprep.subr.bf16.mxu0 %v9352_v63  ;;  %vm13484_vm15 = vmand %vm13453_vm14, %vm15716_vm12  ;;  %vm15722_vm12 = vcmp.lt.s32.totalorder %v5443_v31, 8  ;;  %vm4928_vm14 = vcmp.ge.s32.totalorder %v4920_v40, 0 }
 0x4bd   : > { %v15718_v11 = vsel %vm13484_vm15, 4294967295, %v15717_v11  ;;  %vm13501_vm15 = vmand %vm15723_vm1, %vm15722_vm12  ;;  %vm15726_vm1 = vcmask 130048  }
 0x4be   : > { %v4880_v48 = vmax.f32 %v13351_v27, %v8526_v30  ;;  %v8527_v53 = vpop.f32.mrb[34].mxu1  ;;  %v15725_v44 = vsel %vm13501_vm15, 4294967295, %v15724_v44  ;;  %vm13521_vm12 = vmand %vm4927_vm8, %vm4935_vm13  ;;  %v15735_v27 = vmov 0 }
 0x4bf   : > { %v8528_v60 = vpop.f32.mrb[35].mxu1  ;;  %5765 = vmatpush1.bf16.msra.mxu0 %v9114_v0  ;;  %v15728_v22 = vsel %vm13521_vm12, 4294967295, %v15727_v22  ;;  %v13561_v0 = vadd.s32 4294967295, %v12989_v18 }
 0x4c0   : > { %4901 = vst.msk [vmem:[#allocation3 + $0x9] sm:$0xff] %vm15062_vm3, %v4880_v48  ;;  %v8529_v39 = vadd.f32 %v8528_v60, %v8527_v53  ;;  %5766 = vmatprep.subr.bf16.mxu0 %v9352_v63  ;;  %v13526_v48 = vadd.s32 1, %v12972_v45  ;;  %v9116_v53 = vld [vmem:[%s14986_s4 + $0x20] sm:$0xff]   ;;  %v15733_v45 = vmov 0  ;;  %v4921_v60 = vadd.s32 4294967295, %v12957_v23 }
 0x4c2   : > { %v4881_v17 = vmax.f32 %v13353_v36, %v8529_v39  ;;  %v8530_v52 = vpop.f32.mrb[36].mxu1 }
 0x4c3   : > { %v8531_v5 = vpop.f32.mrb[37].mxu1  ;;  %5767 = vmatpush1.bf16.msra.mxu0 %v9115_v57  ;;  %v15741_v57 = vmov 0 }
 0x4c4   : > { %4902 = vst.msk [vmem:[#allocation3 + $0x11] sm:$0xff] %vm15062_vm3, %v4881_v17  ;;  %v8532_v36 = vadd.f32 %v8531_v5, %v8530_v52  ;;  %vm15719_vm3 = vcmp.lt.s32.totalorder %v13382_v41, 8  ;;  %5768 = vmatprep.subr.bf16.mxu0 %v9352_v63  ;;  %v13572_v52 = vadd.s32 1, %v12986_v6 }
 0x4c5   : > { %vm13492_vm10 = vmand %vm13473_vm6, %vm15719_vm3  ;;  %vm4936_vm3 = vcmp.lt.s32.totalorder %v4920_v40, 8  ;;  %v9118_v40 = vld [vmem:[%s14986_s4 + $0x30] sm:$0xff]  }
 0x4c6   : > { %v4882_v43 = vmax.f32 %v13355_v58, %v8532_v36  ;;  %v8533_v62 = vpop.f32.mrb[38].mxu1  ;;  %v5445_v58 = vadd.s32 1, %v12939_v29 }
 0x4c7   : > { %v8534_v38 = vpop.f32.mrb[39].mxu1  ;;  %v5094_v16 = vld [vmem:[#allocation3 + $0x2] sm:$0xff]  ;;  %5769 = vmatpush1.bf16.msra.mxu0 %v9116_v53 }
 0x4c8   : > { %v13508_v37 = vld [vmem:[#allocation3 + $0x9] sm:$0xff]  ;;  %4903 = vst.msk [vmem:[#allocation3 + $0x19] sm:$0xff] %vm15726_vm1, %v4882_v43  ;;  %v8535_v54 = vadd.f32 %v8534_v38, %v8533_v62  ;;  %v5142_v30 = vsel %vm13420_vm0, %v5094_v16, 0.0  ;;  %vm15732_vm0 = vcmp.lt.s32.totalorder %v13394_v3, 8  ;;  %5770 = vmatprep.subr.bf16.mxu0 %v9352_v63  ;;  %v9117_v43 = vld [vmem:[%s14986_s4 + $0x28] sm:$0xff]   ;;  %v15755_v16 = vmov 0 }
 0x4c9   : > { %v5191_v8 = vld [vmem:[#allocation3 + $0x8] sm:$0xff]  ;;  %v5046_v49 = vsel %vm13400_vm9, %v13508_v37, 0.0  ;;  %5158 = vrot.lane.b32.xlu0 %v5142_v30, %s9353_s27  ;;  %vm15729_vm9 = vcmp.lt.s32.totalorder %v13382_v41, 8  ;;  %vm13545_vm8 = vmand %vm13501_vm15, %vm15732_vm0 }
 0x4ca   : > { %5063 = vrot.lane.b32.xlu1 %v5046_v49, %s9351_s30  ;;  %vm13537_vm13 = vmand %vm13406_vm5, %vm15729_vm9  ;;  %v15734_v45 = vsel %vm13545_vm8, 4294967295, %v15733_v45  ;;  %v4990_v41 = vsel %vm13444_vm4, %v5191_v8, 0.0  ;;  %v4883_v31 = vmax.f32 %v13357_v61, %v8535_v54  ;;  %v8536_v39 = vpop.f32.mrb[40].mxu1  ;;  %v5239_v36 = vsel %vm13432_vm7, %v5191_v8, 0.0 }
 0x4cb   : > { %vm13555_vm9 = vmand %vm4928_vm14, %vm4936_vm3  ;;  %4998 = vst.msk [vmem:[#allocation6 + $0x10] sm:$0xff] %vm15726_vm1, %v4990_v41  ;;  %v8537_v13 = vpop.f32.mrb[41].mxu1  ;;  %v13567_v61 = vld [vmem:[#allocation3 + $0xa] sm:$0xff]  ;;  %vm15737_vm3 = vcmp.ge.s32.totalorder %v13438_v21, 0  ;;  %vm15740_vm4 = vcmp.ge.s32.totalorder %v5444_v19, 0  ;;  %vm15743_vm7 = vcmp.ge.s32.totalorder %v13362_v55, 0  ;;  %5771 = vmatpush1.bf16.msra.mxu0 %v9117_v43 }
 0x4cc   : > { %v15736_v27 = vsel %vm13555_vm9, 4294967295, %v15735_v27  ;;  %v13569_v17 = vld [vmem:[#allocation3 + $0x10] sm:$0xff]  ;;  %vm13579_vm0 = vmand %vm13521_vm12, %vm15737_vm3  ;;  %4904 = vst.msk [vmem:[#allocation3 + $0x21] sm:$0xff] %vm15726_vm1, %v4883_v31  ;;  %v8538_v5 = vadd.f32 %v8537_v13, %v8536_v39  ;;  %v5143_v6 = vsel %vm13462_vm11, %v13567_v61, 0.0  ;;  %vm15750_vm1 = vcmp.lt.s32.totalorder %v13467_v51, 8  ;;  %5772 = vmatprep.subr.bf16.mxu0 %v9352_v63 }
 0x4cd   : > { %vm13592_vm8 = vmand %vm15740_vm4, %vm5460_vm2  ;;  %5255 = vrot.lane.b32.xlu0 %v5239_v36, %s9354_s26  ;;  %vm15746_vm2 = vcmp.lt.s32.totalorder %v13394_v3, 8  ;;  %vm15747_vm4 = vnez %v15710_v9  ;;  %v13626_v19 = vadd.s32 4294967295, %v13029_v59  ;;  %v5446_v3 = vadd.s32 1, %v12957_v23  ;;  %v13679_v46 = vld [vmem:[#allocation3 + $0x11] sm:$0xff] }
 0x4ce   : > { %v15742_v57 = vsel %vm13592_vm8, 4294967295, %v15741_v57  ;;  %5160 = vrot.lane.b32.xlu1 %v5143_v6, %s9353_s27  ;;  %vm13605_vm11 = vmand %vm13473_vm6, %vm15743_vm7  ;;  %vm4937_vm6 = vcmp.lt.s32.totalorder %v4921_v60, 8  ;;  %v4884_v62 = vmax.f32 %v13359_v25, %v8538_v5  ;;  %v8539_v38 = vpop.f32.mrb[42].mxu1  ;;  %vm15754_vm12 = vcmp.ge.s32.totalorder %v5445_v58, 0 }
 0x4cf   : > { %vm13613_vm3 = vmand %vm15747_vm4, %vm15746_vm2  ;;  %vm15753_vm2 = vcmp.lt.s32.totalorder %v5445_v58, 8  ;;  %v4991_v8 = vsel %vm13579_vm0, %v13569_v17, 0.0  ;;  %v8540_v54 = vpop.f32.mrb[43].mxu1  ;;  %v13641_v30 = vld [vmem:[#allocation3 + $0x12] sm:$0xff]  ;;  %v5447_v58 = vadd.s32 1, %v12989_v18  ;;  %v5312_v41 = vsel %vm13406_vm5, %v13508_v37, 0.0  ;;  %5773 = vmatpush1.bf16.msra.mxu0 %v9118_v40 }
 0x4d0   : > { %v15749_v7 = vsel %vm13613_vm3, 4294967295, %v15748_v7  ;;  %vm13621_vm14 = vmand %vm13592_vm8, %vm15750_vm1  ;;  %v13643_v25 = vld [vmem:[#allocation3 + $0x18] sm:$0xff]  ;;  %vm15758_vm8 = vcmp.ge.s32.totalorder %v13506_v2, 0  ;;  %v8541_v53 = vadd.f32 %v8540_v54, %v8539_v38  ;;  %vm15762_vm7 = vnez %v15718_v11  ;;  %5774 = vmatprep.subr.bf16.mxu0 %v9352_v63 }
 0x4d1   : > { %vm13632_vm3 = vmand %vm15754_vm12, %vm15753_vm2  ;;  %vm15757_vm2 = vcmask 130048   ;;  %v5240_v31 = vsel %vm15762_vm7, %v13569_v17, 0.0  ;;  %v5636_v39 = vsel %vm13492_vm10, %v13641_v30, 0.0  ;;  %v15764_v13 = vmov 0  ;;  %5328 = vrot.lane.b32.xlu0 %v5312_v41, %s9355_s20  ;;  %v15773_v37 = vld [vmem:[#allocation19_spill] sm:$0xff] }
 0x4d2   : > { %v15756_v16 = vsel %vm13632_vm3, 4294967295, %v15755_v16  ;;  %4999 = vst.msk [vmem:[#allocation6 + $0x20] sm:$0xff] %vm15757_vm2, %v4991_v8  ;;  %vm13654_vm0 = vmand %vm13555_vm9, %vm15758_vm8  ;;  %vm15763_vm8 = vcmp.ge.s32.totalorder %v4921_v60, 0  ;;  %5257 = vrot.lane.b32.xlu1 %v5240_v31, %s9354_s26  ;;  %vm15767_vm10 = vcmp.ge.s32.totalorder %v13386_v56, 0  ;;  %vm15770_vm7 = vcmp.lt.s32.totalorder %v13526_v48, 8  ;;  %v8542_v5 = vpop.f32.mrb[44].mxu1 }
 0x4d3   : > { %vm15761_vm1 = vmmov %vm15757_vm2  ;;  %v4923_v56 = vadd.s32 4294967295, %v15773_v37  ;;  %v4885_v60 = vmax.f32 %v13364_v42, %v8541_v53  ;;  %vm15775_vm9 = vcmp.ge.s32.totalorder %v13561_v0, 0  ;;  %v15776_v36 = vmov 0  ;;  %v13718_v38 = vld [vmem:[#allocation3 + $0x1a] sm:$0xff] }
 0x4d4   : > { %4905 = vst.msk [vmem:[#allocation3 + $0x29] sm:$0xff] %vm15761_vm1, %v4884_v62  ;;  %vm13670_vm2 = vmand %vm15763_vm8, %vm4937_vm6  ;;  %v13710_v6 = vadd.s32 1, %v13029_v59  ;;  %v13713_v43 = vadd.s32 4294967295, %v13063_v32  ;;  %v4992_v42 = vsel %vm13654_vm0, %v13643_v25, 0.0  ;;  %v8543_v62 = vpop.f32.mrb[45].mxu1  ;;  %v13720_v8 = vld [vmem:[#allocation3 + $0x20] sm:$0xff] }
 0x4d5   : > { %v15765_v13 = vsel %vm13670_vm2, 4294967295, %v15764_v13  ;;  %vm15766_vm5 = vmmov %vm15761_vm1  ;;  %vm15779_vm8 = vcmp.ge.s32.totalorder %v13564_v24, 0  ;;  %v8544_v54 = vadd.f32 %v8543_v62, %v8542_v5  ;;  %v5385_v49 = vsel %vm13537_vm13, %v13567_v61, 0.0  ;;  %v5540_v11 = vld [vmem:[#allocation3 + $0x19] sm:$0xff] }
 0x4d6   : > { %5644 = vst.msk [vmem:[#allocation6 + $0x8] sm:$0xff] %vm15766_vm5, %v5636_v39  ;;  %vm13686_vm6 = vmand %vm13501_vm15, %vm15767_vm10  ;;  %vm5462_vm5 = vcmp.lt.s32.totalorder %v5446_v3, 8  ;;  %vm15774_vm10 = vcmp.lt.s32.totalorder %v13561_v0, 8  ;;  %v4924_v0 = vadd.s32 4294967295, %v13052_v1  ;;  %v5313_v53 = vsel %vm15747_vm4, %v13679_v46, 0.0  ;;  %v9119_v39 = vld [vmem:[%s14986_s4 + $0x38] sm:$0xff]   ;;  %5401 = vrot.lane.b32.xlu0 %v5385_v49, %s9356_s21 }
 0x4d7   : > { %vm13694_vm1 = vmand %vm13632_vm3, %vm15770_vm7  ;;  %v15785_v31 = vmov 0  ;;  %5330 = vrot.lane.b32.xlu1 %v5313_v53, %s9355_s20  ;;  %vm4939_vm7 = vcmp.lt.s32.totalorder %v4923_v56, 8  ;;  %v4886_v20 = vmax.f32 %v13377_v34, %v8544_v54  ;;  %vm15792_vm3 = vcmp.ge.s32.totalorder %v5447_v58, 0  ;;  %5775 = vmatpush1.bf16.msra.mxu0 %v9119_v39  ;;  %v9120_v49 = vld [vmem:[%s14986_s4 + $0x40] sm:$0xff]  }
 0x4d8   : > { %vm13705_vm15 = vmand %vm15775_vm9, %vm15774_vm10  ;;  %vm15778_vm10 = vcmask 130048   ;;  %5776 = vmatprep.subr.bf16.mxu0 %v9352_v63  ;;  %v5490_v62 = vsel %vm13605_vm11, %v13569_v17, 0.0  ;;  %vm15803_vm11 = vcmp.lt.s32.totalorder %v13467_v51, 8  ;;  %v15805_v17 = vmov 0 }
 0x4d9   : > { %v15777_v36 = vsel %vm13705_vm15, 4294967295, %v15776_v36  ;;  %5000 = vst.msk [vmem:[#allocation6 + $0x30] sm:$0xff] %vm15778_vm10, %v4992_v42  ;;  %vm13729_vm12 = vmand %vm13670_vm2, %vm15779_vm8  ;;  %vm15784_vm8 = vcmp.ge.s32.totalorder %v5446_v3, 0  ;;  %vm15811_vm2 = vcmp.lt.s32.totalorder %v13710_v6, 8 }
 0x4da   : > { %vm15782_vm0 = vmmov %vm15778_vm10  ;;  %vm15783_vm10 = vnez %v15734_v45  ;;  %v8545_v45 = vpop.f32.mrb[46].mxu1  ;;  %v4993_v3 = vsel %vm13729_vm12, %v13720_v8, 0.0  ;;  %5506 = vrot.lane.b32.xlu0 %v5490_v62, %s9357_s18 }
 0x4db   : > { %4906 = vst.msk [vmem:[#allocation3 + $0x31] sm:$0xff] %vm15782_vm0, %v4885_v60  ;;  %v5637_v41 = vsel %vm15783_vm10, %v13718_v38, 0.0  ;;  %vm13745_vm9 = vmand %vm15784_vm8, %vm5462_vm5  ;;  %vm15788_vm5 = vcmp.lt.s32.totalorder %v13572_v52, 8  ;;  %vm4931_vm8 = vcmp.ge.s32.totalorder %v4923_v56, 0  ;;  %v8546_v40 = vpop.f32.mrb[47].mxu1  ;;  %v13777_v60 = vld [vmem:[#allocation3 + $0x22] sm:$0xff]  ;;  %5777 = vmatpush1.bf16.msra.mxu0 %v9120_v49 }
 0x4dc   : > { %v15786_v31 = vsel %vm13745_vm9, 4294967295, %v15785_v31  ;;  %vm15787_vm13 = vmmov %vm15782_vm0  ;;  %v13779_v34 = vld [vmem:[#allocation3 + $0x28] sm:$0xff]  ;;  %v8547_v42 = vadd.f32 %v8546_v40, %v8545_v45  ;;  %v5638_v59 = vsel %vm13621_vm14, %v13777_v60, 0.0 }
 0x4dd   : > { %5645 = vst.msk [vmem:[#allocation6 + $0x18] sm:$0xff] %vm15787_vm13, %v5637_v41  ;;  %vm13761_vm10 = vmand %vm13745_vm9, %vm15788_vm5  ;;  %vm15791_vm13 = vcmp.lt.s32.totalorder %v5447_v58, 8  ;;  %v5448_v58 = vadd.s32 1, %v15773_v37  ;;  %vm15800_vm5 = vnez %v15749_v7 }
 0x4de   : > { %vm13769_vm4 = vmand %vm15792_vm3, %vm15791_vm13  ;;  %vm15796_vm13 = vcmp.ge.s32.totalorder %v13626_v19, 0  ;;  %v5386_v63 = vsel %vm15800_vm5, %v13641_v30, 0.0  ;;  %vm15804_vm5 = vnez %v15728_v22 }
 0x4df   : > { %vm15795_vm3 = vmmov %vm15782_vm0  ;;  %5403 = vrot.lane.b32.xlu1 %v5386_v63, %s9356_s21 }
 0x4e0   : > { %5001 = vst.msk [vmem:[#allocation6 + $0x40] sm:$0xff] %vm15795_vm3, %v4993_v3  ;;  %vm13788_vm0 = vmand %vm13705_vm15, %vm15796_vm13  ;;  %vm5213_vm15 = vcmp.lt.s32.totalorder %v15773_v37, 8 }
 0x4e1   : > { %vm15799_vm12 = vmmov %vm15795_vm3  ;;  %v4994_v56 = vsel %vm13788_vm0, %v13779_v34, 0.0 }
 0x4e2   : > { %4907 = vst.msk [vmem:[#allocation3 + $0x39] sm:$0xff] %vm15799_vm12, %v4886_v20  ;;  %vm13804_vm3 = vmand %vm4931_vm8, %vm4939_vm7  ;;  %vm15807_vm7 = vcmp.lt.s32.totalorder %v12927_v26, 8  ;;  %vm15808_vm8 = vcmp.ge.s32.totalorder %v12927_v26, 0  ;;  %v4887_v26 = vmax.f32 %v13391_v28, %v8547_v42  ;;  %v13852_v53 = vld [vmem:[#allocation3 + $0x2a] sm:$0xff]  ;;  %v13857_v28 = vadd.s32 1, %v13063_v32  ;;  %v5653_v20 = vld [vmem:[#allocation6 + $0x8] sm:$0xff] }
 0x4e3   : > { %vm13817_vm14 = vmand %vm15804_vm5, %vm15803_vm11  ;;  %5646 = vst.msk [vmem:[#allocation6 + $0x28] sm:$0xff] %vm15799_vm12, %v5638_v59  ;;  %v13854_v41 = vld [vmem:[#allocation3 + $0x30] sm:$0xff]  ;;  %vm15823_vm11 = vnez %v15715_v4  ;;  %v5491_v32 = vsel %vm13686_vm6, %v13643_v25, 0.0  ;;  %v5639_v3 = vsel %vm13694_vm1, %v13852_v53, 0.0  ;;  %vm15829_vm1 = vcmp.ge.s32.totalorder %v13052_v1, 0 }
 0x4e4   : > { %v15806_v17 = vsel %vm13817_vm14, 4294967295, %v15805_v17  ;;  %vm13825_vm13 = vmand %vm15808_vm8, %vm15807_vm7  ;;  %vm15814_vm7 = vcmp.lt.s32.totalorder %v4924_v0, 8  ;;  %vm15815_vm8 = vcmp.ge.s32.totalorder %v4924_v0, 0  ;;  %v5563_v39 = vsel %vm15823_vm11, %v13679_v46, 0.0  ;;  %v5655_v45 = vld [vmem:[#allocation6 + $0x18] sm:$0xff]  ;;  %5508 = vrot.lane.b32.xlu1 %v5491_v32, %s9357_s18 }
 0x4e5   : > { %v15810_v15 = vsel %vm13825_vm13, 4294967295, %v15809_v15  ;;  %vm13834_vm9 = vmand %vm13769_vm4, %vm15811_vm2  ;;  %vm5456_vm2 = vcmp.ge.s32.totalorder %v5448_v58, 0  ;;  %5579 = vrot.lane.b32.xlu0 %v5563_v39, %s9358_s28  ;;  %v5669_v4 = vpack.c.bf16 %v5655_v45, %v5653_v20  ;;  %vm15828_vm11 = vcmp.lt.s32.totalorder %v13052_v1, 8 }
 0x4e6   : > { %vm13843_vm14 = vmand %vm15815_vm8, %vm15814_vm7  ;;  %vm5464_vm7 = vcmp.lt.s32.totalorder %v5448_v58, 8  ;;  %v5047_v1 = vsel %vm15804_vm5, %v13679_v46, 0.0 }
 0x4e7   : > { %vm15818_vm8 = vmmov %vm15799_vm12  ;;  %vm15819_vm12 = vcmp.ge.s32.totalorder %v13713_v43, 0 }
 0x4e8   : > { %5002 = vst.msk [vmem:[#allocation6 + $0x50] sm:$0xff] %vm15818_vm8, %v4994_v56  ;;  %vm13864_vm13 = vmand %vm13804_vm3, %vm15819_vm12  ;;  %vm15824_vm12 = vcmp.ge.s32.totalorder %v15773_v37, 0  ;;  %v15832_v37 = vmov 0 }
 0x4e9   : > { %vm15822_vm0 = vmmov %vm15818_vm8  ;;  %v4995_v5 = vsel %vm13864_vm13, %v13854_v41, 0.0  ;;  %v13907_v42 = vld [vmem:[#allocation3 + $0x32] sm:$0xff]  ;;  %vm15837_vm13 = vnez %v15725_v44  ;;  %5065 = vrot.lane.b32.xlu0 %v5047_v1, %s9351_s30 }
 0x4ea   : > { %4908 = vst.msk [vmem:[#allocation3 + $0x41] sm:$0xff] %vm15822_vm0, %v4887_v26  ;;  %vm13882_vm8 = vmand %vm15824_vm12, %vm5213_vm15  ;;  %v13909_v62 = vld [vmem:[#allocation3 + $0x38] sm:$0xff]  ;;  %v5564_v58 = vsel %vm15837_vm13, %v5540_v11, 0.0  ;;  %v5640_v63 = vsel %vm13761_vm10, %v13907_v42, 0.0  ;;  %vm15843_vm10 = vcmp.lt.s32.totalorder %v13322_v14, 8  ;;  %vm5210_vm13 = vcmp.lt.s32.totalorder %v12939_v29, 8 }
 0x4eb   : > { %vm15827_vm6 = vmmov %vm15822_vm0  ;;  %5581 = vrot.lane.b32.xlu1 %v5564_v58, %s9358_s28 }
 0x4ec   : > { %5647 = vst.msk [vmem:[#allocation6 + $0x38] sm:$0xff] %vm15827_vm6, %v5639_v3  ;;  %vm13893_vm0 = vmand %vm15829_vm1, %vm15828_vm11  ;;  %vm15836_vm1 = vcmp.ge.s32.totalorder %v13325_v35, 0 }
 0x4ed   : > { %v15831_v12 = vsel %vm13893_vm0, 4294967295, %v15830_v12  ;;  %vm13899_vm15 = vmand %vm5456_vm2, %vm5464_vm7 }
 0x4ee   : > { %v15833_v37 = vsel %vm13899_vm15, 4294967295, %v15832_v37  ;;  %vm15834_vm12 = vmmov %vm15827_vm6  ;;  %vm15083_vm6 = vcmp.lt.s32.totalorder %v13857_v28, 8 }
 0x4ef   : > { %8159 = vmatprep.mubr.msk.bf16.mxu0 %vm15834_vm12, %v5669_v4  ;;  %vm15835_vm11 = vmmov %vm15834_vm12 }
 0x4f0   : > { %5003 = vst.msk [vmem:[#allocation6 + $0x60] sm:$0xff] %vm15835_vm11, %v4995_v5  ;;  %vm4972_vm2 = vmand %vm13843_vm14, %vm15836_vm1  ;;  %vm5202_vm1 = vcmp.ge.s32.totalorder %v12939_v29, 0 }
 0x4f1   : > { %vm13929_vm7 = vmand %vm13882_vm8, %vm15083_vm6  ;;  %v4996_v46 = vsel %vm4972_vm2, %v13909_v62, 0.0  ;;  %v13955_v9 = vld [vmem:[#allocation3 + $0x3a] sm:$0xff]  ;;  %v13973_v39 = vld [vmem:[#allocation3 + $0x42] sm:$0xff] }
 0x4f2   : > { %vm15840_vm5 = vmmov %vm15835_vm11  ;;  %v5641_v56 = vsel %vm13834_vm9, %v13955_v9, 0.0  ;;  %v5391_v0 = vsel %vm13929_vm7, %v13955_v9, 0.0  ;;  %v5295_v55 = vld [vmem:[#allocation3 + $0x41] sm:$0xff] }
 0x4f3   : > { %5648 = vst.msk [vmem:[#allocation6 + $0x48] sm:$0xff] %vm15840_vm5, %v5640_v63  ;;  %vm13940_vm12 = vmand %vm13899_vm15, %vm15083_vm6  ;;  %vm15846_vm6 = vnez %v15806_v17  ;;  %vm15847_vm15 = vnez %v15736_v27  ;;  %v5441_v40 = vld [vmem:[#allocation3 + $0x48] sm:$0xff] }
 0x4f4   : > { %vm13948_vm11 = vmand %vm13893_vm0, %vm15843_vm10  ;;  %5004 = vst.msk [vmem:[#allocation6 + $0x70] sm:$0xff] %vm15840_vm5, %v4996_v46  ;;  %v5144_v49 = vsel %vm15846_vm6, %v13641_v30, 0.0  ;;  %v5048_v26 = vsel %vm15847_vm15, %v5540_v11, 0.0  ;;  %vm15848_vm10 = vcmp.ge.s32.totalorder %v13438_v21, 0  ;;  %vm15849_vm0 = vnez %v15810_v15 }
 0x4f5   : > { %vm5225_vm2 = vmand %vm15849_vm0, %vm15848_vm10  ;;  %5162 = vrot.lane.b32.xlu0 %v5144_v49, %s9353_s27  ;;  %5067 = vrot.lane.b32.xlu1 %v5048_v26, %s9351_s30  ;;  %vm15850_vm6 = vcmp.lt.s32.totalorder %v13526_v48, 8  ;;  %vm15851_vm10 = vcmask 130048   ;;  %v5642_v30 = vsel %vm13940_vm12, %v13973_v39, 0.0  ;;  %v5392_v17 = vsel %vm13948_vm11, %v13973_v39, 0.0 }
 0x4f6   : > { %vm5137_vm5 = vmand %vm15847_vm15, %vm15850_vm6  ;;  %5649 = vst.msk [vmem:[#allocation6 + $0x58] sm:$0xff] %vm15851_vm10, %v5641_v56  ;;  %v5241_v27 = vsel %vm5225_vm2, %v13643_v25, 0.0  ;;  %vm15855_vm15 = vcmp.ge.s32.totalorder %v13506_v2, 0  ;;  %v5314_v29 = vsel %vm15849_vm0, %v5540_v11, 0.0  ;;  %v5291_v25 = vld [vmem:[#allocation3 + $0x21] sm:$0xff]  ;;  %vm15858_vm2 = vnez %v15742_v57 }
 0x4f7   : > { %vm13992_vm9 = vmand %vm5202_vm1, %vm5210_vm13  ;;  %v5145_v32 = vsel %vm5137_vm5, %v13718_v38, 0.0  ;;  %vm15857_vm13 = vcmp.ge.s32.totalorder %v13438_v21, 0  ;;  %vm15859_vm5 = vcmp.lt.s32.totalorder %v13526_v48, 8  ;;  %v5565_v21 = vsel %vm15858_vm2, %v5291_v25, 0.0 }
 0x4f8   : > { %vm15854_vm7 = vmmov %vm15851_vm10  ;;  %v5315_v3 = vsel %vm13992_vm9, %v5291_v25, 0.0  ;;  %vm15886_vm11 = vcmask 261248  }
 0x4f9   : > { %5650 = vst.msk [vmem:[#allocation6 + $0x68] sm:$0xff] %vm15854_vm7, %v5642_v30  ;;  %5259 = vrot.lane.b32.xlu0 %v5241_v27, %s9354_s26  ;;  %5164 = vrot.lane.b32.xlu1 %v5145_v32, %s9353_s27  ;;  %vm5226_vm12 = vmand %vm13992_vm9, %vm15855_vm15  ;;  %vm15856_vm7 = vcmp.lt.s32.totalorder %v13467_v51, 8  ;;  %v5659_v32 = vld [vmem:[#allocation6 + $0x38] sm:$0xff] }
 0x4fa   : > { %v5242_v20 = vsel %vm5226_vm12, %v13720_v8, 0.0  ;;  %vm5379_vm1 = vmand %vm15849_vm0, %vm15856_vm7  ;;  %vm5211_vm7 = vcmp.lt.s32.totalorder %v12957_v23, 8 }
 0x4fb   : > { %v5387_v45 = vsel %vm5379_vm1, %v13718_v38, 0.0  ;;  %vm5476_vm6 = vmand %vm15858_vm2, %vm15857_vm13  ;;  %vm15862_vm1 = vnez %v15765_v13  ;;  %vm15863_vm13 = vcmp.lt.s32.totalorder %v13572_v52, 8 }
 0x4fc   : > { %vm5380_vm0 = vmand %vm13992_vm9, %vm15859_vm5  ;;  %v5492_v51 = vsel %vm5476_vm6, %v13720_v8, 0.0  ;;  %v5542_v8 = vld [vmem:[#allocation3 + $0x29] sm:$0xff]  ;;  %vm5203_vm9 = vcmp.ge.s32.totalorder %v12957_v23, 0  ;;  %v5049_v2 = vsel %vm15862_vm1, %v5291_v25, 0.0  ;;  %vm5204_vm5 = vcmp.ge.s32.totalorder %v12989_v18, 0 }
 0x4fd   : > { %5332 = vrot.lane.b32.xlu0 %v5314_v29, %s9355_s20  ;;  %5261 = vrot.lane.b32.xlu1 %v5242_v20, %s9354_s26  ;;  %v5388_v38 = vsel %vm5380_vm0, %v13777_v60, 0.0  ;;  %vm15860_vm10 = vmmov %vm15855_vm15  ;;  %vm15861_vm15 = vnez %v15756_v16  ;;  %vm5212_vm0 = vcmp.lt.s32.totalorder %v12989_v18, 8 }
 0x4fe   : > { %vm5477_vm12 = vmand %vm15861_vm15, %vm15860_vm10  ;;  %v5566_v15 = vsel %vm15861_vm15, %v5542_v8, 0.0  ;;  %vm15866_vm10 = vnez %v15777_v36  ;;  %vm15867_vm15 = vcmp.ge.s32.totalorder %v13564_v24, 0 }
 0x4ff   : > { %v5493_v48 = vsel %vm5477_vm12, %v13779_v34, 0.0  ;;  %vm5138_vm2 = vmand %vm15862_vm1, %vm15863_vm13  ;;  %v5050_v16 = vsel %vm15866_vm10, %v5542_v8, 0.0  ;;  %vm15871_vm13 = vcmp.ge.s32.totalorder %v13626_v19, 0 }
 0x500   : > { %vm14052_vm6 = vmand %vm5203_vm9, %vm5211_vm7  ;;  %v5146_v23 = vsel %vm5138_vm2, %v13777_v60, 0.0  ;;  %vm15868_vm9 = vcmp.lt.s32.totalorder %v13710_v6, 8 }
 0x501   : > { %5405 = vrot.lane.b32.xlu0 %v5387_v45, %s9356_s21  ;;  %5334 = vrot.lane.b32.xlu1 %v5315_v3, %s9355_s20  ;;  %vm5227_vm12 = vmand %vm14052_vm6, %vm15867_vm15  ;;  %v5316_v36 = vsel %vm14052_vm6, %v5542_v8, 0.0 }
 0x502   : > { %vm5139_vm7 = vmand %vm15866_vm10, %vm15868_vm9  ;;  %v5243_v13 = vsel %vm5227_vm12, %v13779_v34, 0.0  ;;  %v5293_v34 = vld [vmem:[#allocation3 + $0x31] sm:$0xff] }
 0x503   : > { %vm14071_vm1 = vmand %vm5204_vm5, %vm5212_vm0  ;;  %v5147_v60 = vsel %vm5139_vm7, %v13852_v53, 0.0  ;;  %vm15872_vm5 = vcmp.lt.s32.totalorder %v13572_v52, 8  ;;  %v5051_v1 = vsel %vm13804_vm3, %v5293_v34, 0.0 }
 0x504   : > { %vm5228_vm2 = vmand %vm14071_vm1, %vm15871_vm13  ;;  %v5317_v5 = vsel %vm14071_vm1, %v5293_v34, 0.0 }
 0x505   : > { %5510 = vrot.lane.b32.xlu0 %v5492_v51, %s9357_s18  ;;  %5407 = vrot.lane.b32.xlu1 %v5388_v38, %s9356_s21  ;;  %v5244_v4 = vsel %vm5228_vm2, %v13854_v41, 0.0  ;;  %vm5381_vm0 = vmand %vm14052_vm6, %vm15872_vm5  ;;  %vm15877_vm5 = vcmp.ge.s32.totalorder %v13713_v43, 0  ;;  %v5657_v51 = vld [vmem:[#allocation6 + $0x28] sm:$0xff] }
 0x506   : > { %v5389_v11 = vsel %vm5381_vm0, %v13852_v53, 0.0  ;;  %vm15873_vm10 = vmmov %vm15867_vm15  ;;  %vm15874_vm15 = vnez %v15786_v31  ;;  %v5671_v38 = vpack.c.bf16 %v5659_v32, %v5657_v51 }
 0x507   : > { %vm5478_vm12 = vmand %vm15874_vm15, %vm15873_vm10  ;;  %v5567_v24 = vsel %vm15874_vm15, %v5293_v34, 0.0  ;;  %vm15880_vm15 = vnez %v15831_v12  ;;  %v5546_v12 = vld [vmem:[#allocation3 + $0x49] sm:$0xff] }
 0x508   : > { %vm5382_vm6 = vmand %vm14071_vm1, %vm15868_vm9  ;;  %v5494_v52 = vsel %vm5478_vm12, %v13854_v41, 0.0  ;;  %v5544_v41 = vld [vmem:[#allocation3 + $0x39] sm:$0xff]  ;;  %vm15876_vm1 = vcmp.lt.s32.totalorder %v13857_v28, 8 }
 0x509   : > { %5583 = vrot.lane.b32.xlu0 %v5565_v21, %s9358_s28  ;;  %5512 = vrot.lane.b32.xlu1 %v5493_v48, %s9357_s18  ;;  %v5390_v53 = vsel %vm5382_vm6, %v13907_v42, 0.0  ;;  %vm15875_vm7 = vmmov %vm15871_vm13  ;;  %v5568_v58 = vsel %vm13769_vm4, %v5544_v41, 0.0  ;;  %v5052_v31 = vsel %vm13843_vm14, %v5544_v41, 0.0  ;;  %v5198_v28 = vld [vmem:[#allocation3 + $0x40] sm:$0xff] }
 0x50a   : > { %vm5479_vm13 = vmand %vm13769_vm4, %vm15875_vm7  ;;  %vm15878_vm4 = vcmp.lt.s32.totalorder %v13322_v14, 8  ;;  %v5318_v14 = vsel %vm13882_vm8, %v5544_v41, 0.0  ;;  %vm15884_vm7 = vnez %v15698_v33 }
 0x50b   : > { %v5495_v6 = vsel %vm5479_vm13, %v13909_v62, 0.0  ;;  %vm5140_vm2 = vmand %vm13804_vm3, %vm15876_vm1  ;;  %vm15879_vm3 = vcmp.ge.s32.totalorder %v13325_v35, 0  ;;  %v5497_v43 = vsel %vm15884_vm7, %v5441_v40, 0.0  ;;  %vm15885_vm13 = vnez %v15696_v47  ;;  %v5667_v40 = vld [vmem:[#allocation6 + $0x78] sm:$0xff] }
 0x50c   : > { %v5148_v19 = vsel %vm5140_vm2, %v13907_v42, 0.0  ;;  %vm5229_vm0 = vmand %vm13882_vm8, %vm15877_vm5  ;;  %vm15883_vm8 = vnez %v15833_v37  ;;  %v5570_v59 = vsel %vm15885_vm13, %v5546_v12, 0.0  ;;  %vm5182_vm1 = vcmask 392448  }
 0x50d   : > { %5069 = vrot.lane.b32.xlu0 %v5049_v2, %s9351_s30  ;;  %5585 = vrot.lane.b32.xlu1 %v5566_v15, %s9358_s28  ;;  %vm5141_vm10 = vmand %vm13843_vm14, %vm15878_vm4  ;;  %v5245_v61 = vsel %vm5229_vm0, %v13909_v62, 0.0  ;;  %v5319_v62 = vsel %vm15880_vm15, %v5295_v55, 0.0  ;;  %v5569_v63 = vsel %vm15883_vm8, %v5295_v55, 0.0  ;;  %vm5279_vm2 = vcmask 523648  }
 0x50e   : > { %v5149_v54 = vsel %vm5141_vm10, %v13955_v9, 0.0  ;;  %vm5230_vm12 = vmand %vm15880_vm15, %vm15879_vm3  ;;  %vm5425_vm0 = vcmask 786048   ;;  %vm5530_vm4 = vcmask 917248   ;;  %vm5603_vm10 = vcmask 1048448  }
 0x50f   : > { %v5246_v42 = vsel %vm5230_vm12, %v5198_v28, 0.0  ;;  %vm15882_vm9 = vmmov %vm15877_vm5  ;;  %vm5352_vm5 = vcmask 654848   ;;  %vm15889_vm12 = vcmask 130048  }
 0x510   : > { %vm5480_vm6 = vmand %vm15883_vm8, %vm15882_vm9 }
 0x511   : > { %5166 = vrot.lane.b32.xlu0 %v5146_v23, %s9353_s27  ;;  %5071 = vrot.lane.b32.xlu1 %v5050_v16, %s9351_s30  ;;  %v5496_v35 = vsel %vm5480_vm6, %v5198_v28, 0.0  ;;  %vm15887_vm3 = vmmov %vm15886_vm11 }
 0x512   : > { %vm15888_vm15 = vmmov %vm15887_vm3 }
 0x513   : > { %vm15890_vm14 = vmmov %vm15887_vm3 }
 0x514   : > { %vm15891_vm9 = vmmov %vm15887_vm3 }
 0x515   : > { %5263 = vrot.lane.b32.xlu0 %v5243_v13, %s9354_s26  ;;  %5168 = vrot.lane.b32.xlu1 %v5147_v60, %s9353_s27  ;;  %vm15892_vm8 = vmmov %vm15889_vm12 }
 0x516   : > { %vm15893_vm6 = vmmov %vm15887_vm3 }
 0x517   : > { %vm15894_vm7 = vmmov %vm15887_vm3 }
 0x518   : > { %vm15895_vm13 = vmmov %vm15892_vm8 }
 0x519   : > { %5336 = vrot.lane.b32.xlu0 %v5316_v36, %s9355_s20  ;;  %5265 = vrot.lane.b32.xlu1 %v5244_v4, %s9354_s26  ;;  %v5663_v4 = vld [vmem:[#allocation6 + $0x58] sm:$0xff] }
 0x51d   : > { %5409 = vrot.lane.b32.xlu0 %v5389_v11, %s9356_s21  ;;  %5338 = vrot.lane.b32.xlu1 %v5317_v5, %s9355_s20 }
 0x521   : > { %5514 = vrot.lane.b32.xlu0 %v5494_v52, %s9357_s18  ;;  %5411 = vrot.lane.b32.xlu1 %v5390_v53, %s9356_s21 }
 0x525   : > { %5587 = vrot.lane.b32.xlu0 %v5567_v24, %s9358_s28  ;;  %5516 = vrot.lane.b32.xlu1 %v5495_v6, %s9357_s18  ;;  %v5661_v24 = vld [vmem:[#allocation6 + $0x48] sm:$0xff] }
 0x526   : > { %v5673_v6 = vpack.c.bf16 %v5663_v4, %v5661_v24 }
 0x529   : > { %5073 = vrot.lane.b32.xlu0 %v5051_v1, %s9351_s30  ;;  %5589 = vrot.lane.b32.xlu1 %v5568_v58, %s9358_s28 }
 0x52d   : > { %5170 = vrot.lane.b32.xlu0 %v5148_v19, %s9353_s27  ;;  %5075 = vrot.lane.b32.xlu1 %v5052_v31, %s9351_s30 }
 0x531   : > { %5267 = vrot.lane.b32.xlu0 %v5245_v61, %s9354_s26  ;;  %5172 = vrot.lane.b32.xlu1 %v5149_v54, %s9353_s27 }
 0x535   : > { %5340 = vrot.lane.b32.xlu0 %v5318_v14, %s9355_s20  ;;  %5269 = vrot.lane.b32.xlu1 %v5246_v42, %s9354_s26 }
 0x539   : > { %5413 = vrot.lane.b32.xlu0 %v5391_v0, %s9356_s21  ;;  %5342 = vrot.lane.b32.xlu1 %v5319_v62, %s9355_s20 }
 0x53b   : > { %v5159_v44 = vpop.permute.xlu0 %5158 }
 0x53c   : > { %v5064_v22 = vpop.permute.xlu1 %5063  ;;  %5183 = vst.msk [vmem:[#allocation6] sm:$0xff] %vm5182_vm1, %v5159_v44 }
 0x53d   : > { %5518 = vrot.lane.b32.xlu0 %v5496_v35, %s9357_s18  ;;  %5415 = vrot.lane.b32.xlu1 %v5392_v17, %s9356_s21  ;;  %5087 = vst.msk [vmem:[#allocation6 + $0x10] sm:$0xff] %vm15886_vm11, %v5064_v22  ;;  %v5665_v35 = vld [vmem:[#allocation6 + $0x68] sm:$0xff]  ;;  %s8302_s21 = sshll.u32 %s9469_s25, 4 }
 0x53e   : > { %v5675_v22 = vpack.c.bf16 %v5667_v40, %v5665_v35  ;;  %s14940_s30 = scalar_lea.hbm %s14998_s16, %s8302_s21 }
 0x53f   : > { %v5256_v37 = vpop.permute.xlu0 %5255 }
 0x540   : > { %v5161_v33 = vpop.permute.xlu1 %5160  ;;  %5280 = vst.msk [vmem:[#allocation6] sm:$0xff] %vm5279_vm2, %v5256_v37 }
 0x541   : > { %5591 = vrot.lane.b32.xlu0 %v5569_v63, %s9358_s28  ;;  %5520 = vrot.lane.b32.xlu1 %v5497_v43, %s9357_s18  ;;  %5184 = vst.msk [vmem:[#allocation6 + $0x10] sm:$0xff] %vm5182_vm1, %v5161_v33 }
 0x543   : > { %v5329_v46 = vpop.permute.xlu0 %5328 }
 0x544   : > { %v5258_v47 = vpop.permute.xlu1 %5257  ;;  %5353 = vst.msk [vmem:[#allocation6] sm:$0xff] %vm5352_vm5, %v5329_v46 }
 0x545   : > { %5593 = vrot.lane.b32.xlu1 %v5570_v59, %s9358_s28  ;;  %5281 = vst.msk [vmem:[#allocation6 + $0x10] sm:$0xff] %vm5279_vm2, %v5258_v47 }
 0x548   : > { %v5402_v9 = vpop.permute.xlu0 %5401 }
 0x549   : > { %v5331_v49 = vpop.permute.xlu1 %5330  ;;  %5426 = vst.msk [vmem:[#allocation6] sm:$0xff] %vm5425_vm0, %v5402_v9 }
 0x54a   : > { %5354 = vst.msk [vmem:[#allocation6 + $0x10] sm:$0xff] %vm5352_vm5, %v5331_v49 }
 0x54c   : > { %v5507_v26 = vpop.permute.xlu0 %5506 }
 0x54d   : > { %5531 = vst.msk [vmem:[#allocation6] sm:$0xff] %vm5530_vm4, %v5507_v26 }
 0x551   : > { %v5404_v56 = vpop.permute.xlu1 %5403 }
 0x552   : > { %5427 = vst.msk [vmem:[#allocation6 + $0x10] sm:$0xff] %vm5425_vm0, %v5404_v56 }
 0x556   : > { %v5509_v39 = vpop.permute.xlu1 %5508 }
 0x557   : > { %v5580_v0 = vpop.permute.xlu0 %5579  ;;  %5532 = vst.msk [vmem:[#allocation6 + $0x10] sm:$0xff] %vm5530_vm4, %v5509_v39 }
 0x558   : > { %5604 = vst.msk [vmem:[#allocation6] sm:$0xff] %vm5603_vm10, %v5580_v0 }
 0x55b   : > { %v5066_v30 = vpop.permute.xlu0 %5065 }
 0x55c   : > { %5088 = vst.msk [vmem:[#allocation6 + $0x20] sm:$0xff] %vm15887_vm3, %v5066_v30 }
 0x55d   : > { %v5582_v17 = vpop.permute.xlu1 %5581 }
 0x55e   : > { %5605 = vst.msk [vmem:[#allocation6 + $0x10] sm:$0xff] %vm5603_vm10, %v5582_v17 }
 0x55f   : > { %v5652_v25 = vld [vmem:[#allocation6] sm:$0xff] }
 0x565   : > { %v5654_v45 = vld [vmem:[#allocation6 + $0x10] sm:$0xff] }
 0x566   : > { %v5668_v3 = vpack.c.bf16 %v5654_v45, %v5652_v25 }
 0x567   : > { %v5163_v7 = vpop.permute.xlu0 %5162  ;;  %v5068_v27 = vpop.permute.xlu1 %5067 }
 0x568   : > { %5185 = vst.msk [vmem:[#allocation6 + $0x20] sm:$0xff] %vm5182_vm1, %v5163_v7  ;;  %5793 = vmatmul.mubr.bf16.vlgmr.msra.gmra.mrb[48].mxu0 %v5668_v3  ;;  %v15896_v7 = vld [vmem:[#allocation17_spill] sm:$0xff] }
 0x569   : > { %5089 = vst.msk [vmem:[#allocation6 + $0x30] sm:$0xff] %vm15888_vm15, %v5068_v27  ;;  %8160 = vmatprep.mubr.msk.bf16.mxu0 %vm15889_vm12, %v5671_v38  ;;  %v14239_v27 = vshra.s32 %v15896_v7, 2  ;;  %v14242_v32 = vand.u32 3, %v15896_v7  ;;  %vm6237_vm12 = vcmask 254976  }
 0x56a   : > { %6238 = vst.msk [vmem:[#allocation4 + $0x18] sm:$0x3] %vm6237_vm12, %v15692_v50 }
 0x56b   : > { %v5260_v29 = vpop.permute.xlu0 %5259  ;;  %v5165_v20 = vpop.permute.xlu1 %5164  ;;  %v5871_v25 = vmul.u32 2, %v14242_v32 }
 0x56c   : > { %5282 = vst.msk [vmem:[#allocation6 + $0x20] sm:$0xff] %vm5279_vm2, %v5260_v29  ;;  %v5867_v29 = vmul.u32 2, %v14239_v27 }
 0x56d   : > { %5186 = vst.msk [vmem:[#allocation6 + $0x30] sm:$0xff] %vm5182_vm1, %v5165_v20  ;;  %v5961_v51 = vadd.s32 1, %v5871_v25 }
 0x56e   : > { %v5869_v20 = vmul.u32 8, %v5867_v29  ;;  %v6052_v38 = vadd.s32 1, %v5867_v29 }
 0x56f   : > { %v5333_v21 = vpop.permute.xlu0 %5332  ;;  %v5262_v48 = vpop.permute.xlu1 %5261 }
 0x570   : > { %5355 = vst.msk [vmem:[#allocation6 + $0x20] sm:$0xff] %vm5352_vm5, %v5333_v21  ;;  %v5873_v45 = vadd.s32 %v5871_v25, %v5869_v20  ;;  %v14249_v21 = vadd.s32 %v5961_v51, %v5869_v20 }
 0x571   : > { %5283 = vst.msk [vmem:[#allocation6 + $0x30] sm:$0xff] %vm5279_vm2, %v5262_v48  ;;  %v6054_v48 = vmul.u32 8, %v6052_v38 }
 0x572   : > { %vm5875_vm11 = vcmp.eq.s32.totalorder %v12859_v10, %v5873_v45 }
 0x573   : > { %v5406_v8 = vpop.permute.xlu0 %5405  ;;  %v5335_v2 = vpop.permute.xlu1 %5334  ;;  %v5877_v3 = vsel %vm5875_vm11, 1.0, %v15692_v50 }
 0x574   : > { %5428 = vst.msk [vmem:[#allocation6 + $0x20] sm:$0xff] %vm5425_vm0, %v5406_v8  ;;  %v6056_v8 = vadd.s32 %v6054_v48, %v5871_v25 }
 0x575   : > { %5356 = vst.msk [vmem:[#allocation6 + $0x30] sm:$0xff] %vm5352_vm5, %v5335_v2 }
 0x577   : > { %v5511_v15 = vpop.permute.xlu0 %5510  ;;  %v5408_v57 = vpop.permute.xlu1 %5407 }
 0x578   : > { %5533 = vst.msk [vmem:[#allocation6 + $0x20] sm:$0xff] %vm5530_vm4, %v5511_v15  ;;  %v8163_v15 = vld [vmem:[%s14987_s5] ss:$0 sm:$0xff] }
 0x579   : > { %5429 = vst.msk [vmem:[#allocation6 + $0x30] sm:$0xff] %vm5425_vm0, %v5408_v57 }
 0x57b   : > { %v5584_v23 = vpop.permute.xlu0 %5583  ;;  %v5513_v16 = vpop.permute.xlu1 %5512 }
 0x57c   : > { %5606 = vst.msk [vmem:[#allocation6 + $0x20] sm:$0xff] %vm5603_vm10, %v5584_v23  ;;  %v8164_v23 = vld [vmem:[%s14988_s6] ss:$0 sm:$0xff] }
 0x57d   : > { %5534 = vst.msk [vmem:[#allocation6 + $0x30] sm:$0xff] %vm5530_vm4, %v5513_v16  ;;  %v14260_v16 = vadd.s32 %v6054_v48, %v5961_v51 }
 0x57f   : > { %v5070_v18 = vpop.permute.xlu0 %5069  ;;  %v5586_v13 = vpop.permute.xlu1 %5585  ;;  %vm6147_vm3 = vcmp.eq.s32.totalorder %v12859_v10, %v14260_v16 }
 0x580   : > { %5090 = vst.msk [vmem:[#allocation6 + $0x40] sm:$0xff] %vm15890_vm14, %v5070_v18  ;;  %vm15089_vm14 = vmmov 0  }
 0x581   : > { %5607 = vst.msk [vmem:[#allocation6 + $0x30] sm:$0xff] %vm5603_vm10, %v5586_v13 }
 0x583   : > { %v5167_v60 = vpop.permute.xlu0 %5166  ;;  %v5072_v36 = vpop.permute.xlu1 %5071  ;;  %v5656_v5 = vld [vmem:[#allocation6 + $0x20] sm:$0xff] }
 0x584   : > { %5187 = vst.msk [vmem:[#allocation6 + $0x40] sm:$0xff] %vm5182_vm1, %v5167_v60 }
 0x585   : > { %5091 = vst.msk [vmem:[#allocation6 + $0x50] sm:$0xff] %vm15891_vm9, %v5072_v36 }
 0x587   : > { %v5264_v34 = vpop.permute.xlu0 %5263  ;;  %v5169_v11 = vpop.permute.xlu1 %5168 }
 0x588   : > { %v5658_v52 = vld [vmem:[#allocation6 + $0x30] sm:$0xff]  ;;  %5284 = vst.msk [vmem:[#allocation6 + $0x40] sm:$0xff] %vm5279_vm2, %v5264_v34 }
 0x589   : > { %5188 = vst.msk [vmem:[#allocation6 + $0x50] sm:$0xff] %vm5182_vm1, %v5169_v11  ;;  %v5670_v53 = vpack.c.bf16 %v5658_v52, %v5656_v5 }
 0x58b   : > { %5801 = vmatmul.mubr.bf16.gmra.mrb[52].mxu0 %v5670_v53  ;;  %v5337_v41 = vpop.permute.xlu0 %5336  ;;  %v5266_v1 = vpop.permute.xlu1 %5265 }
 0x58c   : > { %8161 = vmatprep.mubr.msk.bf16.mxu0 %vm15892_vm8, %v5673_v6  ;;  %5357 = vst.msk [vmem:[#allocation6 + $0x40] sm:$0xff] %vm5352_vm5, %v5337_v41 }
 0x58d   : > { %5285 = vst.msk [vmem:[#allocation6 + $0x50] sm:$0xff] %vm5279_vm2, %v5266_v1 }
 0x58f   : > { %v5410_v58 = vpop.permute.xlu0 %5409  ;;  %v5339_v19 = vpop.permute.xlu1 %5338 }
 0x590   : > { %5430 = vst.msk [vmem:[#allocation6 + $0x40] sm:$0xff] %vm5425_vm0, %v5410_v58 }
 0x591   : > { %5358 = vst.msk [vmem:[#allocation6 + $0x50] sm:$0xff] %vm5352_vm5, %v5339_v19 }
 0x593   : > { %v5515_v31 = vpop.permute.xlu0 %5514  ;;  %v5412_v61 = vpop.permute.xlu1 %5411 }
 0x594   : > { %5535 = vst.msk [vmem:[#allocation6 + $0x40] sm:$0xff] %vm5530_vm4, %v5515_v31 }
 0x595   : > { %5431 = vst.msk [vmem:[#allocation6 + $0x50] sm:$0xff] %vm5425_vm0, %v5412_v61 }
 0x597   : > { %v5588_v54 = vpop.permute.xlu0 %5587  ;;  %v5517_v28 = vpop.permute.xlu1 %5516 }
 0x598   : > { %5608 = vst.msk [vmem:[#allocation6 + $0x40] sm:$0xff] %vm5603_vm10, %v5588_v54 }
 0x599   : > { %5536 = vst.msk [vmem:[#allocation6 + $0x50] sm:$0xff] %vm5530_vm4, %v5517_v28 }
 0x59b   : > { %v5074_v14 = vpop.permute.xlu0 %5073  ;;  %v5590_v42 = vpop.permute.xlu1 %5589 }
 0x59c   : > { %5092 = vst.msk [vmem:[#allocation6 + $0x60] sm:$0xff] %vm15893_vm6, %v5074_v14  ;;  %vm6315_vm6 = vcmp.ge.s32.totalorder %v14239_v27, 0 }
 0x59d   : > { %5609 = vst.msk [vmem:[#allocation6 + $0x50] sm:$0xff] %vm5603_vm10, %v5590_v42 }
 0x59f   : > { %v5171_v55 = vpop.permute.xlu0 %5170  ;;  %v5076_v62 = vpop.permute.xlu1 %5075  ;;  %v5660_v43 = vld [vmem:[#allocation6 + $0x40] sm:$0xff] }
 0x5a0   : > { %5189 = vst.msk [vmem:[#allocation6 + $0x60] sm:$0xff] %vm5182_vm1, %v5171_v55 }
 0x5a1   : > { %5093 = vst.msk [vmem:[#allocation6 + $0x70] sm:$0xff] %vm15894_vm7, %v5076_v62  ;;  %vm6317_vm7 = vcmp.lt.s32.totalorder %v14239_v27, 4 }
 0x5a3   : > { %v5268_v12 = vpop.permute.xlu0 %5267  ;;  %v5173_v63 = vpop.permute.xlu1 %5172 }
 0x5a4   : > { %v5662_v59 = vld [vmem:[#allocation6 + $0x50] sm:$0xff]  ;;  %5286 = vst.msk [vmem:[#allocation6 + $0x60] sm:$0xff] %vm5279_vm2, %v5268_v12 }
 0x5a5   : > { %5190 = vst.msk [vmem:[#allocation6 + $0x70] sm:$0xff] %vm5182_vm1, %v5173_v63  ;;  %v5672_v44 = vpack.c.bf16 %v5662_v59, %v5660_v43  ;;  %vm5879_vm1 = vcmask 523264  }
 0x5a7   : > { %5809 = vmatmul.mubr.bf16.gmra.mrb[56].mxu0 %v5672_v44  ;;  %v5341_v37 = vpop.permute.xlu0 %5340  ;;  %v5270_v33 = vpop.permute.xlu1 %5269 }
 0x5a8   : > { %8162 = vmatprep.mubr.msk.bf16.mxu0 %vm15895_vm13, %v5675_v22  ;;  %5359 = vst.msk [vmem:[#allocation6 + $0x60] sm:$0xff] %vm5352_vm5, %v5341_v37  ;;  %v15897_v37 = vld [vmem:[#allocation18_spill] sm:$0xff] }
 0x5a9   : > { %5287 = vst.msk [vmem:[#allocation6 + $0x70] sm:$0xff] %vm5279_vm2, %v5270_v33  ;;  %vm6058_vm2 = vcmp.eq.s32.totalorder %v12859_v10, %v6056_v8  ;;  %v14275_v33 = vshra.s32 %v15897_v37, 2 }
 0x5aa   : > { %v6060_v2 = vsel %vm6058_vm2, 1.0, %v15692_v50 }
 0x5ab   : > { %v5414_v46 = vpop.permute.xlu0 %5413  ;;  %v5343_v47 = vpop.permute.xlu1 %5342  ;;  %8768 = vmatprep.mubr.msk.f32.mxu1 %vm5879_vm1, %v6060_v2  ;;  %vm6316_vm9 = vcmp.ge.s32.totalorder %v14275_v33, 0  ;;  %vm6318_vm8 = vcmp.lt.s32.totalorder %v14275_v33, 4 }
 0x5ac   : > { %5432 = vst.msk [vmem:[#allocation6 + $0x60] sm:$0xff] %vm5425_vm0, %v5414_v46  ;;  %v5868_v46 = vmul.u32 2, %v14275_v33  ;;  %vm14342_vm2 = vmand %vm6316_vm9, %vm6318_vm8 }
 0x5ad   : > { %5360 = vst.msk [vmem:[#allocation6 + $0x70] sm:$0xff] %vm5352_vm5, %v5343_v47  ;;  %v14279_v47 = vand.u32 3, %v15897_v37 }
 0x5af   : > { %v5519_v9 = vpop.permute.xlu0 %5518  ;;  %v5416_v49 = vpop.permute.xlu1 %5415 }
 0x5b0   : > { %5537 = vst.msk [vmem:[#allocation6 + $0x60] sm:$0xff] %vm5530_vm4, %v5519_v9  ;;  %v6053_v9 = vadd.s32 1, %v5868_v46 }
 0x5b1   : > { %5433 = vst.msk [vmem:[#allocation6 + $0x70] sm:$0xff] %vm5425_vm0, %v5416_v49 }
 0x5b3   : > { %v5592_v26 = vpop.permute.xlu0 %5591  ;;  %v5521_v56 = vpop.permute.xlu1 %5520 }
 0x5b4   : > { %5610 = vst.msk [vmem:[#allocation6 + $0x60] sm:$0xff] %vm5603_vm10, %v5592_v26  ;;  %v5870_v26 = vmul.u32 8, %v5868_v46  ;;  %v9127_v46 = vld [vmem:[%s14989_s7 + $0x50] sm:$0xff]  }
 0x5b5   : > { %5538 = vst.msk [vmem:[#allocation6 + $0x70] sm:$0xff] %vm5530_vm4, %v5521_v56  ;;  %vm5965_vm4 = vcmp.eq.s32.totalorder %v12859_v10, %v14249_v21 }
 0x5b7   : > { %v5594_v0 = vpop.permute.xlu1 %5593 }
 0x5b8   : > { %5611 = vst.msk [vmem:[#allocation6 + $0x70] sm:$0xff] %vm5603_vm10, %v5594_v0 }
 0x5bb   : > { %v5664_v39 = vld [vmem:[#allocation6 + $0x60] sm:$0xff] }
 0x5bf   : > { %v5666_v30 = vld [vmem:[#allocation6 + $0x70] sm:$0xff] }
 0x5c0   : > { %v5674_v17 = vpack.c.bf16 %v5666_v30, %v5664_v39  ;;  %v5872_v39 = vmul.u32 2, %v14279_v47  ;;  %v6055_v30 = vmul.u32 8, %v6053_v9 }
 0x5c2   : > { %5817 = vmatmul.mubr.bf16.gmra.mrb[60].mxu0 %v5674_v17  ;;  %v6057_v51 = vadd.s32 %v6055_v30, %v5872_v39  ;;  %v5962_v21 = vadd.s32 1, %v5872_v39 }
 0x5c3   : > { %8730 = vmatprep.mubr.msk.f32.mxu0 %vm5879_vm1, %v5877_v3  ;;  %v5874_v3 = vadd.s32 %v5872_v39, %v5870_v26  ;;  %v9129_v39 = vld [vmem:[%s14989_s7 + $0x58] sm:$0xff]  }
 0x5c4   : > { %vm6059_vm0 = vcmp.eq.s32.totalorder %v12859_v10, %v6057_v51 }
 0x5c5   : > { %vm5876_vm5 = vcmp.eq.s32.totalorder %v12859_v10, %v5874_v3 }
 0x5c6   : > { %v5878_v2 = vsel %vm5876_vm5, 1.0, %v15692_v50 }
 0x63b   : > { %v5794_v57 = vpop.f32.mrb[48].mxu0 }
 0x63c   : > { %v5832_v18 = vmul.f32 %v8163_v15, %v5794_v57  ;;  %v5796_v13 = vpop.f32.mrb[49].mxu0  ;;  %v5967_v57 = vsel %vm5965_vm4, 1.0, %v15692_v50 }
 0x63d   : > { %v5797_v60 = vpop.f32.mrb[50].mxu0  ;;  %v6149_v13 = vsel %vm6147_vm3, 1.0, %v15692_v50  ;;  %vm15904_vm3 = vcmask 261120  }
 0x63e   : > { %v5847_v36 = vadd.f32 %v8164_v23, %v5832_v18  ;;  %v5833_v4 = vmul.f32 %v8163_v15, %v5797_v60  ;;  %v5799_v34 = vpop.f32.mrb[51].mxu0  ;;  %v6146_v60 = vadd.s32 %v6055_v30, %v5962_v21  ;;  %vm15907_vm12 = vmmov %vm15904_vm3 }
 0x63f   : > { %v9123_v34 = vld [vmem:[%s14989_s7 + $0x40] sm:$0xff]  }
 0x640   : > { %v5848_v11 = vadd.f32 %v8164_v23, %v5833_v4  ;;  %v5855_v5 = vmax.f32 %v5847_v36, 0.0  ;;  %vm6148_vm15 = vcmp.eq.s32.totalorder %v12859_v10, %v6146_v60  ;;  %v9121_v36 = vld [vmem:[%s14989_s7 + $0x80] sm:$0xff]   ;;  %v9122_v4 = vld [vmem:[%s14989_s7 + $0x88] sm:$0xff]  }
 0x641   : > { %v6150_v16 = vsel %vm6148_vm15, 1.0, %v15692_v50 }
 0x642   : > { %v5856_v52 = vmax.f32 %v5848_v11, 0.0 }
 0x644   : > { %v14262_v53 = vpack.c.bf16 %v5856_v52, %v5855_v5 }
 0x646   : > { %8975 = vmatprep.subr.bf16.mxu0 %v14262_v53  ;;  %9007 = vmatprep.subr.bf16.mxu1 %v14262_v53 }
 0x647   : > { %8977 = vmatpush3.bf16.msra.mxu0 %v14262_v53  ;;  %9009 = vmatpush3.bf16.msra.mxu1 %v14262_v53 }
 0x65e   : > { %v5802_v24 = vpop.f32.mrb[52].mxu0 }
 0x65f   : > { %v5834_v6 = vmul.f32 %v8163_v15, %v5802_v24  ;;  %v5804_v41 = vpop.f32.mrb[53].mxu0 }
 0x660   : > { %v5805_v1 = vpop.f32.mrb[54].mxu0 }
 0x661   : > { %v5849_v58 = vadd.f32 %v8164_v23, %v5834_v6  ;;  %v5835_v19 = vmul.f32 %v8163_v15, %v5805_v1  ;;  %v5807_v31 = vpop.f32.mrb[55].mxu0 }
 0x662   : > { %v6369_v31 = vadd.s32 1, %v14275_v33 }
 0x663   : > { %v5850_v61 = vadd.f32 %v8164_v23, %v5835_v19  ;;  %v5857_v54 = vmax.f32 %v5849_v58, 0.0 }
 0x664   : > { %vm6371_vm13 = vcmp.ge.s32.totalorder %v6369_v31, 0 }
 0x665   : > { %v5858_v28 = vmax.f32 %v5850_v61, 0.0  ;;  %v14326_v61 = vadd.s32 1, %v14279_v47 }
 0x667   : > { %v14268_v14 = vpack.c.bf16 %v5858_v28, %v5857_v54  ;;  %v14331_v54 = vadd.s32 1, %v14242_v32  ;;  %v14336_v28 = vadd.s32 4294967295, %v14279_v47  ;;  %vm15093_vm11 = vcmp.lt.s32.totalorder %v14326_v61, 4 }
 0x668   : > { %vm14369_vm15 = vmand %vm14342_vm2, %vm15093_vm11 }
 0x669   : > { %8979 = vmatprep.subr.bf16.mxu0 %v14268_v14  ;;  %9011 = vmatprep.subr.bf16.mxu1 %v14268_v14  ;;  %vm15092_vm5 = vcmp.lt.s32.totalorder %v14331_v54, 4  ;;  %vm15091_vm4 = vcmp.ge.s32.totalorder %v14336_v28, 0 }
 0x66a   : > { %8981 = vmatpush3.bf16.msra.mxu0 %v14268_v14  ;;  %9013 = vmatpush3.bf16.msra.mxu1 %v14268_v14 }
 0x67a   : > { %v5810_v42 = vpop.f32.mrb[56].mxu0 }
 0x67b   : > { %v5836_v55 = vmul.f32 %v8163_v15, %v5810_v42  ;;  %v5812_v62 = vpop.f32.mrb[57].mxu0 }
 0x67c   : > { %v5813_v35 = vpop.f32.mrb[58].mxu0  ;;  %v6368_v62 = vadd.s32 1, %v14239_v27 }
 0x67d   : > { %v5851_v40 = vadd.f32 %v8164_v23, %v5836_v55  ;;  %v5837_v12 = vmul.f32 %v8163_v15, %v5813_v35  ;;  %v5815_v63 = vpop.f32.mrb[59].mxu0  ;;  %v9125_v35 = vld [vmem:[%s14989_s7 + $0x48] sm:$0xff]  }
 0x67e   : > { %vm6370_vm8 = vcmp.ge.s32.totalorder %v6368_v62, 0 }
 0x67f   : > { %v5852_v43 = vadd.f32 %v8164_v23, %v5837_v12  ;;  %v5859_v59 = vmax.f32 %v5851_v40, 0.0 }
 0x681   : > { %v5860_v44 = vmax.f32 %v5852_v43, 0.0  ;;  %v6244_v43 = vadd.s32 4294967295, %v14275_v33  ;;  %v9126_v33 = vld [vmem:[%s14989_s7 + $0x8] sm:$0xff]  }
 0x683   : > { %v8982_v22 = vpack.c.bf16 %v5860_v44, %v5859_v59 }
 0x685   : > { %8983 = vmatprep.subr.bf16.mxu0 %v8982_v22  ;;  %9015 = vmatprep.subr.bf16.mxu1 %v8982_v22 }
 0x686   : > { %8985 = vmatpush3.bf16.msra.mxu0 %v8982_v22  ;;  %9017 = vmatpush3.bf16.msra.mxu1 %v8982_v22 }
 0x695   : > { %v5818_v49 = vpop.f32.mrb[60].mxu0 }
 0x696   : > { %v5838_v56 = vmul.f32 %v8163_v15, %v5818_v49  ;;  %v5820_v0 = vpop.f32.mrb[61].mxu0  ;;  %v14405_v49 = vadd.s32 4294967295, %v14242_v32 }
 0x697   : > { %v5821_v17 = vpop.f32.mrb[62].mxu0 }
 0x698   : > { %v5853_v29 = vadd.f32 %v8164_v23, %v5838_v56  ;;  %v5839_v20 = vmul.f32 %v8163_v15, %v5821_v17  ;;  %v5823_v25 = vpop.f32.mrb[63].mxu0  ;;  %v6061_v15 = vsel %vm6059_vm0, 1.0, %v15692_v50  ;;  %vm14351_vm0 = vmand %vm6315_vm6, %vm6317_vm7  ;;  %vm6372_vm6 = vcmp.lt.s32.totalorder %v6368_v62, 4  ;;  %v9128_v56 = vld [vmem:[%s14989_s7 + $0x10] sm:$0xff]  }
 0x699   : > { %vm14381_vm9 = vmand %vm14351_vm0, %vm15092_vm5  ;;  %v9135_v62 = vld [vmem:[%s14989_s7 + $0x70] sm:$0xff]  }
 0x69a   : > { %v5854_v45 = vadd.f32 %v8164_v23, %v5839_v20  ;;  %v5861_v38 = vmax.f32 %v5853_v29, 0.0  ;;  %v5964_v23 = vadd.s32 %v5962_v21, %v5870_v26 }
 0x69c   : > { %v5862_v48 = vmax.f32 %v5854_v45, 0.0  ;;  %vm5966_vm10 = vcmp.eq.s32.totalorder %v12859_v10, %v5964_v23 }
 0x69d   : > { %v5968_v18 = vsel %vm5966_vm10, 1.0, %v15692_v50 }
 0x69e   : > { %v8986_v8 = vpack.c.bf16 %v5862_v48, %v5861_v38 }
 0x6a0   : > { %8987 = vmatprep.subr.bf16.mxu0 %v8986_v8  ;;  %9019 = vmatprep.subr.bf16.mxu1 %v8986_v8 }
 0x6a1   : > { %8989 = vmatpush3.bf16.msra.mxu0 %v8986_v8  ;;  %9021 = vmatpush3.bf16.msra.mxu1 %v8986_v8 }
 0x6a2   : > { %8991 = vmatprep.subr.bf16.mxu0 %v14262_v53  ;;  %8588 = vmatprep.subr.bf16.mxu1 %v9123_v34 }
 0x6a4   : > { %8731 = vmatmul.mubr.msk.f32.vlgmr.msra.gmra.mrb[64].mxu0 %vm5879_vm1, %v5878_v2  ;;  %8769 = vmatmul.mubr.msk.f32.vlgmr.msra.gmra.mrb[48].mxu1 %vm5879_vm1, %v6061_v15 }
 0x6a5   : > { %8993 = vmatpush3.bf16.msra.mxu0 %v14262_v53  ;;  %8749 = vmatprep.mubr.msk.f32.mxu0 %vm5879_vm1, %v5967_v57  ;;  %v6679_v57 = vand.u32 1, %v15896_v7 }
 0x6a6   : > { %8995 = vmatprep.subr.bf16.mxu0 %v14268_v14 }
 0x6a9   : > { %8997 = vmatpush3.bf16.msra.mxu0 %v14268_v14 }
 0x6aa   : > { %8999 = vmatprep.subr.bf16.mxu0 %v8982_v22 }
 0x6ad   : > { %9001 = vmatpush3.bf16.msra.mxu0 %v8982_v22 }
 0x6ae   : > { %9003 = vmatprep.subr.bf16.mxu0 %v8986_v8 }
 0x6b1   : > { %9005 = vmatpush3.bf16.msra.mxu0 %v8986_v8 }
 0x6b2   : > { %9023 = vmatprep.subr.bf16.mxu0 %v14262_v53 }
 0x6b4   : > { %8750 = vmatmul.mubr.msk.f32.vlgmr.msra.gmra.mrb[66].mxu0 %vm5879_vm1, %v5968_v18 }
 0x6b5   : > { %9025 = vmatpush3.bf16.msra.mxu0 %v14262_v53  ;;  %8787 = vmatprep.mubr.msk.f32.mxu0 %vm5879_vm1, %v6149_v13 }
 0x6b6   : > { %9027 = vmatprep.subr.bf16.mxu0 %v14268_v14 }
 0x6b9   : > { %9029 = vmatpush3.bf16.msra.mxu0 %v14268_v14  ;;  %v9124_v14 = vld [vmem:[%s14989_s7] sm:$0xff]  }
 0x6ba   : > { %9031 = vmatprep.subr.bf16.mxu0 %v8982_v22  ;;  %8589 = vmatpush3.bf16.msra.mxu1 %v9124_v14  ;;  %v9134_v14 = vld [vmem:[%s14989_s7 + $0x28] sm:$0xff]  }
 0x6bb   : > { %8590 = vmatprep.subr.bf16.mxu1 %v9125_v35 }
 0x6bd   : > { %9033 = vmatpush3.bf16.msra.mxu0 %v8982_v22  ;;  %v6243_v22 = vadd.s32 4294967295, %v14239_v27 }
 0x6be   : > { %9035 = vmatprep.subr.bf16.mxu0 %v8986_v8  ;;  %8591 = vmatpush3.bf16.msra.mxu1 %v9126_v33 }
 0x6bf   : > { %8592 = vmatprep.subr.bf16.mxu1 %v9127_v46 }
 0x6c1   : > { %9037 = vmatpush3.bf16.msra.mxu0 %v8986_v8 }
 0x6c2   : > { %8790 = vmatprep.subr.bf16.mxu0 %v15692_v50  ;;  %8593 = vmatpush3.bf16.msra.mxu1 %v9128_v56 }
 0x6c3   : > { %8594 = vmatprep.subr.bf16.mxu1 %v9129_v39 }
 0x6c4   : > { %8788 = vmatmul.mubr.msk.f32.vlgmr.msra.gmra.mrb[68].mxu0 %vm5879_vm1, %v6150_v16  ;;  %vm6373_vm1 = vcmp.lt.s32.totalorder %v6369_v31, 4 }
 0x6c5   : > { %8791 = vmatpush3.bf16.msra.mxu0 %v9121_v36  ;;  %8794 = vmatprep.mubr.msk.bf16.mxu0 %vm15089_vm14, %v15692_v50  ;;  %vm14359_vm10 = vmand %vm6371_vm13, %vm6373_vm1  ;;  %vm6246_vm13 = vcmp.ge.s32.totalorder %v6244_v43, 0  ;;  %vm6248_vm1 = vcmp.lt.s32.totalorder %v6244_v43, 4  ;;  %vm6247_vm14 = vcmp.lt.s32.totalorder %v6243_v22, 4 }
 0x6c6   : > { %8792 = vmatprep.subr.bf16.mxu0 %v15692_v50  ;;  %vm14392_vm7 = vmand %vm14359_vm10, %vm15091_vm4 }
 0x6c7   : > { %vm14407_vm4 = vmand %vm6370_vm8, %vm6372_vm6  ;;  %vm6253_vm8 = vcmp.ge.s32.totalorder %v14405_v49, 0  ;;  %vm15920_vm6 = vcmp.lt.s32.totalorder %v14331_v54, 4 }
 0x6c8   : > { %vm14414_vm5 = vmand %vm6246_vm13, %vm6248_vm1 }
 0x6c9   : > { %8793 = vmatpush3.bf16.msra.mxu0 %v9122_v4  ;;  %vm14430_vm13 = vmand %vm14407_vm4, %vm15920_vm6  ;;  %v9130_v4 = vld [vmem:[%s14989_s7 + $0x18] sm:$0xff]  }
 0x6ca   : > { %8595 = vmatpush3.bf16.msra.mxu1 %v9130_v4  ;;  %v8193_v4 = vld [vmem:[%s14991_s9] ss:$0 sm:$0xff] }
 0x777   : > { %v8732_v11 = vpop.f32.mrb[64].mxu0  ;;  %v8770_v5 = vpop.f32.mrb[48].mxu1 }
 0x778   : > { %v5952_v52 = vpop.f32.mrb[65].mxu0  ;;  %v6134_v53 = vpop.f32.mrb[49].mxu1 }
 0x787   : > { %v8751_v24 = vpop.f32.mrb[66].mxu0 }
 0x788   : > { %v6051_v6 = vmax.f32 %v8732_v11, %v8751_v24  ;;  %v6041_v41 = vpop.f32.mrb[67].mxu0  ;;  %v9133_v24 = vld [vmem:[%s14989_s7 + $0x68] sm:$0xff]  }
 0x789   : > { %v6050_v1 = vmax.f32 %v5952_v52, %v6041_v41  ;;  %v9131_v52 = vld [vmem:[%s14989_s7 + $0x60] sm:$0xff]  }
 0x78a   : > { %v6144_v58 = vmax.f32 %v6051_v6, %v8770_v5  ;;  %8596 = vmatprep.subr.bf16.mxu1 %v9131_v52 }
 0x78b   : > { %v6143_v19 = vmax.f32 %v6050_v1, %v6134_v53  ;;  %v9132_v53 = vld [vmem:[%s14989_s7 + $0x20] sm:$0xff]  }
 0x78c   : > { %8597 = vmatpush3.bf16.msra.mxu1 %v9132_v53 }
 0x78d   : > { %8598 = vmatprep.subr.bf16.mxu1 %v9133_v24 }
 0x790   : > { %8599 = vmatpush3.bf16.msra.mxu1 %v9134_v14 }
 0x791   : > { %8600 = vmatprep.subr.bf16.mxu1 %v9135_v62 }
 0x797   : > { %v8789_v42 = vpop.f32.mrb[68].mxu0 }
 0x798   : > { %v6233_v40 = vmax.f32 %v6144_v58, %v8789_v42  ;;  %v6223_v12 = vpop.f32.mrb[69].mxu0 }
 0x799   : > { %v6232_v59 = vmax.f32 %v6143_v19, %v6223_v12  ;;  %v9137_v12 = vld [vmem:[%s14989_s7 + $0x78] sm:$0xff]  }
 0x79a   : > { %6240 = vst.msk [vmem:[#allocation4 + $0xd] sm:$0xff] %vm15904_vm3, %v6233_v40  ;;  %vm14400_vm3 = vmand %vm14359_vm10, %vm15093_vm11  ;;  %v9136_v40 = vld [vmem:[%s14989_s7 + $0x30] sm:$0xff]  }
 0x79b   : > { %6239 = vst.msk [vmem:[#allocation4 + $0x5] sm:$0xff] %vm15907_vm12, %v6232_v59  ;;  %vm6245_vm12 = vcmp.ge.s32.totalorder %v6243_v22, 0  ;;  %8601 = vmatpush3.bf16.msra.mxu1 %v9136_v40  ;;  %v9138_v22 = vld [vmem:[%s14989_s7 + $0x38] sm:$0xff]  }
 0x79c   : > { %vm14421_vm11 = vmand %vm6245_vm12, %vm6247_vm14  ;;  %vm15923_vm14 = vcmp.ge.s32.totalorder %v14336_v28, 0  ;;  %vm15926_vm12 = vcmask 261120   ;;  %8602 = vmatprep.subr.bf16.mxu1 %v9137_v12 }
 0x79d   : > { %vm14442_vm1 = vmand %vm14414_vm5, %vm15923_vm14 }
 0x79f   : > { %8603 = vmatpush3.bf16.msra.mxu1 %v9138_v22  ;;  %v9144_v22 = vld [vmem:[%s14992_s10 + $0xc] ss:$16 sps:$4 sm:$0xff]  }
 0x7a1   : > { %v6349_v30 = vld [vmem:[#allocation4 + $0xe] sm:$0xff] }
 0x7a2   : > { %v6411_v17 = vld [vmem:[#allocation4 + $0x12] sm:$0xff]  ;;  %v6355_v20 = vsel %vm14369_vm15, %v6349_v30, 0.0  ;;  %v6348_v25 = vld [vmem:[#allocation4 + $0x6] sm:$0xff]  ;;  %vm14457_vm15 = vmand %vm14421_vm11, %vm6253_vm8 }
 0x7a3   : > { %v6417_v45 = vsel %vm14400_vm3, %v6411_v17, 0.0  ;;  %6360 = vrot.lane.b32.xlu1 %v6355_v20, %s9353_s27  ;;  %v6354_v51 = vsel %vm14381_vm9, %v6348_v25, 0.0  ;;  %v6367_v38 = vld [vmem:[#allocation4 + $0x10] sm:$0xff]  ;;  %v6366_v48 = vld [vmem:[#allocation4 + $0x8] sm:$0xff]  ;;  %vm15929_vm9 = vmmov %vm15926_vm12 }
 0x7a4   : > { %6419 = vst.msk [vmem:[#allocation7 + $0x28] sm:$0xff] %vm15926_vm12, %v6417_v45  ;;  %v6410_v8 = vld [vmem:[#allocation4 + $0xa] sm:$0xff]  ;;  %6358 = vrot.lane.b32.xlu0 %v6354_v51, %s9353_s27  ;;  %v6265_v2 = vld [vmem:[#allocation4 + $0x1] sm:$0xff]  ;;  %v6381_v18 = vsel %vm14392_vm7, %v6367_v38, 0.0  ;;  %v6262_v36 = vsel %vm14442_vm1, %v6366_v48, 0.0  ;;  %vm15930_vm7 = vmmov %vm15929_vm9  ;;  %vm15934_vm1 = vcmp.lt.s32.totalorder %v14331_v54, 4 }
 0x7a5   : > { %v6416_v15 = vsel %vm14430_vm13, %v6410_v8, 0.0  ;;  %v6339_v21 = vld [vmem:[#allocation4 + $0xd] sm:$0xff]  ;;  %v6338_v23 = vld [vmem:[#allocation4 + $0x5] sm:$0xff]  ;;  %v6275_v34 = vsel %vm14421_vm11, %v6265_v2, 0.0  ;;  %vm15931_vm3 = vmmov %vm15930_vm7 }
 0x7a6   : > { %6418 = vst.msk [vmem:[#allocation7 + $0x10] sm:$0xff] %vm15929_vm9, %v6416_v15  ;;  %v6345_v13 = vsel %vm14342_vm2, %v6339_v21, 0.0  ;;  %v6344_v60 = vsel %vm14351_vm0, %v6338_v23, 0.0  ;;  %v6241_v16 = vld [vmem:[#allocation4] sm:$0xff]  ;;  %v6393_v11 = vld [vmem:[#allocation4 + $0x11] sm:$0xff]  ;;  %vm15932_vm6 = vmmov %vm15931_vm3  ;;  %vm15937_vm9 = vmmov 0  }
 0x7a7   : > { %6386 = vrot.lane.b32.xlu1 %v6381_v18, %s9355_s20  ;;  %6347 = vst.msk [vmem:[#allocation7 + $0x20] sm:$0xff] %vm15930_vm7, %v6345_v13  ;;  %v6261_v5 = vsel %vm14457_vm15, %v6241_v16, 0.0  ;;  %vm6376_vm13 = vmand %vm14407_vm4, %vm6253_vm8  ;;  %v6399_v6 = vsel %vm14359_vm10, %v6393_v11, 0.0  ;;  %v6266_v58 = vld [vmem:[#allocation4 + $0x9] sm:$0xff]  ;;  %v8192_v13 = vld [vmem:[%s14990_s8] ss:$0 sm:$0xff] }
 0x7a8   : > { %6346 = vst.msk [vmem:[#allocation7 + $0x8] sm:$0xff] %vm15931_vm3, %v6344_v60  ;;  %6279 = vrot.lane.b32.xlu0 %v6275_v34, %s9353_s27  ;;  %vm15933_vm14 = vmmov %vm15931_vm3  ;;  %v6380_v1 = vsel %vm6376_vm13, %v6366_v48, 0.0  ;;  %v6288_v31 = vld [vmem:[#allocation4 + $0x2] sm:$0xff]  ;;  %v6276_v54 = vsel %vm14414_vm5, %v6266_v58, 0.0  ;;  %v6314_v59 = vld [vmem:[#allocation4 + $0xc] sm:$0xff]  ;;  %v9360_v48 = vmov 0.0|0.0  }
 0x7a9   : > { %6264 = vst.msk [vmem:[#allocation7 + $0x18] sm:$0xff] %vm15932_vm6, %v6262_v36  ;;  %vm6298_vm12 = vmand %vm14421_vm11, %vm15934_vm1  ;;  %vm15936_vm11 = vcmp.lt.s32.totalorder %v14326_v61, 4  ;;  %v6398_v61 = vsel %vm14407_vm4, %v6266_v58, 0.0  ;;  %v6313_v44 = vld [vmem:[#allocation4 + $0x4] sm:$0xff]  ;;  %vm6335_vm4 = vcmask 1048320   ;;  %9038 = vmatprep.subr.bf16.mxu0 %v9360_v48  ;;  %v6682_v11 = vmul.u32 2, %v6679_v57 }
 0x7aa   : > { %6263 = vst.msk [vmem:[#allocation7] sm:$0xff] %vm15933_vm14, %v6261_v5  ;;  %vm15935_vm10 = vmmov %vm15931_vm3  ;;  %v6300_v35 = vsel %vm6298_vm12, %v6288_v31, 0.0  ;;  %vm15939_vm13 = vcmask 130048   ;;  %v9189_v57 = vld [vmem:[%s14992_s10 + $0x104] ss:$16 sps:$4 sm:$0xff]  }
 0x7ab   : > { %v6425_v41 = vld [vmem:[#allocation7 + $0x28] sm:$0xff]  ;;  %6404 = vrot.lane.b32.xlu1 %v6399_v6, %s9357_s18  ;;  %vm6299_vm15 = vmand %vm14414_vm5, %vm15936_vm11  ;;  %vm15938_vm5 = vcmp.ge.s32.totalorder %v14336_v28, 0 }
 0x7ac   : > { %6384 = vrot.lane.b32.xlu0 %v6380_v1, %s9355_s20  ;;  %v6301_v43 = vsel %vm6299_vm15, %v6410_v8, 0.0  ;;  %vm6322_vm7 = vmand %vm14342_vm2, %vm15938_vm5  ;;  %vm6285_vm2 = vcmask 523520   ;;  %v6678_v8 = vshra.s32 %v15896_v7, 1 }
 0x7ad   : > { %v6422_v19 = vld [vmem:[#allocation7 + $0x10] sm:$0xff]  ;;  %vm6321_vm3 = vmand %vm14351_vm0, %vm6253_vm8  ;;  %v6326_v37 = vsel %vm6322_vm7, %v6314_v59, 0.0  ;;  %vm6310_vm0 = vcmask 785920  }
 0x7ae   : > { %v6428_v42 = vpack.c.bf16 %v6425_v41, %v6422_v19  ;;  %v6325_v28 = vsel %vm6321_vm3, %v6313_v44, 0.0  ;;  %v6680_v21 = vmul.u32 2, %v6678_v8  ;;  %v6759_v41 = vadd.s32 1, %v6682_v11  ;;  %vm15940_vm1 = vmmov %vm15939_vm13  ;;  %v9139_v59 = vld [vmem:[%s14992_s10] ss:$16 sps:$4 sm:$0xff]  }
 0x7af   : > { %6281 = vrot.lane.b32.xlu1 %v6276_v54, %s9353_s27  ;;  %vm15942_vm11 = vmmov %vm15940_vm1  ;;  %v9141_v44 = vld [vmem:[%s14992_s10 + $0x4] ss:$16 sps:$4 sm:$0xff]   ;;  %v9186_v8 = vld [vmem:[%s14992_s10 + $0xec] ss:$16 sps:$4 sm:$0xff]   ;;  %s9362_s27 = smov [#allocation9]  }
 0x7b0   : > { %8795 = vmatmul.mubr.msk.bf16.vlgmr.msra.gmra.mrb[72].mxu0 %vm15935_vm10, %v6428_v42  ;;  %6304 = vrot.lane.b32.xlu0 %v6300_v35, %s9355_s20  ;;  %v6681_v34 = vmul.u32 4, %v6680_v21  ;;  %v6837_v1 = vadd.s32 1, %v6680_v21  ;;  %vm15941_vm10 = vmmov %vm15940_vm1  ;;  %v9192_v21 = vld [vmem:[%s14992_s10 + $0x10c] ss:$16 sps:$4 sm:$0xff]   ;;  %s9281_s19 = sshll.u32 %s9362_s27, 4  ;;  %s9282_s19 = int_to_ptr.vmem [resolvable:$false] %s9281_s19 }
 0x7b1   : > { %8802 = vmatprep.mubr.msk.f32.mxu0 %vm15937_vm9, %v15692_v50  ;;  %7456 = vmatprep.subr.bf16.mxu1 %v9141_v44  ;;  %v9217_v44 = vld [vmem:[%s14992_s10 + $0x1a0] ss:$16 sps:$4 sm:$0xff]   ;;  %s9283_s29 = scalar_lea.vmem %s9282_s19, 32 }
 0x7b2   : > { %v6683_v6 = vadd.s32 %v6682_v11, %v6681_v34  ;;  %v6760_v14 = vadd.s32 %v6759_v41, %v6681_v34  ;;  %v6838_v42 = vmul.u32 4, %v6837_v1  ;;  %v9204_v34 = vld [vmem:[%s14992_s10 + $0x14c] ss:$16 sps:$4 sm:$0xff]  }
 0x7b3   : > { %6306 = vrot.lane.b32.xlu1 %v6301_v43, %s9355_s20  ;;  %v9216_v1 = vld [vmem:[%s14992_s10 + $0x18c] ss:$16 sps:$4 sm:$0xff]  }
 0x7b4   : > { %6402 = vrot.lane.b32.xlu0 %v6398_v61, %s9357_s18  ;;  %vm6684_vm8 = vcmp.eq.s32.totalorder %v12859_v10, %v6683_v6  ;;  %vm6761_vm6 = vcmp.eq.s32.totalorder %v12859_v10, %v6760_v14  ;;  %v6839_v35 = vadd.s32 %v6838_v42, %v6682_v11  ;;  %v6916_v12 = vadd.s32 %v6838_v42, %v6759_v41  ;;  %v9199_v11 = vld [vmem:[%s14992_s10 + $0x140] ss:$16 sps:$4 sm:$0xff]   ;;  %v9208_v6 = vld [vmem:[%s14992_s10 + $0x168] ss:$16 sps:$4 sm:$0xff]   ;;  %v9213_v41 = vld [vmem:[%s14992_s10 + $0x184] ss:$16 sps:$4 sm:$0xff]  }
 0x7b5   : > { %v6685_v54 = vsel %vm6684_vm8, 1.0, %v15692_v50  ;;  %v6762_v40 = vsel %vm6761_vm6, 1.0, %v15692_v50  ;;  %v9361_v42 = vmov 1966171168  }
 0x7b6   : > { %vm6840_vm14 = vcmp.eq.s32.totalorder %v12859_v10, %v6839_v35  ;;  %vm6917_vm12 = vcmp.eq.s32.totalorder %v12859_v10, %v6916_v12  ;;  %v9142_v10 = vld [vmem:[%s14992_s10 + $0x8] ss:$16 sps:$4 sm:$0xff]  }
 0x7b7   : > { %6331 = vrot.lane.b32.xlu1 %v6326_v37, %s9357_s18  ;;  %v6841_v43 = vsel %vm6840_vm14, 1.0, %v15692_v50  ;;  %v6918_v61 = vsel %vm6917_vm12, 1.0, %v15692_v50  ;;  %v9147_v37 = vld [vmem:[%s14992_s10 + $0x24] ss:$16 sps:$4 sm:$0xff]  }
 0x7b8   : > { %6329 = vrot.lane.b32.xlu0 %v6325_v28, %s9357_s18  ;;  %v9150_v28 = vld [vmem:[%s14992_s10 + $0x2c] ss:$16 sps:$4 sm:$0xff]   ;;  %s512_s18 = sand.u32 1, %s9331_s22  }
 0x7b9   : > { %s7993_s25 = scalar_lea.sflag [#allocation10], %s512_s18 }
 0x815   : > { %v6361_v55 = vpop.permute.xlu1 %6360 }
 0x816   : > { %6365 = vst.msk [vmem:[#allocation7 + $0x20] sm:$0xff] %vm6285_vm2, %v6361_v55  ;;  %v6359_v33 = vpop.permute.xlu0 %6358  ;;  %v9145_v55 = vld [vmem:[%s14992_s10 + $0x20] ss:$16 sps:$4 sm:$0xff]  }
 0x817   : > { %6364 = vst.msk [vmem:[#allocation7 + $0x8] sm:$0xff] %vm6285_vm2, %v6359_v33  ;;  %v9148_v33 = vld [vmem:[%s14992_s10 + $0x28] ss:$16 sps:$4 sm:$0xff]  }
 0x819   : > { %v6387_v63 = vpop.permute.xlu1 %6386 }
 0x81a   : > { %6391 = vst.msk [vmem:[#allocation7 + $0x20] sm:$0xff] %vm6310_vm0, %v6387_v63  ;;  %v6280_v27 = vpop.permute.xlu0 %6279  ;;  %v9153_v63 = vld [vmem:[%s14992_s10 + $0x44] ss:$16 sps:$4 sm:$0xff]  }
 0x81b   : > { %6286 = vst.msk [vmem:[#allocation7] sm:$0xff] %vm6285_vm2, %v6280_v27  ;;  %v9156_v27 = vld [vmem:[%s14992_s10 + $0x4c] ss:$16 sps:$4 sm:$0xff]  }
 0x81d   : > { %v6405_v46 = vpop.permute.xlu1 %6404 }
 0x81e   : > { %6409 = vst.msk [vmem:[#allocation7 + $0x20] sm:$0xff] %vm6335_vm4, %v6405_v46  ;;  %v6385_v47 = vpop.permute.xlu0 %6384  ;;  %v9151_v46 = vld [vmem:[%s14992_s10 + $0x40] ss:$16 sps:$4 sm:$0xff]  }
 0x81f   : > { %6390 = vst.msk [vmem:[#allocation7 + $0x8] sm:$0xff] %vm6310_vm0, %v6385_v47  ;;  %v9154_v47 = vld [vmem:[%s14992_s10 + $0x48] ss:$16 sps:$4 sm:$0xff]  }
 0x821   : > { %v6282_v9 = vpop.permute.xlu1 %6281 }
 0x822   : > { %6287 = vst.msk [vmem:[#allocation7 + $0x18] sm:$0xff] %vm6285_vm2, %v6282_v9  ;;  %v6305_v49 = vpop.permute.xlu0 %6304  ;;  %v9159_v9 = vld [vmem:[%s14992_s10 + $0x64] ss:$16 sps:$4 sm:$0xff]  }
 0x823   : > { %6311 = vst.msk [vmem:[#allocation7] sm:$0xff] %vm6310_vm0, %v6305_v49  ;;  %v9162_v49 = vld [vmem:[%s14992_s10 + $0x6c] ss:$16 sps:$4 sm:$0xff]  }
 0x825   : > { %v6307_v26 = vpop.permute.xlu1 %6306  ;;  %v6424_v30 = vld [vmem:[#allocation7 + $0x20] sm:$0xff] }
 0x826   : > { %6312 = vst.msk [vmem:[#allocation7 + $0x18] sm:$0xff] %vm6310_vm0, %v6307_v26  ;;  %v6403_v56 = vpop.permute.xlu0 %6402  ;;  %v9157_v26 = vld [vmem:[%s14992_s10 + $0x60] ss:$16 sps:$4 sm:$0xff]  }
 0x827   : > { %6408 = vst.msk [vmem:[#allocation7 + $0x8] sm:$0xff] %vm6335_vm4, %v6403_v56  ;;  %v9160_v56 = vld [vmem:[%s14992_s10 + $0x68] ss:$16 sps:$4 sm:$0xff]  }
 0x829   : > { %v6332_v0 = vpop.permute.xlu1 %6331 }
 0x82a   : > { %6337 = vst.msk [vmem:[#allocation7 + $0x18] sm:$0xff] %vm6335_vm4, %v6332_v0  ;;  %v6330_v39 = vpop.permute.xlu0 %6329  ;;  %v9165_v0 = vld [vmem:[%s14992_s10 + $0x84] ss:$16 sps:$4 sm:$0xff]  }
 0x82b   : > { %6336 = vst.msk [vmem:[#allocation7] sm:$0xff] %vm6335_vm4, %v6330_v39  ;;  %v9168_v39 = vld [vmem:[%s14992_s10 + $0x8c] ss:$16 sps:$4 sm:$0xff]  }
 0x82e   : > { %v6421_v32 = vld [vmem:[#allocation7 + $0x8] sm:$0xff] }
 0x82f   : > { %v6427_v17 = vpack.c.bf16 %v6424_v30, %v6421_v32  ;;  %v9163_v32 = vld [vmem:[%s14992_s10 + $0x80] ss:$16 sps:$4 sm:$0xff]   ;;  %v9166_v30 = vld [vmem:[%s14992_s10 + $0x88] ss:$16 sps:$4 sm:$0xff]  }
 0x831   : > { %6608 = vmatprep.mubr.bf16.mxu1 %v6427_v17  ;;  %v6423_v29 = vld [vmem:[#allocation7 + $0x18] sm:$0xff]  ;;  %v9171_v17 = vld [vmem:[%s14992_s10 + $0xa4] ss:$16 sps:$4 sm:$0xff]  }
 0x832   : > { %v6420_v20 = vld [vmem:[#allocation7] sm:$0xff] }
 0x833   : > { %v6426_v25 = vpack.c.bf16 %v6423_v29, %v6420_v20  ;;  %v9174_v29 = vld [vmem:[%s14992_s10 + $0xac] ss:$16 sps:$4 sm:$0xff]   ;;  %v9169_v20 = vld [vmem:[%s14992_s10 + $0xa0] ss:$16 sps:$4 sm:$0xff]  }
 0x835   : > { %6609 = vmatmul.mubr.bf16.vlgmr.msra.gmra.mrb[52].mxu1 %v6426_v25  ;;  %v9172_v25 = vld [vmem:[%s14992_s10 + $0xa8] ss:$16 sps:$4 sm:$0xff]  }
 0x836   : > { %7457 = vmatpush1.bf16.msra.mxu1 %v9139_v59 }
 0x837   : > { %7458 = vmatprep.subr.bf16.mxu1 %v9147_v37 }
 0x83a   : > { %7459 = vmatpush1.bf16.msra.mxu1 %v9145_v55  ;;  %v9225_v55 = vld [vmem:[%s14992_s10 + $0x1c4] ss:$16 sps:$4 sm:$0xff]  }
 0x83b   : > { %7460 = vmatprep.subr.bf16.mxu1 %v9153_v63  ;;  %v15943_v63 = vlaneseq }
 0x83d   : > { %vm14751_vm15 = vcmp.lt.s32.totalorder %v15943_v63, 64  ;;  %vm7024_vm5 = vcmp.ge.s32.totalorder %v15943_v63, 64  ;;  %vm7025_vm7 = vcmp.lt.s32.totalorder %v15943_v63, 128 }
 0x83e   : > { %7461 = vmatpush1.bf16.msra.mxu1 %v9151_v46  ;;  %v9228_v46 = vld [vmem:[%s14992_s10 + $0x1cc] ss:$16 sps:$4 sm:$0xff]   ;;  %vm7026_vm3 = vmand %vm7024_vm5, %vm7025_vm7 }
 0x83f   : > { %7462 = vmatprep.subr.bf16.mxu1 %v9159_v9 }
 0x842   : > { %7463 = vmatpush1.bf16.msra.mxu1 %v9157_v26  ;;  %v9226_v26 = vld [vmem:[%s14992_s10 + $0x1c8] ss:$16 sps:$4 sm:$0xff]  }
 0x843   : > { %7464 = vmatprep.subr.bf16.mxu1 %v9165_v0 }
 0x846   : > { %7465 = vmatpush1.bf16.msra.mxu1 %v9163_v32 }
 0x847   : > { %7466 = vmatprep.subr.bf16.mxu1 %v9171_v17  ;;  %v9229_v17 = vld [vmem:[%s14992_s10 + $0x1e0] ss:$16 sps:$4 sm:$0xff]  }
 0x84a   : > { %7467 = vmatpush1.bf16.msra.mxu1 %v9169_v20 }
 0x883   : > { %v6651_v45 = vpop.f32.mrb[72].mxu0 }
 0x884   : > { %v8796_v3 = vpop.f32.mrb[73].mxu0 }
 0x885   : > { %v6654_v51 = vpop.f32.mrb[74].mxu0  ;;  %v9180_v3 = vld [vmem:[%s14992_s10 + $0xcc] ss:$16 sps:$4 sm:$0xff]  }
 0x886   : > { %v8797_v38 = vpop.f32.mrb[75].mxu0 }
 0x887   : > { %v9178_v38 = vld [vmem:[%s14992_s10 + $0xc8] ss:$16 sps:$4 sm:$0xff]  }
 0x908   : > { %v8604_v2 = vpop.f32.mrb[52].mxu1 }
 0x909   : > { %v8605_v15 = vpop.f32.mrb[53].mxu1 }
 0x90a   : > { %v8606_v23 = vadd.f32 %v8605_v15, %v8604_v2  ;;  %v8607_v18 = vpop.f32.mrb[54].mxu1  ;;  %v9181_v2 = vld [vmem:[%s14992_s10 + $0xe0] ss:$16 sps:$4 sm:$0xff]   ;;  %v9184_v15 = vld [vmem:[%s14992_s10 + $0xe8] ss:$16 sps:$4 sm:$0xff]  }
 0x90b   : > { %v8608_v60 = vpop.f32.mrb[55].mxu1 }
 0x90c   : > { %v6652_v16 = vadd.f32 %v8606_v23, %v6651_v45  ;;  %v8609_v36 = vadd.f32 %v8608_v60, %v8607_v18  ;;  %v9177_v45 = vld [vmem:[%s14992_s10 + $0xc4] ss:$16 sps:$4 sm:$0xff]   ;;  %v9187_v23 = vld [vmem:[%s14992_s10 + $0x100] ss:$16 sps:$4 sm:$0xff]   ;;  %v9190_v18 = vld [vmem:[%s14992_s10 + $0x108] ss:$16 sps:$4 sm:$0xff]  }
 0x90d   : > { %7468 = vmatprep.subr.bf16.mxu1 %v9177_v45  ;;  %v9198_v60 = vld [vmem:[%s14992_s10 + $0x12c] ss:$16 sps:$4 sm:$0xff]  }
 0x90e   : > { %v6665_v5 = vmul.f32 %v8192_v13, %v6652_v16  ;;  %v6655_v52 = vadd.f32 %v8609_v36, %v6654_v51  ;;  %v9175_v51 = vld [vmem:[%s14992_s10 + $0xc0] ss:$16 sps:$4 sm:$0xff]   ;;  %v9196_v36 = vld [vmem:[%s14992_s10 + $0x128] ss:$16 sps:$4 sm:$0xff]  }
 0x90f   : > { %7469 = vmatpush1.bf16.msra.mxu1 %v9175_v51  ;;  %v9193_v16 = vld [vmem:[%s14992_s10 + $0x120] ss:$16 sps:$4 sm:$0xff]  }
 0x910   : > { %v6674_v53 = vadd.f32 %v8193_v4, %v6665_v5  ;;  %v6666_v24 = vmul.f32 %v8192_v13, %v6655_v52  ;;  %v9195_v13 = vld [vmem:[%s14992_s10 + $0x124] ss:$16 sps:$4 sm:$0xff]   ;;  %v9202_v5 = vld [vmem:[%s14992_s10 + $0x148] ss:$16 sps:$4 sm:$0xff]  }
 0x911   : > { %v9207_v52 = vld [vmem:[%s14992_s10 + $0x164] ss:$16 sps:$4 sm:$0xff]  }
 0x912   : > { %v6675_v58 = vadd.f32 %v8193_v4, %v6666_v24  ;;  %v6676_v19 = vmax.f32 %v6674_v53, 0.0  ;;  %v9201_v4 = vld [vmem:[%s14992_s10 + $0x144] ss:$16 sps:$4 sm:$0xff]   ;;  %v9210_v53 = vld [vmem:[%s14992_s10 + $0x16c] ss:$16 sps:$4 sm:$0xff]  }
 0x913   : > { %v9205_v24 = vld [vmem:[%s14992_s10 + $0x160] ss:$16 sps:$4 sm:$0xff]  }
 0x914   : > { %v6677_v31 = vmax.f32 %v6675_v58, 0.0  ;;  %v9211_v58 = vld [vmem:[%s14992_s10 + $0x180] ss:$16 sps:$4 sm:$0xff]  }
 0x915   : > { %v9236_v51 = vld [vmem:[%s14994_s12 + $0xc0] sm:$0xff]  }
 0x916   : > { %v9039_v62 = vpack.c.bf16 %v6677_v31, %v6676_v19  ;;  %v9214_v19 = vld [vmem:[%s14992_s10 + $0x188] ss:$16 sps:$4 sm:$0xff]  }
 0x918   : > { %9040 = vmatpush3.bf16.msra.mxu0 %v9039_v62 }
 0x919   : > { %9041 = vmatprep.subr.bf16.mxu0 %v9360_v48 }
 0x91b   : > { %8803 = vmatmul.mubr.msk.f32.vlgmr.msra.gmra.mrb[70].mxu0 %vm15939_vm13, %v6685_v54 }
 0x91c   : > { %9043 = vmatpush3.bf16.msra.mxu0 %v9039_v62  ;;  %8809 = vmatprep.mubr.msk.f32.mxu0 %vm15937_vm9, %v15692_v50 }
 0x91d   : > { %9044 = vmatprep.subr.bf16.mxu0 %v9360_v48 }
 0x91f   : > { %8810 = vmatmul.mubr.msk.f32.vlgmr.msra.gmra.mrb[76].mxu0 %vm15940_vm1, %v6762_v40 }
 0x920   : > { %9046 = vmatpush3.bf16.msra.mxu0 %v9039_v62  ;;  %8816 = vmatprep.mubr.msk.f32.mxu0 %vm15937_vm9, %v15692_v50 }
 0x921   : > { %9047 = vmatprep.subr.bf16.mxu0 %v9360_v48  ;;  %v9183_v48 = vld [vmem:[%s14992_s10 + $0xe4] ss:$16 sps:$4 sm:$0xff]  }
 0x922   : > { %7470 = vmatprep.subr.bf16.mxu1 %v9183_v48 }
 0x923   : > { %8817 = vmatmul.mubr.msk.f32.vlgmr.msra.gmra.mrb[78].mxu0 %vm15941_vm10, %v6841_v43  ;;  %7471 = vmatpush1.bf16.msra.mxu1 %v9181_v2  ;;  %v7044_v2 = vsub.s32 1, %v15896_v7 }
 0x924   : > { %9049 = vmatpush3.bf16.msra.mxu0 %v9039_v62  ;;  %8823 = vmatprep.mubr.msk.f32.mxu0 %vm15937_vm9, %v15692_v50  ;;  %v7000_v62 = vunpack.c.l.s4 %v9361_v42  ;;  %v9255_v42 = vld [vmem:[%s14994_s12 + $0x68] sm:$0xff]  }
 0x925   : > { %7497 = vmatprep.subr.bf16.mxu0 %v9144_v22  ;;  %7472 = vmatprep.subr.bf16.mxu1 %v9189_v57  ;;  %v9220_v22 = vld [vmem:[%s14992_s10 + $0x1a8] ss:$16 sps:$4 sm:$0xff]  }
 0x926   : > { %v7001_v12 = vunpack.c.0.s8 %v7000_v62  ;;  %v9256_v62 = vld [vmem:[%s14994_s12 + $0xe8] sm:$0xff]  }
 0x927   : > { %8824 = vmatmul.mubr.msk.f32.vlgmr.msra.gmra.mrb[80].mxu0 %vm15942_vm11, %v6918_v61  ;;  %7473 = vmatpush1.bf16.msra.mxu1 %v9187_v23 }
 0x928   : > { %7498 = vmatpush1.bf16.msra.mxu0 %v9142_v10  ;;  %7474 = vmatprep.subr.bf16.mxu1 %v9195_v13  ;;  %v9219_v10 = vld [vmem:[%s14992_s10 + $0x1a4] ss:$16 sps:$4 sm:$0xff]   ;;  %v7004_v37 = vsub.s32 %v7001_v12, %v15896_v7 }
 0x929   : > { %7499 = vmatprep.subr.bf16.mxu0 %v9150_v28  ;;  %v9222_v28 = vld [vmem:[%s14992_s10 + $0x1ac] ss:$16 sps:$4 sm:$0xff]   ;;  %v9237_v13 = vld [vmem:[%s14994_s12] sm:$0xff]   ;;  %v9260_v12 = vld [vmem:[%s14994_s12 + $0xf0] sm:$0xff]  }
 0x92b   : > { %7475 = vmatpush1.bf16.msra.mxu1 %v9193_v16  ;;  %v9239_v16 = vld [vmem:[%s14994_s12 + $0x48] sm:$0xff]  }
 0x92c   : > { %7500 = vmatpush1.bf16.msra.mxu0 %v9148_v33  ;;  %7476 = vmatprep.subr.bf16.mxu1 %v9201_v4  ;;  %v9241_v4 = vld [vmem:[%s14994_s12 + $0x8] sm:$0xff]  }
 0x92d   : > { %7501 = vmatprep.subr.bf16.mxu0 %v9156_v27 }
 0x92f   : > { %7477 = vmatpush1.bf16.msra.mxu1 %v9199_v11  ;;  %v9243_v11 = vld [vmem:[%s14994_s12 + $0x50] sm:$0xff]  }
 0x930   : > { %7502 = vmatpush1.bf16.msra.mxu0 %v9154_v47  ;;  %7478 = vmatprep.subr.bf16.mxu1 %v9207_v52  ;;  %v9245_v52 = vld [vmem:[%s14994_s12 + $0x10] sm:$0xff]  }
 0x931   : > { %7503 = vmatprep.subr.bf16.mxu0 %v9162_v49  ;;  %v9223_v49 = vld [vmem:[%s14992_s10 + $0x1c0] ss:$16 sps:$4 sm:$0xff]  }
 0x933   : > { %7479 = vmatpush1.bf16.msra.mxu1 %v9205_v24  ;;  %v9247_v24 = vld [vmem:[%s14994_s12 + $0x58] sm:$0xff]  }
 0x934   : > { %7504 = vmatpush1.bf16.msra.mxu0 %v9160_v56  ;;  %7480 = vmatprep.subr.bf16.mxu1 %v9213_v41  ;;  %v9231_v56 = vld [vmem:[%s14992_s10 + $0x1e4] ss:$16 sps:$4 sm:$0xff]   ;;  %v9249_v41 = vld [vmem:[%s14994_s12 + $0x18] sm:$0xff]  }
 0x935   : > { %7505 = vmatprep.subr.bf16.mxu0 %v9168_v39  ;;  %v9234_v39 = vld [vmem:[%s14992_s10 + $0x1ec] ss:$16 sps:$4 sm:$0xff]  }
 0x937   : > { %7481 = vmatpush1.bf16.msra.mxu1 %v9211_v58  ;;  %v9251_v58 = vld [vmem:[%s14994_s12 + $0x60] sm:$0xff]  }
 0x938   : > { %7506 = vmatpush1.bf16.msra.mxu0 %v9166_v30  ;;  %7482 = vmatprep.subr.bf16.mxu1 %v9219_v10  ;;  %v9265_v10 = vld [vmem:[%s14994_s12 + $0x38] sm:$0xff]  }
 0x939   : > { %7507 = vmatprep.subr.bf16.mxu0 %v9174_v29  ;;  %v9232_v29 = vld [vmem:[%s14992_s10 + $0x1e8] ss:$16 sps:$4 sm:$0xff]  }
 0x93b   : > { %7483 = vmatpush1.bf16.msra.mxu1 %v9217_v44  ;;  %v9264_v44 = vld [vmem:[%s14994_s12 + $0xf8] sm:$0xff]  }
 0x93c   : > { %7508 = vmatpush1.bf16.msra.mxu0 %v9172_v25  ;;  %7484 = vmatprep.subr.bf16.mxu1 %v9225_v55  ;;  %v7450_v55 = vsub.s32 3, %v15896_v7 }
 0x93d   : > { %7509 = vmatprep.subr.bf16.mxu0 %v9180_v3  ;;  %v9235_v3 = vld [vmem:[%s14994_s12 + $0x40] sm:$0xff]  }
 0x93f   : > { %7485 = vmatpush1.bf16.msra.mxu1 %v9223_v49 }
 0x940   : > { %7510 = vmatpush1.bf16.msra.mxu0 %v9178_v38  ;;  %7486 = vmatprep.subr.bf16.mxu1 %v9231_v56 }
 0x941   : > { %7511 = vmatprep.subr.bf16.mxu0 %v9186_v8  ;;  %v7040_v8 = vsub.s32 0, %v15896_v7 }
 0x943   : > { %7487 = vmatpush1.bf16.msra.mxu1 %v9229_v17 }
 0x944   : > { %7512 = vmatpush1.bf16.msra.mxu0 %v9184_v15  ;;  %8625 = vmatprep.subr.bf16.mxu1 %v9235_v3 }
 0x945   : > { %7513 = vmatprep.subr.bf16.mxu0 %v9192_v21 }
 0x948   : > { %7514 = vmatpush1.bf16.msra.mxu0 %v9190_v18 }
 0x949   : > { %7515 = vmatprep.subr.bf16.mxu0 %v9198_v60  ;;  %v9238_v60 = vld [vmem:[%s14994_s12 + $0x80] sm:$0xff]  }
 0x94c   : > { %7516 = vmatpush1.bf16.msra.mxu0 %v9196_v36  ;;  %v9240_v36 = vld [vmem:[%s14994_s12 + $0xc8] sm:$0xff]  }
 0x94d   : > { %7517 = vmatprep.subr.bf16.mxu0 %v9204_v34  ;;  %v9242_v34 = vld [vmem:[%s14994_s12 + $0x88] sm:$0xff]  }
 0x950   : > { %7518 = vmatpush1.bf16.msra.mxu0 %v9202_v5  ;;  %v9244_v5 = vld [vmem:[%s14994_s12 + $0xd0] sm:$0xff]  }
 0x951   : > { %7519 = vmatprep.subr.bf16.mxu0 %v9210_v53  ;;  %v9246_v53 = vld [vmem:[%s14994_s12 + $0x90] sm:$0xff]  }
 0x954   : > { %7520 = vmatpush1.bf16.msra.mxu0 %v9208_v6  ;;  %v9248_v6 = vld [vmem:[%s14994_s12 + $0xd8] sm:$0xff]  }
 0x955   : > { %7521 = vmatprep.subr.bf16.mxu0 %v9216_v1  ;;  %v9250_v1 = vld [vmem:[%s14994_s12 + $0x98] sm:$0xff]  }
 0x958   : > { %7522 = vmatpush1.bf16.msra.mxu0 %v9214_v19  ;;  %v9252_v19 = vld [vmem:[%s14994_s12 + $0xe0] sm:$0xff]  }
 0x959   : > { %7523 = vmatprep.subr.bf16.mxu0 %v9222_v28  ;;  %v7114_v28 = vld [vmem:[%s14993_s11] sm:$0xf] }
 0x95a   : > { %v7443_v27 = vrot.slane %v7114_v28, %v7044_v2 }
 0x95c   : > { %7524 = vmatpush1.bf16.msra.mxu0 %v9220_v22  ;;  %v9266_v22 = vld [vmem:[%s14994_s12 + $0xb8] sm:$0xff]  }
 0x95d   : > { %7525 = vmatprep.subr.bf16.mxu0 %v9228_v46  ;;  %v7451_v46 = vrot.slane %v7114_v28, %v7450_v55 }
 0x960   : > { %7526 = vmatpush1.bf16.msra.mxu0 %v9226_v26 }
 0x961   : > { %7527 = vmatprep.subr.bf16.mxu0 %v9234_v39 }
 0x964   : > { %7528 = vmatpush1.bf16.msra.mxu0 %v9232_v29 }
 0x965   : > { %8647 = vmatprep.subr.bf16.mxu0 %v9236_v51 }
 0x9ee   : > { %v6755_v31 = vpop.f32.mrb[70].mxu0 }
 0x9ef   : > { %v8804_v14 = vpop.f32.mrb[71].mxu0 }
 0x9f0   : > { %v9254_v14 = vld [vmem:[%s14994_s12 + $0xa0] sm:$0xff]  }
 0x9f2   : > { %v6832_v54 = vpop.f32.mrb[76].mxu0 }
 0x9f3   : > { %v6836_v35 = vmax.f32 %v6755_v31, %v6832_v54  ;;  %v8811_v40 = vpop.f32.mrb[77].mxu0  ;;  %v9253_v31 = vld [vmem:[%s14994_s12 + $0x20] sm:$0xff]   ;;  %v9257_v54 = vld [vmem:[%s14994_s12 + $0x28] sm:$0xff]  }
 0x9f4   : > { %v9259_v40 = vld [vmem:[%s14994_s12 + $0x70] sm:$0xff]  }
 0x9f6   : > { %v6911_v43 = vpop.f32.mrb[78].mxu0 }
 0x9f7   : > { %v6915_v61 = vmax.f32 %v6836_v35, %v6911_v43  ;;  %v8818_v59 = vpop.f32.mrb[79].mxu0  ;;  %v9258_v35 = vld [vmem:[%s14994_s12 + $0xa8] sm:$0xff]   ;;  %v9261_v43 = vld [vmem:[%s14994_s12 + $0x30] sm:$0xff]  }
 0x9f8   : > { %v9263_v59 = vld [vmem:[%s14994_s12 + $0x78] sm:$0xff]  }
 0x9fa   : > { %v6988_v33 = vpop.f32.mrb[80].mxu0 }
 0x9fb   : > { %v6992_v47 = vmax.f32 %v6915_v61, %v6988_v33  ;;  %v8825_v9 = vpop.f32.mrb[81].mxu0  ;;  %v9262_v61 = vld [vmem:[%s14994_s12 + $0xb0] sm:$0xff]   ;;  %v7439_v33 = vrot.slane %v7114_v28, %v7040_v8 }
 0x9fd   : > { %6997 = vst.msk [vmem:[#allocation8] sm:$0x1] %vm14751_vm15, %v6992_v47  ;;  %v7005_v0 = vrot.slane %v6992_v47, %v7004_v37 }
 0x9ff   : > { %v7006_v32 = vcombine.high %v7005_v0, %v7005_v0  ;;  %v7013_v30 = vrot.slane %v7005_v0, %v7004_v37 }
 0xa01   : > { %v7020_v20 = vrot.slane %v7006_v32, %v7004_v37  ;;  %v7028_v25 = vcombine.high %v7013_v30, %v7013_v30  ;;  %v7446_v37 = vsub.s32 2, %v15896_v7 }
 0xa03   : > { %7030 = vst.msk [vmem:[#allocation8 + $0x1] sm:$0x1] %vm14751_vm15, %v7028_v25  ;;  %7021 = vrot.lane.b32.xlu0 %v7020_v20, %s9355_s20  ;;  %v7031_v45 = vcombine.high %v7020_v20, %v7020_v20  ;;  %v7447_v63 = vrot.slane %v7114_v28, %v7446_v37 }
 0xa05   : > { %7032 = vrot.lane.b32.xlu1 %v7031_v45, %s9355_s20  ;;  %s513_s20 = scalar_lea.vmem [#allocation9], %s512_s18 }
 0xa06   : > { %s8005_s23 = sshll.u32 %s513_s20, 4  ;;  %s14942_s23 = int_to_ptr.vmem [resolvable:$true] %s8005_s23 }
 0xa07   : > { %s9277_s26 = scalar_lea.vmem %s14942_s23, 16  ;;  %p9284_p0 = scmp.lt.s32.totalorder %s14942_s23, %s9282_s19 }
 0xa08   : > { %p9278_p11 = scmp.ne.s32.totalorder %s14942_s23, %s9277_s26  ;;  %p9285_p1 = scmp.lt.s32.totalorder %s9283_s29, %s9277_s26 }
 0xa0a   : > { %p9279_p12 = pnand %p9278_p11, %p9486_p5  ;;  %p9286_p2 = por %p9285_p1, %p9284_p0 }
 0xa0c   : > { %p9280_p13 = pneg %p9279_p12 }
 0xa0e   : > { %p9287_p3 = pnand %p9286_p2, %p9280_p13 }
 0xa75   : > { %v7022_v38 = vpop.permute.xlu0 %7021 }
 0xa76   : > { %7027 = vst.msk [vmem:[#allocation8] sm:$0x1] %vm7026_vm3, %v7022_v38 }
 0xa77   : > { %v7033_v48 = vpop.permute.xlu1 %7032 }
 0xa78   : > { %7035 = vst.msk [vmem:[#allocation8 + $0x1] sm:$0x1] %vm7026_vm3, %v7033_v48  ;;  %v9267_v48 = vld [vmem:[%s14996_s14] sm:$0xff]  }
 0xa7f   : > { %v7036_v15 = vld [vmem:[#allocation8] sm:$0x3] }
 0xa80   : > { %v7041_v57 = vrot.slane %v7036_v15, %v7040_v8  ;;  %v7045_v21 = vrot.slane %v7036_v15, %v7044_v2  ;;  %v9268_v15 = vld [vmem:[%s14996_s14 + $0x8] sm:$0xff]  }
 0xa82   : > { %v7048_v23 = vpack.c.bf16 %v7041_v57, %v7041_v57  ;;  %v7049_v18 = vpack.c.bf16 %v7045_v21, %v7045_v21  ;;  %v9269_v57 = vld [vmem:[%s14996_s14 + $0x10] sm:$0xff]   ;;  %v9270_v21 = vld [vmem:[%s14996_s14 + $0x18] sm:$0xff]  }
 0xa84   : > { %7488 = vmatprep.mubr.bf16.mxu1 %v7049_v18  ;;  %7529 = vmatprep.mubr.bf16.mxu0 %v7049_v18  ;;  %v9272_v18 = vld [vmem:[%s14996_s14 + $0x28] sm:$0xff]  }
 0xa85   : > { %7489 = vmatmul.mubr.bf16.vlgmr.msra.gmra.mrb[56].mxu1 %v7048_v23  ;;  %7530 = vmatmul.mubr.bf16.vlgmr.msra.gmra.mrb[84].mxu0 %v7048_v23  ;;  %v9271_v23 = vld [vmem:[%s14996_s14 + $0x20] sm:$0xff]  }
 0xa86   : > { %8626 = vmatpush3.bf16.msra.mxu1 %v9237_v13  ;;  %8648 = vmatpush3.bf16.msra.mxu0 %v9238_v60  ;;  %v9273_v13 = vld [vmem:[%s14996_s14 + $0x30] sm:$0xff]   ;;  %v9274_v60 = vld [vmem:[%s14996_s14 + $0x38] sm:$0xff]  }
 0xa87   : > { %8627 = vmatprep.subr.bf16.mxu1 %v9239_v16  ;;  %8649 = vmatprep.subr.bf16.mxu0 %v9240_v36 }
 0xa8a   : > { %8628 = vmatpush3.bf16.msra.mxu1 %v9241_v4  ;;  %8650 = vmatpush3.bf16.msra.mxu0 %v9242_v34  ;;  %v7610_v4 = vld [vmem:[%s14995_s13] sm:$0x1] }
 0xa8b   : > { %8629 = vmatprep.subr.bf16.mxu1 %v9243_v11  ;;  %8651 = vmatprep.subr.bf16.mxu0 %v9244_v5 }
 0xa8e   : > { %8630 = vmatpush3.bf16.msra.mxu1 %v9245_v52  ;;  %8652 = vmatpush3.bf16.msra.mxu0 %v9246_v53 }
 0xa8f   : > { %8631 = vmatprep.subr.bf16.mxu1 %v9247_v24  ;;  %8653 = vmatprep.subr.bf16.mxu0 %v9248_v6 }
 0xa92   : > { %8632 = vmatpush3.bf16.msra.mxu1 %v9249_v41  ;;  %8654 = vmatpush3.bf16.msra.mxu0 %v9250_v1 }
 0xa93   : > { %8633 = vmatprep.subr.bf16.mxu1 %v9251_v58  ;;  %8655 = vmatprep.subr.bf16.mxu0 %v9252_v19 }
 0xa96   : > { %8634 = vmatpush3.bf16.msra.mxu1 %v9253_v31  ;;  %8656 = vmatpush3.bf16.msra.mxu0 %v9254_v14  ;;  %v7901_v31 = vld [vmem:[%s14997_s15] sm:$0x1] }
 0xa97   : > { %8635 = vmatprep.subr.bf16.mxu1 %v9255_v42  ;;  %8657 = vmatprep.subr.bf16.mxu0 %v9256_v62 }
 0xa9a   : > { %8636 = vmatpush3.bf16.msra.mxu1 %v9257_v54  ;;  %8658 = vmatpush3.bf16.msra.mxu0 %v9258_v35 }
 0xa9b   : > { %8637 = vmatprep.subr.bf16.mxu1 %v9259_v40  ;;  %8659 = vmatprep.subr.bf16.mxu0 %v9260_v12 }
 0xa9e   : > { %8638 = vmatpush3.bf16.msra.mxu1 %v9261_v43  ;;  %8660 = vmatpush3.bf16.msra.mxu0 %v9262_v61 }
 0xa9f   : > { %8639 = vmatprep.subr.bf16.mxu1 %v9263_v59  ;;  %8661 = vmatprep.subr.bf16.mxu0 %v9264_v44 }
 0xaa2   : > { %8640 = vmatpush3.bf16.msra.mxu1 %v9265_v10  ;;  %8662 = vmatpush3.bf16.msra.mxu0 %v9266_v22 }
 0xaa3   : > { %8826 = vmatprep.subr.bf16.mxu1 %v15692_v50 }
 0xb58   : > { %v7490_v47 = vpop.f32.mrb[56].mxu1  ;;  %v7531_v9 = vpop.f32.mrb[84].mxu0 }
 0xb59   : > { %v7491_v49 = vadd.f32 %v7490_v47, %v7439_v33  ;;  %v7532_v26 = vadd.f32 %v7531_v9, %v7447_v63  ;;  %v7492_v56 = vpop.f32.mrb[57].mxu1  ;;  %v7533_v0 = vpop.f32.mrb[85].mxu0 }
 0xb5a   : > { %v7493_v39 = vadd.f32 %v7492_v56, %v7443_v27  ;;  %v7534_v32 = vadd.f32 %v7533_v0, %v7451_v46  ;;  %v7494_v30 = vpop.f32.mrb[58].mxu1  ;;  %v7535_v17 = vpop.f32.mrb[86].mxu0 }
 0xb5b   : > { %v7538_v29 = vmax.f32 %v7491_v49, 0.0  ;;  %v7540_v20 = vmax.f32 %v7532_v26, 0.0  ;;  %v7495_v25 = vpop.f32.mrb[59].mxu1  ;;  %v7536_v45 = vpop.f32.mrb[87].mxu0 }
 0xb5c   : > { %v7539_v3 = vmax.f32 %v7493_v39, 0.0  ;;  %v7541_v51 = vmax.f32 %v7534_v32, 0.0 }
 0xb5d   : > { %v7542_v8 = vpack.c.bf16 %v7538_v29, %v7538_v29  ;;  %v7544_v2 = vpack.c.bf16 %v7540_v20, %v7540_v20 }
 0xb5e   : > { %v7543_v38 = vpack.c.bf16 %v7539_v3, %v7539_v3  ;;  %v7545_v7 = vpack.c.bf16 %v7541_v51, %v7541_v51 }
 0xb60   : > { %7835 = vmatprep.mubr.bf16.mxu1 %v7543_v38  ;;  %7875 = vmatprep.mubr.bf16.mxu0 %v7545_v7 }
 0xb61   : > { %7836 = vmatmul.mubr.bf16.vlgmr.msra.gmra.mrb[60].mxu1 %v7542_v8  ;;  %7876 = vmatmul.mubr.bf16.vlgmr.msra.gmra.mrb[88].mxu0 %v7544_v2 }
 0xb62   : > { %8827 = vmatpush3.bf16.msra.mxu1 %v9267_v48  ;;  %8842 = vmatprep.mubr.msk.bf16.mxu1 %vm15937_vm9, %v15692_v50  ;;  %vm7990_vm9 = vcmask 73728  }
 0xb63   : > { %8828 = vmatprep.subr.bf16.mxu1 %v15692_v50 }
 0xb66   : > { %8829 = vmatpush3.bf16.msra.mxu1 %v9268_v15 }
 0xb67   : > { %8830 = vmatprep.subr.bf16.mxu1 %v15692_v50 }
 0xb6a   : > { %8831 = vmatpush3.bf16.msra.mxu1 %v9269_v57 }
 0xb6b   : > { %8832 = vmatprep.subr.bf16.mxu1 %v15692_v50 }
 0xb6e   : > { %8833 = vmatpush3.bf16.msra.mxu1 %v9270_v21 }
 0xb6f   : > { %8834 = vmatprep.subr.bf16.mxu1 %v15692_v50 }
 0xb72   : > { %8835 = vmatpush3.bf16.msra.mxu1 %v9271_v23 }
 0xb73   : > { %8836 = vmatprep.subr.bf16.mxu1 %v15692_v50 }
 0xb76   : > { %8837 = vmatpush3.bf16.msra.mxu1 %v9272_v18 }
 0xb77   : > { %8838 = vmatprep.subr.bf16.mxu1 %v15692_v50 }
 0xb7a   : > { %8839 = vmatpush3.bf16.msra.mxu1 %v9273_v13 }
 0xb7b   : > { %8840 = vmatprep.subr.bf16.mxu1 %v15692_v50 }
 0xb7e   : > { %8841 = vmatpush3.bf16.msra.mxu1 %v9274_v60 }
 0xc34   : > { %v8641_v16 = vpop.f32.mrb[60].mxu1  ;;  %v8663_v36 = vpop.f32.mrb[88].mxu0 }
 0xc35   : > { %v8642_v34 = vpop.f32.mrb[61].mxu1  ;;  %v8664_v11 = vpop.f32.mrb[89].mxu0 }
 0xc36   : > { %v8643_v5 = vadd.f32 %v8642_v34, %v8641_v16  ;;  %v8665_v52 = vadd.f32 %v8664_v11, %v8663_v36  ;;  %v8644_v53 = vpop.f32.mrb[62].mxu1  ;;  %v8666_v24 = vpop.f32.mrb[90].mxu0 }
 0xc37   : > { %v8645_v50 = vpop.f32.mrb[63].mxu1  ;;  %v8667_v6 = vpop.f32.mrb[91].mxu0 }
 0xc38   : > { %v7838_v41 = vadd.f32 %v8643_v5, %v7610_v4 }
 0xc3a   : > { %v7878_v1 = vadd.f32 %v8665_v52, %v7838_v41 }
 0xc3c   : > { %v7883_v58 = vmax.f32 %v7878_v1, 0.0 }
 0xc3e   : > { %v7884_v19 = vpack.c.bf16 %v7883_v58, %v7883_v58 }
 0xc40   : > { %8843 = vmatmul.mubr.bf16.vlgmr.msra.gmra.mrb[64].mxu1 %v7884_v19 }
 0xd13   : > { %v7984_v14 = vpop.f32.mrb[64].mxu1 }
 0xd14   : > { %v7985_v42 = vadd.f32 %v7984_v14, %v7901_v31  ;;  %v8844_v62 = vpop.f32.mrb[65].mxu1 }
 0xd15   : > { %v7987_v54 = vpop.f32.mrb[66].mxu1 }
 0xd16   : > { %v8845_v35 = vpop.f32.mrb[67].mxu1  ;;  %7991 = vst.msk [vmem:[%s513_s20] sm:$0x1] %vm7990_vm9, %v7985_v42 }
 0xd17   : > { %9290 = shalt.err (!%p9287_p3)
}
 0xd18   : > { %s9291_s18 = scalar_lea.hbm %s14940_s30, 16  ;;  %s9295_s20 = scalar_lea.hbm %s14998_s16, 32 }
 0xd19   : > { %p9292_p4 = scmp.ne.s32.totalorder %s14940_s30, %s9291_s18  ;;  %p9296_p9 = scmp.lt.u32.totalorder %s14940_s30, %s14998_s16 }
 0xd1a   : > { %p9297_p10 = scmp.lt.u32.totalorder %s9295_s20, %s9291_s18  ;;  %p9299_p12 = scmp.lt.u32.totalorder %s9291_s18, %s14940_s30 }
 0xd1b   : > { %p9293_p7 = pnand %p9292_p4, %p9486_p5 }
 0xd1c   : > { %p9298_p11 = por %p9297_p10, %p9296_p9 }
 0xd1d   : > { %p9294_p8 = pneg %p9293_p7 }
 0xd1e   : > { %p9300_p13 = por %p9299_p12, %p9298_p11 }
 0xd20   : > { %p9301_p0 = pnand %p9300_p13, %p9294_p8 }
 0xd22   : > { %9304 = shalt.err (!%p9301_p0)
}
 0xd23   : > { %9050 = dma.vmem_to_hbm [thread:$0]  (%p9486_p5), %s14942_s23, 16, %s14940_s30, %s7993_s25  }
 0xd24 PF: > { %s15946_s26 = sld [smem:[#allocation12_spill]]  ;;  %p9056_p1 = scmp.ge.s32.totalorder %s9339_s24, 2 }
 0xd26   : > { %p9053_p2 = pnand %p9056_p1, %p9490_p6 }
 0xd2a   : > { %s8017_s19 = sand.u32 1, %s15946_s26  }
 0xd2b   : > { %s8018_s29 = scalar_lea.sflag [#allocation10], %s8017_s19 }
 0xd2c   : > { %9322 = dma.done.wait (!%p9053_p2), %s8018_s29, 16  }
 0xd2d   : > { %9324 = vsyncadd (!%p9053_p2), %s8018_s29, 4294967280  ;;  %s15948_s24 = sld [smem:[#allocation14_spill]]  ;;  %s15949_s18 = sld [smem:[#allocation13_spill]] }
 0xd2e   : > { %s15950_s23 = sld [smem:[#allocation15_spill]]  ;;  %s15951_s21 = smov %s9331_s22 }
 0xd33   : > { %p26_p3 = scmp.ge.s32.totalorder %s15948_s24, 4   ;;  %s15952_s22 = smov %s15949_s18 }
 0xd35   :  { %28 = sbr.rel (!%p26_p3) target bundleno = 6 (0x6), region = 119 }
 0xd3c   :  { %8022 = vsyncpa [#allocation10], 1 }
 0xd3d   :  { %8024 = vsyncpa [#allocation10 + $0x1], 1 }

</bundles_post_ra>
